<compile_context>
chip_gen: v7x
topology: tpu7x:2x2x1
jax: 0.10.0
libtpu: 0.0.40
codegen_flags: <defaults>
</compile_context>

<pallas_src>
import functools

import jax
import jax.numpy as jnp
from jax.experimental import pallas as pl
from jax.experimental.pallas import tpu as pltpu


LANE = 128  # TPU lane width; all buffer offsets/widths are multiples of this.


def _round_up(x, m):
    return (x + m - 1) // m * m


# --------------------------------------------------------------------------- #
# Kernel
# --------------------------------------------------------------------------- #
def densenet_kernel(num_layers, d_pad, h_pad, x_ref, *refs):
    """refs = (w_0, ..., w_{L-1}, w_out, o, buf).

    buf is the lane-aligned concat buffer:
        [ input(d_pad) | layer_0(h_pad) | ... | layer_{L-1}(h_pad) ]
    Lane `D` of the input segment holds 1.0 and row `D` of every packed weight
    holds that layer's bias, so each matmul also applies the bias (no VPU adds).
    """
    w_refs = refs[:num_layers]
    wout_ref = refs[num_layers]
    o_ref = refs[num_layers + 1]
    buf_ref = refs[num_layers + 2]

    # Seed slot 0 with the padded (input ++ ones ++ zeros) segment:
    # full, unmasked (8,128)-tile store.
    buf_ref[:, 0:d_pad] = x_ref[...]

    off = d_pad
    for i in range(num_layers):
        x_in = buf_ref[:, 0:off]                              # lane-aligned prefix
        y = jnp.dot(x_in, w_refs[i][...],
                    preferred_element_type=jnp.float32)
        # Weight pad columns are zero -> pad lanes of y are zero -> full,
        # unmasked 128-wide store of this layer's slot.
        buf_ref[:, off:off + h_pad] = y.astype(buf_ref.dtype)
        off += h_pad

    # out_fc: a single K = total_pad matmul straight into the output tile.
    o_ref[...] = jnp.dot(buf_ref[...], wout_ref[...],
                         preferred_element_type=jnp.float32).astype(o_ref.dtype)


# --------------------------------------------------------------------------- #
# One-time weight packing (outside the forward hot path)
# --------------------------------------------------------------------------- #
def _pack_weight(w, b, input_length, hidden, num_prev, d_pad, h_pad, out_cols,
                 dtype):
    """Re-lay concat-ordered rows onto the 128-lane-aligned buffer layout and
    fold the bias in as row `input_length` (matching the ones-lane of x)."""
    cols = w.shape[1]
    seg0 = jnp.concatenate([w[:input_length], b.reshape(1, cols)], axis=0)
    segs = [jnp.pad(seg0, ((0, d_pad - (input_length + 1)), (0, 0)))]
    for j in range(num_prev):
        seg = w[input_length + hidden * j: input_length + hidden * (j + 1)]
        segs.append(jnp.pad(seg, ((0, h_pad - hidden), (0, 0))))
    packed = jnp.concatenate(segs, axis=0)
    packed = jnp.pad(packed, ((0, 0), (0, out_cols - cols)))
    return packed.astype(dtype)


def prepare_params(fc1_w, fc1_b, out_w, out_b, *, input_length, hidden,
                   num_layers, compute_dtype=jnp.bfloat16):
    """Pad / re-lay / bias-fold / cast the weights ONCE and cache on device."""
    out_length = out_w.shape[1]
    d_pad = _round_up(input_length + 1, LANE)   # +1: ones-lane carries biases
    h_pad = _round_up(hidden, LANE)
    out_pad = _round_up(out_length, LANE)
    total_pad = d_pad + h_pad * num_layers

    w_packed = tuple(
        _pack_weight(w, b, input_length, hidden, i, d_pad, h_pad, h_pad,
                     compute_dtype)
        for i, (w, b) in enumerate(zip(fc1_w, fc1_b))
    )
    wout_packed = _pack_weight(out_w, out_b, input_length, hidden, num_layers,
                               d_pad, h_pad, out_pad, compute_dtype)
    w_packed = tuple(jax.device_put(w) for w in w_packed)
    wout_packed = jax.device_put(wout_packed)

    return dict(
        w=w_packed, w_out=wout_packed,
        d_pad=d_pad, h_pad=h_pad, out_pad=out_pad, total_pad=total_pad,
        input_length=input_length, out_length=out_length,
        hidden=hidden, num_layers=num_layers, compute_dtype=compute_dtype,
    )


# --------------------------------------------------------------------------- #
# Forward (hot path)
# --------------------------------------------------------------------------- #
def densenet_forward(x, params, *, batch_tile=128):
    B, D = x.shape
    assert D == params["input_length"]
    num_layers = params["num_layers"]
    d_pad, h_pad = params["d_pad"], params["h_pad"]
    out_pad, total_pad = params["out_pad"], params["total_pad"]
    out_length = params["out_length"]
    compute_dtype = params["compute_dtype"]
    w_list, wout = params["w"], params["w_out"]

    # 128-row batch tiles: at B>=256 the "parallel" grid has >=2 steps so both
    # v7x TensorCores are used; on v5e/v6e the extra step is ~0.35 us.
    bt = min(batch_tile, _round_up(B, 8))
    b_pad = _round_up(B, bt)

    # Per-call layout plumbing is only this tiny x pad: real input, a ones
    # column at lane D (carries the folded biases), zeros elsewhere.
    x_aug = jnp.concatenate([x.astype(compute_dtype),
                             jnp.ones((B, 1), compute_dtype)], axis=1)
    x_pad = jnp.pad(x_aug, ((0, b_pad - B), (0, d_pad - (D + 1))))

    kernel = functools.partial(densenet_kernel, num_layers, d_pad, h_pad)

    # Advisory cost estimate for XLA's scheduler.
    flops = 2 * b_pad * (
        sum((d_pad + i * h_pad) * h_pad for i in range(num_layers))
        + total_pad * out_pad)
    weight_bytes = (sum(w.size * w.dtype.itemsize for w in w_list)
                    + wout.size * wout.dtype.itemsize)
    bytes_accessed = (weight_bytes + x_pad.size * x_pad.dtype.itemsize
                      + b_pad * out_pad * 4)
    cost = pl.CostEstimate(flops=flops, transcendentals=0,
                           bytes_accessed=bytes_accessed)

    x_spec = pl.BlockSpec((bt, d_pad), lambda i: (i, 0))
    out_spec = pl.BlockSpec((bt, out_pad), lambda i: (i, 0))
    weight_shapes = [w.shape for w in w_list] + [wout.shape]

    def resident_specs(single_buffered):
        specs = []
        for shape in weight_shapes:
            if single_buffered:
                # Grid-invariant block: no point double-buffering it.
                specs.append(pl.BlockSpec(shape, lambda i: (0, 0),
                                          pipeline_mode=pl.Buffered(1)))
            else:
                specs.append(pl.BlockSpec(shape, lambda i: (0, 0)))
        return specs

    def run(weight_specs):
        return pl.pallas_call(
            kernel,
            out_shape=jax.ShapeDtypeStruct((b_pad, out_pad), jnp.float32),
            grid=(b_pad // bt,),
            in_specs=[x_spec] + weight_specs,
            out_specs=out_spec,
            scratch_shapes=[
                pltpu.VMEM((bt, total_pad), compute_dtype),  # concat buffer
            ],
            compiler_params=pltpu.CompilerParams(
                dimension_semantics=("parallel",),   # megacore-shard the batch
                vmem_limit_bytes=32 * 1024 * 1024,   # v7x-safe explicit budget
            ),
            cost_estimate=cost,
        )(x_pad, *w_list, wout)

    try:
        out_padded = run(resident_specs(single_buffered=True))
    except Exception:
        # Fallback for jax versions without BlockSpec(pipeline_mode=...).
        out_padded = run(resident_specs(single_buffered=False))

    # Lane-dense kernel output -> slice real rows/cols here (free plumbing).
    return out_padded[:B, :out_length]


# --------------------------------------------------------------------------- #
# Reference & init
# --------------------------------------------------------------------------- #
def init_params(key, input_length, out_length, hidden, num_layers):
    """PyTorch-style Linear init (U(-1/sqrt(fan_in), +1/sqrt(fan_in)))."""
    fc1_w, fc1_b = [], []
    for i in range(num_layers):
        d_in = input_length + hidden * i
        key, kw, kb = jax.random.split(key, 3)
        bound = 1.0 / float(jnp.sqrt(float(d_in)))
        # stored pre-transposed: [in_features, out_features]
        fc1_w.append(jax.random.uniform(kw, (d_in, hidden), jnp.float32, -bound, bound))
        fc1_b.append(jax.random.uniform(kb, (1, hidden), jnp.float32, -bound, bound))
    d_in = input_length + hidden * num_layers
    key, kw, kb = jax.random.split(key, 3)
    bound = 1.0 / float(jnp.sqrt(float(d_in)))
    out_w = jax.random.uniform(kw, (d_in, out_length), jnp.float32, -bound, bound)
    out_b = jax.random.uniform(kb, (1, out_length), jnp.float32, -bound, bound)
    return fc1_w, fc1_b, out_w, out_b


def densenet_reference(x, fc1_w, fc1_b, out_w, out_b):
    """Plain-JAX reference matching the PyTorch forward()."""
    x_list = [x]
    for w, b in zip(fc1_w, fc1_b):
        x_in = jnp.concatenate(x_list, axis=1)
        x_list.append(x_in @ w + b)
    return jnp.concatenate(x_list, axis=1) @ out_w + out_b


if __name__ == "__main__":
    B = 256            # batched so the MXU / batch grid actually does work
    INPUT_LENGTH = 16
    OUT_LENGTH = 8
    HIDDEN = 64
    NUM_LAYERS = 5

    key = jax.random.PRNGKey(0)
    key, kx = jax.random.split(key)
    x = jax.random.normal(kx, (B, INPUT_LENGTH), jnp.float32)

    fc1_w, fc1_b, out_w, out_b = init_params(
        key, INPUT_LENGTH, OUT_LENGTH, HIDDEN, NUM_LAYERS
    )

    ref = jax.block_until_ready(densenet_reference(x, fc1_w, fc1_b, out_w, out_b))

    # f32 path (tight check against the plain-JAX reference).
    params_f32 = prepare_params(fc1_w, fc1_b, out_w, out_b,
                                input_length=INPUT_LENGTH, hidden=HIDDEN,
                                num_layers=NUM_LAYERS, compute_dtype=jnp.float32)
    out_f32 = jax.block_until_ready(densenet_forward(x, params_f32))
    assert out_f32.shape == (B, OUT_LENGTH)
    assert jnp.allclose(out_f32, ref, atol=2e-4, rtol=2e-4), "f32 kernel mismatch"

    # Default bf16 weights/activations with f32 MXU accumulation. Looser
    # tolerance: activations genuinely live in bf16 between layers.
    params_bf16 = prepare_params(fc1_w, fc1_b, out_w, out_b,
                                 input_length=INPUT_LENGTH, hidden=HIDDEN,
                                 num_layers=NUM_LAYERS, compute_dtype=jnp.bfloat16)
    out_bf16 = jax.block_until_ready(densenet_forward(x, params_bf16))
    assert out_bf16.shape == (B, OUT_LENGTH)
    assert jnp.allclose(out_bf16, ref, atol=1e-1, rtol=1e-1), "bf16 kernel mismatch"

    print("KERNEL_OK")
</pallas_src>

<mosaic_0001>
module attributes {stable_mosaic.version = 11 : i64} {
  func.func @densenet_kernel(%arg0: i32, %arg1: memref<128x128xf32, #tpu.memory_space<vmem>>, %arg2: memref<128x128xf32, #tpu.memory_space<vmem>>, %arg3: memref<256x128xf32, #tpu.memory_space<vmem>>, %arg4: memref<384x128xf32, #tpu.memory_space<vmem>>, %arg5: memref<512x128xf32, #tpu.memory_space<vmem>>, %arg6: memref<640x128xf32, #tpu.memory_space<vmem>>, %arg7: memref<768x128xf32, #tpu.memory_space<vmem>>, %arg8: memref<128x128xf32, #tpu.memory_space<vmem>>, %arg9: memref<128x768xf32, #tpu.memory_space<vmem>>) attributes {dimension_semantics = [#tpu.dimension_semantics<parallel>], iteration_bounds = array<i64: 2>, scalar_prefetch = 0 : i64, scratch_operands = 1 : i64, tpu.core_type = #tpu.core_type<tc>, window_params = [{transform_indices = @transform_0, window_bounds = array<i64: 128, 128>}, {pipeline_mode = #tpu.pipeline_mode<synchronous>, transform_indices = @transform_1, window_bounds = array<i64: 128, 128>}, {pipeline_mode = #tpu.pipeline_mode<synchronous>, transform_indices = @transform_2, window_bounds = array<i64: 256, 128>}, {pipeline_mode = #tpu.pipeline_mode<synchronous>, transform_indices = @transform_3, window_bounds = array<i64: 384, 128>}, {pipeline_mode = #tpu.pipeline_mode<synchronous>, transform_indices = @transform_4, window_bounds = array<i64: 512, 128>}, {pipeline_mode = #tpu.pipeline_mode<synchronous>, transform_indices = @transform_5, window_bounds = array<i64: 640, 128>}, {pipeline_mode = #tpu.pipeline_mode<synchronous>, transform_indices = @transform_6, window_bounds = array<i64: 768, 128>}, {transform_indices = @transform_7, window_bounds = array<i64: 128, 128>}]} {
    %c0 = arith.constant 0 : index
    %c0_0 = arith.constant 0 : index
    %0 = vector.load %arg1[%c0, %c0_0] : memref<128x128xf32, #tpu.memory_space<vmem>>, vector<128x128xf32>
    %c0_1 = arith.constant 0 : index
    %c0_2 = arith.constant 0 : index
    %1 = vector.load %arg9[%c0_1, %c0_2] : memref<128x768xf32, #tpu.memory_space<vmem>>, vector<128x128xf32>
    tpu.vector_store %arg9[%c0_1, %c0_2], %0 {strides = array<i32>} : memref<128x768xf32, #tpu.memory_space<vmem>>, vector<128x128xf32>,
    %c0_3 = arith.constant 0 : index
    %c0_4 = arith.constant 0 : index
    %2 = vector.load %arg9[%c0_3, %c0_4] : memref<128x768xf32, #tpu.memory_space<vmem>>, vector<128x128xf32>
    %c0_5 = arith.constant 0 : index
    %c0_6 = arith.constant 0 : index
    %3 = vector.load %arg2[%c0_5, %c0_6] : memref<128x128xf32, #tpu.memory_space<vmem>>, vector<128x128xf32>
    %cst = arith.constant dense<0.000000e+00> : vector<128x128xf32>
    %4 = tpu.matmul %2, %3, %cst {dimension_numbers = #tpu.dot_dimension_numbers<[1], [0], [0], [1], [0, 0, 1, 1], [], []>} : vector<128x128xf32>, vector<128x128xf32>, vector<128x128xf32> -> vector<128x128xf32>
    %c0_7 = arith.constant 0 : index
    %c128 = arith.constant 128 : index
    %5 = vector.load %arg9[%c0_7, %c128] : memref<128x768xf32, #tpu.memory_space<vmem>>, vector<128x128xf32>
    tpu.vector_store %arg9[%c0_7, %c128], %4 {strides = array<i32>} : memref<128x768xf32, #tpu.memory_space<vmem>>, vector<128x128xf32>,
    %c0_8 = arith.constant 0 : index
    %c0_9 = arith.constant 0 : index
    %6 = vector.load %arg9[%c0_8, %c0_9] : memref<128x768xf32, #tpu.memory_space<vmem>>, vector<128x256xf32>
    %c0_10 = arith.constant 0 : index
    %c0_11 = arith.constant 0 : index
    %7 = vector.load %arg3[%c0_10, %c0_11] : memref<256x128xf32, #tpu.memory_space<vmem>>, vector<256x128xf32>
    %cst_12 = arith.constant dense<0.000000e+00> : vector<128x128xf32>
    %8 = tpu.matmul %6, %7, %cst_12 {dimension_numbers = #tpu.dot_dimension_numbers<[1], [0], [0], [1], [0, 0, 1, 1], [], []>} : vector<128x256xf32>, vector<256x128xf32>, vector<128x128xf32> -> vector<128x128xf32>
    %c0_13 = arith.constant 0 : index
    %c256 = arith.constant 256 : index
    %9 = vector.load %arg9[%c0_13, %c256] : memref<128x768xf32, #tpu.memory_space<vmem>>, vector<128x128xf32>
    tpu.vector_store %arg9[%c0_13, %c256], %8 {strides = array<i32>} : memref<128x768xf32, #tpu.memory_space<vmem>>, vector<128x128xf32>,
    %c0_14 = arith.constant 0 : index
    %c0_15 = arith.constant 0 : index
    %10 = vector.load %arg9[%c0_14, %c0_15] : memref<128x768xf32, #tpu.memory_space<vmem>>, vector<128x384xf32>
    %c0_16 = arith.constant 0 : index
    %c0_17 = arith.constant 0 : index
    %11 = vector.load %arg4[%c0_16, %c0_17] : memref<384x128xf32, #tpu.memory_space<vmem>>, vector<384x128xf32>
    %cst_18 = arith.constant dense<0.000000e+00> : vector<128x128xf32>
    %12 = tpu.matmul %10, %11, %cst_18 {dimension_numbers = #tpu.dot_dimension_numbers<[1], [0], [0], [1], [0, 0, 1, 1], [], []>} : vector<128x384xf32>, vector<384x128xf32>, vector<128x128xf32> -> vector<128x128xf32>
    %c0_19 = arith.constant 0 : index
    %c384 = arith.constant 384 : index
    %13 = vector.load %arg9[%c0_19, %c384] : memref<128x768xf32, #tpu.memory_space<vmem>>, vector<128x128xf32>
    tpu.vector_store %arg9[%c0_19, %c384], %12 {strides = array<i32>} : memref<128x768xf32, #tpu.memory_space<vmem>>, vector<128x128xf32>,
    %c0_20 = arith.constant 0 : index
    %c0_21 = arith.constant 0 : index
    %14 = vector.load %arg9[%c0_20, %c0_21] : memref<128x768xf32, #tpu.memory_space<vmem>>, vector<128x512xf32>
    %c0_22 = arith.constant 0 : index
    %c0_23 = arith.constant 0 : index
    %15 = vector.load %arg5[%c0_22, %c0_23] : memref<512x128xf32, #tpu.memory_space<vmem>>, vector<512x128xf32>
    %cst_24 = arith.constant dense<0.000000e+00> : vector<128x128xf32>
    %16 = tpu.matmul %14, %15, %cst_24 {dimension_numbers = #tpu.dot_dimension_numbers<[1], [0], [0], [1], [0, 0, 1, 1], [], []>} : vector<128x512xf32>, vector<512x128xf32>, vector<128x128xf32> -> vector<128x128xf32>
    %c0_25 = arith.constant 0 : index
    %c512 = arith.constant 512 : index
    %17 = vector.load %arg9[%c0_25, %c512] : memref<128x768xf32, #tpu.memory_space<vmem>>, vector<128x128xf32>
    tpu.vector_store %arg9[%c0_25, %c512], %16 {strides = array<i32>} : memref<128x768xf32, #tpu.memory_space<vmem>>, vector<128x128xf32>,
    %c0_26 = arith.constant 0 : index
    %c0_27 = arith.constant 0 : index
    %18 = vector.load %arg9[%c0_26, %c0_27] : memref<128x768xf32, #tpu.memory_space<vmem>>, vector<128x640xf32>
    %c0_28 = arith.constant 0 : index
    %c0_29 = arith.constant 0 : index
    %19 = vector.load %arg6[%c0_28, %c0_29] : memref<640x128xf32, #tpu.memory_space<vmem>>, vector<640x128xf32>
    %cst_30 = arith.constant dense<0.000000e+00> : vector<128x128xf32>
    %20 = tpu.matmul %18, %19, %cst_30 {dimension_numbers = #tpu.dot_dimension_numbers<[1], [0], [0], [1], [0, 0, 1, 1], [], []>} : vector<128x640xf32>, vector<640x128xf32>, vector<128x128xf32> -> vector<128x128xf32>
    %c0_31 = arith.constant 0 : index
    %c640 = arith.constant 640 : index
    %21 = vector.load %arg9[%c0_31, %c640] : memref<128x768xf32, #tpu.memory_space<vmem>>, vector<128x128xf32>
    tpu.vector_store %arg9[%c0_31, %c640], %20 {strides = array<i32>} : memref<128x768xf32, #tpu.memory_space<vmem>>, vector<128x128xf32>,
    %c0_32 = arith.constant 0 : index
    %c0_33 = arith.constant 0 : index
    %22 = vector.load %arg9[%c0_32, %c0_33] : memref<128x768xf32, #tpu.memory_space<vmem>>, vector<128x768xf32>
    %c0_34 = arith.constant 0 : index
    %c0_35 = arith.constant 0 : index
    %23 = vector.load %arg7[%c0_34, %c0_35] : memref<768x128xf32, #tpu.memory_space<vmem>>, vector<768x128xf32>
    %cst_36 = arith.constant dense<0.000000e+00> : vector<128x128xf32>
    %24 = tpu.matmul %22, %23, %cst_36 {dimension_numbers = #tpu.dot_dimension_numbers<[1], [0], [0], [1], [0, 0, 1, 1], [], []>} : vector<128x768xf32>, vector<768x128xf32>, vector<128x128xf32> -> vector<128x128xf32>
    %c0_37 = arith.constant 0 : index
    %c0_38 = arith.constant 0 : index
    %25 = vector.load %arg8[%c0_37, %c0_38] : memref<128x128xf32, #tpu.memory_space<vmem>>, vector<128x128xf32>
    tpu.vector_store %arg8[%c0_37, %c0_38], %24 {strides = array<i32>} : memref<128x128xf32, #tpu.memory_space<vmem>>, vector<128x128xf32>,
    return
  }
  func.func @transform_0(%arg0: i32) -> (i32, i32) {
    %c0_i32 = arith.constant 0 : i32
    %c0_i32_0 = arith.constant 0 : i32
    return %arg0, %c0_i32 : i32, i32
  }
  func.func @transform_1(%arg0: i32) -> (i32, i32) {
    %c0_i32 = arith.constant 0 : i32
    %c0_i32_0 = arith.constant 0 : i32
    %c0_i32_1 = arith.constant 0 : i32
    return %c0_i32, %c0_i32_0 : i32, i32
  }
  func.func @transform_2(%arg0: i32) -> (i32, i32) {
    %c0_i32 = arith.constant 0 : i32
    %c0_i32_0 = arith.constant 0 : i32
    %c0_i32_1 = arith.constant 0 : i32
    return %c0_i32, %c0_i32_0 : i32, i32
  }
  func.func @transform_3(%arg0: i32) -> (i32, i32) {
    %c0_i32 = arith.constant 0 : i32
    %c0_i32_0 = arith.constant 0 : i32
    %c0_i32_1 = arith.constant 0 : i32
    return %c0_i32, %c0_i32_0 : i32, i32
  }
  func.func @transform_4(%arg0: i32) -> (i32, i32) {
    %c0_i32 = arith.constant 0 : i32
    %c0_i32_0 = arith.constant 0 : i32
    %c0_i32_1 = arith.constant 0 : i32
    return %c0_i32, %c0_i32_0 : i32, i32
  }
  func.func @transform_5(%arg0: i32) -> (i32, i32) {
    %c0_i32 = arith.constant 0 : i32
    %c0_i32_0 = arith.constant 0 : i32
    %c0_i32_1 = arith.constant 0 : i32
    return %c0_i32, %c0_i32_0 : i32, i32
  }
  func.func @transform_6(%arg0: i32) -> (i32, i32) {
    %c0_i32 = arith.constant 0 : i32
    %c0_i32_0 = arith.constant 0 : i32
    %c0_i32_1 = arith.constant 0 : i32
    return %c0_i32, %c0_i32_0 : i32, i32
  }
  func.func @transform_7(%arg0: i32) -> (i32, i32) {
    %c0_i32 = arith.constant 0 : i32
    %c0_i32_0 = arith.constant 0 : i32
    return %arg0, %c0_i32 : i32, i32
  }
}

module attributes {stable_mosaic.version = 11 : i64} {
  func.func @densenet_kernel(%arg0: i32, %arg1: memref<128x128xf32, #tpu.memory_space<vmem>>, %arg2: memref<128x128xf32, #tpu.memory_space<vmem>>, %arg3: memref<256x128xf32, #tpu.memory_space<vmem>>, %arg4: memref<384x128xf32, #tpu.memory_space<vmem>>, %arg5: memref<512x128xf32, #tpu.memory_space<vmem>>, %arg6: memref<640x128xf32, #tpu.memory_space<vmem>>, %arg7: memref<768x128xf32, #tpu.memory_space<vmem>>, %arg8: memref<128x128xf32, #tpu.memory_space<vmem>>, %arg9: memref<128x768xf32, #tpu.memory_space<vmem>>) attributes {dimension_semantics = [#tpu.dimension_semantics<parallel>], iteration_bounds = array<i64: 2>, scalar_prefetch = 0 : i64, scratch_operands = 1 : i64, tpu.core_type = #tpu.core_type<tc>, window_params = [{transform_indices = @transform_0, window_bounds = array<i64: 128, 128>}, {pipeline_mode = #tpu.pipeline_mode<synchronous>, transform_indices = @transform_1, window_bounds = array<i64: 128, 128>}, {pipeline_mode = #tpu.pipeline_mode<synchronous>, transform_indices = @transform_2, window_bounds = array<i64: 256, 128>}, {pipeline_mode = #tpu.pipeline_mode<synchronous>, transform_indices = @transform_3, window_bounds = array<i64: 384, 128>}, {pipeline_mode = #tpu.pipeline_mode<synchronous>, transform_indices = @transform_4, window_bounds = array<i64: 512, 128>}, {pipeline_mode = #tpu.pipeline_mode<synchronous>, transform_indices = @transform_5, window_bounds = array<i64: 640, 128>}, {pipeline_mode = #tpu.pipeline_mode<synchronous>, transform_indices = @transform_6, window_bounds = array<i64: 768, 128>}, {transform_indices = @transform_7, window_bounds = array<i64: 128, 128>}]} {
    %c0 = arith.constant 0 : index
    %c0_0 = arith.constant 0 : index
    %0 = vector.load %arg1[%c0, %c0_0] : memref<128x128xf32, #tpu.memory_space<vmem>>, vector<128x128xf32>
    %c0_1 = arith.constant 0 : index
    %c0_2 = arith.constant 0 : index
    %1 = vector.load %arg9[%c0_1, %c0_2] : memref<128x768xf32, #tpu.memory_space<vmem>>, vector<128x128xf32>
    tpu.vector_store %arg9[%c0_1, %c0_2], %0 {strides = array<i32>} : memref<128x768xf32, #tpu.memory_space<vmem>>, vector<128x128xf32>,
    %c0_3 = arith.constant 0 : index
    %c0_4 = arith.constant 0 : index
    %2 = vector.load %arg9[%c0_3, %c0_4] : memref<128x768xf32, #tpu.memory_space<vmem>>, vector<128x128xf32>
    %c0_5 = arith.constant 0 : index
    %c0_6 = arith.constant 0 : index
    %3 = vector.load %arg2[%c0_5, %c0_6] : memref<128x128xf32, #tpu.memory_space<vmem>>, vector<128x128xf32>
    %cst = arith.constant dense<0.000000e+00> : vector<128x128xf32>
    %4 = tpu.matmul %2, %3, %cst {dimension_numbers = #tpu.dot_dimension_numbers<[1], [0], [0], [1], [0, 0, 1, 1], [], []>} : vector<128x128xf32>, vector<128x128xf32>, vector<128x128xf32> -> vector<128x128xf32>
    %c0_7 = arith.constant 0 : index
    %c128 = arith.constant 128 : index
    %5 = vector.load %arg9[%c0_7, %c128] : memref<128x768xf32, #tpu.memory_space<vmem>>, vector<128x128xf32>
    tpu.vector_store %arg9[%c0_7, %c128], %4 {strides = array<i32>} : memref<128x768xf32, #tpu.memory_space<vmem>>, vector<128x128xf32>,
    %c0_8 = arith.constant 0 : index
    %c0_9 = arith.constant 0 : index
    %6 = vector.load %arg9[%c0_8, %c0_9] : memref<128x768xf32, #tpu.memory_space<vmem>>, vector<128x256xf32>
    %c0_10 = arith.constant 0 : index
    %c0_11 = arith.constant 0 : index
    %7 = vector.load %arg3[%c0_10, %c0_11] : memref<256x128xf32, #tpu.memory_space<vmem>>, vector<256x128xf32>
    %cst_12 = arith.constant dense<0.000000e+00> : vector<128x128xf32>
    %8 = tpu.matmul %6, %7, %cst_12 {dimension_numbers = #tpu.dot_dimension_numbers<[1], [0], [0], [1], [0, 0, 1, 1], [], []>} : vector<128x256xf32>, vector<256x128xf32>, vector<128x128xf32> -> vector<128x128xf32>
    %c0_13 = arith.constant 0 : index
    %c256 = arith.constant 256 : index
    %9 = vector.load %arg9[%c0_13, %c256] : memref<128x768xf32, #tpu.memory_space<vmem>>, vector<128x128xf32>
    tpu.vector_store %arg9[%c0_13, %c256], %8 {strides = array<i32>} : memref<128x768xf32, #tpu.memory_space<vmem>>, vector<128x128xf32>,
    %c0_14 = arith.constant 0 : index
    %c0_15 = arith.constant 0 : index
    %10 = vector.load %arg9[%c0_14, %c0_15] : memref<128x768xf32, #tpu.memory_space<vmem>>, vector<128x384xf32>
    %c0_16 = arith.constant 0 : index
    %c0_17 = arith.constant 0 : index
    %11 = vector.load %arg4[%c0_16, %c0_17] : memref<384x128xf32, #tpu.memory_space<vmem>>, vector<384x128xf32>
    %cst_18 = arith.constant dense<0.000000e+00> : vector<128x128xf32>
    %12 = tpu.matmul %10, %11, %cst_18 {dimension_numbers = #tpu.dot_dimension_numbers<[1], [0], [0], [1], [0, 0, 1, 1], [], []>} : vector<128x384xf32>, vector<384x128xf32>, vector<128x128xf32> -> vector<128x128xf32>
    %c0_19 = arith.constant 0 : index
    %c384 = arith.constant 384 : index
    %13 = vector.load %arg9[%c0_19, %c384] : memref<128x768xf32, #tpu.memory_space<vmem>>, vector<128x128xf32>
    tpu.vector_store %arg9[%c0_19, %c384], %12 {strides = array<i32>} : memref<128x768xf32, #tpu.memory_space<vmem>>, vector<128x128xf32>,
    %c0_20 = arith.constant 0 : index
    %c0_21 = arith.constant 0 : index
    %14 = vector.load %arg9[%c0_20, %c0_21] : memref<128x768xf32, #tpu.memory_space<vmem>>, vector<128x512xf32>
    %c0_22 = arith.constant 0 : index
    %c0_23 = arith.constant 0 : index
    %15 = vector.load %arg5[%c0_22, %c0_23] : memref<512x128xf32, #tpu.memory_space<vmem>>, vector<512x128xf32>
    %cst_24 = arith.constant dense<0.000000e+00> : vector<128x128xf32>
    %16 = tpu.matmul %14, %15, %cst_24 {dimension_numbers = #tpu.dot_dimension_numbers<[1], [0], [0], [1], [0, 0, 1, 1], [], []>} : vector<128x512xf32>, vector<512x128xf32>, vector<128x128xf32> -> vector<128x128xf32>
    %c0_25 = arith.constant 0 : index
    %c512 = arith.constant 512 : index
    %17 = vector.load %arg9[%c0_25, %c512] : memref<128x768xf32, #tpu.memory_space<vmem>>, vector<128x128xf32>
    tpu.vector_store %arg9[%c0_25, %c512], %16 {strides = array<i32>} : memref<128x768xf32, #tpu.memory_space<vmem>>, vector<128x128xf32>,
    %c0_26 = arith.constant 0 : index
    %c0_27 = arith.constant 0 : index
    %18 = vector.load %arg9[%c0_26, %c0_27] : memref<128x768xf32, #tpu.memory_space<vmem>>, vector<128x640xf32>
    %c0_28 = arith.constant 0 : index
    %c0_29 = arith.constant 0 : index
    %19 = vector.load %arg6[%c0_28, %c0_29] : memref<640x128xf32, #tpu.memory_space<vmem>>, vector<640x128xf32>
    %cst_30 = arith.constant dense<0.000000e+00> : vector<128x128xf32>
    %20 = tpu.matmul %18, %19, %cst_30 {dimension_numbers = #tpu.dot_dimension_numbers<[1], [0], [0], [1], [0, 0, 1, 1], [], []>} : vector<128x640xf32>, vector<640x128xf32>, vector<128x128xf32> -> vector<128x128xf32>
    %c0_31 = arith.constant 0 : index
    %c640 = arith.constant 640 : index
    %21 = vector.load %arg9[%c0_31, %c640] : memref<128x768xf32, #tpu.memory_space<vmem>>, vector<128x128xf32>
    tpu.vector_store %arg9[%c0_31, %c640], %20 {strides = array<i32>} : memref<128x768xf32, #tpu.memory_space<vmem>>, vector<128x128xf32>,
    %c0_32 = arith.constant 0 : index
    %c0_33 = arith.constant 0 : index
    %22 = vector.load %arg9[%c0_32, %c0_33] : memref<128x768xf32, #tpu.memory_space<vmem>>, vector<128x768xf32>
    %c0_34 = arith.constant 0 : index
    %c0_35 = arith.constant 0 : index
    %23 = vector.load %arg7[%c0_34, %c0_35] : memref<768x128xf32, #tpu.memory_space<vmem>>, vector<768x128xf32>
    %cst_36 = arith.constant dense<0.000000e+00> : vector<128x128xf32>
    %24 = tpu.matmul %22, %23, %cst_36 {dimension_numbers = #tpu.dot_dimension_numbers<[1], [0], [0], [1], [0, 0, 1, 1], [], []>} : vector<128x768xf32>, vector<768x128xf32>, vector<128x128xf32> -> vector<128x128xf32>
    %c0_37 = arith.constant 0 : index
    %c0_38 = arith.constant 0 : index
    %25 = vector.load %arg8[%c0_37, %c0_38] : memref<128x128xf32, #tpu.memory_space<vmem>>, vector<128x128xf32>
    tpu.vector_store %arg8[%c0_37, %c0_38], %24 {strides = array<i32>} : memref<128x128xf32, #tpu.memory_space<vmem>>, vector<128x128xf32>,
    return
  }
  func.func @transform_0(%arg0: i32) -> (i32, i32) {
    %c0_i32 = arith.constant 0 : i32
    %c0_i32_0 = arith.constant 0 : i32
    return %arg0, %c0_i32 : i32, i32
  }
  func.func @transform_1(%arg0: i32) -> (i32, i32) {
    %c0_i32 = arith.constant 0 : i32
    %c0_i32_0 = arith.constant 0 : i32
    %c0_i32_1 = arith.constant 0 : i32
    return %c0_i32, %c0_i32_0 : i32, i32
  }
  func.func @transform_2(%arg0: i32) -> (i32, i32) {
    %c0_i32 = arith.constant 0 : i32
    %c0_i32_0 = arith.constant 0 : i32
    %c0_i32_1 = arith.constant 0 : i32
    return %c0_i32, %c0_i32_0 : i32, i32
  }
  func.func @transform_3(%arg0: i32) -> (i32, i32) {
    %c0_i32 = arith.constant 0 : i32
    %c0_i32_0 = arith.constant 0 : i32
    %c0_i32_1 = arith.constant 0 : i32
    return %c0_i32, %c0_i32_0 : i32, i32
  }
  func.func @transform_4(%arg0: i32) -> (i32, i32) {
    %c0_i32 = arith.constant 0 : i32
    %c0_i32_0 = arith.constant 0 : i32
    %c0_i32_1 = arith.constant 0 : i32
    return %c0_i32, %c0_i32_0 : i32, i32
  }
  func.func @transform_5(%arg0: i32) -> (i32, i32) {
    %c0_i32 = arith.constant 0 : i32
    %c0_i32_0 = arith.constant 0 : i32
    %c0_i32_1 = arith.constant 0 : i32
    return %c0_i32, %c0_i32_0 : i32, i32
  }
  func.func @transform_6(%arg0: i32) -> (i32, i32) {
    %c0_i32 = arith.constant 0 : i32
    %c0_i32_0 = arith.constant 0 : i32
    %c0_i32_1 = arith.constant 0 : i32
    return %c0_i32, %c0_i32_0 : i32, i32
  }
  func.func @transform_7(%arg0: i32) -> (i32, i32) {
    %c0_i32 = arith.constant 0 : i32
    %c0_i32_0 = arith.constant 0 : i32
    return %arg0, %c0_i32 : i32, i32
  }
}

</mosaic_0001>

<bundles_post_ra>
// kernel: tpu_custom_call.1
= control target key start
LH: loop header
LB: loop body
LE: loop exit
PB: predicated region body
PF: predicated region fallthrough
CT: control target
= control target key end

     0   :  { %12 = vsyncpa [#allocation4], 0  ;;  %s6150_s0 = inlined_call_operand.hbm [shape: f32[256,128], index: 0, kind: input, shape index: {}]   ;;  %s6151_s1 = inlined_call_operand.hbm [shape: f32[128,128], index: 1, kind: input, shape index: {}]   ;;  %s6152_s2 = inlined_call_operand.hbm [shape: f32[256,128], index: 2, kind: input, shape index: {}]   ;;  %s6153_s3 = inlined_call_operand.hbm [shape: f32[384,128], index: 3, kind: input, shape index: {}]   ;;  %s6154_s4 = inlined_call_operand.hbm [shape: f32[512,128], index: 4, kind: input, shape index: {}]   ;;  %s6155_s5 = inlined_call_operand.hbm [shape: f32[640,128], index: 5, kind: input, shape index: {}]   ;;  %s6156_s6 = inlined_call_operand.hbm [shape: f32[768,128], index: 6, kind: input, shape index: {}]   ;;  %s6157_s7 = inlined_call_operand.hbm [shape: f32[256,128], index: 7, kind: output, shape index: {}]  }
   0x1   :  { %14 = vsyncpa [#allocation4 + $0x1], 0 }
   0x2   :  { %15 = vsyncpa [#allocation7], 0 }
   0x3   :  { %16 = vsyncpa [#allocation10], 0 }
   0x4   :  { %17 = vsyncpa [#allocation13], 0 }
   0x5   :  { %18 = vsyncpa [#allocation5], 0 }
   0x6   :  { %20 = vsyncpa [#allocation5 + $0x1], 0  ;;  %s4939_s24 = smov 0   ;;  %s4941_s25 = smov 0  }
   0x7   :  { %s4943_s26 = smov 0   ;;  %s4945_s27 = smov 0  }
   0x8 LB: > { %s4887_s28 = smov [#allocation6]   ;;  %s4960_s30 = sadd.s32 4294967295, %s4885_s27   ;;  %s4885_s27 = sphi %s4945_s27, %s6289_s27   ;;  %s4881_s26 = sphi %s4943_s26, %s6288_s26   ;;  %s4877_s25 = sphi %s4941_s25, %s6287_s25   ;;  %s4873_s24 = sphi %s4939_s24, %s6286_s24  }
   0x9   : > { %s221_s29 = sshll.u32 %s4887_s28, 4  ;;  %p3071_p0 = scmp.ge.s32.totalorder %s4885_s27, 1  ;;  %s4965_s29 = int_to_ptr.vmem [resolvable:$true] %s221_s29 }
   0xa   : > { %p6158_p1 = scmp.eq.s32.totalorder %s4960_s30, 0  ;;  %p209_p2 = scmp.lt.s32.totalorder %s4885_s27, 3 }
   0xb   : > { %s4888_s9 = smov [#allocation9]   ;;  %s4889_s12 = smov [#allocation12]  }
   0xc   : > { %p4967_p3 = pnand %p3071_p0, %p209_p2  ;;  %s247_s10 = sshll.u32 %s4888_s9, 4  ;;  %s4980_s10 = int_to_ptr.vmem [resolvable:$true] %s247_s10 }
   0xd   : > { %s273_s13 = sshll.u32 %s4889_s12, 4  ;;  %s4609_s16 = scalar_lea.hbm %s6151_s1, 2048  ;;  %s4982_s13 = int_to_ptr.vmem [resolvable:$true] %s273_s13 }
   0xe   : > { %s6190_s8 = scalar_select %p4967_p3, 1, 0 }
   0xf   : > { %p4510_p5 = pneg %p4967_p3  ;;  %p4610_p7 = scmp.ne.s32.totalorder %s6151_s1, %s4609_s16 }
  0x10   : > { %p4616_p11 = scmp.lt.u32.totalorder %s4609_s16, %s6151_s1 }
  0x11   : > { %p4976_p6 = pnand %p4510_p5, %p6158_p1 }
  0x13   : > { %p4992_p8 = pneg %p4976_p6 }
  0x15   : > { %p4612_p9 = pnand %p4992_p8, %p4610_p7 }
  0x17   : > { %p4613_p10 = pneg %p4612_p9 }
  0x19   : > { %p4618_p12 = pnand %p4616_p11, %p4613_p10 }
  0x1b   : > { %4621 = shalt.err (!%p4618_p12)
}
  0x1c   : > { %s4622_s22 = scalar_lea.vmem %s4965_s29, 2048  ;;  %p4630_p5 = scmp.lt.s32.totalorder %s4965_s29, %s4965_s29 }
  0x1d   : > { %p4623_p13 = scmp.ne.s32.totalorder %s4965_s29, %s4622_s22  ;;  %p4631_p4 = scmp.lt.s32.totalorder %s4622_s22, %s4622_s22 }
  0x1f   : > { %p4625_p0 = pnand %p4623_p13, %p4992_p8  ;;  %p4632_p7 = por %p4631_p4, %p4630_p5 }
  0x21   : > { %p4626_p2 = pneg %p4625_p0 }
  0x23   : > { %p4633_p9 = pnand %p4632_p7, %p4626_p2 }
  0x25   : > { %4636 = shalt.err (!%p4633_p9)
}
  0x26   : > { %s6160_s23 = smov 128   ;;  %s4891_s28 = smov 8  }
  0x27   : > { %4513 = dma.hbm_to_vmem [thread:$0]  (!%p4976_p6), %s6151_s1, 2048, %s4965_s29, [#allocation7], %s6160_s23, %s6160_s23, %s4891_s28  }
  0x28   : > { %s4637_s16 = scalar_lea.hbm %s6153_s3, 6144 }
  0x29   : > { %p4638_p4 = scmp.ne.s32.totalorder %s6153_s3, %s4637_s16  ;;  %p4644_p12 = scmp.lt.u32.totalorder %s4637_s16, %s6153_s3 }
  0x2b   : > { %p4640_p10 = pnand %p4638_p4, %p4992_p8 }
  0x2d   : > { %p4641_p11 = pneg %p4640_p10 }
  0x2f   : > { %p4646_p13 = pnand %p4644_p12, %p4641_p11 }
  0x31   : > { %4649 = shalt.err (!%p4646_p13)
}
  0x32   : > { %s4650_s29 = scalar_lea.vmem %s4980_s10, 6144  ;;  %p4658_p7 = scmp.lt.s32.totalorder %s4980_s10, %s4980_s10 }
  0x33   : > { %p4651_p0 = scmp.ne.s32.totalorder %s4980_s10, %s4650_s29  ;;  %p4659_p9 = scmp.lt.s32.totalorder %s4650_s29, %s4650_s29 }
  0x35   : > { %p4653_p2 = pnand %p4651_p0, %p4992_p8  ;;  %p4660_p4 = por %p4659_p9, %p4658_p7 }
  0x37   : > { %p4654_p5 = pneg %p4653_p2 }
  0x39   : > { %p4661_p10 = pnand %p4660_p4, %p4654_p5 }
  0x3b   : > { %4664 = shalt.err (!%p4661_p10)
}
  0x3c   : > { %4519 = dma.hbm_to_vmem [thread:$0]  (!%p4976_p6), %s6153_s3, 6144, %s4980_s10, [#allocation10], %s6160_s23, %s6160_s23, %s4891_s28  }
  0x3d   : > { %s4665_s15 = scalar_lea.hbm %s6155_s5, 10240 }
  0x3e   : > { %p4666_p11 = scmp.ne.s32.totalorder %s6155_s5, %s4665_s15  ;;  %p4672_p0 = scmp.lt.u32.totalorder %s4665_s15, %s6155_s5 }
  0x40   : > { %p4668_p12 = pnand %p4666_p11, %p4992_p8 }
  0x42   : > { %p4669_p13 = pneg %p4668_p12 }
  0x44   : > { %p4674_p2 = pnand %p4672_p0, %p4669_p13 }
  0x46   : > { %4677 = shalt.err (!%p4674_p2)
}
  0x47   : > { %s4678_s10 = scalar_lea.vmem %s4982_s13, 10240  ;;  %p4686_p4 = scmp.lt.s32.totalorder %s4982_s13, %s4982_s13 }
  0x48   : > { %p4679_p5 = scmp.ne.s32.totalorder %s4982_s13, %s4678_s10  ;;  %p4687_p10 = scmp.lt.s32.totalorder %s4678_s10, %s4678_s10 }
  0x4a   : > { %p4681_p7 = pnand %p4679_p5, %p4992_p8  ;;  %p4688_p11 = por %p4687_p10, %p4686_p4 }
  0x4c   : > { %p4682_p9 = pneg %p4681_p7 }
  0x4e   : > { %p4689_p12 = pnand %p4688_p11, %p4682_p9 }
  0x50   : > { %4692 = shalt.err (!%p4689_p12)
}
  0x51   : > { %4525 = dma.hbm_to_vmem [thread:$0]  (!%p4976_p6), %s6155_s5, 10240, %s4982_s13, [#allocation13], %s6160_s23, %s6160_s23, %s4891_s28  }
  0x52   : > { %s4892_s22 = smov [#allocation8]   ;;  %s4893_s12 = smov [#allocation11]  }
  0x53   : > { %s234_s9 = sshll.u32 %s4892_s22, 4  ;;  %s260_s14 = sshll.u32 %s4893_s12, 4  ;;  %s235_s9 = int_to_ptr.vmem [resolvable:$true] %s234_s9  ;;  %s261_s14 = int_to_ptr.vmem [resolvable:$true] %s260_s14 }
  0x54   : > { %s4693_s17 = scalar_lea.hbm %s6152_s2, 4096 }
  0x55   : > { %p4694_p13 = scmp.ne.s32.totalorder %s6152_s2, %s4693_s17  ;;  %p4700_p5 = scmp.lt.u32.totalorder %s4693_s17, %s6152_s2 }
  0x57   : > { %p4696_p0 = pnand %p4694_p13, %p4992_p8 }
  0x59   : > { %p4697_p2 = pneg %p4696_p0 }
  0x5b   : > { %p4702_p7 = pnand %p4700_p5, %p4697_p2 }
  0x5d   : > { %4705 = shalt.err (!%p4702_p7)
}
  0x5e   : > { %s4706_s13 = scalar_lea.vmem %s235_s9, 4096  ;;  %p4714_p11 = scmp.lt.s32.totalorder %s235_s9, %s235_s9 }
  0x5f   : > { %p4707_p9 = scmp.ne.s32.totalorder %s235_s9, %s4706_s13  ;;  %p4715_p12 = scmp.lt.s32.totalorder %s4706_s13, %s4706_s13 }
  0x61   : > { %p4709_p4 = pnand %p4707_p9, %p4992_p8  ;;  %p4716_p1 = por %p4715_p12, %p4714_p11 }
  0x63   : > { %p4710_p10 = pneg %p4709_p4 }
  0x65   : > { %p4717_p3 = pnand %p4716_p1, %p4710_p10 }
  0x67   : > { %4720 = shalt.err (!%p4717_p3)
}
  0x68   : > { %4516 = dma.hbm_to_vmem [thread:$0]  (!%p4976_p6), %s6152_s2, 4096, %s235_s9, [#allocation7], %s6160_s23, %s6160_s23, %s4891_s28  }
  0x69   : > { %s4721_s16 = scalar_lea.hbm %s6154_s4, 8192 }
  0x6a   : > { %p4722_p1 = scmp.ne.s32.totalorder %s6154_s4, %s4721_s16  ;;  %p4728_p0 = scmp.lt.u32.totalorder %s4721_s16, %s6154_s4 }
  0x6c   : > { %p4724_p3 = pnand %p4722_p1, %p4992_p8 }
  0x6e   : > { %p4725_p13 = pneg %p4724_p3 }
  0x70   : > { %p4730_p2 = pnand %p4728_p0, %p4725_p13 }
  0x72   : > { %4733 = shalt.err (!%p4730_p2)
}
  0x73   : > { %s4734_s21 = scalar_lea.vmem %s261_s14, 8192  ;;  %p4742_p4 = scmp.lt.s32.totalorder %s261_s14, %s261_s14 }
  0x74   : > { %p4735_p5 = scmp.ne.s32.totalorder %s261_s14, %s4734_s21  ;;  %p4743_p10 = scmp.lt.s32.totalorder %s4734_s21, %s4734_s21 }
  0x76   : > { %p4737_p7 = pnand %p4735_p5, %p4992_p8  ;;  %p4744_p11 = por %p4743_p10, %p4742_p4 }
  0x78   : > { %p4738_p9 = pneg %p4737_p7 }
  0x7a   : > { %p4745_p12 = pnand %p4744_p11, %p4738_p9 }
  0x7c   : > { %4748 = shalt.err (!%p4745_p12)
}
  0x7d   : > { %4522 = dma.hbm_to_vmem [thread:$0]  (!%p4976_p6), %s6154_s4, 8192, %s261_s14, [#allocation10], %s6160_s23, %s6160_s23, %s4891_s28  }
  0x7e   : > { %s4894_s29 = smov [#allocation14]   ;;  %s4749_s16 = scalar_lea.hbm %s6156_s6, 12288 }
  0x7f   : > { %s286_s22 = sshll.u32 %s4894_s29, 4  ;;  %p4750_p1 = scmp.ne.s32.totalorder %s6156_s6, %s4749_s16  ;;  %s287_s22 = int_to_ptr.vmem [resolvable:$true] %s286_s22 }
  0x80   : > { %p4756_p0 = scmp.lt.u32.totalorder %s4749_s16, %s6156_s6 }
  0x81   : > { %p4752_p3 = pnand %p4750_p1, %p4992_p8 }
  0x83   : > { %p4753_p13 = pneg %p4752_p3 }
  0x85   : > { %p4758_p2 = pnand %p4756_p0, %p4753_p13 }
  0x87   : > { %4761 = shalt.err (!%p4758_p2)
}
  0x88   : > { %s4762_s14 = scalar_lea.vmem %s287_s22, 12288  ;;  %p4770_p4 = scmp.lt.s32.totalorder %s287_s22, %s287_s22 }
  0x89   : > { %p4763_p5 = scmp.ne.s32.totalorder %s287_s22, %s4762_s14  ;;  %p4771_p10 = scmp.lt.s32.totalorder %s4762_s14, %s4762_s14 }
  0x8b   : > { %p4765_p7 = pnand %p4763_p5, %p4992_p8  ;;  %p4772_p11 = por %p4771_p10, %p4770_p4 }
  0x8d   : > { %p4766_p9 = pneg %p4765_p7 }
  0x8f   : > { %p4773_p12 = pnand %p4772_p11, %p4766_p9 }
  0x91   : > { %4776 = shalt.err (!%p4773_p12)
}
  0x92   : > { %4528 = dma.hbm_to_vmem [thread:$0]  (!%p4976_p6), %s6156_s6, 12288, %s287_s22, [#allocation13], %s6160_s23, %s6160_s23, %s4891_s28  }
  0x93   : > { %s3070_s11 = sadd.s32 4294967294, %s4885_s27   ;;  %s5133_s19 = sadd.s32 1, %s4885_s27  }
  0x94   : > { %s30_s13 = ssub.s32 %s4885_s27, %s5133_s19  ;;  %s33_s29 = sadd.s32 1, %s4881_s26 }
  0x95   : > { %p31_p8 = scmp.eq.s32.totalorder %s30_s13, 0  ;;  %p40_p1 = scmp.ne.s32.totalorder %s4881_s26, %s4877_s25 }
  0x96   : > { %p41_p3 = scmp.eq.s32.totalorder %s4885_s27, 0  ;;  %p46_p13 = scmp.ne.s32.totalorder %s4877_s25, %s4873_s24 }
  0x97   : > { %s5144_s12 = scalar_select %p31_p8, %s4881_s26, %s33_s29  }
  0x98   : > { %p5146_p0 = por %p41_p3, %p40_p1  ;;  %p6194_p2 = scmp.eq.s32.totalorder %s4960_s30, 0 }
  0x99   : > { %p196_p5 = scmp.eq.s32.totalorder %s4960_s30, 1  ;;  %p202_p7 = scmp.eq.s32.totalorder %s3070_s11, 1 }
  0x9a   : > { %p5152_p6 = por %p6194_p2, %p46_p13  ;;  %p4543_p9 = scmp.lt.s32.totalorder %s4885_s27, 2 }
  0x9b   : > { %s300_s16 = sand.u32 1, %s4881_s26   ;;  %p5159_p4 = por %p196_p5, %p40_p1 }
  0x9c   : > { %p5163_p10 = por %p202_p7, %p46_p13  ;;  %s3079_s20 = sshll.u32 %s300_s16, 7 }
  0x9d   : > { %s6196_s17 = scalar_select %p5159_p4, 1, 0 }
  0x9e   : > { %s6197_s18 = scalar_select %p5163_p10, 1, 0 }
  0x9f   : > { %s3096_s10 = sshll.u32 %s4885_s27, 11  ;;  %s304_s11 = scalar_lea.vmem [#allocation3], %s3079_s20 }
  0xa0   : > { %s5171_s9 = scalar_lea.hbm %s6150_s0, %s3096_s10  ;;  %s311_s13 = sshll.u32 %s304_s11, 4  ;;  %s5173_s13 = int_to_ptr.vmem [resolvable:$true] %s311_s13 }
  0xa1   : > { %p5177_p11 = pnand %p4543_p9, %p5146_p0  ;;  %s5181_s23 = scalar_lea.sflag [#allocation4], %s300_s16 }
  0xa2   : > { %s4777_s14 = scalar_lea.hbm %s5171_s9, 2048  ;;  %s4782_s15 = scalar_lea.hbm %s6150_s0, 4096 }
  0xa3   : > { %p4778_p12 = scmp.ne.s32.totalorder %s5171_s9, %s4777_s14  ;;  %p4779_p8 = pneg %p5177_p11 }
  0xa4   : > { %p4783_p13 = scmp.lt.u32.totalorder %s5171_s9, %s6150_s0  ;;  %p4784_p0 = scmp.lt.u32.totalorder %s4782_s15, %s4777_s14 }
  0xa5   : > { %p4780_p1 = pnand %p4779_p8, %p4778_p12  ;;  %p4786_p5 = scmp.lt.u32.totalorder %s4777_s14, %s5171_s9 }
  0xa6   : > { %p4785_p2 = por %p4784_p0, %p4783_p13 }
  0xa7   : > { %p4781_p3 = pneg %p4780_p1 }
  0xa8   : > { %p4787_p7 = por %p4786_p5, %p4785_p2 }
  0xaa   : > { %p4788_p9 = pnand %p4787_p7, %p4781_p3 }
  0xac   : > { %4791 = shalt.err (!%p4788_p9)
}
  0xad   : > { %s4792_s16 = scalar_lea.vmem %s5173_s13, 2048  ;;  %s4895_s20 = smov [#allocation3]  }
  0xae   : > { %p4793_p12 = scmp.ne.s32.totalorder %s5173_s13, %s4792_s16  ;;  %s4797_s10 = sshll.u32 %s4895_s20, 4  ;;  %s4798_s10 = int_to_ptr.vmem [resolvable:$false] %s4797_s10 }
  0xaf   : > { %s4799_s21 = scalar_lea.vmem %s4798_s10, 4096  ;;  %p4800_p4 = scmp.lt.s32.totalorder %s5173_s13, %s4798_s10 }
  0xb0   : > { %p4795_p1 = pnand %p4793_p12, %p4779_p8  ;;  %p4801_p13 = scmp.lt.s32.totalorder %s4799_s21, %s4792_s16 }
  0xb2   : > { %p4796_p10 = pneg %p4795_p1  ;;  %p4802_p0 = por %p4801_p13, %p4800_p4 }
  0xb4   : > { %p4803_p2 = pnand %p4802_p0, %p4796_p10 }
  0xb6   : > { %4806 = shalt.err (!%p4803_p2)
}
  0xb7   : > { %s6199_s14 = smov 128   ;;  %p6200_p8 = scmp.ne.s32.totalorder %s6190_s8, 0 }
  0xb8   : > { %4532 = dma.hbm_to_vmem [thread:$0]  (!%p5177_p11), %s5171_s9, 2048, %s5173_s13, %s5181_s23, %s6199_s14, %s6199_s14, %s4891_s28  }
  0xb9   : > { %323 = sbr.rel (%p6200_p8) target bundleno = 1619 (0x653), region = 48 }
  0xc0   : > { %s5215_s15 = sand.u32 1, %s4877_s25  }
  0xc1   : > { %s3083_s11 = sshll.u32 %s5215_s15, 7  ;;  %s326_s16 = scalar_lea.sflag [#allocation4], %s5215_s15 }
  0xc2   : > { %s5221_s29 = scalar_lea.vmem [#allocation3], %s3083_s11 }
  0xc3   : > { %4852 = dma.done.wait (%p5152_p6), %s326_s16, 2048  }
  0xc4   : > { %4854 = vsyncadd (%p5152_p6), %s326_s16, 4294965248  ;;  %p6201_p4 = scmp.eq.s32.totalorder %s4960_s30, 0 }
  0xc6   : > { %4856 = dma.done.wait (%p6201_p4), [#allocation7], 6144   ;;  %p6202_p10 = pmov %p6201_p4 }
  0xc7   : > { %p6203_p11 = pmov %p6201_p4 }
  0xc8   : > { %4858 = vsyncadd (%p6202_p10), [#allocation7], 4294961152 }
  0xc9   : > { %4860 = dma.done.wait (%p6203_p11), [#allocation10], 14336   ;;  %p6204_p3 = pmov %p6201_p4 }
  0xcb   : > { %4862 = vsyncadd (%p6204_p3), [#allocation10], 4294952960  ;;  %p6205_p5 = pmov %p6204_p3 }
  0xcc   : > { %p6206_p7 = pmov %p6204_p3 }
  0xcd   : > { %4864 = dma.done.wait (%p6205_p5), [#allocation13], 22528  }
  0xce   : > { %4866 = vsyncadd (%p6206_p7), [#allocation13], 4294944768  ;;  %v434_v0 = vld [vmem:[#allocation6] sm:$0xff]  ;;  %v435_v1 = vld [vmem:[#allocation6 + $0x8] sm:$0xff]  ;;  %s6066_s8 = scalar_lea.vmem [#allocation15], %s3083_s11  ;;  %s3097_s23 = sshll.u32 %s4960_s30, 11 }
  0xcf   : > { %v436_v2 = vld [vmem:[#allocation6 + $0x10] sm:$0xff]  ;;  %v4082_v3 = vpack.c.bf16 %v435_v1, %v434_v0  ;;  %v437_v4 = vld [vmem:[#allocation6 + $0x18] sm:$0xff]  ;;  %v438_v6 = vld [vmem:[#allocation6 + $0x20] sm:$0xff]  ;;  %s2940_s28 = sshll.u32 %s6066_s8, 4  ;;  %s6102_s13 = scalar_lea.hbm %s6157_s7, %s3097_s23  ;;  %s6104_s28 = int_to_ptr.vmem [resolvable:$true] %s2940_s28 }
  0xd0   : > { %v4086_v5 = vpack.c.bf16 %v437_v4, %v436_v2  ;;  %v439_v7 = vld [vmem:[#allocation6 + $0x28] sm:$0xff]  ;;  %v5240_v9 = vld [vmem:[%s5221_s29] sm:$0xff]  ;;  %v440_v10 = vld [vmem:[#allocation6 + $0x30] sm:$0xff]  ;;  %s2927_s20 = scalar_lea.sflag [#allocation5], %s5215_s15  ;;  %s4807_s10 = scalar_lea.vmem %s6104_s28, 2048 }
  0xd1   : > { %4083 = vmatprep.subr.bf16.mxu0 %v4082_v3  ;;  %v4090_v8 = vpack.c.bf16 %v439_v7, %v438_v6  ;;  %v441_v11 = vld [vmem:[#allocation6 + $0x38] sm:$0xff]  ;;  %3946 = vmatprep.mubr.f32.mxu0 %v5240_v9  ;;  %v442_v13 = vld [vmem:[#allocation6 + $0x40] sm:$0xff]  ;;  %v443_v14 = vld [vmem:[#allocation6 + $0x48] sm:$0xff]  ;;  %p4808_p6 = scmp.ne.s32.totalorder %s6104_s28, %s4807_s10  ;;  %p6283_p9 = scmp.ne.s32.totalorder %s6196_s17, 0 }
  0xd2   : > { %4085 = vmatpush3.bf16.msra.mxu0 %v4082_v3  ;;  %v4094_v12 = vpack.c.bf16 %v441_v11, %v440_v10  ;;  %v659_v15 = vld [vmem:[#allocation8 + $0x80] sm:$0xff]  ;;  %v660_v16 = vld [vmem:[#allocation8 + $0x88] sm:$0xff]  ;;  %v4098_v20 = vpack.c.bf16 %v443_v14, %v442_v13  ;;  %v661_v22 = vld [vmem:[#allocation8 + $0x90] sm:$0xff]  ;;  %s4896_s30 = smov [#allocation15]  }
  0xd3   : > { %4087 = vmatprep.subr.bf16.mxu0 %v4086_v5  ;;  %v4114_v17 = vpack.c.bf16 %v660_v16, %v659_v15  ;;  %v643_v18 = vld [vmem:[#allocation8] sm:$0xff]  ;;  %v644_v19 = vld [vmem:[#allocation8 + $0x8] sm:$0xff]  ;;  %v662_v23 = vld [vmem:[#allocation8 + $0x98] sm:$0xff]  ;;  %p4809_p12 = pnand %p4808_p6, %p6283_p9  ;;  %s4811_s21 = sshll.u32 %s4896_s30, 4  ;;  %s4812_s21 = int_to_ptr.vmem [resolvable:$false] %s4811_s21 }
  0xd4   : > { %v4116_v21 = vpack.c.bf16 %v644_v19, %v643_v18  ;;  %v444_v24 = vld [vmem:[#allocation6 + $0x50] sm:$0xff]  ;;  %v445_v25 = vld [vmem:[#allocation6 + $0x58] sm:$0xff]  ;;  %v4118_v26 = vpack.c.bf16 %v662_v23, %v661_v22  ;;  %v663_v30 = vld [vmem:[#allocation8 + $0xa0] sm:$0xff]  ;;  %s4813_s14 = scalar_lea.vmem %s4812_s21, 4096  ;;  %p4814_p13 = scmp.lt.s32.totalorder %s6104_s28, %s4812_s21 }
  0xd5   : > { %4115 = vmatprep.subr.bf16.mxu1 %v4114_v17  ;;  %v645_v27 = vld [vmem:[#allocation8 + $0x10] sm:$0xff]  ;;  %v646_v28 = vld [vmem:[#allocation8 + $0x18] sm:$0xff]  ;;  %v664_v31 = vld [vmem:[#allocation8 + $0xa8] sm:$0xff]  ;;  %v4102_v32 = vpack.c.bf16 %v445_v25, %v444_v24  ;;  %p4810_p1 = pneg %p4809_p12  ;;  %p4815_p0 = scmp.lt.s32.totalorder %s4813_s14, %s4807_s10 }
  0xd6   : > { %4089 = vmatpush3.bf16.msra.mxu0 %v4086_v5  ;;  %4117 = vmatpush3.bf16.msra.mxu1 %v4116_v21  ;;  %v4120_v29 = vpack.c.bf16 %v646_v28, %v645_v27  ;;  %v4122_v33 = vpack.c.bf16 %v664_v31, %v663_v30  ;;  %v647_v34 = vld [vmem:[#allocation8 + $0x20] sm:$0xff]  ;;  %v648_v35 = vld [vmem:[#allocation8 + $0x28] sm:$0xff]  ;;  %v665_v38 = vld [vmem:[#allocation8 + $0xb0] sm:$0xff] }
  0xd7   : > { %4091 = vmatprep.subr.bf16.mxu0 %v4090_v8  ;;  %4119 = vmatprep.subr.bf16.mxu1 %v4118_v26  ;;  %v446_v36 = vld [vmem:[#allocation6 + $0x60] sm:$0xff]  ;;  %v447_v37 = vld [vmem:[#allocation6 + $0x68] sm:$0xff]  ;;  %v4124_v39 = vpack.c.bf16 %v648_v35, %v647_v34  ;;  %v666_v40 = vld [vmem:[#allocation8 + $0xb8] sm:$0xff]  ;;  %p4816_p2 = por %p4815_p0, %p4814_p13 }
  0xd8   : > { %v4126_v41 = vpack.c.bf16 %v666_v40, %v665_v38  ;;  %v649_v42 = vld [vmem:[#allocation8 + $0x30] sm:$0xff]  ;;  %v650_v43 = vld [vmem:[#allocation8 + $0x38] sm:$0xff]  ;;  %v4106_v44 = vpack.c.bf16 %v447_v37, %v446_v36  ;;  %v667_v45 = vld [vmem:[#allocation8 + $0xc0] sm:$0xff] }
  0xd9   : > { %v668_v46 = vld [vmem:[#allocation8 + $0xc8] sm:$0xff]  ;;  %v448_v47 = vld [vmem:[#allocation6 + $0x70] sm:$0xff]  ;;  %v449_v48 = vld [vmem:[#allocation6 + $0x78] sm:$0xff]  ;;  %v4128_v49 = vpack.c.bf16 %v650_v43, %v649_v42  ;;  %p4817_p8 = pnand %p4816_p2, %p4810_p1 }
  0xda   : > { %4093 = vmatpush3.bf16.msra.mxu0 %v4090_v8  ;;  %4121 = vmatpush3.bf16.msra.mxu1 %v4120_v29  ;;  %v4130_v50 = vpack.c.bf16 %v668_v46, %v667_v45  ;;  %v651_v51 = vld [vmem:[#allocation8 + $0x40] sm:$0xff]  ;;  %v652_v52 = vld [vmem:[#allocation8 + $0x48] sm:$0xff]  ;;  %v4110_v53 = vpack.c.bf16 %v449_v48, %v448_v47  ;;  %v669_v54 = vld [vmem:[#allocation8 + $0xd0] sm:$0xff] }
  0xdb   : > { %4095 = vmatprep.subr.bf16.mxu0 %v4094_v12  ;;  %4123 = vmatprep.subr.bf16.mxu1 %v4122_v33  ;;  %v670_v55 = vld [vmem:[#allocation8 + $0xd8] sm:$0xff]  ;;  %v900_v56 = vld [vmem:[#allocation9 + $0x80] sm:$0xff]  ;;  %v901_v57 = vld [vmem:[#allocation9 + $0x88] sm:$0xff]  ;;  %v4132_v58 = vpack.c.bf16 %v652_v52, %v651_v51 }
  0xdc   : > { %v4134_v59 = vpack.c.bf16 %v670_v55, %v669_v54  ;;  %v653_v60 = vld [vmem:[#allocation8 + $0x50] sm:$0xff]  ;;  %v654_v61 = vld [vmem:[#allocation8 + $0x58] sm:$0xff]  ;;  %v4146_v62 = vpack.c.bf16 %v901_v57, %v900_v56  ;;  %v884_v63 = vld [vmem:[#allocation9] sm:$0xff] }
  0xdd   : > { %v885_v0 = vld [vmem:[#allocation9 + $0x8] sm:$0xff]  ;;  %v902_v1 = vld [vmem:[#allocation9 + $0x90] sm:$0xff]  ;;  %v903_v2 = vld [vmem:[#allocation9 + $0x98] sm:$0xff]  ;;  %v4136_v6 = vpack.c.bf16 %v654_v61, %v653_v60 }
  0xde   : > { %4097 = vmatpush3.bf16.msra.mxu0 %v4094_v12  ;;  %4125 = vmatpush3.bf16.msra.mxu1 %v4124_v39  ;;  %v671_v3 = vld [vmem:[#allocation8 + $0xe0] sm:$0xff]  ;;  %v672_v4 = vld [vmem:[#allocation8 + $0xe8] sm:$0xff]  ;;  %v5247_v7 = vld [vmem:[%s5221_s29 + $0x10] sm:$0xff]  ;;  %v4148_v8 = vpack.c.bf16 %v885_v0, %v884_v63  ;;  %v4150_v12 = vpack.c.bf16 %v903_v2, %v902_v1 }
  0xdf   : > { %4099 = vmatprep.subr.bf16.mxu0 %v4098_v20  ;;  %4127 = vmatprep.subr.bf16.mxu1 %v4126_v41  ;;  %v5244_v5 = vld [vmem:[%s5221_s29 + $0x8] sm:$0xff]  ;;  %v655_v10 = vld [vmem:[#allocation8 + $0x60] sm:$0xff]  ;;  %v886_v13 = vld [vmem:[#allocation9 + $0x10] sm:$0xff]  ;;  %v4138_v16 = vpack.c.bf16 %v672_v4, %v671_v3 }
  0xe0   : > { %v656_v11 = vld [vmem:[#allocation8 + $0x68] sm:$0xff]  ;;  %v887_v14 = vld [vmem:[#allocation9 + $0x18] sm:$0xff]  ;;  %v904_v15 = vld [vmem:[#allocation9 + $0xa0] sm:$0xff] }
  0xe1   : > { %v905_v17 = vld [vmem:[#allocation9 + $0xa8] sm:$0xff]  ;;  %v673_v18 = vld [vmem:[#allocation8 + $0xf0] sm:$0xff]  ;;  %v674_v19 = vld [vmem:[#allocation8 + $0xf8] sm:$0xff]  ;;  %v4152_v22 = vpack.c.bf16 %v887_v14, %v886_v13 }
  0xe2   : > { %4101 = vmatpush3.bf16.msra.mxu0 %v4098_v20  ;;  %4129 = vmatpush3.bf16.msra.mxu1 %v4128_v49  ;;  %v4140_v20 = vpack.c.bf16 %v656_v11, %v655_v10  ;;  %v5252_v21 = vld [vmem:[%s5221_s29 + $0x18] sm:$0xff]  ;;  %v5255_v23 = vld [vmem:[%s5221_s29 + $0x20] sm:$0xff]  ;;  %v4154_v24 = vpack.c.bf16 %v905_v17, %v904_v15  ;;  %v889_v26 = vld [vmem:[#allocation9 + $0x28] sm:$0xff]  ;;  %v4142_v27 = vpack.c.bf16 %v674_v19, %v673_v18 }
  0xe3   : > { %4103 = vmatprep.subr.bf16.mxu0 %v4102_v32  ;;  %4131 = vmatprep.subr.bf16.mxu1 %v4130_v50  ;;  %v888_v25 = vld [vmem:[#allocation9 + $0x20] sm:$0xff]  ;;  %v906_v28 = vld [vmem:[#allocation9 + $0xb0] sm:$0xff]  ;;  %v907_v29 = vld [vmem:[#allocation9 + $0xb8] sm:$0xff] }
  0xe4   : > { %v5260_v30 = vld [vmem:[%s5221_s29 + $0x28] sm:$0xff]  ;;  %v4156_v31 = vpack.c.bf16 %v889_v26, %v888_v25  ;;  %v4158_v33 = vpack.c.bf16 %v907_v29, %v906_v28  ;;  %v890_v34 = vld [vmem:[#allocation9 + $0x30] sm:$0xff]  ;;  %v891_v35 = vld [vmem:[#allocation9 + $0x38] sm:$0xff] }
  0xe5   : > { %v908_v36 = vld [vmem:[#allocation9 + $0xc0] sm:$0xff]  ;;  %v909_v37 = vld [vmem:[#allocation9 + $0xc8] sm:$0xff]  ;;  %v5268_v38 = vld [vmem:[%s5221_s29 + $0x38] sm:$0xff]  ;;  %v4160_v39 = vpack.c.bf16 %v891_v35, %v890_v34 }
  0xe6   : > { %4105 = vmatpush3.bf16.msra.mxu0 %v4102_v32  ;;  %4133 = vmatpush3.bf16.msra.mxu1 %v4132_v58  ;;  %v5263_v32 = vld [vmem:[%s5221_s29 + $0x30] sm:$0xff]  ;;  %v5271_v40 = vld [vmem:[%s5221_s29 + $0x40] sm:$0xff]  ;;  %v4162_v41 = vpack.c.bf16 %v909_v37, %v908_v36  ;;  %v893_v43 = vld [vmem:[#allocation9 + $0x48] sm:$0xff] }
  0xe7   : > { %4107 = vmatprep.subr.bf16.mxu0 %v4106_v44  ;;  %4135 = vmatprep.subr.bf16.mxu1 %v4134_v59  ;;  %v892_v42 = vld [vmem:[#allocation9 + $0x40] sm:$0xff]  ;;  %v911_v45 = vld [vmem:[#allocation9 + $0xd8] sm:$0xff]  ;;  %v5276_v46 = vld [vmem:[%s5221_s29 + $0x48] sm:$0xff] }
  0xe8   : > { %v4164_v47 = vpack.c.bf16 %v893_v43, %v892_v42  ;;  %v5279_v48 = vld [vmem:[%s5221_s29 + $0x50] sm:$0xff]  ;;  %v895_v51 = vld [vmem:[#allocation9 + $0x58] sm:$0xff]  ;;  %v912_v52 = vld [vmem:[#allocation9 + $0xe0] sm:$0xff] }
  0xe9   : > { %v894_v50 = vld [vmem:[#allocation9 + $0x50] sm:$0xff]  ;;  %v5284_v54 = vld [vmem:[%s5221_s29 + $0x58] sm:$0xff]  ;;  %v5287_v56 = vld [vmem:[%s5221_s29 + $0x60] sm:$0xff] }
  0xea   : > { %4109 = vmatpush3.bf16.msra.mxu0 %v4106_v44  ;;  %4137 = vmatpush3.bf16.msra.mxu1 %v4136_v6  ;;  %v910_v44 = vld [vmem:[#allocation9 + $0xd0] sm:$0xff]  ;;  %v4168_v55 = vpack.c.bf16 %v895_v51, %v894_v50  ;;  %v896_v58 = vld [vmem:[#allocation9 + $0x60] sm:$0xff]  ;;  %v897_v59 = vld [vmem:[#allocation9 + $0x68] sm:$0xff] }
  0xeb   : > { %4111 = vmatprep.subr.bf16.mxu0 %v4110_v53  ;;  %4139 = vmatprep.subr.bf16.mxu1 %v4138_v16  ;;  %v4166_v49 = vpack.c.bf16 %v911_v45, %v910_v44  ;;  %v914_v60 = vld [vmem:[#allocation9 + $0xf0] sm:$0xff]  ;;  %v915_v61 = vld [vmem:[#allocation9 + $0xf8] sm:$0xff]  ;;  %v4172_v63 = vpack.c.bf16 %v897_v59, %v896_v58  ;;  %v1319_v13 = vld [vmem:[#allocation11 + $0x88] sm:$0xff] }
  0xec   : > { %v5295_v0 = vld [vmem:[%s5221_s29 + $0x70] sm:$0xff]  ;;  %v4174_v1 = vpack.c.bf16 %v915_v61, %v914_v60  ;;  %v5300_v2 = vld [vmem:[%s5221_s29 + $0x78] sm:$0xff]  ;;  %v1302_v15 = vld [vmem:[#allocation11] sm:$0xff] }
  0xed   : > { %v657_v3 = vld [vmem:[#allocation8 + $0x70] sm:$0xff]  ;;  %v658_v4 = vld [vmem:[#allocation8 + $0x78] sm:$0xff]  ;;  %v1303_v16 = vld [vmem:[#allocation11 + $0x8] sm:$0xff] }
  0xee   : > { %4113 = vmatpush3.bf16.msra.mxu0 %v4110_v53  ;;  %4141 = vmatpush3.bf16.msra.mxu1 %v4140_v20  ;;  %v913_v53 = vld [vmem:[#allocation9 + $0xe8] sm:$0xff]  ;;  %v898_v6 = vld [vmem:[#allocation9 + $0x70] sm:$0xff]  ;;  %v899_v10 = vld [vmem:[#allocation9 + $0x78] sm:$0xff] }
  0xef   : > { %4147 = vmatprep.subr.bf16.mxu0 %v4146_v62  ;;  %4143 = vmatprep.subr.bf16.mxu1 %v4142_v27  ;;  %v4170_v57 = vpack.c.bf16 %v913_v53, %v912_v52  ;;  %v5292_v62 = vld [vmem:[%s5221_s29 + $0x68] sm:$0xff]  ;;  %v4176_v11 = vpack.c.bf16 %v899_v10, %v898_v6  ;;  %v1320_v17 = vld [vmem:[#allocation11 + $0x90] sm:$0xff]  ;;  %v1321_v18 = vld [vmem:[#allocation11 + $0x98] sm:$0xff] }
  0xf0   : > { %v1304_v25 = vld [vmem:[#allocation11 + $0x10] sm:$0xff]  ;;  %v1305_v26 = vld [vmem:[#allocation11 + $0x18] sm:$0xff]  ;;  %v1322_v27 = vld [vmem:[#allocation11 + $0xa0] sm:$0xff] }
  0xf1   : > { %3947 = vmatmul.mubr.f32.vlgmr.msra.gmra.mrb[0].mxu0 %v5244_v5  ;;  %v1323_v28 = vld [vmem:[#allocation11 + $0xa8] sm:$0xff]  ;;  %v1306_v35 = vld [vmem:[#allocation11 + $0x20] sm:$0xff]  ;;  %v1324_v37 = vld [vmem:[#allocation11 + $0xb0] sm:$0xff] }
  0xf2   : > { %3949 = vmatprep.mubr.f32.mxu0 %v5247_v7  ;;  %4149 = vmatpush3.bf16.msra.mxu0 %v4148_v8  ;;  %v4144_v8 = vpack.c.bf16 %v658_v4, %v657_v3  ;;  %v4218_v34 = vpack.c.bf16 %v1323_v28, %v1322_v27  ;;  %v1307_v36 = vld [vmem:[#allocation11 + $0x28] sm:$0xff]  ;;  %v1308_v45 = vld [vmem:[#allocation11 + $0x30] sm:$0xff]  ;;  %v1329_v60 = vld [vmem:[#allocation11 + $0xd8] sm:$0xff] }
  0xf3   : > { %4151 = vmatprep.subr.bf16.mxu0 %v4150_v12  ;;  %v1318_v12 = vld [vmem:[#allocation11 + $0x80] sm:$0xff]  ;;  %v4220_v43 = vpack.c.bf16 %v1307_v36, %v1306_v35  ;;  %v1327_v50 = vld [vmem:[#allocation11 + $0xc8] sm:$0xff]  ;;  %v1328_v59 = vld [vmem:[#allocation11 + $0xd0] sm:$0xff] }
  0xf4   : > { %4145 = vmatpush3.bf16.msra.mxu1 %v4144_v8  ;;  %v4210_v14 = vpack.c.bf16 %v1319_v13, %v1318_v12  ;;  %v1311_v58 = vld [vmem:[#allocation11 + $0x48] sm:$0xff]  ;;  %v4230_v3 = vpack.c.bf16 %v1329_v60, %v1328_v59  ;;  %v1312_v4 = vld [vmem:[#allocation11 + $0x50] sm:$0xff]  ;;  %v1313_v6 = vld [vmem:[#allocation11 + $0x58] sm:$0xff] }
  0xf5   : > { %3950 = vmatmul.mubr.f32.gmra.mrb[2].mxu0 %v5252_v21  ;;  %v1330_v8 = vld [vmem:[#allocation11 + $0xe0] sm:$0xff]  ;;  %v1331_v10 = vld [vmem:[#allocation11 + $0xe8] sm:$0xff]  ;;  %v4232_v13 = vpack.c.bf16 %v1313_v6, %v1312_v4  ;;  %v1316_v27 = vld [vmem:[#allocation11 + $0x70] sm:$0xff] }
  0xf6   : > { %3952 = vmatprep.mubr.f32.mxu0 %v5255_v23  ;;  %4153 = vmatpush3.bf16.msra.mxu0 %v4152_v22  ;;  %v4212_v22 = vpack.c.bf16 %v1303_v16, %v1302_v15  ;;  %v1314_v15 = vld [vmem:[#allocation11 + $0x60] sm:$0xff]  ;;  %v1315_v16 = vld [vmem:[#allocation11 + $0x68] sm:$0xff]  ;;  %v1317_v28 = vld [vmem:[#allocation11 + $0x78] sm:$0xff] }
  0xf7   : > { %4155 = vmatprep.subr.bf16.mxu0 %v4154_v24  ;;  %v4214_v24 = vpack.c.bf16 %v1321_v18, %v1320_v17  ;;  %v1332_v17 = vld [vmem:[#allocation11 + $0xf0] sm:$0xff]  ;;  %v1333_v18 = vld [vmem:[#allocation11 + $0xf8] sm:$0xff]  ;;  %v916_v36 = vld [vmem:[#allocation9 + $0x100] sm:$0xff] }
  0xf8   : > { %v923_v59 = vld [vmem:[#allocation9 + $0x138] sm:$0xff]  ;;  %v926_v4 = vld [vmem:[#allocation9 + $0x150] sm:$0xff]  ;;  %v1752_v6 = vld [vmem:[#allocation12] sm:$0xff] }
  0xf9   : > { %3953 = vmatmul.mubr.f32.gmra.mrb[4].mxu0 %v5260_v30 }
  0xfa   : > { %3955 = vmatprep.mubr.f32.mxu0 %v5263_v32  ;;  %4157 = vmatpush3.bf16.msra.mxu0 %v4156_v31 }
  0xfb   : > { %4159 = vmatprep.subr.bf16.mxu0 %v4158_v33  ;;  %v4216_v33 = vpack.c.bf16 %v1305_v26, %v1304_v25  ;;  %v4236_v25 = vpack.c.bf16 %v1315_v16, %v1314_v15  ;;  %v4238_v26 = vpack.c.bf16 %v1333_v18, %v1332_v17  ;;  %v1771_v15 = vld [vmem:[#allocation12 + $0x98] sm:$0xff]  ;;  %v928_v17 = vld [vmem:[#allocation9 + $0x160] sm:$0xff]  ;;  %v929_v18 = vld [vmem:[#allocation9 + $0x168] sm:$0xff] }
  0xfd   : > { %3956 = vmatmul.mubr.f32.gmra.mrb[6].mxu0 %v5268_v38 }
  0xfe   : > { %3958 = vmatprep.mubr.f32.mxu0 %v5271_v40  ;;  %4161 = vmatpush3.bf16.msra.mxu0 %v4160_v39  ;;  %v1325_v39 = vld [vmem:[#allocation11 + $0xb8] sm:$0xff] }
  0xff   : > { %4163 = vmatprep.subr.bf16.mxu0 %v4162_v41  ;;  %v4222_v44 = vpack.c.bf16 %v1325_v39, %v1324_v37  ;;  %v917_v37 = vld [vmem:[#allocation9 + $0x108] sm:$0xff] }
 0x101   : > { %3959 = vmatmul.mubr.f32.gmra.mrb[8].mxu0 %v5276_v46 }
 0x102   : > { %3961 = vmatprep.mubr.f32.mxu0 %v5279_v48  ;;  %4165 = vmatpush3.bf16.msra.mxu0 %v4164_v47  ;;  %v1309_v47 = vld [vmem:[#allocation11 + $0x38] sm:$0xff] }
 0x103   : > { %4167 = vmatprep.subr.bf16.mxu0 %v4166_v49  ;;  %v1326_v49 = vld [vmem:[#allocation11 + $0xc0] sm:$0xff]  ;;  %v4224_v53 = vpack.c.bf16 %v1309_v47, %v1308_v45  ;;  %v918_v47 = vld [vmem:[#allocation9 + $0x110] sm:$0xff] }
 0x105   : > { %3962 = vmatmul.mubr.f32.gmra.mrb[10].mxu0 %v5284_v54 }
 0x106   : > { %3964 = vmatprep.mubr.f32.mxu0 %v5287_v56  ;;  %4169 = vmatpush3.bf16.msra.mxu0 %v4168_v55  ;;  %v4226_v55 = vpack.c.bf16 %v1327_v50, %v1326_v49  ;;  %v919_v49 = vld [vmem:[#allocation9 + $0x118] sm:$0xff] }
 0x107   : > { %4171 = vmatprep.subr.bf16.mxu0 %v4170_v57  ;;  %v1310_v57 = vld [vmem:[#allocation11 + $0x40] sm:$0xff]  ;;  %v4182_v50 = vpack.c.bf16 %v919_v49, %v918_v47  ;;  %v1757_v49 = vld [vmem:[#allocation12 + $0x28] sm:$0xff] }
 0x108   : > { %v1756_v47 = vld [vmem:[#allocation12 + $0x20] sm:$0xff] }
 0x109   : > { %3965 = vmatmul.mubr.f32.gmra.mrb[12].mxu0 %v5292_v62 }
 0x10a   : > { %3967 = vmatprep.mubr.f32.mxu0 %v5295_v0  ;;  %4173 = vmatpush3.bf16.msra.mxu0 %v4172_v63 }
 0x10b   : > { %4175 = vmatprep.subr.bf16.mxu0 %v4174_v1  ;;  %v4228_v1 = vpack.c.bf16 %v1311_v58, %v1310_v57  ;;  %v922_v58 = vld [vmem:[#allocation9 + $0x130] sm:$0xff] }
 0x10c   : > { %v4190_v60 = vpack.c.bf16 %v923_v59, %v922_v58  ;;  %v1758_v59 = vld [vmem:[#allocation12 + $0x30] sm:$0xff] }
 0x10d   : > { %3968 = vmatmul.mubr.f32.gmra.mrb[14].mxu0 %v5300_v2 }
 0x10e   : > { %4177 = vmatpush3.bf16.msra.mxu0 %v4176_v11 }
 0x10f   : > { %4211 = vmatprep.subr.bf16.mxu0 %v4210_v14  ;;  %v4234_v14 = vpack.c.bf16 %v1331_v10, %v1330_v8  ;;  %v1753_v8 = vld [vmem:[#allocation12 + $0x8] sm:$0xff] }
 0x1c4   : > { %v5303_v19 = vpop.f32.mrb[0].mxu0 }
 0x1c5   : > { %v5305_v20 = vpop.f32.mrb[1].mxu0 }
 0x1c6   : > { %739 = vmatprep.mubr.f32.mxu1 %v5305_v20  ;;  %996 = vmatprep.mubr.f32.mxu0 %v5305_v20 }
 0x1c7   : > { %740 = vmatmul.mubr.f32.vlgmr.msra.gmra.mrb[0].mxu1 %v5240_v9  ;;  %997 = vmatmul.mubr.f32.vlgmr.msra.gmra.mrb[16].mxu0 %v5240_v9 }
 0x1c8   : > { %744 = vmatprep.mubr.f32.mxu1 %v5303_v19  ;;  %1001 = vmatprep.mubr.f32.mxu0 %v5303_v19  ;;  %v5313_v29 = vpop.f32.mrb[2].mxu0 }
 0x1c9   : > { %v5315_v31 = vpop.f32.mrb[3].mxu0  ;;  %4213 = vmatpush3.bf16.msra.mxu0 %v4212_v22 }
 0x1ca   : > { %4215 = vmatprep.subr.bf16.mxu0 %v4214_v24 }
 0x1cb   : > { %745 = vmatmul.mubr.f32.gmra.mrb[2].mxu1 %v5244_v5  ;;  %1002 = vmatmul.mubr.f32.gmra.mrb[18].mxu0 %v5244_v5 }
 0x1cc   : > { %749 = vmatprep.mubr.f32.mxu1 %v5315_v31  ;;  %1006 = vmatprep.mubr.f32.mxu0 %v5315_v31  ;;  %v5321_v41 = vpop.f32.mrb[4].mxu0 }
 0x1cd   : > { %v5323_v42 = vpop.f32.mrb[5].mxu0  ;;  %4217 = vmatpush3.bf16.msra.mxu0 %v4216_v33  ;;  %v1768_v33 = vld [vmem:[#allocation12 + $0x80] sm:$0xff] }
 0x1ce   : > { %4219 = vmatprep.subr.bf16.mxu0 %v4218_v34  ;;  %v1769_v34 = vld [vmem:[#allocation12 + $0x88] sm:$0xff] }
 0x1cf   : > { %750 = vmatmul.mubr.f32.gmra.mrb[4].mxu1 %v5247_v7  ;;  %1007 = vmatmul.mubr.f32.gmra.mrb[20].mxu0 %v5247_v7  ;;  %v4274_v45 = vpack.c.bf16 %v1769_v34, %v1768_v33  ;;  %v1772_v33 = vld [vmem:[#allocation12 + $0xa0] sm:$0xff]  ;;  %v1773_v34 = vld [vmem:[#allocation12 + $0xa8] sm:$0xff] }
 0x1d0   : > { %754 = vmatprep.mubr.f32.mxu1 %v5313_v29  ;;  %1011 = vmatprep.mubr.f32.mxu0 %v5313_v29  ;;  %v5329_v51 = vpop.f32.mrb[6].mxu0 }
 0x1d1   : > { %v5331_v52 = vpop.f32.mrb[7].mxu0  ;;  %4221 = vmatpush3.bf16.msra.mxu0 %v4220_v43  ;;  %v4240_v43 = vpack.c.bf16 %v1317_v28, %v1316_v27  ;;  %v1754_v27 = vld [vmem:[#allocation12 + $0x10] sm:$0xff]  ;;  %v1755_v28 = vld [vmem:[#allocation12 + $0x18] sm:$0xff] }
 0x1d2   : > { %4223 = vmatprep.subr.bf16.mxu0 %v4222_v44  ;;  %v4178_v44 = vpack.c.bf16 %v917_v37, %v916_v36  ;;  %v4202_v36 = vpack.c.bf16 %v929_v18, %v928_v17  ;;  %v930_v37 = vld [vmem:[#allocation9 + $0x170] sm:$0xff]  ;;  %v1763_v18 = vld [vmem:[#allocation12 + $0x58] sm:$0xff] }
 0x1d3   : > { %755 = vmatmul.mubr.f32.gmra.mrb[6].mxu1 %v5252_v21  ;;  %1012 = vmatmul.mubr.f32.gmra.mrb[22].mxu0 %v5252_v21  ;;  %v1762_v17 = vld [vmem:[#allocation12 + $0x50] sm:$0xff] }
 0x1d4   : > { %759 = vmatprep.mubr.f32.mxu1 %v5323_v42  ;;  %1016 = vmatprep.mubr.f32.mxu0 %v5323_v42  ;;  %v5337_v61 = vpop.f32.mrb[8].mxu0 }
 0x1d5   : > { %v5339_v63 = vpop.f32.mrb[9].mxu0  ;;  %4225 = vmatpush3.bf16.msra.mxu0 %v4224_v53  ;;  %4179 = vmatprep.subr.bf16.mxu1 %v4178_v44  ;;  %v920_v53 = vld [vmem:[#allocation9 + $0x120] sm:$0xff] }
 0x1d6   : > { %4227 = vmatprep.subr.bf16.mxu0 %v4226_v55  ;;  %4181 = vmatpush3.bf16.msra.mxu1 %v4178_v44  ;;  %v921_v55 = vld [vmem:[#allocation9 + $0x128] sm:$0xff]  ;;  %v4280_v44 = vpack.c.bf16 %v1755_v28, %v1754_v27  ;;  %v4296_v27 = vpack.c.bf16 %v1763_v18, %v1762_v17  ;;  %v1357_v17 = vld [vmem:[#allocation11 + $0x1b8] sm:$0xff] }
 0x1d7   : > { %760 = vmatmul.mubr.f32.gmra.mrb[8].mxu1 %v5255_v23  ;;  %1017 = vmatmul.mubr.f32.gmra.mrb[24].mxu0 %v5255_v23  ;;  %v4186_v57 = vpack.c.bf16 %v921_v55, %v920_v53  ;;  %v1775_v53 = vld [vmem:[#allocation12 + $0xb8] sm:$0xff] }
 0x1d8   : > { %764 = vmatprep.mubr.f32.mxu1 %v5321_v41  ;;  %1021 = vmatprep.mubr.f32.mxu0 %v5321_v41  ;;  %v5345_v11 = vpop.f32.mrb[10].mxu0 }
 0x1d9   : > { %v5347_v12 = vpop.f32.mrb[11].mxu0  ;;  %4229 = vmatpush3.bf16.msra.mxu0 %v4228_v1  ;;  %4183 = vmatprep.subr.bf16.mxu1 %v4182_v50  ;;  %v924_v1 = vld [vmem:[#allocation9 + $0x140] sm:$0xff] }
 0x1da   : > { %4231 = vmatprep.subr.bf16.mxu0 %v4230_v3  ;;  %4185 = vmatpush3.bf16.msra.mxu1 %v4182_v50  ;;  %v925_v3 = vld [vmem:[#allocation9 + $0x148] sm:$0xff]  ;;  %v1774_v50 = vld [vmem:[#allocation12 + $0xb0] sm:$0xff] }
 0x1db   : > { %765 = vmatmul.mubr.f32.gmra.mrb[10].mxu1 %v5260_v30  ;;  %1022 = vmatmul.mubr.f32.gmra.mrb[26].mxu0 %v5260_v30  ;;  %v4194_v10 = vpack.c.bf16 %v925_v3, %v924_v1  ;;  %v4286_v58 = vpack.c.bf16 %v1775_v53, %v1774_v50  ;;  %v1776_v1 = vld [vmem:[#allocation12 + $0xc0] sm:$0xff]  ;;  %v1777_v3 = vld [vmem:[#allocation12 + $0xc8] sm:$0xff] }
 0x1dc   : > { %769 = vmatprep.mubr.f32.mxu1 %v5331_v52  ;;  %1026 = vmatprep.mubr.f32.mxu0 %v5331_v52  ;;  %v5353_v22 = vpop.f32.mrb[12].mxu0  ;;  %v1350_v50 = vld [vmem:[#allocation11 + $0x180] sm:$0xff] }
 0x1dd   : > { %6207 = vst [vmem:[#allocation21_spill] sm:$0xff] %v5353_v22  ;;  %v5355_v24 = vpop.f32.mrb[13].mxu0  ;;  %4233 = vmatpush3.bf16.msra.mxu0 %v4232_v13  ;;  %4187 = vmatprep.subr.bf16.mxu1 %v4186_v57  ;;  %v927_v13 = vld [vmem:[#allocation9 + $0x158] sm:$0xff] }
 0x1de   : > { %6208 = vst [vmem:[#allocation22_spill] sm:$0xff] %v5355_v24  ;;  %4235 = vmatprep.subr.bf16.mxu0 %v4234_v14  ;;  %4189 = vmatpush3.bf16.msra.mxu1 %v4186_v57  ;;  %v1770_v14 = vld [vmem:[#allocation12 + $0x90] sm:$0xff]  ;;  %v4198_v16 = vpack.c.bf16 %v927_v13, %v926_v4  ;;  %v4284_v57 = vpack.c.bf16 %v1757_v49, %v1756_v47  ;;  %v1767_v47 = vld [vmem:[#allocation12 + $0x78] sm:$0xff] }
 0x1df   : > { %770 = vmatmul.mubr.f32.gmra.mrb[12].mxu1 %v5263_v32  ;;  %1027 = vmatmul.mubr.f32.gmra.mrb[28].mxu0 %v5263_v32  ;;  %v1778_v13 = vld [vmem:[#allocation12 + $0xd0] sm:$0xff] }
 0x1e0   : > { %774 = vmatprep.mubr.f32.mxu1 %v5329_v51  ;;  %1031 = vmatprep.mubr.f32.mxu0 %v5329_v51  ;;  %v5361_v35 = vpop.f32.mrb[14].mxu0 }
 0x1e1   : > { %6209 = vst [vmem:[#allocation23_spill] sm:$0xff] %v5361_v35  ;;  %v5363_v39 = vpop.f32.mrb[15].mxu0  ;;  %4237 = vmatpush3.bf16.msra.mxu0 %v4236_v25  ;;  %4191 = vmatprep.subr.bf16.mxu1 %v4190_v60  ;;  %v4276_v25 = vpack.c.bf16 %v1753_v8, %v1752_v6  ;;  %v4290_v6 = vpack.c.bf16 %v1777_v3, %v1776_v1  ;;  %v1760_v8 = vld [vmem:[#allocation12 + $0x40] sm:$0xff]  ;;  %v1355_v3 = vld [vmem:[#allocation11 + $0x1a8] sm:$0xff] }
 0x1e2   : > { %6210 = vst [vmem:[#allocation24_spill] sm:$0xff] %v5363_v39  ;;  %4239 = vmatprep.subr.bf16.mxu0 %v4238_v26  ;;  %4193 = vmatpush3.bf16.msra.mxu1 %v4190_v60  ;;  %v4278_v26 = vpack.c.bf16 %v1771_v15, %v1770_v14  ;;  %v1759_v60 = vld [vmem:[#allocation12 + $0x38] sm:$0xff]  ;;  %v1354_v1 = vld [vmem:[#allocation11 + $0x1a0] sm:$0xff] }
 0x1e3   : > { %775 = vmatmul.mubr.f32.gmra.mrb[14].mxu1 %v5268_v38  ;;  %1032 = vmatmul.mubr.f32.gmra.mrb[30].mxu0 %v5268_v38  ;;  %v4288_v4 = vpack.c.bf16 %v1759_v60, %v1758_v59  ;;  %v1779_v14 = vld [vmem:[#allocation12 + $0xd8] sm:$0xff] }
 0x1e4   : > { %779 = vmatprep.mubr.f32.mxu1 %v5339_v63  ;;  %1036 = vmatprep.mubr.f32.mxu0 %v5339_v63  ;;  %v1337_v59 = vld [vmem:[#allocation11 + $0x118] sm:$0xff] }
 0x1e5   : > { %4241 = vmatpush3.bf16.msra.mxu0 %v4240_v43  ;;  %4195 = vmatprep.subr.bf16.mxu1 %v4194_v10  ;;  %v931_v43 = vld [vmem:[#allocation9 + $0x178] sm:$0xff] }
 0x1e6   : > { %4275 = vmatprep.subr.bf16.mxu0 %v4274_v45  ;;  %4197 = vmatpush3.bf16.msra.mxu1 %v4194_v10  ;;  %v4282_v45 = vpack.c.bf16 %v1773_v34, %v1772_v33  ;;  %v4206_v55 = vpack.c.bf16 %v931_v43, %v930_v37  ;;  %v1761_v10 = vld [vmem:[#allocation12 + $0x48] sm:$0xff]  ;;  %v1764_v33 = vld [vmem:[#allocation12 + $0x60] sm:$0xff]  ;;  %v1783_v37 = vld [vmem:[#allocation12 + $0xf8] sm:$0xff] }
 0x1e7   : > { %780 = vmatmul.mubr.f32.gmra.mrb[16].mxu1 %v5271_v40  ;;  %1037 = vmatmul.mubr.f32.gmra.mrb[32].mxu0 %v5271_v40  ;;  %v4292_v15 = vpack.c.bf16 %v1761_v10, %v1760_v8  ;;  %v1765_v34 = vld [vmem:[#allocation12 + $0x68] sm:$0xff] }
 0x1e8   : > { %784 = vmatprep.mubr.f32.mxu1 %v5337_v61  ;;  %1041 = vmatprep.mubr.f32.mxu0 %v5337_v61  ;;  %v4300_v43 = vpack.c.bf16 %v1765_v34, %v1764_v33  ;;  %v1340_v33 = vld [vmem:[#allocation11 + $0x130] sm:$0xff]  ;;  %v1341_v34 = vld [vmem:[#allocation11 + $0x138] sm:$0xff] }
 0x1e9   : > { %4199 = vmatprep.subr.bf16.mxu1 %v4198_v16 }
 0x1ea   : > { %4201 = vmatpush3.bf16.msra.mxu1 %v4198_v16  ;;  %v4294_v16 = vpack.c.bf16 %v1779_v14, %v1778_v13  ;;  %v4250_v13 = vpack.c.bf16 %v1355_v3, %v1354_v1  ;;  %v1338_v14 = vld [vmem:[#allocation11 + $0x120] sm:$0xff]  ;;  %v1347_v1 = vld [vmem:[#allocation11 + $0x168] sm:$0xff] }
 0x1eb   : > { %785 = vmatmul.mubr.f32.gmra.mrb[18].mxu1 %v5276_v46  ;;  %1042 = vmatmul.mubr.f32.gmra.mrb[34].mxu0 %v5276_v46 }
 0x1ec   : > { %789 = vmatprep.mubr.f32.mxu1 %v5347_v12  ;;  %1046 = vmatprep.mubr.f32.mxu0 %v5347_v12 }
 0x1ed   : > { %4203 = vmatprep.subr.bf16.mxu1 %v4202_v36 }
 0x1ee   : > { %4205 = vmatpush3.bf16.msra.mxu1 %v4202_v36  ;;  %v1782_v36 = vld [vmem:[#allocation12 + $0xf0] sm:$0xff] }
 0x1ef   : > { %790 = vmatmul.mubr.f32.gmra.mrb[20].mxu1 %v5279_v48  ;;  %1047 = vmatmul.mubr.f32.gmra.mrb[36].mxu0 %v5279_v48 }
 0x1f0   : > { %794 = vmatprep.mubr.f32.mxu1 %v5345_v11  ;;  %1051 = vmatprep.mubr.f32.mxu0 %v5345_v11 }
 0x1f1   : > { %4207 = vmatprep.subr.bf16.mxu1 %v4206_v55 }
 0x1f2   : > { %4209 = vmatpush3.bf16.msra.mxu1 %v4206_v55 }
 0x1f3   : > { %795 = vmatmul.mubr.f32.gmra.mrb[22].mxu1 %v5284_v54  ;;  %1052 = vmatmul.mubr.f32.gmra.mrb[38].mxu0 %v5284_v54 }
 0x1f4   : > { %799 = vmatprep.mubr.f32.mxu1 %v5355_v24  ;;  %1056 = vmatprep.mubr.f32.mxu0 %v5355_v24 }
 0x1f7   : > { %800 = vmatmul.mubr.f32.gmra.mrb[24].mxu1 %v5287_v56  ;;  %1057 = vmatmul.mubr.f32.gmra.mrb[40].mxu0 %v5287_v56 }
 0x1f8   : > { %804 = vmatprep.mubr.f32.mxu1 %v5353_v22  ;;  %1061 = vmatprep.mubr.f32.mxu0 %v5353_v22 }
 0x1fb   : > { %805 = vmatmul.mubr.f32.gmra.mrb[26].mxu1 %v5292_v62  ;;  %1062 = vmatmul.mubr.f32.gmra.mrb[42].mxu0 %v5292_v62 }
 0x1fc   : > { %809 = vmatprep.mubr.f32.mxu1 %v5363_v39  ;;  %1066 = vmatprep.mubr.f32.mxu0 %v5363_v39 }
 0x1ff   : > { %810 = vmatmul.mubr.f32.gmra.mrb[28].mxu1 %v5295_v0  ;;  %1067 = vmatmul.mubr.f32.gmra.mrb[44].mxu0 %v5295_v0 }
 0x200   : > { %814 = vmatprep.mubr.f32.mxu1 %v5361_v35  ;;  %1071 = vmatprep.mubr.f32.mxu0 %v5361_v35 }
 0x203   : > { %815 = vmatmul.mubr.f32.gmra.mrb[30].mxu1 %v5300_v2  ;;  %1072 = vmatmul.mubr.f32.gmra.mrb[46].mxu0 %v5300_v2 }
 0x204   : > { %1430 = vmatprep.mubr.f32.mxu0 %v5305_v20 }
 0x207   : > { %1431 = vmatmul.mubr.f32.vlgmr.msra.gmra.mrb[48].mxu0 %v5240_v9 }
 0x208   : > { %1435 = vmatprep.mubr.f32.mxu0 %v5303_v19  ;;  %4277 = vmatpush3.bf16.msra.mxu0 %v4276_v25  ;;  %v1780_v25 = vld [vmem:[#allocation12 + $0xe0] sm:$0xff] }
 0x209   : > { %4279 = vmatprep.subr.bf16.mxu0 %v4278_v26  ;;  %v1781_v26 = vld [vmem:[#allocation12 + $0xe8] sm:$0xff] }
 0x20a   : > { %v4298_v28 = vpack.c.bf16 %v1781_v26, %v1780_v25 }
 0x20b   : > { %1436 = vmatmul.mubr.f32.gmra.mrb[50].mxu0 %v5244_v5 }
 0x20c   : > { %1440 = vmatprep.mubr.f32.mxu0 %v5315_v31  ;;  %4281 = vmatpush3.bf16.msra.mxu0 %v4280_v44  ;;  %v4302_v44 = vpack.c.bf16 %v1783_v37, %v1782_v36  ;;  %v1358_v36 = vld [vmem:[#allocation11 + $0x1c0] sm:$0xff]  ;;  %v1359_v37 = vld [vmem:[#allocation11 + $0x1c8] sm:$0xff] }
 0x20d   : > { %4283 = vmatprep.subr.bf16.mxu0 %v4282_v45  ;;  %v1766_v45 = vld [vmem:[#allocation12 + $0x70] sm:$0xff] }
 0x20e   : > { %v4304_v49 = vpack.c.bf16 %v1767_v47, %v1766_v45  ;;  %v4256_v45 = vpack.c.bf16 %v1341_v34, %v1340_v33 }
 0x20f   : > { %1441 = vmatmul.mubr.f32.gmra.mrb[52].mxu0 %v5247_v7 }
 0x210   : > { %1445 = vmatprep.mubr.f32.mxu0 %v5313_v29  ;;  %4285 = vmatpush3.bf16.msra.mxu0 %v4284_v57 }
 0x211   : > { %4287 = vmatprep.subr.bf16.mxu0 %v4286_v58  ;;  %v1336_v58 = vld [vmem:[#allocation11 + $0x110] sm:$0xff] }
 0x212   : > { %v4248_v8 = vpack.c.bf16 %v1337_v59, %v1336_v58  ;;  %v1346_v59 = vld [vmem:[#allocation11 + $0x160] sm:$0xff] }
 0x213   : > { %1446 = vmatmul.mubr.f32.gmra.mrb[54].mxu0 %v5252_v21 }
 0x214   : > { %1450 = vmatprep.mubr.f32.mxu0 %v5323_v42  ;;  %4289 = vmatpush3.bf16.msra.mxu0 %v4288_v4 }
 0x215   : > { %4291 = vmatprep.subr.bf16.mxu0 %v4290_v6 }
 0x217   : > { %1451 = vmatmul.mubr.f32.gmra.mrb[56].mxu0 %v5255_v23 }
 0x218   : > { %1455 = vmatprep.mubr.f32.mxu0 %v5321_v41  ;;  %4293 = vmatpush3.bf16.msra.mxu0 %v4292_v15  ;;  %v1339_v15 = vld [vmem:[#allocation11 + $0x128] sm:$0xff] }
 0x219   : > { %4295 = vmatprep.subr.bf16.mxu0 %v4294_v16  ;;  %v1356_v16 = vld [vmem:[#allocation11 + $0x1b0] sm:$0xff]  ;;  %v4252_v26 = vpack.c.bf16 %v1339_v15, %v1338_v14 }
 0x21b   : > { %1456 = vmatmul.mubr.f32.gmra.mrb[58].mxu0 %v5260_v30 }
 0x21c   : > { %1460 = vmatprep.mubr.f32.mxu0 %v5331_v52  ;;  %4297 = vmatpush3.bf16.msra.mxu0 %v4296_v27 }
 0x21d   : > { %4299 = vmatprep.subr.bf16.mxu0 %v4298_v28  ;;  %v4254_v28 = vpack.c.bf16 %v1357_v17, %v1356_v16 }
 0x21f   : > { %1461 = vmatmul.mubr.f32.gmra.mrb[60].mxu0 %v5263_v32 }
 0x220   : > { %1465 = vmatprep.mubr.f32.mxu0 %v5329_v51  ;;  %4301 = vmatpush3.bf16.msra.mxu0 %v4300_v43 }
 0x221   : > { %4303 = vmatprep.subr.bf16.mxu0 %v4302_v44 }
 0x223   : > { %1466 = vmatmul.mubr.f32.gmra.mrb[62].mxu0 %v5268_v38 }
 0x224   : > { %1470 = vmatprep.mubr.f32.mxu0 %v5339_v63  ;;  %4305 = vmatpush3.bf16.msra.mxu0 %v4304_v49  ;;  %v4258_v49 = vpack.c.bf16 %v1359_v37, %v1358_v36 }
 0x227   : > { %1471 = vmatmul.mubr.f32.gmra.mrb[64].mxu0 %v5271_v40 }
 0x228   : > { %1475 = vmatprep.mubr.f32.mxu0 %v5337_v61 }
 0x22b   : > { %1476 = vmatmul.mubr.f32.gmra.mrb[66].mxu0 %v5276_v46 }
 0x22c   : > { %1480 = vmatprep.mubr.f32.mxu0 %v5347_v12 }
 0x22f   : > { %1481 = vmatmul.mubr.f32.gmra.mrb[68].mxu0 %v5279_v48 }
 0x230   : > { %1485 = vmatprep.mubr.f32.mxu0 %v5345_v11 }
 0x233   : > { %1486 = vmatmul.mubr.f32.gmra.mrb[70].mxu0 %v5284_v54 }
 0x234   : > { %1490 = vmatprep.mubr.f32.mxu0 %v5355_v24 }
 0x237   : > { %1491 = vmatmul.mubr.f32.gmra.mrb[72].mxu0 %v5287_v56 }
 0x238   : > { %1495 = vmatprep.mubr.f32.mxu0 %v5353_v22 }
 0x23b   : > { %1496 = vmatmul.mubr.f32.gmra.mrb[74].mxu0 %v5292_v62 }
 0x23c   : > { %1500 = vmatprep.mubr.f32.mxu0 %v5363_v39 }
 0x23f   : > { %1501 = vmatmul.mubr.f32.gmra.mrb[76].mxu0 %v5295_v0 }
 0x240   : > { %1505 = vmatprep.mubr.f32.mxu0 %v5361_v35 }
 0x243   : > { %1506 = vmatmul.mubr.f32.gmra.mrb[78].mxu0 %v5300_v2 }
 0x244   : > { %1896 = vmatprep.mubr.f32.mxu0 %v5305_v20 }
 0x247   : > { %1897 = vmatmul.mubr.f32.vlgmr.msra.gmra.mrb[80].mxu0 %v5240_v9  ;;  %v1351_v9 = vld [vmem:[#allocation11 + $0x188] sm:$0xff] }
 0x248   : > { %1901 = vmatprep.mubr.f32.mxu0 %v5303_v19  ;;  %v4242_v53 = vpack.c.bf16 %v1351_v9, %v1350_v50  ;;  %v1342_v50 = vld [vmem:[#allocation11 + $0x140] sm:$0xff]  ;;  %v1343_v9 = vld [vmem:[#allocation11 + $0x148] sm:$0xff] }
 0x24a   : > { %4243 = vmatprep.subr.bf16.mxu1 %v4242_v53  ;;  %v1360_v53 = vld [vmem:[#allocation11 + $0x1d0] sm:$0xff] }
 0x24b   : > { %1902 = vmatmul.mubr.f32.gmra.mrb[82].mxu0 %v5244_v5 }
 0x24c   : > { %1906 = vmatprep.mubr.f32.mxu0 %v5315_v31 }
 0x24f   : > { %1907 = vmatmul.mubr.f32.gmra.mrb[84].mxu0 %v5247_v7 }
 0x250   : > { %1911 = vmatprep.mubr.f32.mxu0 %v5313_v29 }
 0x253   : > { %1912 = vmatmul.mubr.f32.gmra.mrb[86].mxu0 %v5252_v21 }
 0x254   : > { %1916 = vmatprep.mubr.f32.mxu0 %v5323_v42 }
 0x257   : > { %1917 = vmatmul.mubr.f32.gmra.mrb[88].mxu0 %v5255_v23 }
 0x258   : > { %1921 = vmatprep.mubr.f32.mxu0 %v5321_v41 }
 0x25b   : > { %1922 = vmatmul.mubr.f32.gmra.mrb[90].mxu0 %v5260_v30 }
 0x25c   : > { %1926 = vmatprep.mubr.f32.mxu0 %v5331_v52 }
 0x25f   : > { %1927 = vmatmul.mubr.f32.gmra.mrb[92].mxu0 %v5263_v32  ;;  %v1334_v32 = vld [vmem:[#allocation11 + $0x100] sm:$0xff] }
 0x260   : > { %1931 = vmatprep.mubr.f32.mxu0 %v5329_v51 }
 0x263   : > { %1932 = vmatmul.mubr.f32.gmra.mrb[94].mxu0 %v5268_v38  ;;  %v1335_v38 = vld [vmem:[#allocation11 + $0x108] sm:$0xff] }
 0x264   : > { %1936 = vmatprep.mubr.f32.mxu0 %v5339_v63 }
 0x267   : > { %1937 = vmatmul.mubr.f32.gmra.mrb[96].mxu0 %v5271_v40 }
 0x268   : > { %1941 = vmatprep.mubr.f32.mxu0 %v5337_v61 }
 0x26b   : > { %1942 = vmatmul.mubr.f32.gmra.mrb[98].mxu0 %v5276_v46  ;;  %v1352_v46 = vld [vmem:[#allocation11 + $0x190] sm:$0xff] }
 0x26c   : > { %1946 = vmatprep.mubr.f32.mxu0 %v5347_v12 }
 0x26f   : > { %1947 = vmatmul.mubr.f32.gmra.mrb[100].mxu0 %v5279_v48  ;;  %v1353_v48 = vld [vmem:[#allocation11 + $0x198] sm:$0xff] }
 0x270   : > { %1951 = vmatprep.mubr.f32.mxu0 %v5345_v11  ;;  %v4246_v57 = vpack.c.bf16 %v1353_v48, %v1352_v46  ;;  %v1344_v46 = vld [vmem:[#allocation11 + $0x150] sm:$0xff]  ;;  %v1345_v48 = vld [vmem:[#allocation11 + $0x158] sm:$0xff] }
 0x273   : > { %1952 = vmatmul.mubr.f32.gmra.mrb[102].mxu0 %v5284_v54 }
 0x274   : > { %1956 = vmatprep.mubr.f32.mxu0 %v5355_v24 }
 0x277   : > { %1957 = vmatmul.mubr.f32.gmra.mrb[104].mxu0 %v5287_v56 }
 0x278   : > { %1961 = vmatprep.mubr.f32.mxu0 %v5353_v22  ;;  %v2382_v22 = vld [vmem:[#allocation14 + $0x18] sm:$0xff] }
 0x27b   : > { %1962 = vmatmul.mubr.f32.gmra.mrb[106].mxu0 %v5292_v62 }
 0x27c   : > { %1966 = vmatprep.mubr.f32.mxu0 %v5363_v39  ;;  %v2381_v39 = vld [vmem:[#allocation14 + $0x10] sm:$0xff] }
 0x27f   : > { %1967 = vmatmul.mubr.f32.gmra.mrb[108].mxu0 %v5295_v0  ;;  %v4244_v0 = vpack.c.bf16 %v1335_v38, %v1334_v32 }
 0x280   : > { %1971 = vmatprep.mubr.f32.mxu0 %v5361_v35 }
 0x283   : > { %1972 = vmatmul.mubr.f32.gmra.mrb[110].mxu0 %v5300_v2 }
 0x29a   : > { %v3162_v5 = vpop.f32.mrb[0].mxu1  ;;  %v3242_v7 = vpop.f32.mrb[16].mxu0 }
 0x29b   : > { %v3163_v21 = vpop.f32.mrb[1].mxu1  ;;  %v3243_v23 = vpop.f32.mrb[17].mxu0 }
 0x29c   : > { %v5463_v30 = vadd.f32 %v3163_v21, %v3162_v5  ;;  %v5465_v40 = vadd.f32 %v3243_v23, %v3242_v7  ;;  %v1361_v5 = vld [vmem:[#allocation11 + $0x1d8] sm:$0xff]  ;;  %v4260_v23 = vpack.c.bf16 %v1343_v9, %v1342_v50 }
 0x29d   : > { %v4262_v38 = vpack.c.bf16 %v1361_v5, %v1360_v53 }
 0x29e   : > { %v3165_v54 = vpop.f32.mrb[2].mxu1  ;;  %4002 = vmatprep.mubr.f32.mxu1 %v5463_v30  ;;  %v3245_v56 = vpop.f32.mrb[18].mxu0 }
 0x29f   : > { %v3166_v62 = vpop.f32.mrb[3].mxu1  ;;  %v3246_v55 = vpop.f32.mrb[19].mxu0 }
 0x2a0   : > { %v5468_v2 = vadd.f32 %v3166_v62, %v3165_v54  ;;  %v5470_v60 = vadd.f32 %v3246_v55, %v3245_v56  ;;  %v1362_v54 = vld [vmem:[#allocation11 + $0x1e0] sm:$0xff]  ;;  %v1363_v56 = vld [vmem:[#allocation11 + $0x1e8] sm:$0xff]  ;;  %v4264_v55 = vpack.c.bf16 %v1345_v48, %v1344_v46  ;;  %v1365_v46 = vld [vmem:[#allocation11 + $0x1f8] sm:$0xff] }
 0x2a1   : > { %v4266_v58 = vpack.c.bf16 %v1363_v56, %v1362_v54  ;;  %v1348_v54 = vld [vmem:[#allocation11 + $0x170] sm:$0xff]  ;;  %v1349_v56 = vld [vmem:[#allocation11 + $0x178] sm:$0xff] }
 0x2a2   : > { %v3168_v4 = vpop.f32.mrb[4].mxu1  ;;  %4003 = vmatmul.mubr.f32.vlgmr.msra.gmra.mrb[32].mxu1 %v5468_v2 }
 0x2a3   : > { %v3169_v6 = vpop.f32.mrb[5].mxu1  ;;  %4245 = vmatpush3.bf16.msra.mxu1 %v4244_v0 }
 0x2a4   : > { %v5473_v10 = vadd.f32 %v3169_v6, %v3168_v4  ;;  %4247 = vmatprep.subr.bf16.mxu1 %v4246_v57  ;;  %v4268_v6 = vpack.c.bf16 %v1347_v1, %v1346_v59 }
 0x2a6   : > { %v3171_v18 = vpop.f32.mrb[6].mxu1  ;;  %4005 = vmatprep.mubr.f32.mxu1 %v5473_v10 }
 0x2a7   : > { %v3172_v25 = vpop.f32.mrb[7].mxu1  ;;  %4249 = vmatpush3.bf16.msra.mxu1 %v4248_v8 }
 0x2a8   : > { %v5476_v27 = vadd.f32 %v3172_v25, %v3171_v18  ;;  %4251 = vmatprep.subr.bf16.mxu1 %v4250_v13 }
 0x2aa   : > { %v3174_v43 = vpop.f32.mrb[8].mxu1  ;;  %4006 = vmatmul.mubr.f32.gmra.mrb[34].mxu1 %v5476_v27 }
 0x2ab   : > { %v3175_v44 = vpop.f32.mrb[9].mxu1  ;;  %4253 = vmatpush3.bf16.msra.mxu1 %v4252_v26 }
 0x2ac   : > { %v5479_v47 = vadd.f32 %v3175_v44, %v3174_v43  ;;  %4255 = vmatprep.subr.bf16.mxu1 %v4254_v28 }
 0x2ae   : > { %v3177_v7 = vpop.f32.mrb[10].mxu1  ;;  %4008 = vmatprep.mubr.f32.mxu1 %v5479_v47 }
 0x2af   : > { %v3178_v21 = vpop.f32.mrb[11].mxu1  ;;  %4257 = vmatpush3.bf16.msra.mxu1 %v4256_v45 }
 0x2b0   : > { %v5482_v32 = vadd.f32 %v3178_v21, %v3177_v7  ;;  %4259 = vmatprep.subr.bf16.mxu1 %v4258_v49 }
 0x2b2   : > { %v3180_v62 = vpop.f32.mrb[12].mxu1  ;;  %4009 = vmatmul.mubr.f32.gmra.mrb[36].mxu1 %v5482_v32 }
 0x2b3   : > { %v3181_v0 = vpop.f32.mrb[13].mxu1  ;;  %4261 = vmatpush3.bf16.msra.mxu1 %v4260_v23 }
 0x2b4   : > { %v5485_v57 = vadd.f32 %v3181_v0, %v3180_v62  ;;  %4263 = vmatprep.subr.bf16.mxu1 %v4262_v38  ;;  %v1364_v38 = vld [vmem:[#allocation11 + $0x1f0] sm:$0xff]  ;;  %v4272_v62 = vpack.c.bf16 %v1349_v56, %v1348_v54  ;;  %v3248_v0 = vpop.f32.mrb[20].mxu0 }
 0x2b5   : > { %v4270_v48 = vpack.c.bf16 %v1365_v46, %v1364_v38  ;;  %v1800_v46 = vld [vmem:[#allocation12 + $0x180] sm:$0xff] }
 0x2b6   : > { %6211 = vst [vmem:[#allocation25_spill] sm:$0xff] %v5485_v57  ;;  %v3183_v3 = vpop.f32.mrb[14].mxu1  ;;  %4011 = vmatprep.mubr.f32.mxu1 %v5485_v57 }
 0x2b7   : > { %v3184_v4 = vpop.f32.mrb[15].mxu1  ;;  %4265 = vmatpush3.bf16.msra.mxu1 %v4264_v55  ;;  %v3249_v55 = vpop.f32.mrb[21].mxu0 }
 0x2b8   : > { %v5488_v8 = vadd.f32 %v3184_v4, %v3183_v3  ;;  %4267 = vmatprep.subr.bf16.mxu1 %v4266_v58  ;;  %v5515_v58 = vadd.f32 %v3249_v55, %v3248_v0  ;;  %v3251_v59 = vpop.f32.mrb[22].mxu0 }
 0x2b9   : > { %v3252_v1 = vpop.f32.mrb[23].mxu0 }
 0x2ba   : > { %6212 = vst [vmem:[#allocation26_spill] sm:$0xff] %v5488_v8  ;;  %v3186_v13 = vpop.f32.mrb[16].mxu1  ;;  %4012 = vmatmul.mubr.f32.gmra.mrb[38].mxu1 %v5488_v8  ;;  %v5517_v3 = vadd.f32 %v3252_v1, %v3251_v59  ;;  %v3254_v4 = vpop.f32.mrb[24].mxu0 }
 0x2bb   : > { %v3187_v14 = vpop.f32.mrb[17].mxu1  ;;  %4269 = vmatpush3.bf16.msra.mxu1 %v4268_v6  ;;  %v3255_v6 = vpop.f32.mrb[25].mxu0 }
 0x2bc   : > { %v5491_v15 = vadd.f32 %v3187_v14, %v3186_v13  ;;  %4271 = vmatprep.subr.bf16.mxu1 %v4270_v48  ;;  %v5519_v13 = vadd.f32 %v3255_v6, %v3254_v4  ;;  %v3257_v14 = vpop.f32.mrb[26].mxu0  ;;  %v1801_v48 = vld [vmem:[#allocation12 + $0x188] sm:$0xff] }
 0x2bd   : > { %v4306_v56 = vpack.c.bf16 %v1801_v48, %v1800_v46  ;;  %v1802_v48 = vld [vmem:[#allocation12 + $0x190] sm:$0xff] }
 0x2be   : > { %6213 = vst [vmem:[#allocation27_spill] sm:$0xff] %v5491_v15  ;;  %v3189_v16 = vpop.f32.mrb[18].mxu1  ;;  %4014 = vmatprep.mubr.f32.mxu1 %v5491_v15 }
 0x2bf   : > { %v3190_v17 = vpop.f32.mrb[19].mxu1  ;;  %4273 = vmatpush3.bf16.msra.mxu1 %v4272_v62 }
 0x2c0   : > { %v5494_v18 = vadd.f32 %v3190_v17, %v3189_v16  ;;  %v3258_v16 = vpop.f32.mrb[27].mxu0  ;;  %4307 = vmatprep.subr.bf16.mxu1 %v4306_v56 }
 0x2c1   : > { %v5521_v17 = vadd.f32 %v3258_v16, %v3257_v14 }
 0x2c2   : > { %6214 = vst [vmem:[#allocation28_spill] sm:$0xff] %v5494_v18  ;;  %v3192_v25 = vpop.f32.mrb[20].mxu1  ;;  %4015 = vmatmul.mubr.f32.gmra.mrb[40].mxu1 %v5494_v18 }
 0x2c3   : > { %v3193_v26 = vpop.f32.mrb[21].mxu1 }
 0x2c4   : > { %v5497_v28 = vadd.f32 %v3193_v26, %v3192_v25  ;;  %v3260_v25 = vpop.f32.mrb[28].mxu0 }
 0x2c5   : > { %v3261_v26 = vpop.f32.mrb[29].mxu0 }
 0x2c6   : > { %6215 = vst [vmem:[#allocation29_spill] sm:$0xff] %v5497_v28  ;;  %v3195_v33 = vpop.f32.mrb[22].mxu1  ;;  %4017 = vmatprep.mubr.f32.mxu1 %v5497_v28 }
 0x2c7   : > { %v3196_v34 = vpop.f32.mrb[23].mxu1 }
 0x2c8   : > { %v5500_v36 = vadd.f32 %v3196_v34, %v3195_v33  ;;  %v5523_v33 = vadd.f32 %v3261_v26, %v3260_v25  ;;  %v3263_v34 = vpop.f32.mrb[30].mxu0 }
 0x2ca   : > { %6216 = vst [vmem:[#allocation30_spill] sm:$0xff] %v5500_v36  ;;  %v3198_v37 = vpop.f32.mrb[24].mxu1  ;;  %4018 = vmatmul.mubr.f32.gmra.mrb[42].mxu1 %v5500_v36 }
 0x2cb   : > { %v3199_v43 = vpop.f32.mrb[25].mxu1 }
 0x2cc   : > { %v5503_v44 = vadd.f32 %v3199_v43, %v3198_v37  ;;  %v3264_v37 = vpop.f32.mrb[31].mxu0 }
 0x2cd   : > { %v5525_v43 = vadd.f32 %v3264_v37, %v3263_v34 }
 0x2ce   : > { %6217 = vst [vmem:[#allocation31_spill] sm:$0xff] %v5503_v44  ;;  %v3201_v45 = vpop.f32.mrb[26].mxu1  ;;  %4020 = vmatprep.mubr.f32.mxu1 %v5503_v44 }
 0x2cf   : > { %v3202_v49 = vpop.f32.mrb[27].mxu1 }
 0x2d0   : > { %v5506_v50 = vadd.f32 %v3202_v49, %v3201_v45  ;;  %v3266_v45 = vpop.f32.mrb[32].mxu0 }
 0x2d1   : > { %v3267_v49 = vpop.f32.mrb[33].mxu0 }
 0x2d2   : > { %6218 = vst [vmem:[#allocation32_spill] sm:$0xff] %v5506_v50  ;;  %v3204_v9 = vpop.f32.mrb[28].mxu1  ;;  %4021 = vmatmul.mubr.f32.gmra.mrb[44].mxu1 %v5506_v50 }
 0x2d3   : > { %v3205_v53 = vpop.f32.mrb[29].mxu1 }
 0x2d4   : > { %v5509_v5 = vadd.f32 %v3205_v53, %v3204_v9  ;;  %v5527_v9 = vadd.f32 %v3267_v49, %v3266_v45  ;;  %v3269_v53 = vpop.f32.mrb[34].mxu0 }
 0x2d6   : > { %6219 = vst [vmem:[#allocation33_spill] sm:$0xff] %v5509_v5  ;;  %v3207_v7 = vpop.f32.mrb[30].mxu1  ;;  %4023 = vmatprep.mubr.f32.mxu1 %v5509_v5 }
 0x2d7   : > { %v3208_v21 = vpop.f32.mrb[31].mxu1 }
 0x2d8   : > { %v5512_v23 = vadd.f32 %v3208_v21, %v3207_v7  ;;  %v3270_v7 = vpop.f32.mrb[35].mxu0 }
 0x2d9   : > { %v5529_v21 = vadd.f32 %v3270_v7, %v3269_v53  ;;  %v3272_v38 = vpop.f32.mrb[36].mxu0  ;;  %v1784_v7 = vld [vmem:[#allocation12 + $0x100] sm:$0xff] }
 0x2da   : > { %6220 = vst [vmem:[#allocation34_spill] sm:$0xff] %v5512_v23  ;;  %4024 = vmatmul.mubr.f32.gmra.mrb[46].mxu1 %v5512_v23  ;;  %v3273_v54 = vpop.f32.mrb[37].mxu0 }
 0x2db   : > { %v5531_v62 = vadd.f32 %v3273_v54, %v3272_v38  ;;  %v3275_v0 = vpop.f32.mrb[38].mxu0  ;;  %v1785_v38 = vld [vmem:[#allocation12 + $0x108] sm:$0xff]  ;;  %v1803_v54 = vld [vmem:[#allocation12 + $0x198] sm:$0xff] }
 0x2dc   : > { %v3276_v55 = vpop.f32.mrb[39].mxu0 }
 0x2dd   : > { %v5533_v59 = vadd.f32 %v3276_v55, %v3275_v0  ;;  %v3278_v1 = vpop.f32.mrb[40].mxu0 }
 0x2de   : > { %v3279_v4 = vpop.f32.mrb[41].mxu0 }
 0x2df   : > { %v5535_v6 = vadd.f32 %v3279_v4, %v3278_v1  ;;  %v3281_v14 = vpop.f32.mrb[42].mxu0  ;;  %v4308_v1 = vpack.c.bf16 %v1785_v38, %v1784_v7  ;;  %v4310_v4 = vpack.c.bf16 %v1803_v54, %v1802_v48  ;;  %v1807_v7 = vld [vmem:[#allocation12 + $0x1b8] sm:$0xff] }
 0x2e0   : > { %v3282_v16 = vpop.f32.mrb[43].mxu0 }
 0x2e1   : > { %v5537_v25 = vadd.f32 %v3282_v16, %v3281_v14  ;;  %v3284_v26 = vpop.f32.mrb[44].mxu0  ;;  %v1786_v14 = vld [vmem:[#allocation12 + $0x110] sm:$0xff]  ;;  %v1787_v16 = vld [vmem:[#allocation12 + $0x118] sm:$0xff] }
 0x2e2   : > { %v3285_v34 = vpop.f32.mrb[45].mxu0 }
 0x2e3   : > { %v5539_v37 = vadd.f32 %v3285_v34, %v3284_v26  ;;  %v3287_v45 = vpop.f32.mrb[46].mxu0  ;;  %v1804_v26 = vld [vmem:[#allocation12 + $0x1a0] sm:$0xff]  ;;  %v1805_v34 = vld [vmem:[#allocation12 + $0x1a8] sm:$0xff] }
 0x2e4   : > { %v3288_v49 = vpop.f32.mrb[47].mxu0 }
 0x2e5   : > { %v5541_v53 = vadd.f32 %v3288_v49, %v3287_v45  ;;  %v4312_v45 = vpack.c.bf16 %v1787_v16, %v1786_v14  ;;  %v1788_v49 = vld [vmem:[#allocation12 + $0x120] sm:$0xff]  ;;  %v1791_v14 = vld [vmem:[#allocation12 + $0x138] sm:$0xff] }
 0x2e6   : > { %v1808_v16 = vld [vmem:[#allocation12 + $0x1c0] sm:$0xff] }
 0x375   : > { %v4004_v46 = vpop.f32.mrb[32].mxu1 }
 0x376   : > { %v5544_v56 = vadd.f32 %v4004_v46, %v5470_v60  ;;  %v1143_v0 = vpop.f32.mrb[33].mxu1  ;;  %v4314_v60 = vpack.c.bf16 %v1805_v34, %v1804_v26  ;;  %v1789_v46 = vld [vmem:[#allocation12 + $0x128] sm:$0xff] }
 0x377   : > { %v5547_v55 = vadd.f32 %v5465_v40, %v1143_v0  ;;  %v1806_v0 = vld [vmem:[#allocation12 + $0x1b0] sm:$0xff]  ;;  %v4316_v35 = vpack.c.bf16 %v1789_v46, %v1788_v49  ;;  %v1809_v26 = vld [vmem:[#allocation12 + $0x1c8] sm:$0xff] }
 0x378   : > { %v4322_v34 = vpack.c.bf16 %v1809_v26, %v1808_v16  ;;  %v1810_v49 = vld [vmem:[#allocation12 + $0x1d0] sm:$0xff]  ;;  %v1813_v16 = vld [vmem:[#allocation12 + $0x1e8] sm:$0xff] }
 0x379   : > { %1575 = vmatprep.mubr.f32.mxu1 %v5547_v55 }
 0x37a   : > { %1576 = vmatmul.mubr.f32.vlgmr.msra.gmra.mrb[48].mxu1 %v5463_v30 }
 0x37b   : > { %1580 = vmatprep.mubr.f32.mxu1 %v5544_v56  ;;  %4309 = vmatpush3.bf16.msra.mxu1 %v4308_v1  ;;  %v4318_v1 = vpack.c.bf16 %v1807_v7, %v1806_v0 }
 0x37c   : > { %4311 = vmatprep.subr.bf16.mxu1 %v4310_v4  ;;  %v1790_v4 = vld [vmem:[#allocation12 + $0x130] sm:$0xff] }
 0x37d   : > { %v4007_v40 = vpop.f32.mrb[34].mxu1 }
 0x37e   : > { %v5553_v38 = vadd.f32 %v4007_v40, %v5517_v3  ;;  %v1153_v48 = vpop.f32.mrb[35].mxu1  ;;  %1581 = vmatmul.mubr.f32.gmra.mrb[50].mxu1 %v5468_v2  ;;  %v4320_v3 = vpack.c.bf16 %v1791_v14, %v1790_v4  ;;  %v1793_v40 = vld [vmem:[#allocation12 + $0x148] sm:$0xff]  ;;  %v1795_v4 = vld [vmem:[#allocation12 + $0x158] sm:$0xff]  ;;  %v1812_v14 = vld [vmem:[#allocation12 + $0x1e0] sm:$0xff] }
 0x37f   : > { %v5557_v54 = vadd.f32 %v5515_v58, %v1153_v48  ;;  %4313 = vmatpush3.bf16.msra.mxu1 %v4312_v45  ;;  %v1792_v58 = vld [vmem:[#allocation12 + $0x140] sm:$0xff]  ;;  %v4330_v26 = vpack.c.bf16 %v1813_v16, %v1812_v14  ;;  %v2396_v14 = vld [vmem:[#allocation14 + $0x88] sm:$0xff] }
 0x380   : > { %4315 = vmatprep.subr.bf16.mxu1 %v4314_v60  ;;  %v1811_v60 = vld [vmem:[#allocation12 + $0x1d8] sm:$0xff]  ;;  %v4324_v48 = vpack.c.bf16 %v1793_v40, %v1792_v58  ;;  %v1814_v58 = vld [vmem:[#allocation12 + $0x1f0] sm:$0xff] }
 0x381   : > { %1585 = vmatprep.mubr.f32.mxu1 %v5557_v54 }
 0x382   : > { %1586 = vmatmul.mubr.f32.gmra.mrb[52].mxu1 %v5473_v10 }
 0x383   : > { %1590 = vmatprep.mubr.f32.mxu1 %v5553_v38  ;;  %4317 = vmatpush3.bf16.msra.mxu1 %v4316_v35  ;;  %v4326_v35 = vpack.c.bf16 %v1811_v60, %v1810_v49 }
 0x384   : > { %4319 = vmatprep.subr.bf16.mxu1 %v4318_v1  ;;  %v1794_v1 = vld [vmem:[#allocation12 + $0x150] sm:$0xff] }
 0x385   : > { %v4010_v45 = vpop.f32.mrb[36].mxu1 }
 0x386   : > { %v5563_v46 = vadd.f32 %v4010_v45, %v5521_v17  ;;  %v1163_v0 = vpop.f32.mrb[37].mxu1  ;;  %1591 = vmatmul.mubr.f32.gmra.mrb[54].mxu1 %v5476_v27  ;;  %v4328_v17 = vpack.c.bf16 %v1795_v4, %v1794_v1  ;;  %v1797_v45 = vld [vmem:[#allocation12 + $0x168] sm:$0xff]  ;;  %v1799_v1 = vld [vmem:[#allocation12 + $0x178] sm:$0xff]  ;;  %v2395_v4 = vld [vmem:[#allocation14 + $0x80] sm:$0xff] }
 0x387   : > { %v5567_v7 = vadd.f32 %v5519_v13, %v1163_v0  ;;  %4321 = vmatpush3.bf16.msra.mxu1 %v4320_v3  ;;  %v1796_v13 = vld [vmem:[#allocation12 + $0x160] sm:$0xff]  ;;  %v4370_v16 = vpack.c.bf16 %v2396_v14, %v2395_v4 }
 0x388   : > { %4323 = vmatprep.subr.bf16.mxu1 %v4322_v34  ;;  %v1815_v34 = vld [vmem:[#allocation12 + $0x1f8] sm:$0xff]  ;;  %v4332_v0 = vpack.c.bf16 %v1797_v45, %v1796_v13  ;;  %v1816_v45 = vld [vmem:[#allocation12 + $0x200] sm:$0xff] }
 0x389   : > { %1595 = vmatprep.mubr.f32.mxu1 %v5567_v7  ;;  %v1820_v14 = vld [vmem:[#allocation12 + $0x220] sm:$0xff] }
 0x38a   : > { %1596 = vmatmul.mubr.f32.gmra.mrb[56].mxu1 %v5479_v47 }
 0x38b   : > { %1600 = vmatprep.mubr.f32.mxu1 %v5563_v46  ;;  %4325 = vmatpush3.bf16.msra.mxu1 %v4324_v48  ;;  %v4334_v48 = vpack.c.bf16 %v1815_v34, %v1814_v58 }
 0x38c   : > { %4327 = vmatprep.subr.bf16.mxu1 %v4326_v35  ;;  %v1798_v35 = vld [vmem:[#allocation12 + $0x170] sm:$0xff] }
 0x38d   : > { %v4013_v3 = vpop.f32.mrb[38].mxu1 }
 0x38e   : > { %v5573_v40 = vadd.f32 %v4013_v3, %v5525_v43  ;;  %v1173_v49 = vpop.f32.mrb[39].mxu1  ;;  %1601 = vmatmul.mubr.f32.gmra.mrb[58].mxu1 %v5482_v32  ;;  %v4336_v43 = vpack.c.bf16 %v1799_v1, %v1798_v35  ;;  %v1817_v3 = vld [vmem:[#allocation12 + $0x208] sm:$0xff] }
 0x38f   : > { %v5577_v60 = vadd.f32 %v5523_v33, %v1173_v49  ;;  %4329 = vmatpush3.bf16.msra.mxu1 %v4328_v17  ;;  %v4338_v58 = vpack.c.bf16 %v1817_v3, %v1816_v45  ;;  %v1822_v45 = vld [vmem:[#allocation12 + $0x230] sm:$0xff]  ;;  %v1823_v3 = vld [vmem:[#allocation12 + $0x238] sm:$0xff] }
 0x390   : > { %6221 = vst [vmem:[#allocation35_spill] sm:$0xff] %v5573_v40  ;;  %4331 = vmatprep.subr.bf16.mxu1 %v4330_v26 }
 0x391   : > { %1605 = vmatprep.mubr.f32.mxu1 %v5577_v60  ;;  %4339 = vmatprep.subr.bf16.mxu0 %v4338_v58 }
 0x392   : > { %1606 = vmatmul.mubr.f32.gmra.mrb[60].mxu1 %v5485_v57  ;;  %4341 = vmatpush3.bf16.msra.mxu0 %v4338_v58  ;;  %v1824_v58 = vld [vmem:[#allocation12 + $0x240] sm:$0xff] }
 0x393   : > { %1610 = vmatprep.mubr.f32.mxu1 %v5573_v40  ;;  %4333 = vmatpush3.bf16.msra.mxu1 %v4332_v0  ;;  %v1818_v0 = vld [vmem:[#allocation12 + $0x210] sm:$0xff] }
 0x394   : > { %4335 = vmatprep.subr.bf16.mxu1 %v4334_v48  ;;  %v1819_v48 = vld [vmem:[#allocation12 + $0x218] sm:$0xff] }
 0x395   : > { %v4016_v33 = vpop.f32.mrb[40].mxu1  ;;  %v4342_v35 = vpack.c.bf16 %v1819_v48, %v1818_v0  ;;  %v4350_v0 = vpack.c.bf16 %v1823_v3, %v1822_v45  ;;  %v1825_v48 = vld [vmem:[#allocation12 + $0x248] sm:$0xff]  ;;  %v2399_v45 = vld [vmem:[#allocation14 + $0xa0] sm:$0xff] }
 0x396   : > { %v5583_v17 = vadd.f32 %v4016_v33, %v5529_v21  ;;  %v1183_v26 = vpop.f32.mrb[41].mxu1  ;;  %1611 = vmatmul.mubr.f32.gmra.mrb[62].mxu1 %v5488_v8  ;;  %v2400_v3 = vld [vmem:[#allocation14 + $0xa8] sm:$0xff] }
 0x397   : > { %v5587_v13 = vadd.f32 %v5527_v9, %v1183_v26  ;;  %4337 = vmatpush3.bf16.msra.mxu1 %v4336_v43  ;;  %4343 = vmatprep.subr.bf16.mxu0 %v4342_v35  ;;  %v1821_v43 = vld [vmem:[#allocation12 + $0x228] sm:$0xff] }
 0x398   : > { %6222 = vst [vmem:[#allocation36_spill] sm:$0xff] %v5583_v17  ;;  %4371 = vmatprep.subr.bf16.mxu1 %v4370_v16  ;;  %4345 = vmatpush3.bf16.msra.mxu0 %v4342_v35  ;;  %v4346_v16 = vpack.c.bf16 %v1821_v43, %v1820_v14  ;;  %v1826_v43 = vld [vmem:[#allocation12 + $0x250] sm:$0xff] }
 0x399   : > { %6223 = vst [vmem:[#allocation37_spill] sm:$0xff] %v5587_v13  ;;  %1615 = vmatprep.mubr.f32.mxu1 %v5587_v13 }
 0x39a   : > { %1616 = vmatmul.mubr.f32.gmra.mrb[64].mxu1 %v5491_v15  ;;  %4347 = vmatprep.subr.bf16.mxu0 %v4346_v16 }
 0x39b   : > { %1620 = vmatprep.mubr.f32.mxu1 %v5583_v17 }
 0x39c   : > { %4349 = vmatpush3.bf16.msra.mxu0 %v4346_v16  ;;  %v1827_v16 = vld [vmem:[#allocation12 + $0x258] sm:$0xff] }
 0x39d   : > { %v4019_v34 = vpop.f32.mrb[42].mxu1  ;;  %4351 = vmatprep.subr.bf16.mxu0 %v4350_v0  ;;  %v4358_v24 = vpack.c.bf16 %v1827_v16, %v1826_v43  ;;  %v2386_v43 = vld [vmem:[#allocation14 + $0x38] sm:$0xff] }
 0x39e   : > { %v5593_v21 = vadd.f32 %v4019_v34, %v5533_v59  ;;  %v1193_v49 = vpop.f32.mrb[43].mxu1  ;;  %1621 = vmatmul.mubr.f32.gmra.mrb[66].mxu1 %v5494_v18  ;;  %v3354_v34 = vpop.f32.mrb[48].mxu0 }
 0x39f   : > { %v5597_v9 = vadd.f32 %v5531_v62, %v1193_v49  ;;  %v2380_v49 = vld [vmem:[#allocation14 + $0x8] sm:$0xff]  ;;  %v3355_v35 = vpop.f32.mrb[49].mxu0 }
 0x3a0   : > { %6224 = vst [vmem:[#allocation38_spill] sm:$0xff] %v5593_v21  ;;  %v5622_v14 = vadd.f32 %v3355_v35, %v3354_v34  ;;  %4353 = vmatpush3.bf16.msra.mxu0 %v4350_v0  ;;  %v4378_v34 = vpack.c.bf16 %v2400_v3, %v2399_v45  ;;  %v2384_v35 = vld [vmem:[#allocation14 + $0x28] sm:$0xff]  ;;  %v2405_v45 = vld [vmem:[#allocation14 + $0xd0] sm:$0xff]  ;;  %v2406_v3 = vld [vmem:[#allocation14 + $0xd8] sm:$0xff] }
 0x3a1   : > { %6225 = vst [vmem:[#allocation39_spill] sm:$0xff] %v5597_v9  ;;  %1625 = vmatprep.mubr.f32.mxu1 %v5597_v9 }
 0x3a2   : > { %1626 = vmatmul.mubr.f32.gmra.mrb[68].mxu1 %v5497_v28 }
 0x3a3   : > { %1630 = vmatprep.mubr.f32.mxu1 %v5593_v21 }
 0x3a5   : > { %v4022_v1 = vpop.f32.mrb[44].mxu1 }
 0x3a6   : > { %v5603_v59 = vadd.f32 %v4022_v1, %v5537_v25  ;;  %v1203_v4 = vpop.f32.mrb[45].mxu1  ;;  %1631 = vmatmul.mubr.f32.gmra.mrb[70].mxu1 %v5500_v36  ;;  %v2397_v1 = vld [vmem:[#allocation14 + $0x90] sm:$0xff] }
 0x3a7   : > { %v5607_v62 = vadd.f32 %v5535_v6, %v1203_v4  ;;  %v2398_v4 = vld [vmem:[#allocation14 + $0x98] sm:$0xff] }
 0x3a8   : > { %6226 = vst [vmem:[#allocation40_spill] sm:$0xff] %v5603_v59 }
 0x3a9   : > { %6227 = vst [vmem:[#allocation41_spill] sm:$0xff] %v5607_v62  ;;  %1635 = vmatprep.mubr.f32.mxu1 %v5607_v62 }
 0x3aa   : > { %1636 = vmatmul.mubr.f32.gmra.mrb[72].mxu1 %v5503_v44 }
 0x3ab   : > { %1640 = vmatprep.mubr.f32.mxu1 %v5603_v59 }
 0x3ad   : > { %v4025_v33 = vpop.f32.mrb[46].mxu1 }
 0x3ae   : > { %v5613_v25 = vadd.f32 %v4025_v33, %v5541_v53  ;;  %v1213_v26 = vpop.f32.mrb[47].mxu1  ;;  %1641 = vmatmul.mubr.f32.gmra.mrb[74].mxu1 %v5506_v50  ;;  %v2379_v53 = vld [vmem:[#allocation14] sm:$0xff] }
 0x3af   : > { %v5617_v6 = vadd.f32 %v5539_v37, %v1213_v26  ;;  %v4354_v37 = vpack.c.bf16 %v1825_v48, %v1824_v58  ;;  %v4372_v33 = vpack.c.bf16 %v2380_v49, %v2379_v53  ;;  %v4374_v26 = vpack.c.bf16 %v2398_v4, %v2397_v1  ;;  %v2383_v48 = vld [vmem:[#allocation14 + $0x20] sm:$0xff]  ;;  %v2401_v53 = vld [vmem:[#allocation14 + $0xb0] sm:$0xff]  ;;  %v2402_v49 = vld [vmem:[#allocation14 + $0xb8] sm:$0xff] }
 0x3b0   : > { %6228 = vst [vmem:[#allocation42_spill] sm:$0xff] %v5613_v25  ;;  %v4376_v58 = vpack.c.bf16 %v2382_v22, %v2381_v39  ;;  %v4380_v0 = vpack.c.bf16 %v2384_v35, %v2383_v48  ;;  %v4382_v1 = vpack.c.bf16 %v2402_v49, %v2401_v53  ;;  %v2385_v4 = vld [vmem:[#allocation14 + $0x30] sm:$0xff]  ;;  %v2403_v22 = vld [vmem:[#allocation14 + $0xc0] sm:$0xff]  ;;  %v2404_v39 = vld [vmem:[#allocation14 + $0xc8] sm:$0xff] }
 0x3b1   : > { %6229 = vst [vmem:[#allocation43_spill] sm:$0xff] %v5617_v6  ;;  %1645 = vmatprep.mubr.f32.mxu1 %v5617_v6  ;;  %4355 = vmatprep.subr.bf16.mxu0 %v4354_v37  ;;  %v4386_v16 = vpack.c.bf16 %v2404_v39, %v2403_v22  ;;  %v2390_v48 = vld [vmem:[#allocation14 + $0x58] sm:$0xff]  ;;  %v2407_v35 = vld [vmem:[#allocation14 + $0xe0] sm:$0xff]  ;;  %v2408_v53 = vld [vmem:[#allocation14 + $0xe8] sm:$0xff] }
 0x3b2   : > { %1646 = vmatmul.mubr.f32.gmra.mrb[76].mxu1 %v5509_v5  ;;  %4357 = vmatpush3.bf16.msra.mxu0 %v4354_v37  ;;  %v4384_v37 = vpack.c.bf16 %v2386_v43, %v2385_v4  ;;  %v2392_v4 = vld [vmem:[#allocation14 + $0x68] sm:$0xff]  ;;  %v1828_v43 = vld [vmem:[#allocation12 + $0x260] sm:$0xff]  ;;  %v2409_v39 = vld [vmem:[#allocation14 + $0xf0] sm:$0xff] }
 0x3b3   : > { %1650 = vmatprep.mubr.f32.mxu1 %v5613_v25  ;;  %4359 = vmatprep.subr.bf16.mxu0 %v4358_v24  ;;  %v1829_v22 = vld [vmem:[#allocation12 + $0x268] sm:$0xff] }
 0x3b6   : > { %1651 = vmatmul.mubr.f32.gmra.mrb[78].mxu1 %v5512_v23  ;;  %4361 = vmatpush3.bf16.msra.mxu0 %v4358_v24 }
 0x3b7   : > { %2041 = vmatprep.mubr.f32.mxu1 %v5547_v55 }
 0x3ba   : > { %2042 = vmatmul.mubr.f32.vlgmr.msra.gmra.mrb[80].mxu1 %v5463_v30 }
 0x3bb   : > { %2046 = vmatprep.mubr.f32.mxu1 %v5544_v56  ;;  %4373 = vmatpush3.bf16.msra.mxu1 %v4372_v33  ;;  %v2387_v33 = vld [vmem:[#allocation14 + $0x40] sm:$0xff] }
 0x3bc   : > { %4375 = vmatprep.subr.bf16.mxu1 %v4374_v26  ;;  %v2388_v26 = vld [vmem:[#allocation14 + $0x48] sm:$0xff] }
 0x3bd   : > { %v4388_v24 = vpack.c.bf16 %v2388_v26, %v2387_v33  ;;  %v2393_v26 = vld [vmem:[#allocation14 + $0x70] sm:$0xff] }
 0x3be   : > { %2047 = vmatmul.mubr.f32.gmra.mrb[82].mxu1 %v5468_v2 }
 0x3bf   : > { %2051 = vmatprep.mubr.f32.mxu1 %v5557_v54  ;;  %4377 = vmatpush3.bf16.msra.mxu1 %v4376_v58  ;;  %v4390_v58 = vpack.c.bf16 %v2406_v3, %v2405_v45  ;;  %v2394_v3 = vld [vmem:[#allocation14 + $0x78] sm:$0xff] }
 0x3c0   : > { %4379 = vmatprep.subr.bf16.mxu1 %v4378_v34  ;;  %v2389_v34 = vld [vmem:[#allocation14 + $0x50] sm:$0xff] }
 0x3c1   : > { %v4392_v49 = vpack.c.bf16 %v2390_v48, %v2389_v34  ;;  %v1831_v34 = vld [vmem:[#allocation12 + $0x278] sm:$0xff] }
 0x3c2   : > { %2052 = vmatmul.mubr.f32.gmra.mrb[84].mxu1 %v5473_v10 }
 0x3c3   : > { %2056 = vmatprep.mubr.f32.mxu1 %v5553_v38  ;;  %4381 = vmatpush3.bf16.msra.mxu1 %v4380_v0  ;;  %v2391_v0 = vld [vmem:[#allocation14 + $0x60] sm:$0xff] }
 0x3c4   : > { %4383 = vmatprep.subr.bf16.mxu1 %v4382_v1  ;;  %v4394_v1 = vpack.c.bf16 %v2408_v53, %v2407_v35  ;;  %v4396_v33 = vpack.c.bf16 %v2392_v4, %v2391_v0 }
 0x3c6   : > { %2057 = vmatmul.mubr.f32.gmra.mrb[86].mxu1 %v5476_v27 }
 0x3c7   : > { %2061 = vmatprep.mubr.f32.mxu1 %v5567_v7  ;;  %4385 = vmatpush3.bf16.msra.mxu1 %v4384_v37  ;;  %v2410_v37 = vld [vmem:[#allocation14 + $0xf8] sm:$0xff] }
 0x3c8   : > { %4387 = vmatprep.subr.bf16.mxu1 %v4386_v16  ;;  %v4362_v16 = vpack.c.bf16 %v1829_v22, %v1828_v43  ;;  %v4398_v45 = vpack.c.bf16 %v2410_v37, %v2409_v39 }
 0x3ca   : > { %2062 = vmatmul.mubr.f32.gmra.mrb[88].mxu1 %v5479_v47  ;;  %4363 = vmatprep.subr.bf16.mxu0 %v4362_v16 }
 0x3cb   : > { %2066 = vmatprep.mubr.f32.mxu1 %v5563_v46  ;;  %4389 = vmatpush3.bf16.msra.mxu1 %v4388_v24  ;;  %v3357_v24 = vpop.f32.mrb[50].mxu0 }
 0x3cc   : > { %4391 = vmatprep.subr.bf16.mxu1 %v4390_v58  ;;  %v1830_v58 = vld [vmem:[#allocation12 + $0x270] sm:$0xff]  ;;  %4365 = vmatpush3.bf16.msra.mxu0 %v4362_v16  ;;  %v3358_v48 = vpop.f32.mrb[51].mxu0 }
 0x3cd   : > { %v4366_v35 = vpack.c.bf16 %v1831_v34, %v1830_v58  ;;  %v5639_v53 = vadd.f32 %v3358_v48, %v3357_v24  ;;  %v3360_v0 = vpop.f32.mrb[52].mxu0 }
 0x3ce   : > { %2067 = vmatmul.mubr.f32.gmra.mrb[90].mxu1 %v5482_v32 }
 0x3cf   : > { %2071 = vmatprep.mubr.f32.mxu1 %v5577_v60  ;;  %4393 = vmatpush3.bf16.msra.mxu1 %v4392_v49  ;;  %v4400_v49 = vpack.c.bf16 %v2394_v3, %v2393_v26 }
 0x3d0   : > { %4395 = vmatprep.subr.bf16.mxu1 %v4394_v1  ;;  %4367 = vmatprep.subr.bf16.mxu0 %v4366_v35  ;;  %v3361_v1 = vpop.f32.mrb[53].mxu0 }
 0x3d1   : > { %4369 = vmatpush3.bf16.msra.mxu0 %v4366_v35  ;;  %v5643_v4 = vadd.f32 %v3361_v1, %v3360_v0  ;;  %v3363_v43 = vpop.f32.mrb[54].mxu0 }
 0x3d2   : > { %2072 = vmatmul.mubr.f32.gmra.mrb[92].mxu1 %v5485_v57  ;;  %v3364_v22 = vpop.f32.mrb[55].mxu0  ;;  %v2453_v57 = vld [vmem:[#allocation14 + $0x250] sm:$0xff] }
 0x3d3   : > { %2076 = vmatprep.mubr.f32.mxu1 %v5573_v40  ;;  %4397 = vmatpush3.bf16.msra.mxu1 %v4396_v33  ;;  %v5647_v39 = vadd.f32 %v3364_v22, %v3363_v43  ;;  %v3366_v37 = vpop.f32.mrb[56].mxu0  ;;  %v2451_v40 = vld [vmem:[#allocation14 + $0x240] sm:$0xff] }
 0x3d4   : > { %4399 = vmatprep.subr.bf16.mxu1 %v4398_v45  ;;  %v3367_v16 = vpop.f32.mrb[57].mxu0 }
 0x3d5   : > { %v5651_v33 = vadd.f32 %v3367_v16, %v3366_v37  ;;  %v3369_v26 = vpop.f32.mrb[58].mxu0  ;;  %v2427_v37 = vld [vmem:[#allocation14 + $0x180] sm:$0xff]  ;;  %v2428_v16 = vld [vmem:[#allocation14 + $0x188] sm:$0xff] }
 0x3d6   : > { %2077 = vmatmul.mubr.f32.gmra.mrb[94].mxu1 %v5488_v8  ;;  %v3370_v45 = vpop.f32.mrb[59].mxu0 }
 0x3d7   : > { %2081 = vmatprep.mubr.f32.mxu1 %v5587_v13  ;;  %4401 = vmatpush3.bf16.msra.mxu1 %v4400_v49  ;;  %v5655_v3 = vadd.f32 %v3370_v45, %v3369_v26  ;;  %v3372_v24 = vpop.f32.mrb[60].mxu0  ;;  %v4402_v45 = vpack.c.bf16 %v2428_v16, %v2427_v37  ;;  %v4593_v37 = vld [vmem:[%s5221_s29] sm:$0xff]  ;;  %v2448_v13 = vld [vmem:[#allocation14 + $0x228] sm:$0xff] }
 0x3d8   : > { %v3373_v58 = vpop.f32.mrb[61].mxu0 }
 0x3d9   : > { %v5659_v34 = vadd.f32 %v3373_v58, %v3372_v24  ;;  %v3375_v48 = vpop.f32.mrb[62].mxu0  ;;  %4403 = vmatprep.subr.bf16.mxu0 %v4402_v45  ;;  %v4594_v45 = vld [vmem:[%s5221_s29 + $0x8] sm:$0xff] }
 0x3da   : > { %2082 = vmatmul.mubr.f32.gmra.mrb[96].mxu1 %v5491_v15  ;;  %v3376_v35 = vpop.f32.mrb[63].mxu0 }
 0x3db   : > { %2086 = vmatprep.mubr.f32.mxu1 %v5583_v17  ;;  %v5663_v49 = vadd.f32 %v3376_v35, %v3375_v48  ;;  %v3378_v0 = vpop.f32.mrb[64].mxu0  ;;  %v2413_v17 = vld [vmem:[#allocation14 + $0x110] sm:$0xff] }
 0x3dc   : > { %v3379_v1 = vpop.f32.mrb[65].mxu0 }
 0x3dd   : > { %v5667_v43 = vadd.f32 %v3379_v1, %v3378_v0  ;;  %v3381_v22 = vpop.f32.mrb[66].mxu0 }
 0x3de   : > { %2087 = vmatmul.mubr.f32.gmra.mrb[98].mxu1 %v5494_v18  ;;  %v3382_v26 = vpop.f32.mrb[67].mxu0 }
 0x3df   : > { %2091 = vmatprep.mubr.f32.mxu1 %v5597_v9  ;;  %v5671_v24 = vadd.f32 %v3382_v26, %v3381_v22  ;;  %v3384_v58 = vpop.f32.mrb[68].mxu0  ;;  %v2443_v9 = vld [vmem:[#allocation14 + $0x200] sm:$0xff] }
 0x3e0   : > { %v3385_v48 = vpop.f32.mrb[69].mxu0 }
 0x3e1   : > { %v5675_v35 = vadd.f32 %v3385_v48, %v3384_v58  ;;  %v3387_v0 = vpop.f32.mrb[70].mxu0  ;;  %v4595_v48 = vld [vmem:[%s5221_s29 + $0x10] sm:$0xff] }
 0x3e2   : > { %2092 = vmatmul.mubr.f32.gmra.mrb[100].mxu1 %v5497_v28  ;;  %v3388_v1 = vpop.f32.mrb[71].mxu0 }
 0x3e3   : > { %2096 = vmatprep.mubr.f32.mxu1 %v5593_v21  ;;  %v5679_v16 = vadd.f32 %v3388_v1, %v3387_v0  ;;  %v3390_v22 = vpop.f32.mrb[72].mxu0  ;;  %v4596_v1 = vld [vmem:[%s5221_s29 + $0x18] sm:$0xff] }
 0x3e4   : > { %v3391_v26 = vpop.f32.mrb[73].mxu0 }
 0x3e5   : > { %v3393_v58 = vpop.f32.mrb[74].mxu0 }
 0x3e6   : > { %2097 = vmatmul.mubr.f32.gmra.mrb[102].mxu1 %v5500_v36 }
 0x3e7   : > { %2101 = vmatprep.mubr.f32.mxu1 %v5607_v62 }
 0x3ea   : > { %2102 = vmatmul.mubr.f32.gmra.mrb[104].mxu1 %v5503_v44 }
 0x3eb   : > { %2106 = vmatprep.mubr.f32.mxu1 %v5603_v59  ;;  %v4608_v59 = vld [vmem:[%s5221_s29 + $0x78] sm:$0xff] }
 0x3ee   : > { %2107 = vmatmul.mubr.f32.gmra.mrb[106].mxu1 %v5506_v50 }
 0x3ef   : > { %2111 = vmatprep.mubr.f32.mxu1 %v5617_v6 }
 0x3f2   : > { %2112 = vmatmul.mubr.f32.gmra.mrb[108].mxu1 %v5509_v5 }
 0x3f3   : > { %2116 = vmatprep.mubr.f32.mxu1 %v5613_v25  ;;  %v5683_v25 = vadd.f32 %v3391_v26, %v3390_v22  ;;  %v4597_v26 = vld [vmem:[%s5221_s29 + $0x20] sm:$0xff] }
 0x3f6   : > { %2117 = vmatmul.mubr.f32.gmra.mrb[110].mxu1 %v5512_v23 }
 0x3f7   : > { %2539 = vmatprep.mubr.f32.mxu1 %v5305_v20  ;;  %v3394_v20 = vpop.f32.mrb[75].mxu0 }
 0x3f8   : > { %v3396_v0 = vpop.f32.mrb[76].mxu0 }
 0x3fa   : > { %2540 = vmatmul.mubr.f32.vlgmr.msra.gmra.mrb[112].mxu1 %v4593_v37  ;;  %v5687_v37 = vadd.f32 %v3394_v20, %v3393_v58 }
 0x3fb   : > { %2544 = vmatprep.mubr.f32.mxu1 %v5303_v19  ;;  %v3397_v19 = vpop.f32.mrb[77].mxu0 }
 0x3fc   : > { %v5691_v23 = vadd.f32 %v3397_v19, %v3396_v0  ;;  %v3399_v22 = vpop.f32.mrb[78].mxu0  ;;  %v4599_v19 = vld [vmem:[%s5221_s29 + $0x30] sm:$0xff] }
 0x3fe   : > { %2545 = vmatmul.mubr.f32.gmra.mrb[114].mxu1 %v4594_v45 }
 0x3ff   : > { %2549 = vmatprep.mubr.f32.mxu1 %v5315_v31  ;;  %v3400_v31 = vpop.f32.mrb[79].mxu0 }
 0x400   : > { %v5695_v45 = vadd.f32 %v3400_v31, %v3399_v22  ;;  %v3514_v58 = vpop.f32.mrb[80].mxu0  ;;  %v4600_v31 = vld [vmem:[%s5221_s29 + $0x38] sm:$0xff] }
 0x401   : > { %v3515_v20 = vpop.f32.mrb[81].mxu0 }
 0x402   : > { %2550 = vmatmul.mubr.f32.gmra.mrb[116].mxu1 %v4595_v48  ;;  %v5700_v48 = vadd.f32 %v3515_v20, %v3514_v58  ;;  %v3517_v0 = vpop.f32.mrb[82].mxu0 }
 0x403   : > { %2554 = vmatprep.mubr.f32.mxu1 %v5313_v29  ;;  %v4598_v29 = vld [vmem:[%s5221_s29 + $0x28] sm:$0xff] }
 0x406   : > { %2555 = vmatmul.mubr.f32.gmra.mrb[118].mxu1 %v4596_v1 }
 0x407   : > { %2559 = vmatprep.mubr.f32.mxu1 %v5323_v42  ;;  %v3518_v42 = vpop.f32.mrb[83].mxu0 }
 0x408   : > { %v5703_v1 = vadd.f32 %v3518_v42, %v3517_v0  ;;  %v3520_v22 = vpop.f32.mrb[84].mxu0  ;;  %v4602_v42 = vld [vmem:[%s5221_s29 + $0x48] sm:$0xff] }
 0x40a   : > { %2560 = vmatmul.mubr.f32.gmra.mrb[120].mxu1 %v4597_v26 }
 0x40b   : > { %2564 = vmatprep.mubr.f32.mxu1 %v5321_v41  ;;  %v3521_v41 = vpop.f32.mrb[85].mxu0 }
 0x40c   : > { %v5707_v26 = vadd.f32 %v3521_v41, %v3520_v22  ;;  %v4603_v41 = vld [vmem:[%s5221_s29 + $0x50] sm:$0xff] }
 0x40e   : > { %2565 = vmatmul.mubr.f32.gmra.mrb[122].mxu1 %v4598_v29  ;;  %v4601_v29 = vld [vmem:[%s5221_s29 + $0x40] sm:$0xff] }
 0x40f   : > { %2569 = vmatprep.mubr.f32.mxu1 %v5331_v52  ;;  %v3523_v52 = vpop.f32.mrb[86].mxu0 }
 0x410   : > { %v3524_v58 = vpop.f32.mrb[87].mxu0 }
 0x411   : > { %v5711_v20 = vadd.f32 %v3524_v58, %v3523_v52  ;;  %v3526_v0 = vpop.f32.mrb[88].mxu0  ;;  %v4604_v58 = vld [vmem:[%s5221_s29 + $0x58] sm:$0xff] }
 0x412   : > { %2570 = vmatmul.mubr.f32.gmra.mrb[124].mxu1 %v4599_v19 }
 0x413   : > { %2574 = vmatprep.mubr.f32.mxu1 %v5329_v51  ;;  %v3527_v51 = vpop.f32.mrb[89].mxu0 }
 0x414   : > { %v5715_v19 = vadd.f32 %v3527_v51, %v3526_v0  ;;  %v3529_v22 = vpop.f32.mrb[90].mxu0  ;;  %v6231_v0 = vld [vmem:[#allocation22_spill] sm:$0xff] }
 0x416   : > { %2575 = vmatmul.mubr.f32.gmra.mrb[126].mxu1 %v4600_v31 }
 0x417   : > { %2579 = vmatprep.mubr.f32.mxu1 %v5339_v63  ;;  %v3530_v63 = vpop.f32.mrb[91].mxu0 }
 0x418   : > { %v5719_v31 = vadd.f32 %v3530_v63, %v3529_v22  ;;  %v3532_v52 = vpop.f32.mrb[92].mxu0  ;;  %v6233_v22 = vld [vmem:[#allocation21_spill] sm:$0xff] }
 0x41a   : > { %2580 = vmatmul.mubr.f32.gmra.mrb[128].mxu1 %v4601_v29 }
 0x41b   : > { %2584 = vmatprep.mubr.f32.mxu1 %v5337_v61  ;;  %v3533_v61 = vpop.f32.mrb[93].mxu0 }
 0x41c   : > { %v5723_v29 = vadd.f32 %v3533_v61, %v3532_v52  ;;  %v3535_v51 = vpop.f32.mrb[94].mxu0  ;;  %v6235_v52 = vld [vmem:[#allocation24_spill] sm:$0xff] }
 0x41e   : > { %2585 = vmatmul.mubr.f32.gmra.mrb[130].mxu1 %v4602_v42  ;;  %6230 = vst [vmem:[#allocation44_spill] sm:$0xff] %v5723_v29  ;;  %v4605_v42 = vld [vmem:[%s5221_s29 + $0x60] sm:$0xff] }
 0x41f   : > { %2589 = vmatprep.mubr.f32.mxu1 %v5347_v12  ;;  %v3536_v12 = vpop.f32.mrb[95].mxu0  ;;  %v2455_v29 = vld [vmem:[#allocation14 + $0x260] sm:$0xff] }
 0x420   : > { %v5727_v5 = vadd.f32 %v3536_v12, %v3535_v51  ;;  %v3538_v63 = vpop.f32.mrb[96].mxu0 }
 0x422   : > { %2590 = vmatmul.mubr.f32.gmra.mrb[132].mxu1 %v4603_v41  ;;  %6232 = vst [vmem:[#allocation22_spill] sm:$0xff] %v5727_v5  ;;  %v4606_v41 = vld [vmem:[%s5221_s29 + $0x68] sm:$0xff]  ;;  %v2449_v5 = vld [vmem:[#allocation14 + $0x230] sm:$0xff] }
 0x423   : > { %2594 = vmatprep.mubr.f32.mxu1 %v5345_v11  ;;  %v3539_v11 = vpop.f32.mrb[97].mxu0 }
 0x424   : > { %v5731_v6 = vadd.f32 %v3539_v11, %v3538_v63  ;;  %v3541_v61 = vpop.f32.mrb[98].mxu0 }
 0x426   : > { %2595 = vmatmul.mubr.f32.gmra.mrb[134].mxu1 %v4604_v58  ;;  %6234 = vst [vmem:[#allocation21_spill] sm:$0xff] %v5731_v6  ;;  %v3542_v58 = vpop.f32.mrb[99].mxu0  ;;  %v2447_v6 = vld [vmem:[#allocation14 + $0x220] sm:$0xff] }
 0x427   : > { %2599 = vmatprep.mubr.f32.mxu1 %v6231_v0  ;;  %v4607_v0 = vld [vmem:[%s5221_s29 + $0x70] sm:$0xff]  ;;  %v5735_v50 = vadd.f32 %v3542_v58, %v3541_v61  ;;  %v3544_v51 = vpop.f32.mrb[100].mxu0 }
 0x428   : > { %v3545_v12 = vpop.f32.mrb[101].mxu0 }
 0x429   : > { %6236 = vst [vmem:[#allocation24_spill] sm:$0xff] %v5735_v50  ;;  %v3547_v44 = vpop.f32.mrb[102].mxu0 }
 0x42a   : > { %2600 = vmatmul.mubr.f32.gmra.mrb[136].mxu1 %v4605_v42  ;;  %v6237_v42 = vld [vmem:[#allocation23_spill] sm:$0xff] }
 0x42b   : > { %2604 = vmatprep.mubr.f32.mxu1 %v6233_v22  ;;  %v5738_v22 = vadd.f32 %v3545_v12, %v3544_v51 }
 0x42d   : > { %6238 = vst [vmem:[#allocation23_spill] sm:$0xff] %v5738_v22 }
 0x42e   : > { %2605 = vmatmul.mubr.f32.gmra.mrb[138].mxu1 %v4606_v41  ;;  %v3548_v41 = vpop.f32.mrb[103].mxu0 }
 0x42f   : > { %2609 = vmatprep.mubr.f32.mxu1 %v6235_v52  ;;  %v5741_v63 = vadd.f32 %v3548_v41, %v3547_v44  ;;  %v3550_v11 = vpop.f32.mrb[104].mxu0  ;;  %v2459_v41 = vld [vmem:[#allocation14 + $0x280] sm:$0xff] }
 0x430   : > { %v3551_v52 = vpop.f32.mrb[105].mxu0 }
 0x431   : > { %6239 = vst [vmem:[#allocation45_spill] sm:$0xff] %v5741_v63  ;;  %v5743_v62 = vadd.f32 %v3551_v52, %v3550_v11  ;;  %v3553_v36 = vpop.f32.mrb[106].mxu0  ;;  %v2460_v63 = vld [vmem:[#allocation14 + $0x288] sm:$0xff] }
 0x432   : > { %2610 = vmatmul.mubr.f32.gmra.mrb[140].mxu1 %v4607_v0  ;;  %v3554_v0 = vpop.f32.mrb[107].mxu0  ;;  %v5751_v11 = vpack.c.bf16 %v2460_v63, %v2459_v41  ;;  %v2444_v52 = vld [vmem:[#allocation14 + $0x208] sm:$0xff]  ;;  %v2445_v63 = vld [vmem:[#allocation14 + $0x210] sm:$0xff] }
 0x433   : > { %2614 = vmatprep.mubr.f32.mxu1 %v6237_v42  ;;  %6240 = vst [vmem:[#allocation46_spill] sm:$0xff] %v5743_v62  ;;  %v5745_v61 = vadd.f32 %v3554_v0, %v3553_v36  ;;  %v3556_v58 = vpop.f32.mrb[108].mxu0  ;;  %v2461_v62 = vld [vmem:[#allocation14 + $0x290] sm:$0xff]  ;;  %v2462_v36 = vld [vmem:[#allocation14 + $0x298] sm:$0xff] }
 0x434   : > { %v3557_v42 = vpop.f32.mrb[109].mxu0  ;;  %4466 = vmatprep.subr.bf16.mxu1 %v5751_v11 }
 0x435   : > { %6241 = vst [vmem:[#allocation47_spill] sm:$0xff] %v5745_v61  ;;  %v5747_v21 = vadd.f32 %v3557_v42, %v3556_v58  ;;  %v3559_v51 = vpop.f32.mrb[110].mxu0  ;;  %v2411_v42 = vld [vmem:[#allocation14 + $0x100] sm:$0xff]  ;;  %v2429_v61 = vld [vmem:[#allocation14 + $0x190] sm:$0xff] }
 0x436   : > { %2615 = vmatmul.mubr.f32.gmra.mrb[142].mxu1 %v4608_v59  ;;  %v3560_v12 = vpop.f32.mrb[111].mxu0 }
 0x437   : > { %6242 = vst [vmem:[#allocation48_spill] sm:$0xff] %v5747_v21  ;;  %v5749_v28 = vadd.f32 %v3560_v12, %v3559_v51  ;;  %v2412_v21 = vld [vmem:[#allocation14 + $0x108] sm:$0xff]  ;;  %v5756_v51 = vpack.c.bf16 %v2444_v52, %v2443_v9 }
 0x438   : > { %v4404_v18 = vpack.c.bf16 %v2412_v21, %v2411_v42  ;;  %v2465_v21 = vld [vmem:[#allocation14 + $0x2b0] sm:$0xff] }
 0x439   : > { %6243 = vst [vmem:[#allocation49_spill] sm:$0xff] %v5749_v28  ;;  %v2430_v28 = vld [vmem:[#allocation14 + $0x198] sm:$0xff]  ;;  %4474 = vmatpush3.bf16.msra.mxu1 %v5756_v51 }
 0x43a   : > { %v4406_v50 = vpack.c.bf16 %v2430_v28, %v2429_v61 }
 0x44d   : > { %v3434_v59 = vpop.f32.mrb[48].mxu1 }
 0x44e   : > { %v3435_v22 = vpop.f32.mrb[49].mxu1 }
 0x44f   : > { %v3436_v44 = vadd.f32 %v3435_v22, %v3434_v59  ;;  %v5759_v22 = vpack.c.bf16 %v2462_v36, %v2461_v62  ;;  %v2446_v59 = vld [vmem:[#allocation14 + $0x218] sm:$0xff]  ;;  %v2431_v36 = vld [vmem:[#allocation14 + $0x1a0] sm:$0xff] }
 0x450   : > { %v2414_v62 = vld [vmem:[#allocation14 + $0x118] sm:$0xff]  ;;  %v5767_v15 = vpack.c.bf16 %v2446_v59, %v2445_v63  ;;  %v2415_v59 = vld [vmem:[#allocation14 + $0x120] sm:$0xff] }
 0x451   : > { %v5754_v0 = vadd.f32 %v3436_v44, %v5622_v14  ;;  %v3437_v58 = vpop.f32.mrb[50].mxu1  ;;  %v2463_v14 = vld [vmem:[#allocation14 + $0x2a0] sm:$0xff]  ;;  %v2464_v44 = vld [vmem:[#allocation14 + $0x2a8] sm:$0xff]  ;;  %4467 = vmatprep.subr.bf16.mxu1 %v5759_v22  ;;  %v4408_v28 = vpack.c.bf16 %v2414_v62, %v2413_v17 }
 0x452   : > { %v3438_v12 = vpop.f32.mrb[51].mxu1  ;;  %4475 = vmatpush3.bf16.msra.mxu1 %v5767_v15 }
 0x453   : > { %6244 = vst [vmem:[#allocation50_spill] sm:$0xff] %v5754_v0  ;;  %v3439_v41 = vadd.f32 %v3438_v12, %v3437_v58  ;;  %4058 = vmatprep.mubr.f32.mxu0 %v5754_v0  ;;  %v2432_v12 = vld [vmem:[#allocation14 + $0x1a8] sm:$0xff]  ;;  %v5769_v0 = vpack.c.bf16 %v2464_v44, %v2463_v14  ;;  %v2433_v14 = vld [vmem:[#allocation14 + $0x1b0] sm:$0xff]  ;;  %v5777_v44 = vpack.c.bf16 %v2448_v13, %v2447_v6 }
 0x454   : > { %v4410_v63 = vpack.c.bf16 %v2432_v12, %v2431_v36  ;;  %v2417_v36 = vld [vmem:[#allocation14 + $0x130] sm:$0xff]  ;;  %v2418_v12 = vld [vmem:[#allocation14 + $0x138] sm:$0xff] }
 0x455   : > { %v5765_v9 = vadd.f32 %v3439_v41, %v5639_v53  ;;  %v3440_v52 = vpop.f32.mrb[52].mxu1  ;;  %v2466_v53 = vld [vmem:[#allocation14 + $0x2b8] sm:$0xff]  ;;  %4468 = vmatprep.subr.bf16.mxu1 %v5769_v0  ;;  %v2416_v41 = vld [vmem:[#allocation14 + $0x128] sm:$0xff] }
 0x456   : > { %v3441_v58 = vpop.f32.mrb[53].mxu1  ;;  %4476 = vmatpush3.bf16.msra.mxu1 %v5777_v44 }
 0x457   : > { %6245 = vst [vmem:[#allocation51_spill] sm:$0xff] %v5765_v9  ;;  %v3442_v8 = vadd.f32 %v3441_v58, %v3440_v52  ;;  %4059 = vmatmul.mubr.f32.vlgmr.msra.gmra.mrb[112].mxu0 %v5765_v9  ;;  %v2434_v58 = vld [vmem:[#allocation14 + $0x1b8] sm:$0xff]  ;;  %v5779_v9 = vpack.c.bf16 %v2466_v53, %v2465_v21  ;;  %v2435_v21 = vld [vmem:[#allocation14 + $0x1c0] sm:$0xff] }
 0x458   : > { %4405 = vmatpush3.bf16.msra.mxu0 %v4404_v18  ;;  %v2450_v18 = vld [vmem:[#allocation14 + $0x238] sm:$0xff]  ;;  %v4414_v62 = vpack.c.bf16 %v2434_v58, %v2433_v14 }
 0x459   : > { %v5775_v61 = vadd.f32 %v3442_v8, %v5643_v4  ;;  %v3443_v42 = vpop.f32.mrb[54].mxu1  ;;  %4407 = vmatprep.subr.bf16.mxu0 %v4406_v50  ;;  %v2467_v8 = vld [vmem:[#allocation14 + $0x2c0] sm:$0xff]  ;;  %v2468_v4 = vld [vmem:[#allocation14 + $0x2c8] sm:$0xff]  ;;  %v4412_v50 = vpack.c.bf16 %v2416_v41, %v2415_v59  ;;  %4469 = vmatprep.subr.bf16.mxu1 %v5779_v9  ;;  %v5787_v53 = vpack.c.bf16 %v2450_v18, %v2449_v5  ;;  %v2470_v41 = vld [vmem:[#allocation14 + $0x2d8] sm:$0xff] }
 0x45a   : > { %v3444_v52 = vpop.f32.mrb[55].mxu1  ;;  %v2419_v18 = vld [vmem:[#allocation14 + $0x140] sm:$0xff] }
 0x45b   : > { %6246 = vst [vmem:[#allocation52_spill] sm:$0xff] %v5775_v61  ;;  %v3445_v17 = vadd.f32 %v3444_v52, %v3443_v42  ;;  %4061 = vmatprep.mubr.f32.mxu0 %v5775_v61  ;;  %v2436_v52 = vld [vmem:[#allocation14 + $0x1c8] sm:$0xff]  ;;  %v5789_v61 = vpack.c.bf16 %v2468_v4, %v2467_v8  ;;  %4477 = vmatpush3.bf16.msra.mxu1 %v5787_v53  ;;  %v2437_v8 = vld [vmem:[#allocation14 + $0x1d0] sm:$0xff] }
 0x45c   : > { %4409 = vmatpush3.bf16.msra.mxu0 %v4408_v28  ;;  %v2452_v28 = vld [vmem:[#allocation14 + $0x248] sm:$0xff]  ;;  %v4418_v58 = vpack.c.bf16 %v2436_v52, %v2435_v21 }
 0x45d   : > { %v5785_v13 = vadd.f32 %v3445_v17, %v5647_v39  ;;  %v3446_v6 = vpop.f32.mrb[56].mxu1  ;;  %4411 = vmatprep.subr.bf16.mxu0 %v4410_v63  ;;  %v2469_v39 = vld [vmem:[#allocation14 + $0x2d0] sm:$0xff]  ;;  %v4416_v63 = vpack.c.bf16 %v2418_v12, %v2417_v36  ;;  %4470 = vmatprep.subr.bf16.mxu1 %v5789_v61  ;;  %v2420_v17 = vld [vmem:[#allocation14 + $0x148] sm:$0xff]  ;;  %v5797_v4 = vpack.c.bf16 %v2452_v28, %v2451_v40 }
 0x45e   : > { %v3447_v42 = vpop.f32.mrb[57].mxu1  ;;  %v2472_v12 = vld [vmem:[#allocation14 + $0x2e8] sm:$0xff]  ;;  %v2421_v28 = vld [vmem:[#allocation14 + $0x150] sm:$0xff] }
 0x45f   : > { %6247 = vst [vmem:[#allocation53_spill] sm:$0xff] %v5785_v13  ;;  %v3448_v59 = vadd.f32 %v3447_v42, %v3446_v6  ;;  %4062 = vmatmul.mubr.f32.gmra.mrb[114].mxu0 %v5785_v13  ;;  %v2438_v42 = vld [vmem:[#allocation14 + $0x1d8] sm:$0xff]  ;;  %v5799_v13 = vpack.c.bf16 %v2470_v41, %v2469_v39  ;;  %4478 = vmatpush3.bf16.msra.mxu1 %v5797_v4  ;;  %v2439_v39 = vld [vmem:[#allocation14 + $0x1e0] sm:$0xff] }
 0x460   : > { %4413 = vmatpush3.bf16.msra.mxu0 %v4412_v50  ;;  %v2454_v50 = vld [vmem:[#allocation14 + $0x258] sm:$0xff]  ;;  %v4422_v52 = vpack.c.bf16 %v2438_v42, %v2437_v8  ;;  %v2423_v8 = vld [vmem:[#allocation14 + $0x160] sm:$0xff]  ;;  %v2424_v42 = vld [vmem:[#allocation14 + $0x168] sm:$0xff] }
 0x461   : > { %v5795_v5 = vadd.f32 %v3448_v59, %v5651_v33  ;;  %v3449_v14 = vpop.f32.mrb[58].mxu1  ;;  %4415 = vmatprep.subr.bf16.mxu0 %v4414_v62  ;;  %v2471_v33 = vld [vmem:[#allocation14 + $0x2e0] sm:$0xff]  ;;  %v4420_v62 = vpack.c.bf16 %v2420_v17, %v2419_v18  ;;  %4471 = vmatprep.subr.bf16.mxu1 %v5799_v13  ;;  %v2422_v59 = vld [vmem:[#allocation14 + $0x158] sm:$0xff]  ;;  %v5807_v41 = vpack.c.bf16 %v2454_v50, %v2453_v57 }
 0x462   : > { %v3450_v6 = vpop.f32.mrb[59].mxu1 }
 0x463   : > { %6248 = vst [vmem:[#allocation54_spill] sm:$0xff] %v5795_v5  ;;  %v3451_v36 = vadd.f32 %v3450_v6, %v3449_v14  ;;  %4064 = vmatprep.mubr.f32.mxu0 %v5795_v5  ;;  %v2440_v6 = vld [vmem:[#allocation14 + $0x1e8] sm:$0xff]  ;;  %v5809_v5 = vpack.c.bf16 %v2472_v12, %v2471_v33  ;;  %4479 = vmatpush3.bf16.msra.mxu1 %v5807_v41  ;;  %v2441_v33 = vld [vmem:[#allocation14 + $0x1f0] sm:$0xff]  ;;  %v2442_v12 = vld [vmem:[#allocation14 + $0x1f8] sm:$0xff] }
 0x464   : > { %4417 = vmatpush3.bf16.msra.mxu0 %v4416_v63  ;;  %v2456_v63 = vld [vmem:[#allocation14 + $0x268] sm:$0xff]  ;;  %v4426_v17 = vpack.c.bf16 %v2440_v6, %v2439_v39  ;;  %v2426_v39 = vld [vmem:[#allocation14 + $0x178] sm:$0xff] }
 0x465   : > { %v5805_v40 = vadd.f32 %v3451_v36, %v5655_v3  ;;  %v3452_v21 = vpop.f32.mrb[60].mxu1  ;;  %4419 = vmatprep.subr.bf16.mxu0 %v4418_v58  ;;  %v4424_v3 = vpack.c.bf16 %v2422_v59, %v2421_v28  ;;  %4472 = vmatprep.subr.bf16.mxu1 %v5809_v5  ;;  %v5817_v50 = vpack.c.bf16 %v2456_v63, %v2455_v29  ;;  %v2425_v59 = vld [vmem:[#allocation14 + $0x170] sm:$0xff] }
 0x466   : > { %v3453_v14 = vpop.f32.mrb[61].mxu1  ;;  %v4432_v6 = vpack.c.bf16 %v2426_v39, %v2425_v59 }
 0x467   : > { %v3454_v18 = vadd.f32 %v3453_v14, %v3452_v21  ;;  %4065 = vmatmul.mubr.f32.gmra.mrb[116].mxu0 %v5805_v40  ;;  %4480 = vmatpush3.bf16.msra.mxu1 %v5817_v50 }
 0x468   : > { %4421 = vmatpush3.bf16.msra.mxu0 %v4420_v62  ;;  %v4428_v62 = vpack.c.bf16 %v2424_v42, %v2423_v8 }
 0x469   : > { %v5815_v58 = vadd.f32 %v3454_v18, %v5659_v34  ;;  %v3455_v57 = vpop.f32.mrb[62].mxu1  ;;  %4423 = vmatprep.subr.bf16.mxu0 %v4422_v52  ;;  %v4430_v52 = vpack.c.bf16 %v2442_v12, %v2441_v33 }
 0x46a   : > { %v3456_v36 = vpop.f32.mrb[63].mxu1 }
 0x46b   : > { %v3457_v21 = vadd.f32 %v3456_v36, %v3455_v57  ;;  %4067 = vmatprep.mubr.f32.mxu0 %v5815_v58 }
 0x46c   : > { %4425 = vmatpush3.bf16.msra.mxu0 %v4424_v3 }
 0x46d   : > { %v5822_v34 = vadd.f32 %v3457_v21, %v5663_v49  ;;  %v3458_v28 = vpop.f32.mrb[64].mxu1  ;;  %4427 = vmatprep.subr.bf16.mxu0 %v4426_v17 }
 0x46e   : > { %v3459_v29 = vpop.f32.mrb[65].mxu1 }
 0x46f   : > { %v3460_v14 = vadd.f32 %v3459_v29, %v3458_v28  ;;  %4068 = vmatmul.mubr.f32.gmra.mrb[118].mxu0 %v5822_v34 }
 0x470   : > { %4429 = vmatpush3.bf16.msra.mxu0 %v4428_v62 }
 0x471   : > { %v5826_v63 = vadd.f32 %v3460_v14, %v5667_v43  ;;  %v3461_v18 = vpop.f32.mrb[66].mxu1  ;;  %4431 = vmatprep.subr.bf16.mxu0 %v4430_v52 }
 0x472   : > { %v3462_v3 = vpop.f32.mrb[67].mxu1 }
 0x473   : > { %v3463_v57 = vadd.f32 %v3462_v3, %v3461_v18  ;;  %4070 = vmatprep.mubr.f32.mxu0 %v5826_v63 }
 0x474   : > { %4433 = vmatpush3.bf16.msra.mxu0 %v4432_v6 }
 0x475   : > { %v5830_v49 = vadd.f32 %v3463_v57, %v5671_v24  ;;  %v3464_v17 = vpop.f32.mrb[68].mxu1  ;;  %4435 = vmatprep.subr.bf16.mxu0 %v5751_v11 }
 0x476   : > { %v3465_v8 = vpop.f32.mrb[69].mxu1 }
 0x477   : > { %v3466_v42 = vadd.f32 %v3465_v8, %v3464_v17  ;;  %4071 = vmatmul.mubr.f32.gmra.mrb[120].mxu0 %v5830_v49 }
 0x479   : > { %v5835_v43 = vadd.f32 %v3466_v42, %v5675_v35  ;;  %v3467_v36 = vpop.f32.mrb[70].mxu1 }
 0x47a   : > { %v3468_v33 = vpop.f32.mrb[71].mxu1 }
 0x47b   : > { %v3469_v12 = vadd.f32 %v3468_v33, %v3467_v36  ;;  %4073 = vmatprep.mubr.f32.mxu0 %v5835_v43 }
 0x47d   : > { %v5839_v21 = vadd.f32 %v3469_v12, %v5679_v16  ;;  %v3470_v24 = vpop.f32.mrb[72].mxu1 }
 0x47e   : > { %v3471_v62 = vpop.f32.mrb[73].mxu1 }
 0x47f   : > { %v3472_v28 = vadd.f32 %v3471_v62, %v3470_v24  ;;  %4074 = vmatmul.mubr.f32.gmra.mrb[122].mxu0 %v5839_v21  ;;  %v6250_v62 = vld [vmem:[#allocation25_spill] sm:$0xff] }
 0x481   : > { %v5843_v11 = vadd.f32 %v3472_v28, %v5683_v25  ;;  %v3473_v52 = vpop.f32.mrb[74].mxu1 }
 0x482   : > { %v3474_v59 = vpop.f32.mrb[75].mxu1 }
 0x483   : > { %v3475_v35 = vadd.f32 %v3474_v59, %v3473_v52  ;;  %4076 = vmatprep.mubr.f32.mxu0 %v5843_v11 }
 0x485   : > { %v5847_v39 = vadd.f32 %v3475_v35, %v5687_v37  ;;  %v3476_v29 = vpop.f32.mrb[76].mxu1  ;;  %v6253_v35 = vld [vmem:[#allocation26_spill] sm:$0xff] }
 0x486   : > { %v3477_v14 = vpop.f32.mrb[77].mxu1 }
 0x487   : > { %v3478_v16 = vadd.f32 %v3477_v14, %v3476_v29  ;;  %4077 = vmatmul.mubr.f32.gmra.mrb[124].mxu0 %v5847_v39  ;;  %v6254_v29 = vld [vmem:[#allocation37_spill] sm:$0xff] }
 0x489   : > { %v5851_v6 = vadd.f32 %v3478_v16, %v5691_v23  ;;  %v3479_v18 = vpop.f32.mrb[78].mxu1  ;;  %v6255_v16 = vld [vmem:[#allocation21_spill] sm:$0xff] }
 0x48a   : > { %v3480_v3 = vpop.f32.mrb[79].mxu1 }
 0x48b   : > { %v3481_v25 = vadd.f32 %v3480_v3, %v3479_v18  ;;  %4079 = vmatprep.mubr.f32.mxu0 %v5851_v6 }
 0x48d   : > { %v5855_v57 = vadd.f32 %v3481_v25, %v5695_v45  ;;  %v3594_v17 = vpop.f32.mrb[80].mxu1 }
 0x48e   : > { %v3595_v8 = vpop.f32.mrb[81].mxu1 }
 0x48f   : > { %v3596_v37 = vadd.f32 %v3595_v8, %v3594_v17  ;;  %4080 = vmatmul.mubr.f32.gmra.mrb[126].mxu0 %v5855_v57  ;;  %v6257_v17 = vld [vmem:[#allocation36_spill] sm:$0xff] }
 0x490   : > { %2684 = vmatprep.mubr.f32.mxu0 %v5547_v55 }
 0x491   : > { %v3597_v42 = vpop.f32.mrb[82].mxu1  ;;  %v5860_v36 = vadd.f32 %v3596_v37, %v5700_v48  ;;  %v6258_v37 = vld [vmem:[#allocation24_spill] sm:$0xff] }
 0x492   : > { %v3598_v23 = vpop.f32.mrb[83].mxu1 }
 0x493   : > { %v3599_v33 = vadd.f32 %v3598_v23, %v3597_v42  ;;  %2685 = vmatmul.mubr.f32.vlgmr.msra.gmra.mrb[128].mxu0 %v5463_v30 }
 0x494   : > { %2689 = vmatprep.mubr.f32.mxu0 %v5544_v56  ;;  %4437 = vmatpush3.bf16.msra.mxu0 %v5756_v51 }
 0x495   : > { %v3600_v45 = vpop.f32.mrb[84].mxu1  ;;  %4439 = vmatprep.subr.bf16.mxu0 %v5759_v22  ;;  %v5867_v12 = vadd.f32 %v3599_v33, %v5703_v1 }
 0x496   : > { %v3601_v24 = vpop.f32.mrb[85].mxu1 }
 0x497   : > { %v3602_v55 = vadd.f32 %v3601_v24, %v3600_v45  ;;  %2690 = vmatmul.mubr.f32.gmra.mrb[130].mxu0 %v5468_v2  ;;  %v6259_v45 = vld [vmem:[#allocation28_spill] sm:$0xff]  ;;  %v6260_v24 = vld [vmem:[#allocation39_spill] sm:$0xff] }
 0x498   : > { %2694 = vmatprep.mubr.f32.mxu0 %v5557_v54  ;;  %4441 = vmatpush3.bf16.msra.mxu0 %v5767_v15 }
 0x499   : > { %v3603_v48 = vpop.f32.mrb[86].mxu1  ;;  %4443 = vmatprep.subr.bf16.mxu0 %v5769_v0  ;;  %v5874_v30 = vadd.f32 %v3602_v55, %v5707_v26 }
 0x49a   : > { %v3604_v56 = vpop.f32.mrb[87].mxu1 }
 0x49b   : > { %v3605_v51 = vadd.f32 %v3604_v56, %v3603_v48  ;;  %2695 = vmatmul.mubr.f32.gmra.mrb[132].mxu0 %v5473_v10  ;;  %v6261_v48 = vld [vmem:[#allocation23_spill] sm:$0xff] }
 0x49c   : > { %2699 = vmatprep.mubr.f32.mxu0 %v5553_v38  ;;  %4445 = vmatpush3.bf16.msra.mxu0 %v5777_v44  ;;  %v2458_v44 = vld [vmem:[#allocation14 + $0x278] sm:$0xff] }
 0x49d   : > { %v3606_v1 = vpop.f32.mrb[88].mxu1  ;;  %4447 = vmatprep.subr.bf16.mxu0 %v5779_v9  ;;  %v5881_v2 = vadd.f32 %v3605_v51, %v5711_v20 }
 0x49e   : > { %v3607_v15 = vpop.f32.mrb[89].mxu1 }
 0x49f   : > { %v3608_v54 = vadd.f32 %v3607_v15, %v3606_v1  ;;  %2700 = vmatmul.mubr.f32.gmra.mrb[134].mxu0 %v5476_v27  ;;  %v6262_v15 = vld [vmem:[#allocation29_spill] sm:$0xff] }
 0x4a0   : > { %2704 = vmatprep.mubr.f32.mxu0 %v5567_v7  ;;  %4449 = vmatpush3.bf16.msra.mxu0 %v5787_v53 }
 0x4a1   : > { %v3609_v26 = vpop.f32.mrb[90].mxu1  ;;  %4451 = vmatprep.subr.bf16.mxu0 %v5789_v61  ;;  %v5888_v10 = vadd.f32 %v3608_v54, %v5715_v19  ;;  %v2473_v19 = vld [vmem:[#allocation14 + $0x2f0] sm:$0xff]  ;;  %v6263_v54 = vld [vmem:[#allocation38_spill] sm:$0xff] }
 0x4a2   : > { %v3610_v38 = vpop.f32.mrb[91].mxu1  ;;  %v2457_v61 = vld [vmem:[#allocation14 + $0x270] sm:$0xff] }
 0x4a3   : > { %v3611_v0 = vadd.f32 %v3610_v38, %v3609_v26  ;;  %2705 = vmatmul.mubr.f32.gmra.mrb[136].mxu0 %v5479_v47  ;;  %v2474_v47 = vld [vmem:[#allocation14 + $0x2f8] sm:$0xff]  ;;  %v6264_v38 = vld [vmem:[#allocation45_spill] sm:$0xff] }
 0x4a4   : > { %2709 = vmatprep.mubr.f32.mxu0 %v5563_v46  ;;  %4453 = vmatpush3.bf16.msra.mxu0 %v5797_v4  ;;  %v4462_v46 = vpack.c.bf16 %v2474_v47, %v2473_v19  ;;  %v6266_v19 = vld [vmem:[#allocation41_spill] sm:$0xff] }
 0x4a5   : > { %v3612_v20 = vpop.f32.mrb[92].mxu1  ;;  %4455 = vmatprep.subr.bf16.mxu0 %v5799_v13  ;;  %v5895_v27 = vadd.f32 %v3611_v0, %v5719_v31  ;;  %v6249_v13 = vld [vmem:[#allocation44_spill] sm:$0xff] }
 0x4a6   : > { %v3613_v7 = vpop.f32.mrb[93].mxu1  ;;  %4473 = vmatprep.subr.bf16.mxu1 %v4462_v46 }
 0x4a7   : > { %v3614_v22 = vadd.f32 %v3613_v7, %v3612_v20  ;;  %2710 = vmatmul.mubr.f32.gmra.mrb[138].mxu0 %v5482_v32  ;;  %v4464_v32 = vpack.c.bf16 %v2458_v44, %v2457_v61 }
 0x4a8   : > { %2714 = vmatprep.mubr.f32.mxu0 %v5577_v60  ;;  %4457 = vmatpush3.bf16.msra.mxu0 %v5807_v41  ;;  %v6251_v60 = vld [vmem:[#allocation35_spill] sm:$0xff] }
 0x4a9   : > { %v3615_v9 = vpop.f32.mrb[94].mxu1  ;;  %4459 = vmatprep.subr.bf16.mxu0 %v5809_v5  ;;  %v5902_v53 = vadd.f32 %v3614_v22, %v6249_v13  ;;  %4481 = vmatpush3.bf16.msra.mxu1 %v4464_v32  ;;  %v6252_v5 = vld [vmem:[#allocation22_spill] sm:$0xff]  ;;  %v6268_v13 = vld [vmem:[#allocation31_spill] sm:$0xff] }
 0x4aa   : > { %v3616_v31 = vpop.f32.mrb[95].mxu1  ;;  %v6265_v22 = vld [vmem:[#allocation30_spill] sm:$0xff] }
 0x4ab   : > { %v3617_v4 = vadd.f32 %v3616_v31, %v3615_v9  ;;  %2715 = vmatmul.mubr.f32.gmra.mrb[140].mxu0 %v6250_v62  ;;  %v6267_v9 = vld [vmem:[#allocation46_spill] sm:$0xff]  ;;  %v6269_v31 = vld [vmem:[#allocation40_spill] sm:$0xff]  ;;  %v6270_v62 = vld [vmem:[#allocation47_spill] sm:$0xff] }
 0x4ac   : > { %2719 = vmatprep.mubr.f32.mxu0 %v6251_v60  ;;  %4461 = vmatpush3.bf16.msra.mxu0 %v5817_v50  ;;  %v6256_v50 = vld [vmem:[#allocation27_spill] sm:$0xff] }
 0x4ad   : > { %v3618_v41 = vpop.f32.mrb[96].mxu1  ;;  %4463 = vmatprep.subr.bf16.mxu0 %v4462_v46  ;;  %v5908_v28 = vadd.f32 %v3617_v4, %v6252_v5  ;;  %v6271_v5 = vld [vmem:[#allocation32_spill] sm:$0xff] }
 0x4ae   : > { %v3619_v52 = vpop.f32.mrb[97].mxu1 }
 0x4af   : > { %v3620_v59 = vadd.f32 %v3619_v52, %v3618_v41  ;;  %2720 = vmatmul.mubr.f32.gmra.mrb[142].mxu0 %v6253_v35  ;;  %v6272_v52 = vld [vmem:[#allocation43_spill] sm:$0xff]  ;;  %v6273_v35 = vld [vmem:[#allocation48_spill] sm:$0xff] }
 0x4b0   : > { %2724 = vmatprep.mubr.f32.mxu0 %v6254_v29  ;;  %4465 = vmatpush3.bf16.msra.mxu0 %v4464_v32 }
 0x4b1   : > { %v3621_v14 = vpop.f32.mrb[98].mxu1  ;;  %v5913_v18 = vadd.f32 %v3620_v59, %v6255_v16 }
 0x4b2   : > { %v3622_v3 = vpop.f32.mrb[99].mxu1 }
 0x4b3   : > { %v3623_v25 = vadd.f32 %v3622_v3, %v3621_v14  ;;  %2725 = vmatmul.mubr.f32.gmra.mrb[144].mxu0 %v6256_v50  ;;  %v6274_v3 = vld [vmem:[#allocation33_spill] sm:$0xff] }
 0x4b4   : > { %2729 = vmatprep.mubr.f32.mxu0 %v6257_v17  ;;  %v6276_v50 = vld [vmem:[#allocation49_spill] sm:$0xff] }
 0x4b5   : > { %v3624_v8 = vpop.f32.mrb[100].mxu1  ;;  %v5918_v42 = vadd.f32 %v3623_v25, %v6258_v37  ;;  %v6275_v25 = vld [vmem:[#allocation42_spill] sm:$0xff] }
 0x4b6   : > { %v3625_v23 = vpop.f32.mrb[101].mxu1 }
 0x4b7   : > { %v3626_v33 = vadd.f32 %v3625_v23, %v3624_v8  ;;  %2730 = vmatmul.mubr.f32.gmra.mrb[146].mxu0 %v6259_v45  ;;  %v6277_v8 = vld [vmem:[#allocation34_spill] sm:$0xff] }
 0x4b8   : > { %2734 = vmatprep.mubr.f32.mxu0 %v6260_v24 }
 0x4b9   : > { %v3627_v55 = vpop.f32.mrb[102].mxu1  ;;  %v5923_v56 = vadd.f32 %v3626_v33, %v6261_v48 }
 0x4ba   : > { %v3628_v51 = vpop.f32.mrb[103].mxu1 }
 0x4bb   : > { %v3629_v1 = vadd.f32 %v3628_v51, %v3627_v55  ;;  %2735 = vmatmul.mubr.f32.gmra.mrb[148].mxu0 %v6262_v15 }
 0x4bc   : > { %2739 = vmatprep.mubr.f32.mxu0 %v6263_v54 }
 0x4bd   : > { %v3630_v26 = vpop.f32.mrb[104].mxu1  ;;  %v5928_v0 = vadd.f32 %v3629_v1, %v6264_v38 }
 0x4be   : > { %v3631_v20 = vpop.f32.mrb[105].mxu1 }
 0x4bf   : > { %v3632_v7 = vadd.f32 %v3631_v20, %v3630_v26  ;;  %2740 = vmatmul.mubr.f32.gmra.mrb[150].mxu0 %v6265_v22 }
 0x4c0   : > { %2744 = vmatprep.mubr.f32.mxu0 %v6266_v19 }
 0x4c1   : > { %v3633_v47 = vpop.f32.mrb[106].mxu1  ;;  %v5933_v46 = vadd.f32 %v3632_v7, %v6267_v9 }
 0x4c2   : > { %v3634_v61 = vpop.f32.mrb[107].mxu1 }
 0x4c3   : > { %v3635_v44 = vadd.f32 %v3634_v61, %v3633_v47  ;;  %2745 = vmatmul.mubr.f32.gmra.mrb[152].mxu0 %v6268_v13 }
 0x4c4   : > { %2749 = vmatprep.mubr.f32.mxu0 %v6269_v31 }
 0x4c5   : > { %v3636_v4 = vpop.f32.mrb[108].mxu1  ;;  %v5938_v32 = vadd.f32 %v3635_v44, %v6270_v62 }
 0x4c6   : > { %v3637_v60 = vpop.f32.mrb[109].mxu1 }
 0x4c7   : > { %v3638_v41 = vadd.f32 %v3637_v60, %v3636_v4  ;;  %2750 = vmatmul.mubr.f32.gmra.mrb[154].mxu0 %v6271_v5 }
 0x4c8   : > { %2754 = vmatprep.mubr.f32.mxu0 %v6272_v52 }
 0x4c9   : > { %v3639_v59 = vpop.f32.mrb[110].mxu1  ;;  %v5943_v29 = vadd.f32 %v3638_v41, %v6273_v35 }
 0x4ca   : > { %v3640_v14 = vpop.f32.mrb[111].mxu1 }
 0x4cb   : > { %v3641_v16 = vadd.f32 %v3640_v14, %v3639_v59  ;;  %2755 = vmatmul.mubr.f32.gmra.mrb[156].mxu0 %v6274_v3 }
 0x4cc   : > { %2759 = vmatprep.mubr.f32.mxu0 %v6275_v25 }
 0x4cd   : > { %v5948_v17 = vadd.f32 %v3641_v16, %v6276_v50  ;;  %v3706_v37 = vpop.f32.mrb[112].mxu1 }
 0x4ce   : > { %v3707_v23 = vpop.f32.mrb[113].mxu1 }
 0x4cf   : > { %2760 = vmatmul.mubr.f32.gmra.mrb[158].mxu0 %v6277_v8  ;;  %v5951_v33 = vadd.f32 %v3707_v23, %v3706_v37 }
 0x4d1   : > { %v3709_v45 = vpop.f32.mrb[114].mxu1 }
 0x4d2   : > { %v3710_v24 = vpop.f32.mrb[115].mxu1 }
 0x4d3   : > { %v5953_v55 = vadd.f32 %v3710_v24, %v3709_v45 }
 0x4d5   : > { %v3712_v48 = vpop.f32.mrb[116].mxu1 }
 0x4d6   : > { %v3713_v51 = vpop.f32.mrb[117].mxu1 }
 0x4d7   : > { %v5955_v1 = vadd.f32 %v3713_v51, %v3712_v48 }
 0x4d9   : > { %v3715_v15 = vpop.f32.mrb[118].mxu1 }
 0x4da   : > { %v3716_v54 = vpop.f32.mrb[119].mxu1 }
 0x4db   : > { %v5957_v26 = vadd.f32 %v3716_v54, %v3715_v15 }
 0x4dd   : > { %v3718_v38 = vpop.f32.mrb[120].mxu1 }
 0x4de   : > { %v3719_v20 = vpop.f32.mrb[121].mxu1 }
 0x4df   : > { %v5959_v7 = vadd.f32 %v3719_v20, %v3718_v38 }
 0x4e1   : > { %v3721_v22 = vpop.f32.mrb[122].mxu1 }
 0x4e2   : > { %v3722_v19 = vpop.f32.mrb[123].mxu1 }
 0x4e3   : > { %v5961_v47 = vadd.f32 %v3722_v19, %v3721_v22 }
 0x4e5   : > { %v3724_v9 = vpop.f32.mrb[124].mxu1 }
 0x4e6   : > { %v3725_v61 = vpop.f32.mrb[125].mxu1 }
 0x4e7   : > { %v5963_v44 = vadd.f32 %v3725_v61, %v3724_v9 }
 0x4e9   : > { %v3727_v13 = vpop.f32.mrb[126].mxu1 }
 0x4ea   : > { %v3728_v31 = vpop.f32.mrb[127].mxu1 }
 0x4eb   : > { %v5965_v4 = vadd.f32 %v3728_v31, %v3727_v13  ;;  %v6278_v31 = vld [vmem:[#allocation50_spill] sm:$0xff] }
 0x4ed   : > { %v3730_v62 = vpop.f32.mrb[128].mxu1 }
 0x4ee   : > { %v3731_v60 = vpop.f32.mrb[129].mxu1 }
 0x4ef   : > { %v5967_v41 = vadd.f32 %v3731_v60, %v3730_v62 }
 0x4f1   : > { %v3733_v5 = vpop.f32.mrb[130].mxu1 }
 0x4f2   : > { %v3734_v52 = vpop.f32.mrb[131].mxu1 }
 0x4f3   : > { %v5969_v59 = vadd.f32 %v3734_v52, %v3733_v5  ;;  %v6279_v52 = vld [vmem:[#allocation51_spill] sm:$0xff] }
 0x4f5   : > { %v3736_v35 = vpop.f32.mrb[132].mxu1 }
 0x4f6   : > { %v3737_v14 = vpop.f32.mrb[133].mxu1 }
 0x4f7   : > { %v5971_v16 = vadd.f32 %v3737_v14, %v3736_v35  ;;  %v6280_v14 = vld [vmem:[#allocation52_spill] sm:$0xff] }
 0x4f9   : > { %v3739_v3 = vpop.f32.mrb[134].mxu1 }
 0x4fa   : > { %v3740_v25 = vpop.f32.mrb[135].mxu1 }
 0x4fb   : > { %v5973_v50 = vadd.f32 %v3740_v25, %v3739_v3  ;;  %v6281_v25 = vld [vmem:[#allocation53_spill] sm:$0xff] }
 0x4fd   : > { %v3742_v8 = vpop.f32.mrb[136].mxu1 }
 0x4fe   : > { %v3743_v37 = vpop.f32.mrb[137].mxu1 }
 0x4ff   : > { %v5975_v23 = vadd.f32 %v3743_v37, %v3742_v8  ;;  %v6282_v37 = vld [vmem:[#allocation54_spill] sm:$0xff] }
 0x501   : > { %v3745_v45 = vpop.f32.mrb[138].mxu1 }
 0x502   : > { %v3746_v24 = vpop.f32.mrb[139].mxu1 }
 0x503   : > { %v5977_v48 = vadd.f32 %v3746_v24, %v3745_v45 }
 0x505   : > { %v3748_v51 = vpop.f32.mrb[140].mxu1 }
 0x506   : > { %v3749_v15 = vpop.f32.mrb[141].mxu1 }
 0x507   : > { %v5979_v54 = vadd.f32 %v3749_v15, %v3748_v51 }
 0x509   : > { %v3751_v38 = vpop.f32.mrb[142].mxu1 }
 0x50a   : > { %v3752_v20 = vpop.f32.mrb[143].mxu1 }
 0x50b   : > { %v5981_v22 = vadd.f32 %v3752_v20, %v3751_v38 }
 0x52a   : > { %v4060_v19 = vpop.f32.mrb[112].mxu0 }
 0x52b   : > { %v2194_v9 = vadd.f32 %v4060_v19, %v5867_v12  ;;  %v2188_v61 = vpop.f32.mrb[113].mxu0 }
 0x52c   : > { %v2189_v13 = vadd.f32 %v2188_v61, %v5860_v36 }
 0x52e   : > { %2829 = vmatprep.mubr.f32.mxu0 %v2189_v13 }
 0x52f   : > { %2830 = vmatmul.mubr.f32.vlgmr.msra.gmra.mrb[160].mxu0 %v6278_v31 }
 0x530   : > { %2834 = vmatprep.mubr.f32.mxu0 %v2194_v9 }
 0x532   : > { %v4063_v62 = vpop.f32.mrb[114].mxu0 }
 0x533   : > { %v2204_v60 = vadd.f32 %v4063_v62, %v5881_v2  ;;  %v2198_v5 = vpop.f32.mrb[115].mxu0  ;;  %2835 = vmatmul.mubr.f32.gmra.mrb[162].mxu0 %v6279_v52 }
 0x534   : > { %v2199_v35 = vadd.f32 %v2198_v5, %v5874_v30 }
 0x536   : > { %2839 = vmatprep.mubr.f32.mxu0 %v2199_v35 }
 0x537   : > { %2840 = vmatmul.mubr.f32.gmra.mrb[164].mxu0 %v6280_v14 }
 0x538   : > { %2844 = vmatprep.mubr.f32.mxu0 %v2204_v60 }
 0x53a   : > { %v4066_v12 = vpop.f32.mrb[116].mxu0 }
 0x53b   : > { %v2214_v3 = vadd.f32 %v4066_v12, %v5895_v27  ;;  %v2208_v36 = vpop.f32.mrb[117].mxu0  ;;  %2845 = vmatmul.mubr.f32.gmra.mrb[166].mxu0 %v6281_v25 }
 0x53c   : > { %v2209_v8 = vadd.f32 %v2208_v36, %v5888_v10 }
 0x53e   : > { %2849 = vmatprep.mubr.f32.mxu1 %v2209_v8 }
 0x53f   : > { %2850 = vmatmul.mubr.f32.vlgmr.msra.gmra.mrb[144].mxu1 %v6282_v37 }
 0x540   : > { %2854 = vmatprep.mubr.f32.mxu1 %v2214_v3 }
 0x542   : > { %v4069_v2 = vpop.f32.mrb[118].mxu0 }
 0x543   : > { %v2224_v45 = vadd.f32 %v4069_v2, %v5908_v28  ;;  %v2218_v30 = vpop.f32.mrb[119].mxu0  ;;  %2855 = vmatmul.mubr.f32.gmra.mrb[146].mxu1 %v5805_v40 }
 0x544   : > { %v2219_v24 = vadd.f32 %v2218_v30, %v5902_v53 }
 0x546   : > { %2859 = vmatprep.mubr.f32.mxu1 %v2219_v24 }
 0x547   : > { %2860 = vmatmul.mubr.f32.gmra.mrb[148].mxu1 %v5815_v58 }
 0x548   : > { %2864 = vmatprep.mubr.f32.mxu1 %v2224_v45 }
 0x54a   : > { %v4072_v27 = vpop.f32.mrb[120].mxu0 }
 0x54b   : > { %v2234_v51 = vadd.f32 %v4072_v27, %v5918_v42  ;;  %v2228_v10 = vpop.f32.mrb[121].mxu0  ;;  %2865 = vmatmul.mubr.f32.gmra.mrb[150].mxu1 %v5822_v34 }
 0x54c   : > { %v2229_v15 = vadd.f32 %v2228_v10, %v5913_v18 }
 0x54e   : > { %2869 = vmatprep.mubr.f32.mxu1 %v2229_v15 }
 0x54f   : > { %2870 = vmatmul.mubr.f32.gmra.mrb[152].mxu1 %v5826_v63 }
 0x550   : > { %2874 = vmatprep.mubr.f32.mxu1 %v2234_v51 }
 0x552   : > { %v4075_v28 = vpop.f32.mrb[122].mxu0 }
 0x553   : > { %v2244_v40 = vadd.f32 %v4075_v28, %v5928_v0  ;;  %v2238_v53 = vpop.f32.mrb[123].mxu0  ;;  %2875 = vmatmul.mubr.f32.gmra.mrb[154].mxu1 %v5830_v49 }
 0x554   : > { %v2239_v58 = vadd.f32 %v2238_v53, %v5923_v56 }
 0x556   : > { %2879 = vmatprep.mubr.f32.mxu1 %v2239_v58 }
 0x557   : > { %2880 = vmatmul.mubr.f32.gmra.mrb[156].mxu1 %v5835_v43 }
 0x558   : > { %2884 = vmatprep.mubr.f32.mxu1 %v2244_v40 }
 0x55a   : > { %v4078_v42 = vpop.f32.mrb[124].mxu0 }
 0x55b   : > { %v2254_v34 = vadd.f32 %v4078_v42, %v5938_v32  ;;  %v2248_v18 = vpop.f32.mrb[125].mxu0  ;;  %2885 = vmatmul.mubr.f32.gmra.mrb[158].mxu1 %v5839_v21 }
 0x55c   : > { %v2249_v63 = vadd.f32 %v2248_v18, %v5933_v46 }
 0x55e   : > { %2889 = vmatprep.mubr.f32.mxu1 %v2249_v63 }
 0x55f   : > { %2890 = vmatmul.mubr.f32.gmra.mrb[160].mxu1 %v5843_v11 }
 0x560   : > { %2894 = vmatprep.mubr.f32.mxu1 %v2254_v34 }
 0x562   : > { %v4081_v0 = vpop.f32.mrb[126].mxu0 }
 0x563   : > { %v2264_v49 = vadd.f32 %v4081_v0, %v5948_v17  ;;  %v2258_v56 = vpop.f32.mrb[127].mxu0  ;;  %2895 = vmatmul.mubr.f32.gmra.mrb[162].mxu1 %v5847_v39 }
 0x564   : > { %v2259_v43 = vadd.f32 %v2258_v56, %v5943_v29 }
 0x566   : > { %v3786_v38 = vpop.f32.mrb[128].mxu0  ;;  %2899 = vmatprep.mubr.f32.mxu1 %v2259_v43 }
 0x567   : > { %v3787_v32 = vpop.f32.mrb[129].mxu0  ;;  %2900 = vmatmul.mubr.f32.gmra.mrb[164].mxu1 %v5851_v6 }
 0x568   : > { %v3788_v21 = vadd.f32 %v3787_v32, %v3786_v38  ;;  %2904 = vmatprep.mubr.f32.mxu1 %v2264_v49 }
 0x56a   : > { %v6015_v46 = vadd.f32 %v3788_v21, %v5951_v33  ;;  %v3789_v11 = vpop.f32.mrb[130].mxu0 }
 0x56b   : > { %v3790_v20 = vpop.f32.mrb[131].mxu0  ;;  %2905 = vmatmul.mubr.f32.gmra.mrb[166].mxu1 %v5855_v57 }
 0x56c   : > { %v3791_v17 = vadd.f32 %v3790_v20, %v3789_v11 }
 0x56e   : > { %v6019_v19 = vadd.f32 %v3791_v17, %v5953_v55  ;;  %v3792_v39 = vpop.f32.mrb[132].mxu0 }
 0x56f   : > { %v3793_v29 = vpop.f32.mrb[133].mxu0 }
 0x570   : > { %v3794_v9 = vadd.f32 %v3793_v29, %v3792_v39 }
 0x572   : > { %v6022_v61 = vadd.f32 %v3794_v9, %v5955_v1  ;;  %v3795_v6 = vpop.f32.mrb[134].mxu0 }
 0x573   : > { %v3796_v13 = vpop.f32.mrb[135].mxu0 }
 0x574   : > { %v3797_v31 = vadd.f32 %v3796_v13, %v3795_v6 }
 0x576   : > { %v6025_v33 = vadd.f32 %v3797_v31, %v5957_v26  ;;  %v3798_v62 = vpop.f32.mrb[136].mxu0 }
 0x577   : > { %v3799_v60 = vpop.f32.mrb[137].mxu0 }
 0x578   : > { %v3800_v5 = vadd.f32 %v3799_v60, %v3798_v62 }
 0x57a   : > { %v6028_v57 = vadd.f32 %v3800_v5, %v5959_v7  ;;  %v3801_v55 = vpop.f32.mrb[138].mxu0 }
 0x57b   : > { %v3802_v52 = vpop.f32.mrb[139].mxu0 }
 0x57c   : > { %v3803_v35 = vadd.f32 %v3802_v52, %v3801_v55 }
 0x57e   : > { %v6031_v14 = vadd.f32 %v3803_v35, %v5961_v47  ;;  %v3804_v1 = vpop.f32.mrb[140].mxu0 }
 0x57f   : > { %v3805_v12 = vpop.f32.mrb[141].mxu0 }
 0x580   : > { %v3806_v3 = vadd.f32 %v3805_v12, %v3804_v1 }
 0x582   : > { %v6034_v36 = vadd.f32 %v3806_v3, %v5963_v44  ;;  %v3807_v26 = vpop.f32.mrb[142].mxu0 }
 0x583   : > { %v3808_v25 = vpop.f32.mrb[143].mxu0 }
 0x584   : > { %v3809_v8 = vadd.f32 %v3808_v25, %v3807_v26 }
 0x586   : > { %v6037_v37 = vadd.f32 %v3809_v8, %v5965_v4  ;;  %v3810_v7 = vpop.f32.mrb[144].mxu0 }
 0x587   : > { %v3811_v2 = vpop.f32.mrb[145].mxu0 }
 0x588   : > { %v3812_v45 = vadd.f32 %v3811_v2, %v3810_v7 }
 0x58a   : > { %v6040_v30 = vadd.f32 %v3812_v45, %v5967_v41  ;;  %v3813_v47 = vpop.f32.mrb[146].mxu0 }
 0x58b   : > { %v3814_v24 = vpop.f32.mrb[147].mxu0 }
 0x58c   : > { %v3815_v27 = vadd.f32 %v3814_v24, %v3813_v47 }
 0x58e   : > { %v6043_v51 = vadd.f32 %v3815_v27, %v5969_v59  ;;  %v3816_v44 = vpop.f32.mrb[148].mxu0 }
 0x58f   : > { %v3817_v10 = vpop.f32.mrb[149].mxu0 }
 0x590   : > { %v3818_v15 = vadd.f32 %v3817_v10, %v3816_v44 }
 0x592   : > { %v6046_v28 = vadd.f32 %v3818_v15, %v5971_v16  ;;  %v3819_v4 = vpop.f32.mrb[150].mxu0 }
 0x593   : > { %v3820_v40 = vpop.f32.mrb[151].mxu0 }
 0x594   : > { %v3821_v53 = vadd.f32 %v3820_v40, %v3819_v4 }
 0x596   : > { %v6049_v58 = vadd.f32 %v3821_v53, %v5973_v50  ;;  %v3822_v41 = vpop.f32.mrb[152].mxu0 }
 0x597   : > { %v3823_v42 = vpop.f32.mrb[153].mxu0 }
 0x598   : > { %v3824_v34 = vadd.f32 %v3823_v42, %v3822_v41 }
 0x59a   : > { %v6052_v18 = vadd.f32 %v3824_v34, %v5975_v23  ;;  %v3825_v59 = vpop.f32.mrb[154].mxu0 }
 0x59b   : > { %v3826_v63 = vpop.f32.mrb[155].mxu0 }
 0x59c   : > { %v3827_v0 = vadd.f32 %v3826_v63, %v3825_v59 }
 0x59e   : > { %v6055_v49 = vadd.f32 %v3827_v0, %v5977_v48  ;;  %v3828_v16 = vpop.f32.mrb[156].mxu0 }
 0x59f   : > { %v3829_v56 = vpop.f32.mrb[157].mxu0 }
 0x5a0   : > { %v3830_v43 = vadd.f32 %v3829_v56, %v3828_v16 }
 0x5a2   : > { %v6058_v38 = vadd.f32 %v3830_v43, %v5979_v54  ;;  %v3831_v50 = vpop.f32.mrb[158].mxu0 }
 0x5a3   : > { %v3832_v32 = vpop.f32.mrb[159].mxu0 }
 0x5a4   : > { %v3833_v21 = vadd.f32 %v3832_v32, %v3831_v50 }
 0x5a6   : > { %v6061_v11 = vadd.f32 %v3833_v21, %v5981_v22 }
 0x602   : > { %v3866_v23 = vpop.f32.mrb[160].mxu0 }
 0x603   : > { %v3867_v20 = vpop.f32.mrb[161].mxu0 }
 0x604   : > { %v3868_v17 = vadd.f32 %v3867_v20, %v3866_v23 }
 0x606   : > { %v2832_v39 = vadd.f32 %v3868_v17, %v6015_v46  ;;  %v3869_v29 = vpop.f32.mrb[162].mxu0 }
 0x607   : > { %v3870_v48 = vpop.f32.mrb[163].mxu0 }
 0x608   : > { %2910 = vst [vmem:[%s6066_s8] sm:$0xff] %v2832_v39  ;;  %v3871_v54 = vadd.f32 %v3870_v48, %v3869_v29 }
 0x60a   : > { %v2837_v9 = vadd.f32 %v3871_v54, %v6019_v19  ;;  %v3872_v22 = vpop.f32.mrb[164].mxu0 }
 0x60b   : > { %v3873_v6 = vpop.f32.mrb[165].mxu0 }
 0x60c   : > { %2911 = vst [vmem:[%s6066_s8 + $0x8] sm:$0xff] %v2837_v9  ;;  %v3874_v13 = vadd.f32 %v3873_v6, %v3872_v22 }
 0x60e   : > { %v2842_v46 = vadd.f32 %v3874_v13, %v6022_v61  ;;  %v3875_v31 = vpop.f32.mrb[166].mxu0 }
 0x60f   : > { %v3876_v62 = vpop.f32.mrb[167].mxu0 }
 0x610   : > { %2912 = vst [vmem:[%s6066_s8 + $0x10] sm:$0xff] %v2842_v46  ;;  %v3877_v60 = vadd.f32 %v3876_v62, %v3875_v31 }
 0x612   : > { %v2847_v5 = vadd.f32 %v3877_v60, %v6025_v33  ;;  %v3878_v55 = vpop.f32.mrb[144].mxu1 }
 0x613   : > { %v3879_v52 = vpop.f32.mrb[145].mxu1 }
 0x614   : > { %2913 = vst [vmem:[%s6066_s8 + $0x18] sm:$0xff] %v2847_v5  ;;  %v3880_v35 = vadd.f32 %v3879_v52, %v3878_v55 }
 0x616   : > { %v2852_v19 = vadd.f32 %v3880_v35, %v6028_v57  ;;  %v3881_v1 = vpop.f32.mrb[146].mxu1 }
 0x617   : > { %v3882_v12 = vpop.f32.mrb[147].mxu1 }
 0x618   : > { %2914 = vst [vmem:[%s6066_s8 + $0x20] sm:$0xff] %v2852_v19  ;;  %v3883_v3 = vadd.f32 %v3882_v12, %v3881_v1 }
 0x61a   : > { %v2857_v61 = vadd.f32 %v3883_v3, %v6031_v14  ;;  %v3884_v26 = vpop.f32.mrb[148].mxu1 }
 0x61b   : > { %v3885_v25 = vpop.f32.mrb[149].mxu1 }
 0x61c   : > { %2915 = vst [vmem:[%s6066_s8 + $0x28] sm:$0xff] %v2857_v61  ;;  %v3886_v8 = vadd.f32 %v3885_v25, %v3884_v26 }
 0x61e   : > { %v2862_v33 = vadd.f32 %v3886_v8, %v6034_v36  ;;  %v3887_v7 = vpop.f32.mrb[150].mxu1 }
 0x61f   : > { %v3888_v2 = vpop.f32.mrb[151].mxu1 }
 0x620   : > { %2916 = vst [vmem:[%s6066_s8 + $0x30] sm:$0xff] %v2862_v33  ;;  %v3889_v45 = vadd.f32 %v3888_v2, %v3887_v7 }
 0x622   : > { %v2867_v57 = vadd.f32 %v3889_v45, %v6037_v37  ;;  %v3890_v47 = vpop.f32.mrb[152].mxu1 }
 0x623   : > { %v3891_v24 = vpop.f32.mrb[153].mxu1 }
 0x624   : > { %2917 = vst [vmem:[%s6066_s8 + $0x38] sm:$0xff] %v2867_v57  ;;  %v3892_v27 = vadd.f32 %v3891_v24, %v3890_v47 }
 0x626   : > { %v2872_v14 = vadd.f32 %v3892_v27, %v6040_v30  ;;  %v3893_v44 = vpop.f32.mrb[154].mxu1 }
 0x627   : > { %v3894_v10 = vpop.f32.mrb[155].mxu1 }
 0x628   : > { %2918 = vst [vmem:[%s6066_s8 + $0x40] sm:$0xff] %v2872_v14  ;;  %v3895_v15 = vadd.f32 %v3894_v10, %v3893_v44 }
 0x62a   : > { %v2877_v36 = vadd.f32 %v3895_v15, %v6043_v51  ;;  %v3896_v4 = vpop.f32.mrb[156].mxu1 }
 0x62b   : > { %v3897_v40 = vpop.f32.mrb[157].mxu1 }
 0x62c   : > { %2919 = vst [vmem:[%s6066_s8 + $0x48] sm:$0xff] %v2877_v36  ;;  %v3898_v53 = vadd.f32 %v3897_v40, %v3896_v4 }
 0x62e   : > { %v2882_v37 = vadd.f32 %v3898_v53, %v6046_v28  ;;  %v3899_v41 = vpop.f32.mrb[158].mxu1 }
 0x62f   : > { %v3900_v42 = vpop.f32.mrb[159].mxu1 }
 0x630   : > { %2920 = vst [vmem:[%s6066_s8 + $0x50] sm:$0xff] %v2882_v37  ;;  %v3901_v34 = vadd.f32 %v3900_v42, %v3899_v41 }
 0x632   : > { %v2887_v30 = vadd.f32 %v3901_v34, %v6049_v58  ;;  %v3902_v59 = vpop.f32.mrb[160].mxu1 }
 0x633   : > { %v3903_v63 = vpop.f32.mrb[161].mxu1 }
 0x634   : > { %2921 = vst [vmem:[%s6066_s8 + $0x58] sm:$0xff] %v2887_v30  ;;  %v3904_v51 = vadd.f32 %v3903_v63, %v3902_v59 }
 0x636   : > { %v2892_v0 = vadd.f32 %v3904_v51, %v6052_v18  ;;  %v3905_v16 = vpop.f32.mrb[162].mxu1 }
 0x637   : > { %v3906_v56 = vpop.f32.mrb[163].mxu1 }
 0x638   : > { %2922 = vst [vmem:[%s6066_s8 + $0x60] sm:$0xff] %v2892_v0  ;;  %v3907_v28 = vadd.f32 %v3906_v56, %v3905_v16 }
 0x63a   : > { %v2897_v43 = vadd.f32 %v3907_v28, %v6055_v49  ;;  %v3908_v50 = vpop.f32.mrb[164].mxu1 }
 0x63b   : > { %v3909_v32 = vpop.f32.mrb[165].mxu1 }
 0x63c   : > { %2923 = vst [vmem:[%s6066_s8 + $0x68] sm:$0xff] %v2897_v43  ;;  %v3910_v58 = vadd.f32 %v3909_v32, %v3908_v50 }
 0x63e   : > { %v2902_v21 = vadd.f32 %v3910_v58, %v6058_v38  ;;  %v3911_v23 = vpop.f32.mrb[166].mxu1 }
 0x63f   : > { %v3912_v20 = vpop.f32.mrb[167].mxu1 }
 0x640   : > { %2924 = vst [vmem:[%s6066_s8 + $0x70] sm:$0xff] %v2902_v21  ;;  %v3913_v18 = vadd.f32 %v3912_v20, %v3911_v23 }
 0x642   : > { %v2907_v49 = vadd.f32 %v3913_v18, %v6061_v11 }
 0x644   : > { %2925 = vst [vmem:[%s6066_s8 + $0x78] sm:$0xff] %v2907_v49 }
 0x645   : > { %4820 = shalt.err (!%p4817_p8)
}
 0x646   : > { %s4821_s11 = scalar_lea.hbm %s6102_s13, 2048  ;;  %s4825_s8 = scalar_lea.hbm %s6157_s7, 4096 }
 0x647   : > { %p4822_p4 = scmp.ne.s32.totalorder %s6102_s13, %s4821_s11  ;;  %p4826_p3 = scmp.lt.u32.totalorder %s6102_s13, %s6157_s7 }
 0x648   : > { %p4827_p5 = scmp.lt.u32.totalorder %s4825_s8, %s4821_s11  ;;  %p4829_p6 = scmp.lt.u32.totalorder %s4821_s11, %s6102_s13 }
 0x649   : > { %p4823_p10 = pnand %p4822_p4, %p6283_p9 }
 0x64a   : > { %p4828_p7 = por %p4827_p5, %p4826_p3 }
 0x64b   : > { %p4824_p11 = pneg %p4823_p10 }
 0x64c   : > { %p4830_p12 = por %p4829_p6, %p4828_p7 }
 0x64e   : > { %p4831_p1 = pnand %p4830_p12, %p4824_p11 }
 0x650   : > { %4834 = shalt.err (!%p4831_p1)
}
 0x651   : > { %s4897_s9 = smov 128   ;;  %s4898_s10 = smov 8  }
 0x652   : > { %4508 = dma.vmem_to_hbm [thread:$0]  (%p6283_p9), %s6104_s28, 2048, %s6102_s13, %s2927_s20, %s4897_s9, %s4897_s9, %s4898_s10  }
 0x653 PF: > { %s2955_s30 = sand.u32 1, %s4873_s24   ;;  %p6284_p13 = scmp.ne.s32.totalorder %s6197_s18, 0 }
 0x654   : > { %p6285_p0 = scmp.ge.s32.totalorder %s4885_s27, 2  ;;  %s2956_s21 = scalar_lea.sflag [#allocation5], %s2955_s30 }
 0x656   : > { %p4534_p2 = pnand %p6285_p0, %p6284_p13 }
 0x658   : > { %4868 = dma.done.wait (!%p4534_p2), %s2956_s21, 2048  }
 0x659   : > { %4870 = vsyncadd (!%p4534_p2), %s2956_s21, 4294965248  ;;  %p23_p8 = scmp.ge.s32.totalorder %s5133_s19, 4   ;;  %s6286_s24 = smov %s4877_s25 }
 0x65a   : > { %s6287_s25 = smov %s4881_s26  ;;  %s6288_s26 = smov %s5144_s12 }
 0x65b   : > { %s6289_s27 = smov %s5133_s19  ;;  %25 = sbr.rel (!%p23_p8) target bundleno = 8 (0x8), region = 117 }
 0x662   :  { %2961 = vsyncpa [#allocation4], 1 }
 0x663   :  { %2963 = vsyncpa [#allocation4 + $0x1], 1 }
 0x664   :  { %2964 = vsyncpa [#allocation7], 1 }
 0x665   :  { %2965 = vsyncpa [#allocation10], 1 }
 0x666   :  { %2966 = vsyncpa [#allocation13], 1 }
 0x667   :  { %2967 = vsyncpa [#allocation5], 1 }
 0x668   :  { %2969 = vsyncpa [#allocation5 + $0x1], 1 }

// kernel: tpu_custom_call.1
= control target key start
LH: loop header
LB: loop body
LE: loop exit
PB: predicated region body
PF: predicated region fallthrough
CT: control target
= control target key end

     0   :  { %12 = vsyncpa [#allocation4], 0  ;;  %s6150_s0 = inlined_call_operand.hbm [shape: f32[256,128], index: 0, kind: input, shape index: {}]   ;;  %s6151_s1 = inlined_call_operand.hbm [shape: f32[128,128], index: 1, kind: input, shape index: {}]   ;;  %s6152_s2 = inlined_call_operand.hbm [shape: f32[256,128], index: 2, kind: input, shape index: {}]   ;;  %s6153_s3 = inlined_call_operand.hbm [shape: f32[384,128], index: 3, kind: input, shape index: {}]   ;;  %s6154_s4 = inlined_call_operand.hbm [shape: f32[512,128], index: 4, kind: input, shape index: {}]   ;;  %s6155_s5 = inlined_call_operand.hbm [shape: f32[640,128], index: 5, kind: input, shape index: {}]   ;;  %s6156_s6 = inlined_call_operand.hbm [shape: f32[768,128], index: 6, kind: input, shape index: {}]   ;;  %s6157_s7 = inlined_call_operand.hbm [shape: f32[256,128], index: 7, kind: output, shape index: {}]  }
   0x1   :  { %14 = vsyncpa [#allocation4 + $0x1], 0 }
   0x2   :  { %15 = vsyncpa [#allocation7], 0 }
   0x3   :  { %16 = vsyncpa [#allocation10], 0 }
   0x4   :  { %17 = vsyncpa [#allocation13], 0 }
   0x5   :  { %18 = vsyncpa [#allocation5], 0 }
   0x6   :  { %20 = vsyncpa [#allocation5 + $0x1], 0  ;;  %s4939_s24 = smov 0   ;;  %s4941_s25 = smov 0  }
   0x7   :  { %s4943_s26 = smov 0   ;;  %s4945_s27 = smov 0  }
   0x8 LB: > { %s4887_s28 = smov [#allocation6]   ;;  %s4960_s30 = sadd.s32 4294967295, %s4885_s27   ;;  %s4885_s27 = sphi %s4945_s27, %s6289_s27   ;;  %s4881_s26 = sphi %s4943_s26, %s6288_s26   ;;  %s4877_s25 = sphi %s4941_s25, %s6287_s25   ;;  %s4873_s24 = sphi %s4939_s24, %s6286_s24  }
   0x9   : > { %s221_s29 = sshll.u32 %s4887_s28, 4  ;;  %p3071_p0 = scmp.ge.s32.totalorder %s4885_s27, 1  ;;  %s4965_s29 = int_to_ptr.vmem [resolvable:$true] %s221_s29 }
   0xa   : > { %p6158_p1 = scmp.eq.s32.totalorder %s4960_s30, 0  ;;  %p209_p2 = scmp.lt.s32.totalorder %s4885_s27, 3 }
   0xb   : > { %s4888_s9 = smov [#allocation9]   ;;  %s4889_s12 = smov [#allocation12]  }
   0xc   : > { %p4967_p3 = pnand %p3071_p0, %p209_p2  ;;  %s247_s10 = sshll.u32 %s4888_s9, 4  ;;  %s4980_s10 = int_to_ptr.vmem [resolvable:$true] %s247_s10 }
   0xd   : > { %s273_s13 = sshll.u32 %s4889_s12, 4  ;;  %s4609_s16 = scalar_lea.hbm %s6151_s1, 2048  ;;  %s4982_s13 = int_to_ptr.vmem [resolvable:$true] %s273_s13 }
   0xe   : > { %s6190_s8 = scalar_select %p4967_p3, 1, 0 }
   0xf   : > { %p4510_p5 = pneg %p4967_p3  ;;  %p4610_p7 = scmp.ne.s32.totalorder %s6151_s1, %s4609_s16 }
  0x10   : > { %p4616_p11 = scmp.lt.u32.totalorder %s4609_s16, %s6151_s1 }
  0x11   : > { %p4976_p6 = pnand %p4510_p5, %p6158_p1 }
  0x13   : > { %p4992_p8 = pneg %p4976_p6 }
  0x15   : > { %p4612_p9 = pnand %p4992_p8, %p4610_p7 }
  0x17   : > { %p4613_p10 = pneg %p4612_p9 }
  0x19   : > { %p4618_p12 = pnand %p4616_p11, %p4613_p10 }
  0x1b   : > { %4621 = shalt.err (!%p4618_p12)
}
  0x1c   : > { %s4622_s22 = scalar_lea.vmem %s4965_s29, 2048  ;;  %p4630_p5 = scmp.lt.s32.totalorder %s4965_s29, %s4965_s29 }
  0x1d   : > { %p4623_p13 = scmp.ne.s32.totalorder %s4965_s29, %s4622_s22  ;;  %p4631_p4 = scmp.lt.s32.totalorder %s4622_s22, %s4622_s22 }
  0x1f   : > { %p4625_p0 = pnand %p4623_p13, %p4992_p8  ;;  %p4632_p7 = por %p4631_p4, %p4630_p5 }
  0x21   : > { %p4626_p2 = pneg %p4625_p0 }
  0x23   : > { %p4633_p9 = pnand %p4632_p7, %p4626_p2 }
  0x25   : > { %4636 = shalt.err (!%p4633_p9)
}
  0x26   : > { %s6160_s23 = smov 128   ;;  %s4891_s28 = smov 8  }
  0x27   : > { %4513 = dma.hbm_to_vmem [thread:$0]  (!%p4976_p6), %s6151_s1, 2048, %s4965_s29, [#allocation7], %s6160_s23, %s6160_s23, %s4891_s28  }
  0x28   : > { %s4637_s16 = scalar_lea.hbm %s6153_s3, 6144 }
  0x29   : > { %p4638_p4 = scmp.ne.s32.totalorder %s6153_s3, %s4637_s16  ;;  %p4644_p12 = scmp.lt.u32.totalorder %s4637_s16, %s6153_s3 }
  0x2b   : > { %p4640_p10 = pnand %p4638_p4, %p4992_p8 }
  0x2d   : > { %p4641_p11 = pneg %p4640_p10 }
  0x2f   : > { %p4646_p13 = pnand %p4644_p12, %p4641_p11 }
  0x31   : > { %4649 = shalt.err (!%p4646_p13)
}
  0x32   : > { %s4650_s29 = scalar_lea.vmem %s4980_s10, 6144  ;;  %p4658_p7 = scmp.lt.s32.totalorder %s4980_s10, %s4980_s10 }
  0x33   : > { %p4651_p0 = scmp.ne.s32.totalorder %s4980_s10, %s4650_s29  ;;  %p4659_p9 = scmp.lt.s32.totalorder %s4650_s29, %s4650_s29 }
  0x35   : > { %p4653_p2 = pnand %p4651_p0, %p4992_p8  ;;  %p4660_p4 = por %p4659_p9, %p4658_p7 }
  0x37   : > { %p4654_p5 = pneg %p4653_p2 }
  0x39   : > { %p4661_p10 = pnand %p4660_p4, %p4654_p5 }
  0x3b   : > { %4664 = shalt.err (!%p4661_p10)
}
  0x3c   : > { %4519 = dma.hbm_to_vmem [thread:$0]  (!%p4976_p6), %s6153_s3, 6144, %s4980_s10, [#allocation10], %s6160_s23, %s6160_s23, %s4891_s28  }
  0x3d   : > { %s4665_s15 = scalar_lea.hbm %s6155_s5, 10240 }
  0x3e   : > { %p4666_p11 = scmp.ne.s32.totalorder %s6155_s5, %s4665_s15  ;;  %p4672_p0 = scmp.lt.u32.totalorder %s4665_s15, %s6155_s5 }
  0x40   : > { %p4668_p12 = pnand %p4666_p11, %p4992_p8 }
  0x42   : > { %p4669_p13 = pneg %p4668_p12 }
  0x44   : > { %p4674_p2 = pnand %p4672_p0, %p4669_p13 }
  0x46   : > { %4677 = shalt.err (!%p4674_p2)
}
  0x47   : > { %s4678_s10 = scalar_lea.vmem %s4982_s13, 10240  ;;  %p4686_p4 = scmp.lt.s32.totalorder %s4982_s13, %s4982_s13 }
  0x48   : > { %p4679_p5 = scmp.ne.s32.totalorder %s4982_s13, %s4678_s10  ;;  %p4687_p10 = scmp.lt.s32.totalorder %s4678_s10, %s4678_s10 }
  0x4a   : > { %p4681_p7 = pnand %p4679_p5, %p4992_p8  ;;  %p4688_p11 = por %p4687_p10, %p4686_p4 }
  0x4c   : > { %p4682_p9 = pneg %p4681_p7 }
  0x4e   : > { %p4689_p12 = pnand %p4688_p11, %p4682_p9 }
  0x50   : > { %4692 = shalt.err (!%p4689_p12)
}
  0x51   : > { %4525 = dma.hbm_to_vmem [thread:$0]  (!%p4976_p6), %s6155_s5, 10240, %s4982_s13, [#allocation13], %s6160_s23, %s6160_s23, %s4891_s28  }
  0x52   : > { %s4892_s22 = smov [#allocation8]   ;;  %s4893_s12 = smov [#allocation11]  }
  0x53   : > { %s234_s9 = sshll.u32 %s4892_s22, 4  ;;  %s260_s14 = sshll.u32 %s4893_s12, 4  ;;  %s235_s9 = int_to_ptr.vmem [resolvable:$true] %s234_s9  ;;  %s261_s14 = int_to_ptr.vmem [resolvable:$true] %s260_s14 }
  0x54   : > { %s4693_s17 = scalar_lea.hbm %s6152_s2, 4096 }
  0x55   : > { %p4694_p13 = scmp.ne.s32.totalorder %s6152_s2, %s4693_s17  ;;  %p4700_p5 = scmp.lt.u32.totalorder %s4693_s17, %s6152_s2 }
  0x57   : > { %p4696_p0 = pnand %p4694_p13, %p4992_p8 }
  0x59   : > { %p4697_p2 = pneg %p4696_p0 }
  0x5b   : > { %p4702_p7 = pnand %p4700_p5, %p4697_p2 }
  0x5d   : > { %4705 = shalt.err (!%p4702_p7)
}
  0x5e   : > { %s4706_s13 = scalar_lea.vmem %s235_s9, 4096  ;;  %p4714_p11 = scmp.lt.s32.totalorder %s235_s9, %s235_s9 }
  0x5f   : > { %p4707_p9 = scmp.ne.s32.totalorder %s235_s9, %s4706_s13  ;;  %p4715_p12 = scmp.lt.s32.totalorder %s4706_s13, %s4706_s13 }
  0x61   : > { %p4709_p4 = pnand %p4707_p9, %p4992_p8  ;;  %p4716_p1 = por %p4715_p12, %p4714_p11 }
  0x63   : > { %p4710_p10 = pneg %p4709_p4 }
  0x65   : > { %p4717_p3 = pnand %p4716_p1, %p4710_p10 }
  0x67   : > { %4720 = shalt.err (!%p4717_p3)
}
  0x68   : > { %4516 = dma.hbm_to_vmem [thread:$0]  (!%p4976_p6), %s6152_s2, 4096, %s235_s9, [#allocation7], %s6160_s23, %s6160_s23, %s4891_s28  }
  0x69   : > { %s4721_s16 = scalar_lea.hbm %s6154_s4, 8192 }
  0x6a   : > { %p4722_p1 = scmp.ne.s32.totalorder %s6154_s4, %s4721_s16  ;;  %p4728_p0 = scmp.lt.u32.totalorder %s4721_s16, %s6154_s4 }
  0x6c   : > { %p4724_p3 = pnand %p4722_p1, %p4992_p8 }
  0x6e   : > { %p4725_p13 = pneg %p4724_p3 }
  0x70   : > { %p4730_p2 = pnand %p4728_p0, %p4725_p13 }
  0x72   : > { %4733 = shalt.err (!%p4730_p2)
}
  0x73   : > { %s4734_s21 = scalar_lea.vmem %s261_s14, 8192  ;;  %p4742_p4 = scmp.lt.s32.totalorder %s261_s14, %s261_s14 }
  0x74   : > { %p4735_p5 = scmp.ne.s32.totalorder %s261_s14, %s4734_s21  ;;  %p4743_p10 = scmp.lt.s32.totalorder %s4734_s21, %s4734_s21 }
  0x76   : > { %p4737_p7 = pnand %p4735_p5, %p4992_p8  ;;  %p4744_p11 = por %p4743_p10, %p4742_p4 }
  0x78   : > { %p4738_p9 = pneg %p4737_p7 }
  0x7a   : > { %p4745_p12 = pnand %p4744_p11, %p4738_p9 }
  0x7c   : > { %4748 = shalt.err (!%p4745_p12)
}
  0x7d   : > { %4522 = dma.hbm_to_vmem [thread:$0]  (!%p4976_p6), %s6154_s4, 8192, %s261_s14, [#allocation10], %s6160_s23, %s6160_s23, %s4891_s28  }
  0x7e   : > { %s4894_s29 = smov [#allocation14]   ;;  %s4749_s16 = scalar_lea.hbm %s6156_s6, 12288 }
  0x7f   : > { %s286_s22 = sshll.u32 %s4894_s29, 4  ;;  %p4750_p1 = scmp.ne.s32.totalorder %s6156_s6, %s4749_s16  ;;  %s287_s22 = int_to_ptr.vmem [resolvable:$true] %s286_s22 }
  0x80   : > { %p4756_p0 = scmp.lt.u32.totalorder %s4749_s16, %s6156_s6 }
  0x81   : > { %p4752_p3 = pnand %p4750_p1, %p4992_p8 }
  0x83   : > { %p4753_p13 = pneg %p4752_p3 }
  0x85   : > { %p4758_p2 = pnand %p4756_p0, %p4753_p13 }
  0x87   : > { %4761 = shalt.err (!%p4758_p2)
}
  0x88   : > { %s4762_s14 = scalar_lea.vmem %s287_s22, 12288  ;;  %p4770_p4 = scmp.lt.s32.totalorder %s287_s22, %s287_s22 }
  0x89   : > { %p4763_p5 = scmp.ne.s32.totalorder %s287_s22, %s4762_s14  ;;  %p4771_p10 = scmp.lt.s32.totalorder %s4762_s14, %s4762_s14 }
  0x8b   : > { %p4765_p7 = pnand %p4763_p5, %p4992_p8  ;;  %p4772_p11 = por %p4771_p10, %p4770_p4 }
  0x8d   : > { %p4766_p9 = pneg %p4765_p7 }
  0x8f   : > { %p4773_p12 = pnand %p4772_p11, %p4766_p9 }
  0x91   : > { %4776 = shalt.err (!%p4773_p12)
}
  0x92   : > { %4528 = dma.hbm_to_vmem [thread:$0]  (!%p4976_p6), %s6156_s6, 12288, %s287_s22, [#allocation13], %s6160_s23, %s6160_s23, %s4891_s28  }
  0x93   : > { %s3070_s11 = sadd.s32 4294967294, %s4885_s27   ;;  %s5133_s19 = sadd.s32 1, %s4885_s27  }
  0x94   : > { %s30_s13 = ssub.s32 %s4885_s27, %s5133_s19  ;;  %s33_s29 = sadd.s32 1, %s4881_s26 }
  0x95   : > { %p31_p8 = scmp.eq.s32.totalorder %s30_s13, 0  ;;  %p40_p1 = scmp.ne.s32.totalorder %s4881_s26, %s4877_s25 }
  0x96   : > { %p41_p3 = scmp.eq.s32.totalorder %s4885_s27, 0  ;;  %p46_p13 = scmp.ne.s32.totalorder %s4877_s25, %s4873_s24 }
  0x97   : > { %s5144_s12 = scalar_select %p31_p8, %s4881_s26, %s33_s29  }
  0x98   : > { %p5146_p0 = por %p41_p3, %p40_p1  ;;  %p6194_p2 = scmp.eq.s32.totalorder %s4960_s30, 0 }
  0x99   : > { %p196_p5 = scmp.eq.s32.totalorder %s4960_s30, 1  ;;  %p202_p7 = scmp.eq.s32.totalorder %s3070_s11, 1 }
  0x9a   : > { %p5152_p6 = por %p6194_p2, %p46_p13  ;;  %p4543_p9 = scmp.lt.s32.totalorder %s4885_s27, 2 }
  0x9b   : > { %s300_s16 = sand.u32 1, %s4881_s26   ;;  %p5159_p4 = por %p196_p5, %p40_p1 }
  0x9c   : > { %p5163_p10 = por %p202_p7, %p46_p13  ;;  %s3079_s20 = sshll.u32 %s300_s16, 7 }
  0x9d   : > { %s6196_s17 = scalar_select %p5159_p4, 1, 0 }
  0x9e   : > { %s6197_s18 = scalar_select %p5163_p10, 1, 0 }
  0x9f   : > { %s3096_s10 = sshll.u32 %s4885_s27, 11  ;;  %s304_s11 = scalar_lea.vmem [#allocation3], %s3079_s20 }
  0xa0   : > { %s5171_s9 = scalar_lea.hbm %s6150_s0, %s3096_s10  ;;  %s311_s13 = sshll.u32 %s304_s11, 4  ;;  %s5173_s13 = int_to_ptr.vmem [resolvable:$true] %s311_s13 }
  0xa1   : > { %p5177_p11 = pnand %p4543_p9, %p5146_p0  ;;  %s5181_s23 = scalar_lea.sflag [#allocation4], %s300_s16 }
  0xa2   : > { %s4777_s14 = scalar_lea.hbm %s5171_s9, 2048  ;;  %s4782_s15 = scalar_lea.hbm %s6150_s0, 4096 }
  0xa3   : > { %p4778_p12 = scmp.ne.s32.totalorder %s5171_s9, %s4777_s14  ;;  %p4779_p8 = pneg %p5177_p11 }
  0xa4   : > { %p4783_p13 = scmp.lt.u32.totalorder %s5171_s9, %s6150_s0  ;;  %p4784_p0 = scmp.lt.u32.totalorder %s4782_s15, %s4777_s14 }
  0xa5   : > { %p4780_p1 = pnand %p4779_p8, %p4778_p12  ;;  %p4786_p5 = scmp.lt.u32.totalorder %s4777_s14, %s5171_s9 }
  0xa6   : > { %p4785_p2 = por %p4784_p0, %p4783_p13 }
  0xa7   : > { %p4781_p3 = pneg %p4780_p1 }
  0xa8   : > { %p4787_p7 = por %p4786_p5, %p4785_p2 }
  0xaa   : > { %p4788_p9 = pnand %p4787_p7, %p4781_p3 }
  0xac   : > { %4791 = shalt.err (!%p4788_p9)
}
  0xad   : > { %s4792_s16 = scalar_lea.vmem %s5173_s13, 2048  ;;  %s4895_s20 = smov [#allocation3]  }
  0xae   : > { %p4793_p12 = scmp.ne.s32.totalorder %s5173_s13, %s4792_s16  ;;  %s4797_s10 = sshll.u32 %s4895_s20, 4  ;;  %s4798_s10 = int_to_ptr.vmem [resolvable:$false] %s4797_s10 }
  0xaf   : > { %s4799_s21 = scalar_lea.vmem %s4798_s10, 4096  ;;  %p4800_p4 = scmp.lt.s32.totalorder %s5173_s13, %s4798_s10 }
  0xb0   : > { %p4795_p1 = pnand %p4793_p12, %p4779_p8  ;;  %p4801_p13 = scmp.lt.s32.totalorder %s4799_s21, %s4792_s16 }
  0xb2   : > { %p4796_p10 = pneg %p4795_p1  ;;  %p4802_p0 = por %p4801_p13, %p4800_p4 }
  0xb4   : > { %p4803_p2 = pnand %p4802_p0, %p4796_p10 }
  0xb6   : > { %4806 = shalt.err (!%p4803_p2)
}
  0xb7   : > { %s6199_s14 = smov 128   ;;  %p6200_p8 = scmp.ne.s32.totalorder %s6190_s8, 0 }
  0xb8   : > { %4532 = dma.hbm_to_vmem [thread:$0]  (!%p5177_p11), %s5171_s9, 2048, %s5173_s13, %s5181_s23, %s6199_s14, %s6199_s14, %s4891_s28  }
  0xb9   : > { %323 = sbr.rel (%p6200_p8) target bundleno = 1619 (0x653), region = 48 }
  0xc0   : > { %s5215_s15 = sand.u32 1, %s4877_s25  }
  0xc1   : > { %s3083_s11 = sshll.u32 %s5215_s15, 7  ;;  %s326_s16 = scalar_lea.sflag [#allocation4], %s5215_s15 }
  0xc2   : > { %s5221_s29 = scalar_lea.vmem [#allocation3], %s3083_s11 }
  0xc3   : > { %4852 = dma.done.wait (%p5152_p6), %s326_s16, 2048  }
  0xc4   : > { %4854 = vsyncadd (%p5152_p6), %s326_s16, 4294965248  ;;  %p6201_p4 = scmp.eq.s32.totalorder %s4960_s30, 0 }
  0xc6   : > { %4856 = dma.done.wait (%p6201_p4), [#allocation7], 6144   ;;  %p6202_p10 = pmov %p6201_p4 }
  0xc7   : > { %p6203_p11 = pmov %p6201_p4 }
  0xc8   : > { %4858 = vsyncadd (%p6202_p10), [#allocation7], 4294961152 }
  0xc9   : > { %4860 = dma.done.wait (%p6203_p11), [#allocation10], 14336   ;;  %p6204_p3 = pmov %p6201_p4 }
  0xcb   : > { %4862 = vsyncadd (%p6204_p3), [#allocation10], 4294952960  ;;  %p6205_p5 = pmov %p6204_p3 }
  0xcc   : > { %p6206_p7 = pmov %p6204_p3 }
  0xcd   : > { %4864 = dma.done.wait (%p6205_p5), [#allocation13], 22528  }
  0xce   : > { %4866 = vsyncadd (%p6206_p7), [#allocation13], 4294944768  ;;  %v434_v0 = vld [vmem:[#allocation6] sm:$0xff]  ;;  %v435_v1 = vld [vmem:[#allocation6 + $0x8] sm:$0xff]  ;;  %s6066_s8 = scalar_lea.vmem [#allocation15], %s3083_s11  ;;  %s3097_s23 = sshll.u32 %s4960_s30, 11 }
  0xcf   : > { %v436_v2 = vld [vmem:[#allocation6 + $0x10] sm:$0xff]  ;;  %v4082_v3 = vpack.c.bf16 %v435_v1, %v434_v0  ;;  %v437_v4 = vld [vmem:[#allocation6 + $0x18] sm:$0xff]  ;;  %v438_v6 = vld [vmem:[#allocation6 + $0x20] sm:$0xff]  ;;  %s2940_s28 = sshll.u32 %s6066_s8, 4  ;;  %s6102_s13 = scalar_lea.hbm %s6157_s7, %s3097_s23  ;;  %s6104_s28 = int_to_ptr.vmem [resolvable:$true] %s2940_s28 }
  0xd0   : > { %v4086_v5 = vpack.c.bf16 %v437_v4, %v436_v2  ;;  %v439_v7 = vld [vmem:[#allocation6 + $0x28] sm:$0xff]  ;;  %v5240_v9 = vld [vmem:[%s5221_s29] sm:$0xff]  ;;  %v440_v10 = vld [vmem:[#allocation6 + $0x30] sm:$0xff]  ;;  %s2927_s20 = scalar_lea.sflag [#allocation5], %s5215_s15  ;;  %s4807_s10 = scalar_lea.vmem %s6104_s28, 2048 }
  0xd1   : > { %4083 = vmatprep.subr.bf16.mxu0 %v4082_v3  ;;  %v4090_v8 = vpack.c.bf16 %v439_v7, %v438_v6  ;;  %v441_v11 = vld [vmem:[#allocation6 + $0x38] sm:$0xff]  ;;  %3946 = vmatprep.mubr.f32.mxu0 %v5240_v9  ;;  %v442_v13 = vld [vmem:[#allocation6 + $0x40] sm:$0xff]  ;;  %v443_v14 = vld [vmem:[#allocation6 + $0x48] sm:$0xff]  ;;  %p4808_p6 = scmp.ne.s32.totalorder %s6104_s28, %s4807_s10  ;;  %p6283_p9 = scmp.ne.s32.totalorder %s6196_s17, 0 }
  0xd2   : > { %4085 = vmatpush3.bf16.msra.mxu0 %v4082_v3  ;;  %v4094_v12 = vpack.c.bf16 %v441_v11, %v440_v10  ;;  %v659_v15 = vld [vmem:[#allocation8 + $0x80] sm:$0xff]  ;;  %v660_v16 = vld [vmem:[#allocation8 + $0x88] sm:$0xff]  ;;  %v4098_v20 = vpack.c.bf16 %v443_v14, %v442_v13  ;;  %v661_v22 = vld [vmem:[#allocation8 + $0x90] sm:$0xff]  ;;  %s4896_s30 = smov [#allocation15]  }
  0xd3   : > { %4087 = vmatprep.subr.bf16.mxu0 %v4086_v5  ;;  %v4114_v17 = vpack.c.bf16 %v660_v16, %v659_v15  ;;  %v643_v18 = vld [vmem:[#allocation8] sm:$0xff]  ;;  %v644_v19 = vld [vmem:[#allocation8 + $0x8] sm:$0xff]  ;;  %v662_v23 = vld [vmem:[#allocation8 + $0x98] sm:$0xff]  ;;  %p4809_p12 = pnand %p4808_p6, %p6283_p9  ;;  %s4811_s21 = sshll.u32 %s4896_s30, 4  ;;  %s4812_s21 = int_to_ptr.vmem [resolvable:$false] %s4811_s21 }
  0xd4   : > { %v4116_v21 = vpack.c.bf16 %v644_v19, %v643_v18  ;;  %v444_v24 = vld [vmem:[#allocation6 + $0x50] sm:$0xff]  ;;  %v445_v25 = vld [vmem:[#allocation6 + $0x58] sm:$0xff]  ;;  %v4118_v26 = vpack.c.bf16 %v662_v23, %v661_v22  ;;  %v663_v30 = vld [vmem:[#allocation8 + $0xa0] sm:$0xff]  ;;  %s4813_s14 = scalar_lea.vmem %s4812_s21, 4096  ;;  %p4814_p13 = scmp.lt.s32.totalorder %s6104_s28, %s4812_s21 }
  0xd5   : > { %4115 = vmatprep.subr.bf16.mxu1 %v4114_v17  ;;  %v645_v27 = vld [vmem:[#allocation8 + $0x10] sm:$0xff]  ;;  %v646_v28 = vld [vmem:[#allocation8 + $0x18] sm:$0xff]  ;;  %v664_v31 = vld [vmem:[#allocation8 + $0xa8] sm:$0xff]  ;;  %v4102_v32 = vpack.c.bf16 %v445_v25, %v444_v24  ;;  %p4810_p1 = pneg %p4809_p12  ;;  %p4815_p0 = scmp.lt.s32.totalorder %s4813_s14, %s4807_s10 }
  0xd6   : > { %4089 = vmatpush3.bf16.msra.mxu0 %v4086_v5  ;;  %4117 = vmatpush3.bf16.msra.mxu1 %v4116_v21  ;;  %v4120_v29 = vpack.c.bf16 %v646_v28, %v645_v27  ;;  %v4122_v33 = vpack.c.bf16 %v664_v31, %v663_v30  ;;  %v647_v34 = vld [vmem:[#allocation8 + $0x20] sm:$0xff]  ;;  %v648_v35 = vld [vmem:[#allocation8 + $0x28] sm:$0xff]  ;;  %v665_v38 = vld [vmem:[#allocation8 + $0xb0] sm:$0xff] }
  0xd7   : > { %4091 = vmatprep.subr.bf16.mxu0 %v4090_v8  ;;  %4119 = vmatprep.subr.bf16.mxu1 %v4118_v26  ;;  %v446_v36 = vld [vmem:[#allocation6 + $0x60] sm:$0xff]  ;;  %v447_v37 = vld [vmem:[#allocation6 + $0x68] sm:$0xff]  ;;  %v4124_v39 = vpack.c.bf16 %v648_v35, %v647_v34  ;;  %v666_v40 = vld [vmem:[#allocation8 + $0xb8] sm:$0xff]  ;;  %p4816_p2 = por %p4815_p0, %p4814_p13 }
  0xd8   : > { %v4126_v41 = vpack.c.bf16 %v666_v40, %v665_v38  ;;  %v649_v42 = vld [vmem:[#allocation8 + $0x30] sm:$0xff]  ;;  %v650_v43 = vld [vmem:[#allocation8 + $0x38] sm:$0xff]  ;;  %v4106_v44 = vpack.c.bf16 %v447_v37, %v446_v36  ;;  %v667_v45 = vld [vmem:[#allocation8 + $0xc0] sm:$0xff] }
  0xd9   : > { %v668_v46 = vld [vmem:[#allocation8 + $0xc8] sm:$0xff]  ;;  %v448_v47 = vld [vmem:[#allocation6 + $0x70] sm:$0xff]  ;;  %v449_v48 = vld [vmem:[#allocation6 + $0x78] sm:$0xff]  ;;  %v4128_v49 = vpack.c.bf16 %v650_v43, %v649_v42  ;;  %p4817_p8 = pnand %p4816_p2, %p4810_p1 }
  0xda   : > { %4093 = vmatpush3.bf16.msra.mxu0 %v4090_v8  ;;  %4121 = vmatpush3.bf16.msra.mxu1 %v4120_v29  ;;  %v4130_v50 = vpack.c.bf16 %v668_v46, %v667_v45  ;;  %v651_v51 = vld [vmem:[#allocation8 + $0x40] sm:$0xff]  ;;  %v652_v52 = vld [vmem:[#allocation8 + $0x48] sm:$0xff]  ;;  %v4110_v53 = vpack.c.bf16 %v449_v48, %v448_v47  ;;  %v669_v54 = vld [vmem:[#allocation8 + $0xd0] sm:$0xff] }
  0xdb   : > { %4095 = vmatprep.subr.bf16.mxu0 %v4094_v12  ;;  %4123 = vmatprep.subr.bf16.mxu1 %v4122_v33  ;;  %v670_v55 = vld [vmem:[#allocation8 + $0xd8] sm:$0xff]  ;;  %v900_v56 = vld [vmem:[#allocation9 + $0x80] sm:$0xff]  ;;  %v901_v57 = vld [vmem:[#allocation9 + $0x88] sm:$0xff]  ;;  %v4132_v58 = vpack.c.bf16 %v652_v52, %v651_v51 }
  0xdc   : > { %v4134_v59 = vpack.c.bf16 %v670_v55, %v669_v54  ;;  %v653_v60 = vld [vmem:[#allocation8 + $0x50] sm:$0xff]  ;;  %v654_v61 = vld [vmem:[#allocation8 + $0x58] sm:$0xff]  ;;  %v4146_v62 = vpack.c.bf16 %v901_v57, %v900_v56  ;;  %v884_v63 = vld [vmem:[#allocation9] sm:$0xff] }
  0xdd   : > { %v885_v0 = vld [vmem:[#allocation9 + $0x8] sm:$0xff]  ;;  %v902_v1 = vld [vmem:[#allocation9 + $0x90] sm:$0xff]  ;;  %v903_v2 = vld [vmem:[#allocation9 + $0x98] sm:$0xff]  ;;  %v4136_v6 = vpack.c.bf16 %v654_v61, %v653_v60 }
  0xde   : > { %4097 = vmatpush3.bf16.msra.mxu0 %v4094_v12  ;;  %4125 = vmatpush3.bf16.msra.mxu1 %v4124_v39  ;;  %v671_v3 = vld [vmem:[#allocation8 + $0xe0] sm:$0xff]  ;;  %v672_v4 = vld [vmem:[#allocation8 + $0xe8] sm:$0xff]  ;;  %v5247_v7 = vld [vmem:[%s5221_s29 + $0x10] sm:$0xff]  ;;  %v4148_v8 = vpack.c.bf16 %v885_v0, %v884_v63  ;;  %v4150_v12 = vpack.c.bf16 %v903_v2, %v902_v1 }
  0xdf   : > { %4099 = vmatprep.subr.bf16.mxu0 %v4098_v20  ;;  %4127 = vmatprep.subr.bf16.mxu1 %v4126_v41  ;;  %v5244_v5 = vld [vmem:[%s5221_s29 + $0x8] sm:$0xff]  ;;  %v655_v10 = vld [vmem:[#allocation8 + $0x60] sm:$0xff]  ;;  %v886_v13 = vld [vmem:[#allocation9 + $0x10] sm:$0xff]  ;;  %v4138_v16 = vpack.c.bf16 %v672_v4, %v671_v3 }
  0xe0   : > { %v656_v11 = vld [vmem:[#allocation8 + $0x68] sm:$0xff]  ;;  %v887_v14 = vld [vmem:[#allocation9 + $0x18] sm:$0xff]  ;;  %v904_v15 = vld [vmem:[#allocation9 + $0xa0] sm:$0xff] }
  0xe1   : > { %v905_v17 = vld [vmem:[#allocation9 + $0xa8] sm:$0xff]  ;;  %v673_v18 = vld [vmem:[#allocation8 + $0xf0] sm:$0xff]  ;;  %v674_v19 = vld [vmem:[#allocation8 + $0xf8] sm:$0xff]  ;;  %v4152_v22 = vpack.c.bf16 %v887_v14, %v886_v13 }
  0xe2   : > { %4101 = vmatpush3.bf16.msra.mxu0 %v4098_v20  ;;  %4129 = vmatpush3.bf16.msra.mxu1 %v4128_v49  ;;  %v4140_v20 = vpack.c.bf16 %v656_v11, %v655_v10  ;;  %v5252_v21 = vld [vmem:[%s5221_s29 + $0x18] sm:$0xff]  ;;  %v5255_v23 = vld [vmem:[%s5221_s29 + $0x20] sm:$0xff]  ;;  %v4154_v24 = vpack.c.bf16 %v905_v17, %v904_v15  ;;  %v889_v26 = vld [vmem:[#allocation9 + $0x28] sm:$0xff]  ;;  %v4142_v27 = vpack.c.bf16 %v674_v19, %v673_v18 }
  0xe3   : > { %4103 = vmatprep.subr.bf16.mxu0 %v4102_v32  ;;  %4131 = vmatprep.subr.bf16.mxu1 %v4130_v50  ;;  %v888_v25 = vld [vmem:[#allocation9 + $0x20] sm:$0xff]  ;;  %v906_v28 = vld [vmem:[#allocation9 + $0xb0] sm:$0xff]  ;;  %v907_v29 = vld [vmem:[#allocation9 + $0xb8] sm:$0xff] }
  0xe4   : > { %v5260_v30 = vld [vmem:[%s5221_s29 + $0x28] sm:$0xff]  ;;  %v4156_v31 = vpack.c.bf16 %v889_v26, %v888_v25  ;;  %v4158_v33 = vpack.c.bf16 %v907_v29, %v906_v28  ;;  %v890_v34 = vld [vmem:[#allocation9 + $0x30] sm:$0xff]  ;;  %v891_v35 = vld [vmem:[#allocation9 + $0x38] sm:$0xff] }
  0xe5   : > { %v908_v36 = vld [vmem:[#allocation9 + $0xc0] sm:$0xff]  ;;  %v909_v37 = vld [vmem:[#allocation9 + $0xc8] sm:$0xff]  ;;  %v5268_v38 = vld [vmem:[%s5221_s29 + $0x38] sm:$0xff]  ;;  %v4160_v39 = vpack.c.bf16 %v891_v35, %v890_v34 }
  0xe6   : > { %4105 = vmatpush3.bf16.msra.mxu0 %v4102_v32  ;;  %4133 = vmatpush3.bf16.msra.mxu1 %v4132_v58  ;;  %v5263_v32 = vld [vmem:[%s5221_s29 + $0x30] sm:$0xff]  ;;  %v5271_v40 = vld [vmem:[%s5221_s29 + $0x40] sm:$0xff]  ;;  %v4162_v41 = vpack.c.bf16 %v909_v37, %v908_v36  ;;  %v893_v43 = vld [vmem:[#allocation9 + $0x48] sm:$0xff] }
  0xe7   : > { %4107 = vmatprep.subr.bf16.mxu0 %v4106_v44  ;;  %4135 = vmatprep.subr.bf16.mxu1 %v4134_v59  ;;  %v892_v42 = vld [vmem:[#allocation9 + $0x40] sm:$0xff]  ;;  %v911_v45 = vld [vmem:[#allocation9 + $0xd8] sm:$0xff]  ;;  %v5276_v46 = vld [vmem:[%s5221_s29 + $0x48] sm:$0xff] }
  0xe8   : > { %v4164_v47 = vpack.c.bf16 %v893_v43, %v892_v42  ;;  %v5279_v48 = vld [vmem:[%s5221_s29 + $0x50] sm:$0xff]  ;;  %v895_v51 = vld [vmem:[#allocation9 + $0x58] sm:$0xff]  ;;  %v912_v52 = vld [vmem:[#allocation9 + $0xe0] sm:$0xff] }
  0xe9   : > { %v894_v50 = vld [vmem:[#allocation9 + $0x50] sm:$0xff]  ;;  %v5284_v54 = vld [vmem:[%s5221_s29 + $0x58] sm:$0xff]  ;;  %v5287_v56 = vld [vmem:[%s5221_s29 + $0x60] sm:$0xff] }
  0xea   : > { %4109 = vmatpush3.bf16.msra.mxu0 %v4106_v44  ;;  %4137 = vmatpush3.bf16.msra.mxu1 %v4136_v6  ;;  %v910_v44 = vld [vmem:[#allocation9 + $0xd0] sm:$0xff]  ;;  %v4168_v55 = vpack.c.bf16 %v895_v51, %v894_v50  ;;  %v896_v58 = vld [vmem:[#allocation9 + $0x60] sm:$0xff]  ;;  %v897_v59 = vld [vmem:[#allocation9 + $0x68] sm:$0xff] }
  0xeb   : > { %4111 = vmatprep.subr.bf16.mxu0 %v4110_v53  ;;  %4139 = vmatprep.subr.bf16.mxu1 %v4138_v16  ;;  %v4166_v49 = vpack.c.bf16 %v911_v45, %v910_v44  ;;  %v914_v60 = vld [vmem:[#allocation9 + $0xf0] sm:$0xff]  ;;  %v915_v61 = vld [vmem:[#allocation9 + $0xf8] sm:$0xff]  ;;  %v4172_v63 = vpack.c.bf16 %v897_v59, %v896_v58  ;;  %v1319_v13 = vld [vmem:[#allocation11 + $0x88] sm:$0xff] }
  0xec   : > { %v5295_v0 = vld [vmem:[%s5221_s29 + $0x70] sm:$0xff]  ;;  %v4174_v1 = vpack.c.bf16 %v915_v61, %v914_v60  ;;  %v5300_v2 = vld [vmem:[%s5221_s29 + $0x78] sm:$0xff]  ;;  %v1302_v15 = vld [vmem:[#allocation11] sm:$0xff] }
  0xed   : > { %v657_v3 = vld [vmem:[#allocation8 + $0x70] sm:$0xff]  ;;  %v658_v4 = vld [vmem:[#allocation8 + $0x78] sm:$0xff]  ;;  %v1303_v16 = vld [vmem:[#allocation11 + $0x8] sm:$0xff] }
  0xee   : > { %4113 = vmatpush3.bf16.msra.mxu0 %v4110_v53  ;;  %4141 = vmatpush3.bf16.msra.mxu1 %v4140_v20  ;;  %v913_v53 = vld [vmem:[#allocation9 + $0xe8] sm:$0xff]  ;;  %v898_v6 = vld [vmem:[#allocation9 + $0x70] sm:$0xff]  ;;  %v899_v10 = vld [vmem:[#allocation9 + $0x78] sm:$0xff] }
  0xef   : > { %4147 = vmatprep.subr.bf16.mxu0 %v4146_v62  ;;  %4143 = vmatprep.subr.bf16.mxu1 %v4142_v27  ;;  %v4170_v57 = vpack.c.bf16 %v913_v53, %v912_v52  ;;  %v5292_v62 = vld [vmem:[%s5221_s29 + $0x68] sm:$0xff]  ;;  %v4176_v11 = vpack.c.bf16 %v899_v10, %v898_v6  ;;  %v1320_v17 = vld [vmem:[#allocation11 + $0x90] sm:$0xff]  ;;  %v1321_v18 = vld [vmem:[#allocation11 + $0x98] sm:$0xff] }
  0xf0   : > { %v1304_v25 = vld [vmem:[#allocation11 + $0x10] sm:$0xff]  ;;  %v1305_v26 = vld [vmem:[#allocation11 + $0x18] sm:$0xff]  ;;  %v1322_v27 = vld [vmem:[#allocation11 + $0xa0] sm:$0xff] }
  0xf1   : > { %3947 = vmatmul.mubr.f32.vlgmr.msra.gmra.mrb[0].mxu0 %v5244_v5  ;;  %v1323_v28 = vld [vmem:[#allocation11 + $0xa8] sm:$0xff]  ;;  %v1306_v35 = vld [vmem:[#allocation11 + $0x20] sm:$0xff]  ;;  %v1324_v37 = vld [vmem:[#allocation11 + $0xb0] sm:$0xff] }
  0xf2   : > { %3949 = vmatprep.mubr.f32.mxu0 %v5247_v7  ;;  %4149 = vmatpush3.bf16.msra.mxu0 %v4148_v8  ;;  %v4144_v8 = vpack.c.bf16 %v658_v4, %v657_v3  ;;  %v4218_v34 = vpack.c.bf16 %v1323_v28, %v1322_v27  ;;  %v1307_v36 = vld [vmem:[#allocation11 + $0x28] sm:$0xff]  ;;  %v1308_v45 = vld [vmem:[#allocation11 + $0x30] sm:$0xff]  ;;  %v1329_v60 = vld [vmem:[#allocation11 + $0xd8] sm:$0xff] }
  0xf3   : > { %4151 = vmatprep.subr.bf16.mxu0 %v4150_v12  ;;  %v1318_v12 = vld [vmem:[#allocation11 + $0x80] sm:$0xff]  ;;  %v4220_v43 = vpack.c.bf16 %v1307_v36, %v1306_v35  ;;  %v1327_v50 = vld [vmem:[#allocation11 + $0xc8] sm:$0xff]  ;;  %v1328_v59 = vld [vmem:[#allocation11 + $0xd0] sm:$0xff] }
  0xf4   : > { %4145 = vmatpush3.bf16.msra.mxu1 %v4144_v8  ;;  %v4210_v14 = vpack.c.bf16 %v1319_v13, %v1318_v12  ;;  %v1311_v58 = vld [vmem:[#allocation11 + $0x48] sm:$0xff]  ;;  %v4230_v3 = vpack.c.bf16 %v1329_v60, %v1328_v59  ;;  %v1312_v4 = vld [vmem:[#allocation11 + $0x50] sm:$0xff]  ;;  %v1313_v6 = vld [vmem:[#allocation11 + $0x58] sm:$0xff] }
  0xf5   : > { %3950 = vmatmul.mubr.f32.gmra.mrb[2].mxu0 %v5252_v21  ;;  %v1330_v8 = vld [vmem:[#allocation11 + $0xe0] sm:$0xff]  ;;  %v1331_v10 = vld [vmem:[#allocation11 + $0xe8] sm:$0xff]  ;;  %v4232_v13 = vpack.c.bf16 %v1313_v6, %v1312_v4  ;;  %v1316_v27 = vld [vmem:[#allocation11 + $0x70] sm:$0xff] }
  0xf6   : > { %3952 = vmatprep.mubr.f32.mxu0 %v5255_v23  ;;  %4153 = vmatpush3.bf16.msra.mxu0 %v4152_v22  ;;  %v4212_v22 = vpack.c.bf16 %v1303_v16, %v1302_v15  ;;  %v1314_v15 = vld [vmem:[#allocation11 + $0x60] sm:$0xff]  ;;  %v1315_v16 = vld [vmem:[#allocation11 + $0x68] sm:$0xff]  ;;  %v1317_v28 = vld [vmem:[#allocation11 + $0x78] sm:$0xff] }
  0xf7   : > { %4155 = vmatprep.subr.bf16.mxu0 %v4154_v24  ;;  %v4214_v24 = vpack.c.bf16 %v1321_v18, %v1320_v17  ;;  %v1332_v17 = vld [vmem:[#allocation11 + $0xf0] sm:$0xff]  ;;  %v1333_v18 = vld [vmem:[#allocation11 + $0xf8] sm:$0xff]  ;;  %v916_v36 = vld [vmem:[#allocation9 + $0x100] sm:$0xff] }
  0xf8   : > { %v923_v59 = vld [vmem:[#allocation9 + $0x138] sm:$0xff]  ;;  %v926_v4 = vld [vmem:[#allocation9 + $0x150] sm:$0xff]  ;;  %v1752_v6 = vld [vmem:[#allocation12] sm:$0xff] }
  0xf9   : > { %3953 = vmatmul.mubr.f32.gmra.mrb[4].mxu0 %v5260_v30 }
  0xfa   : > { %3955 = vmatprep.mubr.f32.mxu0 %v5263_v32  ;;  %4157 = vmatpush3.bf16.msra.mxu0 %v4156_v31 }
  0xfb   : > { %4159 = vmatprep.subr.bf16.mxu0 %v4158_v33  ;;  %v4216_v33 = vpack.c.bf16 %v1305_v26, %v1304_v25  ;;  %v4236_v25 = vpack.c.bf16 %v1315_v16, %v1314_v15  ;;  %v4238_v26 = vpack.c.bf16 %v1333_v18, %v1332_v17  ;;  %v1771_v15 = vld [vmem:[#allocation12 + $0x98] sm:$0xff]  ;;  %v928_v17 = vld [vmem:[#allocation9 + $0x160] sm:$0xff]  ;;  %v929_v18 = vld [vmem:[#allocation9 + $0x168] sm:$0xff] }
  0xfd   : > { %3956 = vmatmul.mubr.f32.gmra.mrb[6].mxu0 %v5268_v38 }
  0xfe   : > { %3958 = vmatprep.mubr.f32.mxu0 %v5271_v40  ;;  %4161 = vmatpush3.bf16.msra.mxu0 %v4160_v39  ;;  %v1325_v39 = vld [vmem:[#allocation11 + $0xb8] sm:$0xff] }
  0xff   : > { %4163 = vmatprep.subr.bf16.mxu0 %v4162_v41  ;;  %v4222_v44 = vpack.c.bf16 %v1325_v39, %v1324_v37  ;;  %v917_v37 = vld [vmem:[#allocation9 + $0x108] sm:$0xff] }
 0x101   : > { %3959 = vmatmul.mubr.f32.gmra.mrb[8].mxu0 %v5276_v46 }
 0x102   : > { %3961 = vmatprep.mubr.f32.mxu0 %v5279_v48  ;;  %4165 = vmatpush3.bf16.msra.mxu0 %v4164_v47  ;;  %v1309_v47 = vld [vmem:[#allocation11 + $0x38] sm:$0xff] }
 0x103   : > { %4167 = vmatprep.subr.bf16.mxu0 %v4166_v49  ;;  %v1326_v49 = vld [vmem:[#allocation11 + $0xc0] sm:$0xff]  ;;  %v4224_v53 = vpack.c.bf16 %v1309_v47, %v1308_v45  ;;  %v918_v47 = vld [vmem:[#allocation9 + $0x110] sm:$0xff] }
 0x105   : > { %3962 = vmatmul.mubr.f32.gmra.mrb[10].mxu0 %v5284_v54 }
 0x106   : > { %3964 = vmatprep.mubr.f32.mxu0 %v5287_v56  ;;  %4169 = vmatpush3.bf16.msra.mxu0 %v4168_v55  ;;  %v4226_v55 = vpack.c.bf16 %v1327_v50, %v1326_v49  ;;  %v919_v49 = vld [vmem:[#allocation9 + $0x118] sm:$0xff] }
 0x107   : > { %4171 = vmatprep.subr.bf16.mxu0 %v4170_v57  ;;  %v1310_v57 = vld [vmem:[#allocation11 + $0x40] sm:$0xff]  ;;  %v4182_v50 = vpack.c.bf16 %v919_v49, %v918_v47  ;;  %v1757_v49 = vld [vmem:[#allocation12 + $0x28] sm:$0xff] }
 0x108   : > { %v1756_v47 = vld [vmem:[#allocation12 + $0x20] sm:$0xff] }
 0x109   : > { %3965 = vmatmul.mubr.f32.gmra.mrb[12].mxu0 %v5292_v62 }
 0x10a   : > { %3967 = vmatprep.mubr.f32.mxu0 %v5295_v0  ;;  %4173 = vmatpush3.bf16.msra.mxu0 %v4172_v63 }
 0x10b   : > { %4175 = vmatprep.subr.bf16.mxu0 %v4174_v1  ;;  %v4228_v1 = vpack.c.bf16 %v1311_v58, %v1310_v57  ;;  %v922_v58 = vld [vmem:[#allocation9 + $0x130] sm:$0xff] }
 0x10c   : > { %v4190_v60 = vpack.c.bf16 %v923_v59, %v922_v58  ;;  %v1758_v59 = vld [vmem:[#allocation12 + $0x30] sm:$0xff] }
 0x10d   : > { %3968 = vmatmul.mubr.f32.gmra.mrb[14].mxu0 %v5300_v2 }
 0x10e   : > { %4177 = vmatpush3.bf16.msra.mxu0 %v4176_v11 }
 0x10f   : > { %4211 = vmatprep.subr.bf16.mxu0 %v4210_v14  ;;  %v4234_v14 = vpack.c.bf16 %v1331_v10, %v1330_v8  ;;  %v1753_v8 = vld [vmem:[#allocation12 + $0x8] sm:$0xff] }
 0x1c4   : > { %v5303_v19 = vpop.f32.mrb[0].mxu0 }
 0x1c5   : > { %v5305_v20 = vpop.f32.mrb[1].mxu0 }
 0x1c6   : > { %739 = vmatprep.mubr.f32.mxu1 %v5305_v20  ;;  %996 = vmatprep.mubr.f32.mxu0 %v5305_v20 }
 0x1c7   : > { %740 = vmatmul.mubr.f32.vlgmr.msra.gmra.mrb[0].mxu1 %v5240_v9  ;;  %997 = vmatmul.mubr.f32.vlgmr.msra.gmra.mrb[16].mxu0 %v5240_v9 }
 0x1c8   : > { %744 = vmatprep.mubr.f32.mxu1 %v5303_v19  ;;  %1001 = vmatprep.mubr.f32.mxu0 %v5303_v19  ;;  %v5313_v29 = vpop.f32.mrb[2].mxu0 }
 0x1c9   : > { %v5315_v31 = vpop.f32.mrb[3].mxu0  ;;  %4213 = vmatpush3.bf16.msra.mxu0 %v4212_v22 }
 0x1ca   : > { %4215 = vmatprep.subr.bf16.mxu0 %v4214_v24 }
 0x1cb   : > { %745 = vmatmul.mubr.f32.gmra.mrb[2].mxu1 %v5244_v5  ;;  %1002 = vmatmul.mubr.f32.gmra.mrb[18].mxu0 %v5244_v5 }
 0x1cc   : > { %749 = vmatprep.mubr.f32.mxu1 %v5315_v31  ;;  %1006 = vmatprep.mubr.f32.mxu0 %v5315_v31  ;;  %v5321_v41 = vpop.f32.mrb[4].mxu0 }
 0x1cd   : > { %v5323_v42 = vpop.f32.mrb[5].mxu0  ;;  %4217 = vmatpush3.bf16.msra.mxu0 %v4216_v33  ;;  %v1768_v33 = vld [vmem:[#allocation12 + $0x80] sm:$0xff] }
 0x1ce   : > { %4219 = vmatprep.subr.bf16.mxu0 %v4218_v34  ;;  %v1769_v34 = vld [vmem:[#allocation12 + $0x88] sm:$0xff] }
 0x1cf   : > { %750 = vmatmul.mubr.f32.gmra.mrb[4].mxu1 %v5247_v7  ;;  %1007 = vmatmul.mubr.f32.gmra.mrb[20].mxu0 %v5247_v7  ;;  %v4274_v45 = vpack.c.bf16 %v1769_v34, %v1768_v33  ;;  %v1772_v33 = vld [vmem:[#allocation12 + $0xa0] sm:$0xff]  ;;  %v1773_v34 = vld [vmem:[#allocation12 + $0xa8] sm:$0xff] }
 0x1d0   : > { %754 = vmatprep.mubr.f32.mxu1 %v5313_v29  ;;  %1011 = vmatprep.mubr.f32.mxu0 %v5313_v29  ;;  %v5329_v51 = vpop.f32.mrb[6].mxu0 }
 0x1d1   : > { %v5331_v52 = vpop.f32.mrb[7].mxu0  ;;  %4221 = vmatpush3.bf16.msra.mxu0 %v4220_v43  ;;  %v4240_v43 = vpack.c.bf16 %v1317_v28, %v1316_v27  ;;  %v1754_v27 = vld [vmem:[#allocation12 + $0x10] sm:$0xff]  ;;  %v1755_v28 = vld [vmem:[#allocation12 + $0x18] sm:$0xff] }
 0x1d2   : > { %4223 = vmatprep.subr.bf16.mxu0 %v4222_v44  ;;  %v4178_v44 = vpack.c.bf16 %v917_v37, %v916_v36  ;;  %v4202_v36 = vpack.c.bf16 %v929_v18, %v928_v17  ;;  %v930_v37 = vld [vmem:[#allocation9 + $0x170] sm:$0xff]  ;;  %v1763_v18 = vld [vmem:[#allocation12 + $0x58] sm:$0xff] }
 0x1d3   : > { %755 = vmatmul.mubr.f32.gmra.mrb[6].mxu1 %v5252_v21  ;;  %1012 = vmatmul.mubr.f32.gmra.mrb[22].mxu0 %v5252_v21  ;;  %v1762_v17 = vld [vmem:[#allocation12 + $0x50] sm:$0xff] }
 0x1d4   : > { %759 = vmatprep.mubr.f32.mxu1 %v5323_v42  ;;  %1016 = vmatprep.mubr.f32.mxu0 %v5323_v42  ;;  %v5337_v61 = vpop.f32.mrb[8].mxu0 }
 0x1d5   : > { %v5339_v63 = vpop.f32.mrb[9].mxu0  ;;  %4225 = vmatpush3.bf16.msra.mxu0 %v4224_v53  ;;  %4179 = vmatprep.subr.bf16.mxu1 %v4178_v44  ;;  %v920_v53 = vld [vmem:[#allocation9 + $0x120] sm:$0xff] }
 0x1d6   : > { %4227 = vmatprep.subr.bf16.mxu0 %v4226_v55  ;;  %4181 = vmatpush3.bf16.msra.mxu1 %v4178_v44  ;;  %v921_v55 = vld [vmem:[#allocation9 + $0x128] sm:$0xff]  ;;  %v4280_v44 = vpack.c.bf16 %v1755_v28, %v1754_v27  ;;  %v4296_v27 = vpack.c.bf16 %v1763_v18, %v1762_v17  ;;  %v1357_v17 = vld [vmem:[#allocation11 + $0x1b8] sm:$0xff] }
 0x1d7   : > { %760 = vmatmul.mubr.f32.gmra.mrb[8].mxu1 %v5255_v23  ;;  %1017 = vmatmul.mubr.f32.gmra.mrb[24].mxu0 %v5255_v23  ;;  %v4186_v57 = vpack.c.bf16 %v921_v55, %v920_v53  ;;  %v1775_v53 = vld [vmem:[#allocation12 + $0xb8] sm:$0xff] }
 0x1d8   : > { %764 = vmatprep.mubr.f32.mxu1 %v5321_v41  ;;  %1021 = vmatprep.mubr.f32.mxu0 %v5321_v41  ;;  %v5345_v11 = vpop.f32.mrb[10].mxu0 }
 0x1d9   : > { %v5347_v12 = vpop.f32.mrb[11].mxu0  ;;  %4229 = vmatpush3.bf16.msra.mxu0 %v4228_v1  ;;  %4183 = vmatprep.subr.bf16.mxu1 %v4182_v50  ;;  %v924_v1 = vld [vmem:[#allocation9 + $0x140] sm:$0xff] }
 0x1da   : > { %4231 = vmatprep.subr.bf16.mxu0 %v4230_v3  ;;  %4185 = vmatpush3.bf16.msra.mxu1 %v4182_v50  ;;  %v925_v3 = vld [vmem:[#allocation9 + $0x148] sm:$0xff]  ;;  %v1774_v50 = vld [vmem:[#allocation12 + $0xb0] sm:$0xff] }
 0x1db   : > { %765 = vmatmul.mubr.f32.gmra.mrb[10].mxu1 %v5260_v30  ;;  %1022 = vmatmul.mubr.f32.gmra.mrb[26].mxu0 %v5260_v30  ;;  %v4194_v10 = vpack.c.bf16 %v925_v3, %v924_v1  ;;  %v4286_v58 = vpack.c.bf16 %v1775_v53, %v1774_v50  ;;  %v1776_v1 = vld [vmem:[#allocation12 + $0xc0] sm:$0xff]  ;;  %v1777_v3 = vld [vmem:[#allocation12 + $0xc8] sm:$0xff] }
 0x1dc   : > { %769 = vmatprep.mubr.f32.mxu1 %v5331_v52  ;;  %1026 = vmatprep.mubr.f32.mxu0 %v5331_v52  ;;  %v5353_v22 = vpop.f32.mrb[12].mxu0  ;;  %v1350_v50 = vld [vmem:[#allocation11 + $0x180] sm:$0xff] }
 0x1dd   : > { %6207 = vst [vmem:[#allocation21_spill] sm:$0xff] %v5353_v22  ;;  %v5355_v24 = vpop.f32.mrb[13].mxu0  ;;  %4233 = vmatpush3.bf16.msra.mxu0 %v4232_v13  ;;  %4187 = vmatprep.subr.bf16.mxu1 %v4186_v57  ;;  %v927_v13 = vld [vmem:[#allocation9 + $0x158] sm:$0xff] }
 0x1de   : > { %6208 = vst [vmem:[#allocation22_spill] sm:$0xff] %v5355_v24  ;;  %4235 = vmatprep.subr.bf16.mxu0 %v4234_v14  ;;  %4189 = vmatpush3.bf16.msra.mxu1 %v4186_v57  ;;  %v1770_v14 = vld [vmem:[#allocation12 + $0x90] sm:$0xff]  ;;  %v4198_v16 = vpack.c.bf16 %v927_v13, %v926_v4  ;;  %v4284_v57 = vpack.c.bf16 %v1757_v49, %v1756_v47  ;;  %v1767_v47 = vld [vmem:[#allocation12 + $0x78] sm:$0xff] }
 0x1df   : > { %770 = vmatmul.mubr.f32.gmra.mrb[12].mxu1 %v5263_v32  ;;  %1027 = vmatmul.mubr.f32.gmra.mrb[28].mxu0 %v5263_v32  ;;  %v1778_v13 = vld [vmem:[#allocation12 + $0xd0] sm:$0xff] }
 0x1e0   : > { %774 = vmatprep.mubr.f32.mxu1 %v5329_v51  ;;  %1031 = vmatprep.mubr.f32.mxu0 %v5329_v51  ;;  %v5361_v35 = vpop.f32.mrb[14].mxu0 }
 0x1e1   : > { %6209 = vst [vmem:[#allocation23_spill] sm:$0xff] %v5361_v35  ;;  %v5363_v39 = vpop.f32.mrb[15].mxu0  ;;  %4237 = vmatpush3.bf16.msra.mxu0 %v4236_v25  ;;  %4191 = vmatprep.subr.bf16.mxu1 %v4190_v60  ;;  %v4276_v25 = vpack.c.bf16 %v1753_v8, %v1752_v6  ;;  %v4290_v6 = vpack.c.bf16 %v1777_v3, %v1776_v1  ;;  %v1760_v8 = vld [vmem:[#allocation12 + $0x40] sm:$0xff]  ;;  %v1355_v3 = vld [vmem:[#allocation11 + $0x1a8] sm:$0xff] }
 0x1e2   : > { %6210 = vst [vmem:[#allocation24_spill] sm:$0xff] %v5363_v39  ;;  %4239 = vmatprep.subr.bf16.mxu0 %v4238_v26  ;;  %4193 = vmatpush3.bf16.msra.mxu1 %v4190_v60  ;;  %v4278_v26 = vpack.c.bf16 %v1771_v15, %v1770_v14  ;;  %v1759_v60 = vld [vmem:[#allocation12 + $0x38] sm:$0xff]  ;;  %v1354_v1 = vld [vmem:[#allocation11 + $0x1a0] sm:$0xff] }
 0x1e3   : > { %775 = vmatmul.mubr.f32.gmra.mrb[14].mxu1 %v5268_v38  ;;  %1032 = vmatmul.mubr.f32.gmra.mrb[30].mxu0 %v5268_v38  ;;  %v4288_v4 = vpack.c.bf16 %v1759_v60, %v1758_v59  ;;  %v1779_v14 = vld [vmem:[#allocation12 + $0xd8] sm:$0xff] }
 0x1e4   : > { %779 = vmatprep.mubr.f32.mxu1 %v5339_v63  ;;  %1036 = vmatprep.mubr.f32.mxu0 %v5339_v63  ;;  %v1337_v59 = vld [vmem:[#allocation11 + $0x118] sm:$0xff] }
 0x1e5   : > { %4241 = vmatpush3.bf16.msra.mxu0 %v4240_v43  ;;  %4195 = vmatprep.subr.bf16.mxu1 %v4194_v10  ;;  %v931_v43 = vld [vmem:[#allocation9 + $0x178] sm:$0xff] }
 0x1e6   : > { %4275 = vmatprep.subr.bf16.mxu0 %v4274_v45  ;;  %4197 = vmatpush3.bf16.msra.mxu1 %v4194_v10  ;;  %v4282_v45 = vpack.c.bf16 %v1773_v34, %v1772_v33  ;;  %v4206_v55 = vpack.c.bf16 %v931_v43, %v930_v37  ;;  %v1761_v10 = vld [vmem:[#allocation12 + $0x48] sm:$0xff]  ;;  %v1764_v33 = vld [vmem:[#allocation12 + $0x60] sm:$0xff]  ;;  %v1783_v37 = vld [vmem:[#allocation12 + $0xf8] sm:$0xff] }
 0x1e7   : > { %780 = vmatmul.mubr.f32.gmra.mrb[16].mxu1 %v5271_v40  ;;  %1037 = vmatmul.mubr.f32.gmra.mrb[32].mxu0 %v5271_v40  ;;  %v4292_v15 = vpack.c.bf16 %v1761_v10, %v1760_v8  ;;  %v1765_v34 = vld [vmem:[#allocation12 + $0x68] sm:$0xff] }
 0x1e8   : > { %784 = vmatprep.mubr.f32.mxu1 %v5337_v61  ;;  %1041 = vmatprep.mubr.f32.mxu0 %v5337_v61  ;;  %v4300_v43 = vpack.c.bf16 %v1765_v34, %v1764_v33  ;;  %v1340_v33 = vld [vmem:[#allocation11 + $0x130] sm:$0xff]  ;;  %v1341_v34 = vld [vmem:[#allocation11 + $0x138] sm:$0xff] }
 0x1e9   : > { %4199 = vmatprep.subr.bf16.mxu1 %v4198_v16 }
 0x1ea   : > { %4201 = vmatpush3.bf16.msra.mxu1 %v4198_v16  ;;  %v4294_v16 = vpack.c.bf16 %v1779_v14, %v1778_v13  ;;  %v4250_v13 = vpack.c.bf16 %v1355_v3, %v1354_v1  ;;  %v1338_v14 = vld [vmem:[#allocation11 + $0x120] sm:$0xff]  ;;  %v1347_v1 = vld [vmem:[#allocation11 + $0x168] sm:$0xff] }
 0x1eb   : > { %785 = vmatmul.mubr.f32.gmra.mrb[18].mxu1 %v5276_v46  ;;  %1042 = vmatmul.mubr.f32.gmra.mrb[34].mxu0 %v5276_v46 }
 0x1ec   : > { %789 = vmatprep.mubr.f32.mxu1 %v5347_v12  ;;  %1046 = vmatprep.mubr.f32.mxu0 %v5347_v12 }
 0x1ed   : > { %4203 = vmatprep.subr.bf16.mxu1 %v4202_v36 }
 0x1ee   : > { %4205 = vmatpush3.bf16.msra.mxu1 %v4202_v36  ;;  %v1782_v36 = vld [vmem:[#allocation12 + $0xf0] sm:$0xff] }
 0x1ef   : > { %790 = vmatmul.mubr.f32.gmra.mrb[20].mxu1 %v5279_v48  ;;  %1047 = vmatmul.mubr.f32.gmra.mrb[36].mxu0 %v5279_v48 }
 0x1f0   : > { %794 = vmatprep.mubr.f32.mxu1 %v5345_v11  ;;  %1051 = vmatprep.mubr.f32.mxu0 %v5345_v11 }
 0x1f1   : > { %4207 = vmatprep.subr.bf16.mxu1 %v4206_v55 }
 0x1f2   : > { %4209 = vmatpush3.bf16.msra.mxu1 %v4206_v55 }
 0x1f3   : > { %795 = vmatmul.mubr.f32.gmra.mrb[22].mxu1 %v5284_v54  ;;  %1052 = vmatmul.mubr.f32.gmra.mrb[38].mxu0 %v5284_v54 }
 0x1f4   : > { %799 = vmatprep.mubr.f32.mxu1 %v5355_v24  ;;  %1056 = vmatprep.mubr.f32.mxu0 %v5355_v24 }
 0x1f7   : > { %800 = vmatmul.mubr.f32.gmra.mrb[24].mxu1 %v5287_v56  ;;  %1057 = vmatmul.mubr.f32.gmra.mrb[40].mxu0 %v5287_v56 }
 0x1f8   : > { %804 = vmatprep.mubr.f32.mxu1 %v5353_v22  ;;  %1061 = vmatprep.mubr.f32.mxu0 %v5353_v22 }
 0x1fb   : > { %805 = vmatmul.mubr.f32.gmra.mrb[26].mxu1 %v5292_v62  ;;  %1062 = vmatmul.mubr.f32.gmra.mrb[42].mxu0 %v5292_v62 }
 0x1fc   : > { %809 = vmatprep.mubr.f32.mxu1 %v5363_v39  ;;  %1066 = vmatprep.mubr.f32.mxu0 %v5363_v39 }
 0x1ff   : > { %810 = vmatmul.mubr.f32.gmra.mrb[28].mxu1 %v5295_v0  ;;  %1067 = vmatmul.mubr.f32.gmra.mrb[44].mxu0 %v5295_v0 }
 0x200   : > { %814 = vmatprep.mubr.f32.mxu1 %v5361_v35  ;;  %1071 = vmatprep.mubr.f32.mxu0 %v5361_v35 }
 0x203   : > { %815 = vmatmul.mubr.f32.gmra.mrb[30].mxu1 %v5300_v2  ;;  %1072 = vmatmul.mubr.f32.gmra.mrb[46].mxu0 %v5300_v2 }
 0x204   : > { %1430 = vmatprep.mubr.f32.mxu0 %v5305_v20 }
 0x207   : > { %1431 = vmatmul.mubr.f32.vlgmr.msra.gmra.mrb[48].mxu0 %v5240_v9 }
 0x208   : > { %1435 = vmatprep.mubr.f32.mxu0 %v5303_v19  ;;  %4277 = vmatpush3.bf16.msra.mxu0 %v4276_v25  ;;  %v1780_v25 = vld [vmem:[#allocation12 + $0xe0] sm:$0xff] }
 0x209   : > { %4279 = vmatprep.subr.bf16.mxu0 %v4278_v26  ;;  %v1781_v26 = vld [vmem:[#allocation12 + $0xe8] sm:$0xff] }
 0x20a   : > { %v4298_v28 = vpack.c.bf16 %v1781_v26, %v1780_v25 }
 0x20b   : > { %1436 = vmatmul.mubr.f32.gmra.mrb[50].mxu0 %v5244_v5 }
 0x20c   : > { %1440 = vmatprep.mubr.f32.mxu0 %v5315_v31  ;;  %4281 = vmatpush3.bf16.msra.mxu0 %v4280_v44  ;;  %v4302_v44 = vpack.c.bf16 %v1783_v37, %v1782_v36  ;;  %v1358_v36 = vld [vmem:[#allocation11 + $0x1c0] sm:$0xff]  ;;  %v1359_v37 = vld [vmem:[#allocation11 + $0x1c8] sm:$0xff] }
 0x20d   : > { %4283 = vmatprep.subr.bf16.mxu0 %v4282_v45  ;;  %v1766_v45 = vld [vmem:[#allocation12 + $0x70] sm:$0xff] }
 0x20e   : > { %v4304_v49 = vpack.c.bf16 %v1767_v47, %v1766_v45  ;;  %v4256_v45 = vpack.c.bf16 %v1341_v34, %v1340_v33 }
 0x20f   : > { %1441 = vmatmul.mubr.f32.gmra.mrb[52].mxu0 %v5247_v7 }
 0x210   : > { %1445 = vmatprep.mubr.f32.mxu0 %v5313_v29  ;;  %4285 = vmatpush3.bf16.msra.mxu0 %v4284_v57 }
 0x211   : > { %4287 = vmatprep.subr.bf16.mxu0 %v4286_v58  ;;  %v1336_v58 = vld [vmem:[#allocation11 + $0x110] sm:$0xff] }
 0x212   : > { %v4248_v8 = vpack.c.bf16 %v1337_v59, %v1336_v58  ;;  %v1346_v59 = vld [vmem:[#allocation11 + $0x160] sm:$0xff] }
 0x213   : > { %1446 = vmatmul.mubr.f32.gmra.mrb[54].mxu0 %v5252_v21 }
 0x214   : > { %1450 = vmatprep.mubr.f32.mxu0 %v5323_v42  ;;  %4289 = vmatpush3.bf16.msra.mxu0 %v4288_v4 }
 0x215   : > { %4291 = vmatprep.subr.bf16.mxu0 %v4290_v6 }
 0x217   : > { %1451 = vmatmul.mubr.f32.gmra.mrb[56].mxu0 %v5255_v23 }
 0x218   : > { %1455 = vmatprep.mubr.f32.mxu0 %v5321_v41  ;;  %4293 = vmatpush3.bf16.msra.mxu0 %v4292_v15  ;;  %v1339_v15 = vld [vmem:[#allocation11 + $0x128] sm:$0xff] }
 0x219   : > { %4295 = vmatprep.subr.bf16.mxu0 %v4294_v16  ;;  %v1356_v16 = vld [vmem:[#allocation11 + $0x1b0] sm:$0xff]  ;;  %v4252_v26 = vpack.c.bf16 %v1339_v15, %v1338_v14 }
 0x21b   : > { %1456 = vmatmul.mubr.f32.gmra.mrb[58].mxu0 %v5260_v30 }
 0x21c   : > { %1460 = vmatprep.mubr.f32.mxu0 %v5331_v52  ;;  %4297 = vmatpush3.bf16.msra.mxu0 %v4296_v27 }
 0x21d   : > { %4299 = vmatprep.subr.bf16.mxu0 %v4298_v28  ;;  %v4254_v28 = vpack.c.bf16 %v1357_v17, %v1356_v16 }
 0x21f   : > { %1461 = vmatmul.mubr.f32.gmra.mrb[60].mxu0 %v5263_v32 }
 0x220   : > { %1465 = vmatprep.mubr.f32.mxu0 %v5329_v51  ;;  %4301 = vmatpush3.bf16.msra.mxu0 %v4300_v43 }
 0x221   : > { %4303 = vmatprep.subr.bf16.mxu0 %v4302_v44 }
 0x223   : > { %1466 = vmatmul.mubr.f32.gmra.mrb[62].mxu0 %v5268_v38 }
 0x224   : > { %1470 = vmatprep.mubr.f32.mxu0 %v5339_v63  ;;  %4305 = vmatpush3.bf16.msra.mxu0 %v4304_v49  ;;  %v4258_v49 = vpack.c.bf16 %v1359_v37, %v1358_v36 }
 0x227   : > { %1471 = vmatmul.mubr.f32.gmra.mrb[64].mxu0 %v5271_v40 }
 0x228   : > { %1475 = vmatprep.mubr.f32.mxu0 %v5337_v61 }
 0x22b   : > { %1476 = vmatmul.mubr.f32.gmra.mrb[66].mxu0 %v5276_v46 }
 0x22c   : > { %1480 = vmatprep.mubr.f32.mxu0 %v5347_v12 }
 0x22f   : > { %1481 = vmatmul.mubr.f32.gmra.mrb[68].mxu0 %v5279_v48 }
 0x230   : > { %1485 = vmatprep.mubr.f32.mxu0 %v5345_v11 }
 0x233   : > { %1486 = vmatmul.mubr.f32.gmra.mrb[70].mxu0 %v5284_v54 }
 0x234   : > { %1490 = vmatprep.mubr.f32.mxu0 %v5355_v24 }
 0x237   : > { %1491 = vmatmul.mubr.f32.gmra.mrb[72].mxu0 %v5287_v56 }
 0x238   : > { %1495 = vmatprep.mubr.f32.mxu0 %v5353_v22 }
 0x23b   : > { %1496 = vmatmul.mubr.f32.gmra.mrb[74].mxu0 %v5292_v62 }
 0x23c   : > { %1500 = vmatprep.mubr.f32.mxu0 %v5363_v39 }
 0x23f   : > { %1501 = vmatmul.mubr.f32.gmra.mrb[76].mxu0 %v5295_v0 }
 0x240   : > { %1505 = vmatprep.mubr.f32.mxu0 %v5361_v35 }
 0x243   : > { %1506 = vmatmul.mubr.f32.gmra.mrb[78].mxu0 %v5300_v2 }
 0x244   : > { %1896 = vmatprep.mubr.f32.mxu0 %v5305_v20 }
 0x247   : > { %1897 = vmatmul.mubr.f32.vlgmr.msra.gmra.mrb[80].mxu0 %v5240_v9  ;;  %v1351_v9 = vld [vmem:[#allocation11 + $0x188] sm:$0xff] }
 0x248   : > { %1901 = vmatprep.mubr.f32.mxu0 %v5303_v19  ;;  %v4242_v53 = vpack.c.bf16 %v1351_v9, %v1350_v50  ;;  %v1342_v50 = vld [vmem:[#allocation11 + $0x140] sm:$0xff]  ;;  %v1343_v9 = vld [vmem:[#allocation11 + $0x148] sm:$0xff] }
 0x24a   : > { %4243 = vmatprep.subr.bf16.mxu1 %v4242_v53  ;;  %v1360_v53 = vld [vmem:[#allocation11 + $0x1d0] sm:$0xff] }
 0x24b   : > { %1902 = vmatmul.mubr.f32.gmra.mrb[82].mxu0 %v5244_v5 }
 0x24c   : > { %1906 = vmatprep.mubr.f32.mxu0 %v5315_v31 }
 0x24f   : > { %1907 = vmatmul.mubr.f32.gmra.mrb[84].mxu0 %v5247_v7 }
 0x250   : > { %1911 = vmatprep.mubr.f32.mxu0 %v5313_v29 }
 0x253   : > { %1912 = vmatmul.mubr.f32.gmra.mrb[86].mxu0 %v5252_v21 }
 0x254   : > { %1916 = vmatprep.mubr.f32.mxu0 %v5323_v42 }
 0x257   : > { %1917 = vmatmul.mubr.f32.gmra.mrb[88].mxu0 %v5255_v23 }
 0x258   : > { %1921 = vmatprep.mubr.f32.mxu0 %v5321_v41 }
 0x25b   : > { %1922 = vmatmul.mubr.f32.gmra.mrb[90].mxu0 %v5260_v30 }
 0x25c   : > { %1926 = vmatprep.mubr.f32.mxu0 %v5331_v52 }
 0x25f   : > { %1927 = vmatmul.mubr.f32.gmra.mrb[92].mxu0 %v5263_v32  ;;  %v1334_v32 = vld [vmem:[#allocation11 + $0x100] sm:$0xff] }
 0x260   : > { %1931 = vmatprep.mubr.f32.mxu0 %v5329_v51 }
 0x263   : > { %1932 = vmatmul.mubr.f32.gmra.mrb[94].mxu0 %v5268_v38  ;;  %v1335_v38 = vld [vmem:[#allocation11 + $0x108] sm:$0xff] }
 0x264   : > { %1936 = vmatprep.mubr.f32.mxu0 %v5339_v63 }
 0x267   : > { %1937 = vmatmul.mubr.f32.gmra.mrb[96].mxu0 %v5271_v40 }
 0x268   : > { %1941 = vmatprep.mubr.f32.mxu0 %v5337_v61 }
 0x26b   : > { %1942 = vmatmul.mubr.f32.gmra.mrb[98].mxu0 %v5276_v46  ;;  %v1352_v46 = vld [vmem:[#allocation11 + $0x190] sm:$0xff] }
 0x26c   : > { %1946 = vmatprep.mubr.f32.mxu0 %v5347_v12 }
 0x26f   : > { %1947 = vmatmul.mubr.f32.gmra.mrb[100].mxu0 %v5279_v48  ;;  %v1353_v48 = vld [vmem:[#allocation11 + $0x198] sm:$0xff] }
 0x270   : > { %1951 = vmatprep.mubr.f32.mxu0 %v5345_v11  ;;  %v4246_v57 = vpack.c.bf16 %v1353_v48, %v1352_v46  ;;  %v1344_v46 = vld [vmem:[#allocation11 + $0x150] sm:$0xff]  ;;  %v1345_v48 = vld [vmem:[#allocation11 + $0x158] sm:$0xff] }
 0x273   : > { %1952 = vmatmul.mubr.f32.gmra.mrb[102].mxu0 %v5284_v54 }
 0x274   : > { %1956 = vmatprep.mubr.f32.mxu0 %v5355_v24 }
 0x277   : > { %1957 = vmatmul.mubr.f32.gmra.mrb[104].mxu0 %v5287_v56 }
 0x278   : > { %1961 = vmatprep.mubr.f32.mxu0 %v5353_v22  ;;  %v2382_v22 = vld [vmem:[#allocation14 + $0x18] sm:$0xff] }
 0x27b   : > { %1962 = vmatmul.mubr.f32.gmra.mrb[106].mxu0 %v5292_v62 }
 0x27c   : > { %1966 = vmatprep.mubr.f32.mxu0 %v5363_v39  ;;  %v2381_v39 = vld [vmem:[#allocation14 + $0x10] sm:$0xff] }
 0x27f   : > { %1967 = vmatmul.mubr.f32.gmra.mrb[108].mxu0 %v5295_v0  ;;  %v4244_v0 = vpack.c.bf16 %v1335_v38, %v1334_v32 }
 0x280   : > { %1971 = vmatprep.mubr.f32.mxu0 %v5361_v35 }
 0x283   : > { %1972 = vmatmul.mubr.f32.gmra.mrb[110].mxu0 %v5300_v2 }
 0x29a   : > { %v3162_v5 = vpop.f32.mrb[0].mxu1  ;;  %v3242_v7 = vpop.f32.mrb[16].mxu0 }
 0x29b   : > { %v3163_v21 = vpop.f32.mrb[1].mxu1  ;;  %v3243_v23 = vpop.f32.mrb[17].mxu0 }
 0x29c   : > { %v5463_v30 = vadd.f32 %v3163_v21, %v3162_v5  ;;  %v5465_v40 = vadd.f32 %v3243_v23, %v3242_v7  ;;  %v1361_v5 = vld [vmem:[#allocation11 + $0x1d8] sm:$0xff]  ;;  %v4260_v23 = vpack.c.bf16 %v1343_v9, %v1342_v50 }
 0x29d   : > { %v4262_v38 = vpack.c.bf16 %v1361_v5, %v1360_v53 }
 0x29e   : > { %v3165_v54 = vpop.f32.mrb[2].mxu1  ;;  %4002 = vmatprep.mubr.f32.mxu1 %v5463_v30  ;;  %v3245_v56 = vpop.f32.mrb[18].mxu0 }
 0x29f   : > { %v3166_v62 = vpop.f32.mrb[3].mxu1  ;;  %v3246_v55 = vpop.f32.mrb[19].mxu0 }
 0x2a0   : > { %v5468_v2 = vadd.f32 %v3166_v62, %v3165_v54  ;;  %v5470_v60 = vadd.f32 %v3246_v55, %v3245_v56  ;;  %v1362_v54 = vld [vmem:[#allocation11 + $0x1e0] sm:$0xff]  ;;  %v1363_v56 = vld [vmem:[#allocation11 + $0x1e8] sm:$0xff]  ;;  %v4264_v55 = vpack.c.bf16 %v1345_v48, %v1344_v46  ;;  %v1365_v46 = vld [vmem:[#allocation11 + $0x1f8] sm:$0xff] }
 0x2a1   : > { %v4266_v58 = vpack.c.bf16 %v1363_v56, %v1362_v54  ;;  %v1348_v54 = vld [vmem:[#allocation11 + $0x170] sm:$0xff]  ;;  %v1349_v56 = vld [vmem:[#allocation11 + $0x178] sm:$0xff] }
 0x2a2   : > { %v3168_v4 = vpop.f32.mrb[4].mxu1  ;;  %4003 = vmatmul.mubr.f32.vlgmr.msra.gmra.mrb[32].mxu1 %v5468_v2 }
 0x2a3   : > { %v3169_v6 = vpop.f32.mrb[5].mxu1  ;;  %4245 = vmatpush3.bf16.msra.mxu1 %v4244_v0 }
 0x2a4   : > { %v5473_v10 = vadd.f32 %v3169_v6, %v3168_v4  ;;  %4247 = vmatprep.subr.bf16.mxu1 %v4246_v57  ;;  %v4268_v6 = vpack.c.bf16 %v1347_v1, %v1346_v59 }
 0x2a6   : > { %v3171_v18 = vpop.f32.mrb[6].mxu1  ;;  %4005 = vmatprep.mubr.f32.mxu1 %v5473_v10 }
 0x2a7   : > { %v3172_v25 = vpop.f32.mrb[7].mxu1  ;;  %4249 = vmatpush3.bf16.msra.mxu1 %v4248_v8 }
 0x2a8   : > { %v5476_v27 = vadd.f32 %v3172_v25, %v3171_v18  ;;  %4251 = vmatprep.subr.bf16.mxu1 %v4250_v13 }
 0x2aa   : > { %v3174_v43 = vpop.f32.mrb[8].mxu1  ;;  %4006 = vmatmul.mubr.f32.gmra.mrb[34].mxu1 %v5476_v27 }
 0x2ab   : > { %v3175_v44 = vpop.f32.mrb[9].mxu1  ;;  %4253 = vmatpush3.bf16.msra.mxu1 %v4252_v26 }
 0x2ac   : > { %v5479_v47 = vadd.f32 %v3175_v44, %v3174_v43  ;;  %4255 = vmatprep.subr.bf16.mxu1 %v4254_v28 }
 0x2ae   : > { %v3177_v7 = vpop.f32.mrb[10].mxu1  ;;  %4008 = vmatprep.mubr.f32.mxu1 %v5479_v47 }
 0x2af   : > { %v3178_v21 = vpop.f32.mrb[11].mxu1  ;;  %4257 = vmatpush3.bf16.msra.mxu1 %v4256_v45 }
 0x2b0   : > { %v5482_v32 = vadd.f32 %v3178_v21, %v3177_v7  ;;  %4259 = vmatprep.subr.bf16.mxu1 %v4258_v49 }
 0x2b2   : > { %v3180_v62 = vpop.f32.mrb[12].mxu1  ;;  %4009 = vmatmul.mubr.f32.gmra.mrb[36].mxu1 %v5482_v32 }
 0x2b3   : > { %v3181_v0 = vpop.f32.mrb[13].mxu1  ;;  %4261 = vmatpush3.bf16.msra.mxu1 %v4260_v23 }
 0x2b4   : > { %v5485_v57 = vadd.f32 %v3181_v0, %v3180_v62  ;;  %4263 = vmatprep.subr.bf16.mxu1 %v4262_v38  ;;  %v1364_v38 = vld [vmem:[#allocation11 + $0x1f0] sm:$0xff]  ;;  %v4272_v62 = vpack.c.bf16 %v1349_v56, %v1348_v54  ;;  %v3248_v0 = vpop.f32.mrb[20].mxu0 }
 0x2b5   : > { %v4270_v48 = vpack.c.bf16 %v1365_v46, %v1364_v38  ;;  %v1800_v46 = vld [vmem:[#allocation12 + $0x180] sm:$0xff] }
 0x2b6   : > { %6211 = vst [vmem:[#allocation25_spill] sm:$0xff] %v5485_v57  ;;  %v3183_v3 = vpop.f32.mrb[14].mxu1  ;;  %4011 = vmatprep.mubr.f32.mxu1 %v5485_v57 }
 0x2b7   : > { %v3184_v4 = vpop.f32.mrb[15].mxu1  ;;  %4265 = vmatpush3.bf16.msra.mxu1 %v4264_v55  ;;  %v3249_v55 = vpop.f32.mrb[21].mxu0 }
 0x2b8   : > { %v5488_v8 = vadd.f32 %v3184_v4, %v3183_v3  ;;  %4267 = vmatprep.subr.bf16.mxu1 %v4266_v58  ;;  %v5515_v58 = vadd.f32 %v3249_v55, %v3248_v0  ;;  %v3251_v59 = vpop.f32.mrb[22].mxu0 }
 0x2b9   : > { %v3252_v1 = vpop.f32.mrb[23].mxu0 }
 0x2ba   : > { %6212 = vst [vmem:[#allocation26_spill] sm:$0xff] %v5488_v8  ;;  %v3186_v13 = vpop.f32.mrb[16].mxu1  ;;  %4012 = vmatmul.mubr.f32.gmra.mrb[38].mxu1 %v5488_v8  ;;  %v5517_v3 = vadd.f32 %v3252_v1, %v3251_v59  ;;  %v3254_v4 = vpop.f32.mrb[24].mxu0 }
 0x2bb   : > { %v3187_v14 = vpop.f32.mrb[17].mxu1  ;;  %4269 = vmatpush3.bf16.msra.mxu1 %v4268_v6  ;;  %v3255_v6 = vpop.f32.mrb[25].mxu0 }
 0x2bc   : > { %v5491_v15 = vadd.f32 %v3187_v14, %v3186_v13  ;;  %4271 = vmatprep.subr.bf16.mxu1 %v4270_v48  ;;  %v5519_v13 = vadd.f32 %v3255_v6, %v3254_v4  ;;  %v3257_v14 = vpop.f32.mrb[26].mxu0  ;;  %v1801_v48 = vld [vmem:[#allocation12 + $0x188] sm:$0xff] }
 0x2bd   : > { %v4306_v56 = vpack.c.bf16 %v1801_v48, %v1800_v46  ;;  %v1802_v48 = vld [vmem:[#allocation12 + $0x190] sm:$0xff] }
 0x2be   : > { %6213 = vst [vmem:[#allocation27_spill] sm:$0xff] %v5491_v15  ;;  %v3189_v16 = vpop.f32.mrb[18].mxu1  ;;  %4014 = vmatprep.mubr.f32.mxu1 %v5491_v15 }
 0x2bf   : > { %v3190_v17 = vpop.f32.mrb[19].mxu1  ;;  %4273 = vmatpush3.bf16.msra.mxu1 %v4272_v62 }
 0x2c0   : > { %v5494_v18 = vadd.f32 %v3190_v17, %v3189_v16  ;;  %v3258_v16 = vpop.f32.mrb[27].mxu0  ;;  %4307 = vmatprep.subr.bf16.mxu1 %v4306_v56 }
 0x2c1   : > { %v5521_v17 = vadd.f32 %v3258_v16, %v3257_v14 }
 0x2c2   : > { %6214 = vst [vmem:[#allocation28_spill] sm:$0xff] %v5494_v18  ;;  %v3192_v25 = vpop.f32.mrb[20].mxu1  ;;  %4015 = vmatmul.mubr.f32.gmra.mrb[40].mxu1 %v5494_v18 }
 0x2c3   : > { %v3193_v26 = vpop.f32.mrb[21].mxu1 }
 0x2c4   : > { %v5497_v28 = vadd.f32 %v3193_v26, %v3192_v25  ;;  %v3260_v25 = vpop.f32.mrb[28].mxu0 }
 0x2c5   : > { %v3261_v26 = vpop.f32.mrb[29].mxu0 }
 0x2c6   : > { %6215 = vst [vmem:[#allocation29_spill] sm:$0xff] %v5497_v28  ;;  %v3195_v33 = vpop.f32.mrb[22].mxu1  ;;  %4017 = vmatprep.mubr.f32.mxu1 %v5497_v28 }
 0x2c7   : > { %v3196_v34 = vpop.f32.mrb[23].mxu1 }
 0x2c8   : > { %v5500_v36 = vadd.f32 %v3196_v34, %v3195_v33  ;;  %v5523_v33 = vadd.f32 %v3261_v26, %v3260_v25  ;;  %v3263_v34 = vpop.f32.mrb[30].mxu0 }
 0x2ca   : > { %6216 = vst [vmem:[#allocation30_spill] sm:$0xff] %v5500_v36  ;;  %v3198_v37 = vpop.f32.mrb[24].mxu1  ;;  %4018 = vmatmul.mubr.f32.gmra.mrb[42].mxu1 %v5500_v36 }
 0x2cb   : > { %v3199_v43 = vpop.f32.mrb[25].mxu1 }
 0x2cc   : > { %v5503_v44 = vadd.f32 %v3199_v43, %v3198_v37  ;;  %v3264_v37 = vpop.f32.mrb[31].mxu0 }
 0x2cd   : > { %v5525_v43 = vadd.f32 %v3264_v37, %v3263_v34 }
 0x2ce   : > { %6217 = vst [vmem:[#allocation31_spill] sm:$0xff] %v5503_v44  ;;  %v3201_v45 = vpop.f32.mrb[26].mxu1  ;;  %4020 = vmatprep.mubr.f32.mxu1 %v5503_v44 }
 0x2cf   : > { %v3202_v49 = vpop.f32.mrb[27].mxu1 }
 0x2d0   : > { %v5506_v50 = vadd.f32 %v3202_v49, %v3201_v45  ;;  %v3266_v45 = vpop.f32.mrb[32].mxu0 }
 0x2d1   : > { %v3267_v49 = vpop.f32.mrb[33].mxu0 }
 0x2d2   : > { %6218 = vst [vmem:[#allocation32_spill] sm:$0xff] %v5506_v50  ;;  %v3204_v9 = vpop.f32.mrb[28].mxu1  ;;  %4021 = vmatmul.mubr.f32.gmra.mrb[44].mxu1 %v5506_v50 }
 0x2d3   : > { %v3205_v53 = vpop.f32.mrb[29].mxu1 }
 0x2d4   : > { %v5509_v5 = vadd.f32 %v3205_v53, %v3204_v9  ;;  %v5527_v9 = vadd.f32 %v3267_v49, %v3266_v45  ;;  %v3269_v53 = vpop.f32.mrb[34].mxu0 }
 0x2d6   : > { %6219 = vst [vmem:[#allocation33_spill] sm:$0xff] %v5509_v5  ;;  %v3207_v7 = vpop.f32.mrb[30].mxu1  ;;  %4023 = vmatprep.mubr.f32.mxu1 %v5509_v5 }
 0x2d7   : > { %v3208_v21 = vpop.f32.mrb[31].mxu1 }
 0x2d8   : > { %v5512_v23 = vadd.f32 %v3208_v21, %v3207_v7  ;;  %v3270_v7 = vpop.f32.mrb[35].mxu0 }
 0x2d9   : > { %v5529_v21 = vadd.f32 %v3270_v7, %v3269_v53  ;;  %v3272_v38 = vpop.f32.mrb[36].mxu0  ;;  %v1784_v7 = vld [vmem:[#allocation12 + $0x100] sm:$0xff] }
 0x2da   : > { %6220 = vst [vmem:[#allocation34_spill] sm:$0xff] %v5512_v23  ;;  %4024 = vmatmul.mubr.f32.gmra.mrb[46].mxu1 %v5512_v23  ;;  %v3273_v54 = vpop.f32.mrb[37].mxu0 }
 0x2db   : > { %v5531_v62 = vadd.f32 %v3273_v54, %v3272_v38  ;;  %v3275_v0 = vpop.f32.mrb[38].mxu0  ;;  %v1785_v38 = vld [vmem:[#allocation12 + $0x108] sm:$0xff]  ;;  %v1803_v54 = vld [vmem:[#allocation12 + $0x198] sm:$0xff] }
 0x2dc   : > { %v3276_v55 = vpop.f32.mrb[39].mxu0 }
 0x2dd   : > { %v5533_v59 = vadd.f32 %v3276_v55, %v3275_v0  ;;  %v3278_v1 = vpop.f32.mrb[40].mxu0 }
 0x2de   : > { %v3279_v4 = vpop.f32.mrb[41].mxu0 }
 0x2df   : > { %v5535_v6 = vadd.f32 %v3279_v4, %v3278_v1  ;;  %v3281_v14 = vpop.f32.mrb[42].mxu0  ;;  %v4308_v1 = vpack.c.bf16 %v1785_v38, %v1784_v7  ;;  %v4310_v4 = vpack.c.bf16 %v1803_v54, %v1802_v48  ;;  %v1807_v7 = vld [vmem:[#allocation12 + $0x1b8] sm:$0xff] }
 0x2e0   : > { %v3282_v16 = vpop.f32.mrb[43].mxu0 }
 0x2e1   : > { %v5537_v25 = vadd.f32 %v3282_v16, %v3281_v14  ;;  %v3284_v26 = vpop.f32.mrb[44].mxu0  ;;  %v1786_v14 = vld [vmem:[#allocation12 + $0x110] sm:$0xff]  ;;  %v1787_v16 = vld [vmem:[#allocation12 + $0x118] sm:$0xff] }
 0x2e2   : > { %v3285_v34 = vpop.f32.mrb[45].mxu0 }
 0x2e3   : > { %v5539_v37 = vadd.f32 %v3285_v34, %v3284_v26  ;;  %v3287_v45 = vpop.f32.mrb[46].mxu0  ;;  %v1804_v26 = vld [vmem:[#allocation12 + $0x1a0] sm:$0xff]  ;;  %v1805_v34 = vld [vmem:[#allocation12 + $0x1a8] sm:$0xff] }
 0x2e4   : > { %v3288_v49 = vpop.f32.mrb[47].mxu0 }
 0x2e5   : > { %v5541_v53 = vadd.f32 %v3288_v49, %v3287_v45  ;;  %v4312_v45 = vpack.c.bf16 %v1787_v16, %v1786_v14  ;;  %v1788_v49 = vld [vmem:[#allocation12 + $0x120] sm:$0xff]  ;;  %v1791_v14 = vld [vmem:[#allocation12 + $0x138] sm:$0xff] }
 0x2e6   : > { %v1808_v16 = vld [vmem:[#allocation12 + $0x1c0] sm:$0xff] }
 0x375   : > { %v4004_v46 = vpop.f32.mrb[32].mxu1 }
 0x376   : > { %v5544_v56 = vadd.f32 %v4004_v46, %v5470_v60  ;;  %v1143_v0 = vpop.f32.mrb[33].mxu1  ;;  %v4314_v60 = vpack.c.bf16 %v1805_v34, %v1804_v26  ;;  %v1789_v46 = vld [vmem:[#allocation12 + $0x128] sm:$0xff] }
 0x377   : > { %v5547_v55 = vadd.f32 %v5465_v40, %v1143_v0  ;;  %v1806_v0 = vld [vmem:[#allocation12 + $0x1b0] sm:$0xff]  ;;  %v4316_v35 = vpack.c.bf16 %v1789_v46, %v1788_v49  ;;  %v1809_v26 = vld [vmem:[#allocation12 + $0x1c8] sm:$0xff] }
 0x378   : > { %v4322_v34 = vpack.c.bf16 %v1809_v26, %v1808_v16  ;;  %v1810_v49 = vld [vmem:[#allocation12 + $0x1d0] sm:$0xff]  ;;  %v1813_v16 = vld [vmem:[#allocation12 + $0x1e8] sm:$0xff] }
 0x379   : > { %1575 = vmatprep.mubr.f32.mxu1 %v5547_v55 }
 0x37a   : > { %1576 = vmatmul.mubr.f32.vlgmr.msra.gmra.mrb[48].mxu1 %v5463_v30 }
 0x37b   : > { %1580 = vmatprep.mubr.f32.mxu1 %v5544_v56  ;;  %4309 = vmatpush3.bf16.msra.mxu1 %v4308_v1  ;;  %v4318_v1 = vpack.c.bf16 %v1807_v7, %v1806_v0 }
 0x37c   : > { %4311 = vmatprep.subr.bf16.mxu1 %v4310_v4  ;;  %v1790_v4 = vld [vmem:[#allocation12 + $0x130] sm:$0xff] }
 0x37d   : > { %v4007_v40 = vpop.f32.mrb[34].mxu1 }
 0x37e   : > { %v5553_v38 = vadd.f32 %v4007_v40, %v5517_v3  ;;  %v1153_v48 = vpop.f32.mrb[35].mxu1  ;;  %1581 = vmatmul.mubr.f32.gmra.mrb[50].mxu1 %v5468_v2  ;;  %v4320_v3 = vpack.c.bf16 %v1791_v14, %v1790_v4  ;;  %v1793_v40 = vld [vmem:[#allocation12 + $0x148] sm:$0xff]  ;;  %v1795_v4 = vld [vmem:[#allocation12 + $0x158] sm:$0xff]  ;;  %v1812_v14 = vld [vmem:[#allocation12 + $0x1e0] sm:$0xff] }
 0x37f   : > { %v5557_v54 = vadd.f32 %v5515_v58, %v1153_v48  ;;  %4313 = vmatpush3.bf16.msra.mxu1 %v4312_v45  ;;  %v1792_v58 = vld [vmem:[#allocation12 + $0x140] sm:$0xff]  ;;  %v4330_v26 = vpack.c.bf16 %v1813_v16, %v1812_v14  ;;  %v2396_v14 = vld [vmem:[#allocation14 + $0x88] sm:$0xff] }
 0x380   : > { %4315 = vmatprep.subr.bf16.mxu1 %v4314_v60  ;;  %v1811_v60 = vld [vmem:[#allocation12 + $0x1d8] sm:$0xff]  ;;  %v4324_v48 = vpack.c.bf16 %v1793_v40, %v1792_v58  ;;  %v1814_v58 = vld [vmem:[#allocation12 + $0x1f0] sm:$0xff] }
 0x381   : > { %1585 = vmatprep.mubr.f32.mxu1 %v5557_v54 }
 0x382   : > { %1586 = vmatmul.mubr.f32.gmra.mrb[52].mxu1 %v5473_v10 }
 0x383   : > { %1590 = vmatprep.mubr.f32.mxu1 %v5553_v38  ;;  %4317 = vmatpush3.bf16.msra.mxu1 %v4316_v35  ;;  %v4326_v35 = vpack.c.bf16 %v1811_v60, %v1810_v49 }
 0x384   : > { %4319 = vmatprep.subr.bf16.mxu1 %v4318_v1  ;;  %v1794_v1 = vld [vmem:[#allocation12 + $0x150] sm:$0xff] }
 0x385   : > { %v4010_v45 = vpop.f32.mrb[36].mxu1 }
 0x386   : > { %v5563_v46 = vadd.f32 %v4010_v45, %v5521_v17  ;;  %v1163_v0 = vpop.f32.mrb[37].mxu1  ;;  %1591 = vmatmul.mubr.f32.gmra.mrb[54].mxu1 %v5476_v27  ;;  %v4328_v17 = vpack.c.bf16 %v1795_v4, %v1794_v1  ;;  %v1797_v45 = vld [vmem:[#allocation12 + $0x168] sm:$0xff]  ;;  %v1799_v1 = vld [vmem:[#allocation12 + $0x178] sm:$0xff]  ;;  %v2395_v4 = vld [vmem:[#allocation14 + $0x80] sm:$0xff] }
 0x387   : > { %v5567_v7 = vadd.f32 %v5519_v13, %v1163_v0  ;;  %4321 = vmatpush3.bf16.msra.mxu1 %v4320_v3  ;;  %v1796_v13 = vld [vmem:[#allocation12 + $0x160] sm:$0xff]  ;;  %v4370_v16 = vpack.c.bf16 %v2396_v14, %v2395_v4 }
 0x388   : > { %4323 = vmatprep.subr.bf16.mxu1 %v4322_v34  ;;  %v1815_v34 = vld [vmem:[#allocation12 + $0x1f8] sm:$0xff]  ;;  %v4332_v0 = vpack.c.bf16 %v1797_v45, %v1796_v13  ;;  %v1816_v45 = vld [vmem:[#allocation12 + $0x200] sm:$0xff] }
 0x389   : > { %1595 = vmatprep.mubr.f32.mxu1 %v5567_v7  ;;  %v1820_v14 = vld [vmem:[#allocation12 + $0x220] sm:$0xff] }
 0x38a   : > { %1596 = vmatmul.mubr.f32.gmra.mrb[56].mxu1 %v5479_v47 }
 0x38b   : > { %1600 = vmatprep.mubr.f32.mxu1 %v5563_v46  ;;  %4325 = vmatpush3.bf16.msra.mxu1 %v4324_v48  ;;  %v4334_v48 = vpack.c.bf16 %v1815_v34, %v1814_v58 }
 0x38c   : > { %4327 = vmatprep.subr.bf16.mxu1 %v4326_v35  ;;  %v1798_v35 = vld [vmem:[#allocation12 + $0x170] sm:$0xff] }
 0x38d   : > { %v4013_v3 = vpop.f32.mrb[38].mxu1 }
 0x38e   : > { %v5573_v40 = vadd.f32 %v4013_v3, %v5525_v43  ;;  %v1173_v49 = vpop.f32.mrb[39].mxu1  ;;  %1601 = vmatmul.mubr.f32.gmra.mrb[58].mxu1 %v5482_v32  ;;  %v4336_v43 = vpack.c.bf16 %v1799_v1, %v1798_v35  ;;  %v1817_v3 = vld [vmem:[#allocation12 + $0x208] sm:$0xff] }
 0x38f   : > { %v5577_v60 = vadd.f32 %v5523_v33, %v1173_v49  ;;  %4329 = vmatpush3.bf16.msra.mxu1 %v4328_v17  ;;  %v4338_v58 = vpack.c.bf16 %v1817_v3, %v1816_v45  ;;  %v1822_v45 = vld [vmem:[#allocation12 + $0x230] sm:$0xff]  ;;  %v1823_v3 = vld [vmem:[#allocation12 + $0x238] sm:$0xff] }
 0x390   : > { %6221 = vst [vmem:[#allocation35_spill] sm:$0xff] %v5573_v40  ;;  %4331 = vmatprep.subr.bf16.mxu1 %v4330_v26 }
 0x391   : > { %1605 = vmatprep.mubr.f32.mxu1 %v5577_v60  ;;  %4339 = vmatprep.subr.bf16.mxu0 %v4338_v58 }
 0x392   : > { %1606 = vmatmul.mubr.f32.gmra.mrb[60].mxu1 %v5485_v57  ;;  %4341 = vmatpush3.bf16.msra.mxu0 %v4338_v58  ;;  %v1824_v58 = vld [vmem:[#allocation12 + $0x240] sm:$0xff] }
 0x393   : > { %1610 = vmatprep.mubr.f32.mxu1 %v5573_v40  ;;  %4333 = vmatpush3.bf16.msra.mxu1 %v4332_v0  ;;  %v1818_v0 = vld [vmem:[#allocation12 + $0x210] sm:$0xff] }
 0x394   : > { %4335 = vmatprep.subr.bf16.mxu1 %v4334_v48  ;;  %v1819_v48 = vld [vmem:[#allocation12 + $0x218] sm:$0xff] }
 0x395   : > { %v4016_v33 = vpop.f32.mrb[40].mxu1  ;;  %v4342_v35 = vpack.c.bf16 %v1819_v48, %v1818_v0  ;;  %v4350_v0 = vpack.c.bf16 %v1823_v3, %v1822_v45  ;;  %v1825_v48 = vld [vmem:[#allocation12 + $0x248] sm:$0xff]  ;;  %v2399_v45 = vld [vmem:[#allocation14 + $0xa0] sm:$0xff] }
 0x396   : > { %v5583_v17 = vadd.f32 %v4016_v33, %v5529_v21  ;;  %v1183_v26 = vpop.f32.mrb[41].mxu1  ;;  %1611 = vmatmul.mubr.f32.gmra.mrb[62].mxu1 %v5488_v8  ;;  %v2400_v3 = vld [vmem:[#allocation14 + $0xa8] sm:$0xff] }
 0x397   : > { %v5587_v13 = vadd.f32 %v5527_v9, %v1183_v26  ;;  %4337 = vmatpush3.bf16.msra.mxu1 %v4336_v43  ;;  %4343 = vmatprep.subr.bf16.mxu0 %v4342_v35  ;;  %v1821_v43 = vld [vmem:[#allocation12 + $0x228] sm:$0xff] }
 0x398   : > { %6222 = vst [vmem:[#allocation36_spill] sm:$0xff] %v5583_v17  ;;  %4371 = vmatprep.subr.bf16.mxu1 %v4370_v16  ;;  %4345 = vmatpush3.bf16.msra.mxu0 %v4342_v35  ;;  %v4346_v16 = vpack.c.bf16 %v1821_v43, %v1820_v14  ;;  %v1826_v43 = vld [vmem:[#allocation12 + $0x250] sm:$0xff] }
 0x399   : > { %6223 = vst [vmem:[#allocation37_spill] sm:$0xff] %v5587_v13  ;;  %1615 = vmatprep.mubr.f32.mxu1 %v5587_v13 }
 0x39a   : > { %1616 = vmatmul.mubr.f32.gmra.mrb[64].mxu1 %v5491_v15  ;;  %4347 = vmatprep.subr.bf16.mxu0 %v4346_v16 }
 0x39b   : > { %1620 = vmatprep.mubr.f32.mxu1 %v5583_v17 }
 0x39c   : > { %4349 = vmatpush3.bf16.msra.mxu0 %v4346_v16  ;;  %v1827_v16 = vld [vmem:[#allocation12 + $0x258] sm:$0xff] }
 0x39d   : > { %v4019_v34 = vpop.f32.mrb[42].mxu1  ;;  %4351 = vmatprep.subr.bf16.mxu0 %v4350_v0  ;;  %v4358_v24 = vpack.c.bf16 %v1827_v16, %v1826_v43  ;;  %v2386_v43 = vld [vmem:[#allocation14 + $0x38] sm:$0xff] }
 0x39e   : > { %v5593_v21 = vadd.f32 %v4019_v34, %v5533_v59  ;;  %v1193_v49 = vpop.f32.mrb[43].mxu1  ;;  %1621 = vmatmul.mubr.f32.gmra.mrb[66].mxu1 %v5494_v18  ;;  %v3354_v34 = vpop.f32.mrb[48].mxu0 }
 0x39f   : > { %v5597_v9 = vadd.f32 %v5531_v62, %v1193_v49  ;;  %v2380_v49 = vld [vmem:[#allocation14 + $0x8] sm:$0xff]  ;;  %v3355_v35 = vpop.f32.mrb[49].mxu0 }
 0x3a0   : > { %6224 = vst [vmem:[#allocation38_spill] sm:$0xff] %v5593_v21  ;;  %v5622_v14 = vadd.f32 %v3355_v35, %v3354_v34  ;;  %4353 = vmatpush3.bf16.msra.mxu0 %v4350_v0  ;;  %v4378_v34 = vpack.c.bf16 %v2400_v3, %v2399_v45  ;;  %v2384_v35 = vld [vmem:[#allocation14 + $0x28] sm:$0xff]  ;;  %v2405_v45 = vld [vmem:[#allocation14 + $0xd0] sm:$0xff]  ;;  %v2406_v3 = vld [vmem:[#allocation14 + $0xd8] sm:$0xff] }
 0x3a1   : > { %6225 = vst [vmem:[#allocation39_spill] sm:$0xff] %v5597_v9  ;;  %1625 = vmatprep.mubr.f32.mxu1 %v5597_v9 }
 0x3a2   : > { %1626 = vmatmul.mubr.f32.gmra.mrb[68].mxu1 %v5497_v28 }
 0x3a3   : > { %1630 = vmatprep.mubr.f32.mxu1 %v5593_v21 }
 0x3a5   : > { %v4022_v1 = vpop.f32.mrb[44].mxu1 }
 0x3a6   : > { %v5603_v59 = vadd.f32 %v4022_v1, %v5537_v25  ;;  %v1203_v4 = vpop.f32.mrb[45].mxu1  ;;  %1631 = vmatmul.mubr.f32.gmra.mrb[70].mxu1 %v5500_v36  ;;  %v2397_v1 = vld [vmem:[#allocation14 + $0x90] sm:$0xff] }
 0x3a7   : > { %v5607_v62 = vadd.f32 %v5535_v6, %v1203_v4  ;;  %v2398_v4 = vld [vmem:[#allocation14 + $0x98] sm:$0xff] }
 0x3a8   : > { %6226 = vst [vmem:[#allocation40_spill] sm:$0xff] %v5603_v59 }
 0x3a9   : > { %6227 = vst [vmem:[#allocation41_spill] sm:$0xff] %v5607_v62  ;;  %1635 = vmatprep.mubr.f32.mxu1 %v5607_v62 }
 0x3aa   : > { %1636 = vmatmul.mubr.f32.gmra.mrb[72].mxu1 %v5503_v44 }
 0x3ab   : > { %1640 = vmatprep.mubr.f32.mxu1 %v5603_v59 }
 0x3ad   : > { %v4025_v33 = vpop.f32.mrb[46].mxu1 }
 0x3ae   : > { %v5613_v25 = vadd.f32 %v4025_v33, %v5541_v53  ;;  %v1213_v26 = vpop.f32.mrb[47].mxu1  ;;  %1641 = vmatmul.mubr.f32.gmra.mrb[74].mxu1 %v5506_v50  ;;  %v2379_v53 = vld [vmem:[#allocation14] sm:$0xff] }
 0x3af   : > { %v5617_v6 = vadd.f32 %v5539_v37, %v1213_v26  ;;  %v4354_v37 = vpack.c.bf16 %v1825_v48, %v1824_v58  ;;  %v4372_v33 = vpack.c.bf16 %v2380_v49, %v2379_v53  ;;  %v4374_v26 = vpack.c.bf16 %v2398_v4, %v2397_v1  ;;  %v2383_v48 = vld [vmem:[#allocation14 + $0x20] sm:$0xff]  ;;  %v2401_v53 = vld [vmem:[#allocation14 + $0xb0] sm:$0xff]  ;;  %v2402_v49 = vld [vmem:[#allocation14 + $0xb8] sm:$0xff] }
 0x3b0   : > { %6228 = vst [vmem:[#allocation42_spill] sm:$0xff] %v5613_v25  ;;  %v4376_v58 = vpack.c.bf16 %v2382_v22, %v2381_v39  ;;  %v4380_v0 = vpack.c.bf16 %v2384_v35, %v2383_v48  ;;  %v4382_v1 = vpack.c.bf16 %v2402_v49, %v2401_v53  ;;  %v2385_v4 = vld [vmem:[#allocation14 + $0x30] sm:$0xff]  ;;  %v2403_v22 = vld [vmem:[#allocation14 + $0xc0] sm:$0xff]  ;;  %v2404_v39 = vld [vmem:[#allocation14 + $0xc8] sm:$0xff] }
 0x3b1   : > { %6229 = vst [vmem:[#allocation43_spill] sm:$0xff] %v5617_v6  ;;  %1645 = vmatprep.mubr.f32.mxu1 %v5617_v6  ;;  %4355 = vmatprep.subr.bf16.mxu0 %v4354_v37  ;;  %v4386_v16 = vpack.c.bf16 %v2404_v39, %v2403_v22  ;;  %v2390_v48 = vld [vmem:[#allocation14 + $0x58] sm:$0xff]  ;;  %v2407_v35 = vld [vmem:[#allocation14 + $0xe0] sm:$0xff]  ;;  %v2408_v53 = vld [vmem:[#allocation14 + $0xe8] sm:$0xff] }
 0x3b2   : > { %1646 = vmatmul.mubr.f32.gmra.mrb[76].mxu1 %v5509_v5  ;;  %4357 = vmatpush3.bf16.msra.mxu0 %v4354_v37  ;;  %v4384_v37 = vpack.c.bf16 %v2386_v43, %v2385_v4  ;;  %v2392_v4 = vld [vmem:[#allocation14 + $0x68] sm:$0xff]  ;;  %v1828_v43 = vld [vmem:[#allocation12 + $0x260] sm:$0xff]  ;;  %v2409_v39 = vld [vmem:[#allocation14 + $0xf0] sm:$0xff] }
 0x3b3   : > { %1650 = vmatprep.mubr.f32.mxu1 %v5613_v25  ;;  %4359 = vmatprep.subr.bf16.mxu0 %v4358_v24  ;;  %v1829_v22 = vld [vmem:[#allocation12 + $0x268] sm:$0xff] }
 0x3b6   : > { %1651 = vmatmul.mubr.f32.gmra.mrb[78].mxu1 %v5512_v23  ;;  %4361 = vmatpush3.bf16.msra.mxu0 %v4358_v24 }
 0x3b7   : > { %2041 = vmatprep.mubr.f32.mxu1 %v5547_v55 }
 0x3ba   : > { %2042 = vmatmul.mubr.f32.vlgmr.msra.gmra.mrb[80].mxu1 %v5463_v30 }
 0x3bb   : > { %2046 = vmatprep.mubr.f32.mxu1 %v5544_v56  ;;  %4373 = vmatpush3.bf16.msra.mxu1 %v4372_v33  ;;  %v2387_v33 = vld [vmem:[#allocation14 + $0x40] sm:$0xff] }
 0x3bc   : > { %4375 = vmatprep.subr.bf16.mxu1 %v4374_v26  ;;  %v2388_v26 = vld [vmem:[#allocation14 + $0x48] sm:$0xff] }
 0x3bd   : > { %v4388_v24 = vpack.c.bf16 %v2388_v26, %v2387_v33  ;;  %v2393_v26 = vld [vmem:[#allocation14 + $0x70] sm:$0xff] }
 0x3be   : > { %2047 = vmatmul.mubr.f32.gmra.mrb[82].mxu1 %v5468_v2 }
 0x3bf   : > { %2051 = vmatprep.mubr.f32.mxu1 %v5557_v54  ;;  %4377 = vmatpush3.bf16.msra.mxu1 %v4376_v58  ;;  %v4390_v58 = vpack.c.bf16 %v2406_v3, %v2405_v45  ;;  %v2394_v3 = vld [vmem:[#allocation14 + $0x78] sm:$0xff] }
 0x3c0   : > { %4379 = vmatprep.subr.bf16.mxu1 %v4378_v34  ;;  %v2389_v34 = vld [vmem:[#allocation14 + $0x50] sm:$0xff] }
 0x3c1   : > { %v4392_v49 = vpack.c.bf16 %v2390_v48, %v2389_v34  ;;  %v1831_v34 = vld [vmem:[#allocation12 + $0x278] sm:$0xff] }
 0x3c2   : > { %2052 = vmatmul.mubr.f32.gmra.mrb[84].mxu1 %v5473_v10 }
 0x3c3   : > { %2056 = vmatprep.mubr.f32.mxu1 %v5553_v38  ;;  %4381 = vmatpush3.bf16.msra.mxu1 %v4380_v0  ;;  %v2391_v0 = vld [vmem:[#allocation14 + $0x60] sm:$0xff] }
 0x3c4   : > { %4383 = vmatprep.subr.bf16.mxu1 %v4382_v1  ;;  %v4394_v1 = vpack.c.bf16 %v2408_v53, %v2407_v35  ;;  %v4396_v33 = vpack.c.bf16 %v2392_v4, %v2391_v0 }
 0x3c6   : > { %2057 = vmatmul.mubr.f32.gmra.mrb[86].mxu1 %v5476_v27 }
 0x3c7   : > { %2061 = vmatprep.mubr.f32.mxu1 %v5567_v7  ;;  %4385 = vmatpush3.bf16.msra.mxu1 %v4384_v37  ;;  %v2410_v37 = vld [vmem:[#allocation14 + $0xf8] sm:$0xff] }
 0x3c8   : > { %4387 = vmatprep.subr.bf16.mxu1 %v4386_v16  ;;  %v4362_v16 = vpack.c.bf16 %v1829_v22, %v1828_v43  ;;  %v4398_v45 = vpack.c.bf16 %v2410_v37, %v2409_v39 }
 0x3ca   : > { %2062 = vmatmul.mubr.f32.gmra.mrb[88].mxu1 %v5479_v47  ;;  %4363 = vmatprep.subr.bf16.mxu0 %v4362_v16 }
 0x3cb   : > { %2066 = vmatprep.mubr.f32.mxu1 %v5563_v46  ;;  %4389 = vmatpush3.bf16.msra.mxu1 %v4388_v24  ;;  %v3357_v24 = vpop.f32.mrb[50].mxu0 }
 0x3cc   : > { %4391 = vmatprep.subr.bf16.mxu1 %v4390_v58  ;;  %v1830_v58 = vld [vmem:[#allocation12 + $0x270] sm:$0xff]  ;;  %4365 = vmatpush3.bf16.msra.mxu0 %v4362_v16  ;;  %v3358_v48 = vpop.f32.mrb[51].mxu0 }
 0x3cd   : > { %v4366_v35 = vpack.c.bf16 %v1831_v34, %v1830_v58  ;;  %v5639_v53 = vadd.f32 %v3358_v48, %v3357_v24  ;;  %v3360_v0 = vpop.f32.mrb[52].mxu0 }
 0x3ce   : > { %2067 = vmatmul.mubr.f32.gmra.mrb[90].mxu1 %v5482_v32 }
 0x3cf   : > { %2071 = vmatprep.mubr.f32.mxu1 %v5577_v60  ;;  %4393 = vmatpush3.bf16.msra.mxu1 %v4392_v49  ;;  %v4400_v49 = vpack.c.bf16 %v2394_v3, %v2393_v26 }
 0x3d0   : > { %4395 = vmatprep.subr.bf16.mxu1 %v4394_v1  ;;  %4367 = vmatprep.subr.bf16.mxu0 %v4366_v35  ;;  %v3361_v1 = vpop.f32.mrb[53].mxu0 }
 0x3d1   : > { %4369 = vmatpush3.bf16.msra.mxu0 %v4366_v35  ;;  %v5643_v4 = vadd.f32 %v3361_v1, %v3360_v0  ;;  %v3363_v43 = vpop.f32.mrb[54].mxu0 }
 0x3d2   : > { %2072 = vmatmul.mubr.f32.gmra.mrb[92].mxu1 %v5485_v57  ;;  %v3364_v22 = vpop.f32.mrb[55].mxu0  ;;  %v2453_v57 = vld [vmem:[#allocation14 + $0x250] sm:$0xff] }
 0x3d3   : > { %2076 = vmatprep.mubr.f32.mxu1 %v5573_v40  ;;  %4397 = vmatpush3.bf16.msra.mxu1 %v4396_v33  ;;  %v5647_v39 = vadd.f32 %v3364_v22, %v3363_v43  ;;  %v3366_v37 = vpop.f32.mrb[56].mxu0  ;;  %v2451_v40 = vld [vmem:[#allocation14 + $0x240] sm:$0xff] }
 0x3d4   : > { %4399 = vmatprep.subr.bf16.mxu1 %v4398_v45  ;;  %v3367_v16 = vpop.f32.mrb[57].mxu0 }
 0x3d5   : > { %v5651_v33 = vadd.f32 %v3367_v16, %v3366_v37  ;;  %v3369_v26 = vpop.f32.mrb[58].mxu0  ;;  %v2427_v37 = vld [vmem:[#allocation14 + $0x180] sm:$0xff]  ;;  %v2428_v16 = vld [vmem:[#allocation14 + $0x188] sm:$0xff] }
 0x3d6   : > { %2077 = vmatmul.mubr.f32.gmra.mrb[94].mxu1 %v5488_v8  ;;  %v3370_v45 = vpop.f32.mrb[59].mxu0 }
 0x3d7   : > { %2081 = vmatprep.mubr.f32.mxu1 %v5587_v13  ;;  %4401 = vmatpush3.bf16.msra.mxu1 %v4400_v49  ;;  %v5655_v3 = vadd.f32 %v3370_v45, %v3369_v26  ;;  %v3372_v24 = vpop.f32.mrb[60].mxu0  ;;  %v4402_v45 = vpack.c.bf16 %v2428_v16, %v2427_v37  ;;  %v4593_v37 = vld [vmem:[%s5221_s29] sm:$0xff]  ;;  %v2448_v13 = vld [vmem:[#allocation14 + $0x228] sm:$0xff] }
 0x3d8   : > { %v3373_v58 = vpop.f32.mrb[61].mxu0 }
 0x3d9   : > { %v5659_v34 = vadd.f32 %v3373_v58, %v3372_v24  ;;  %v3375_v48 = vpop.f32.mrb[62].mxu0  ;;  %4403 = vmatprep.subr.bf16.mxu0 %v4402_v45  ;;  %v4594_v45 = vld [vmem:[%s5221_s29 + $0x8] sm:$0xff] }
 0x3da   : > { %2082 = vmatmul.mubr.f32.gmra.mrb[96].mxu1 %v5491_v15  ;;  %v3376_v35 = vpop.f32.mrb[63].mxu0 }
 0x3db   : > { %2086 = vmatprep.mubr.f32.mxu1 %v5583_v17  ;;  %v5663_v49 = vadd.f32 %v3376_v35, %v3375_v48  ;;  %v3378_v0 = vpop.f32.mrb[64].mxu0  ;;  %v2413_v17 = vld [vmem:[#allocation14 + $0x110] sm:$0xff] }
 0x3dc   : > { %v3379_v1 = vpop.f32.mrb[65].mxu0 }
 0x3dd   : > { %v5667_v43 = vadd.f32 %v3379_v1, %v3378_v0  ;;  %v3381_v22 = vpop.f32.mrb[66].mxu0 }
 0x3de   : > { %2087 = vmatmul.mubr.f32.gmra.mrb[98].mxu1 %v5494_v18  ;;  %v3382_v26 = vpop.f32.mrb[67].mxu0 }
 0x3df   : > { %2091 = vmatprep.mubr.f32.mxu1 %v5597_v9  ;;  %v5671_v24 = vadd.f32 %v3382_v26, %v3381_v22  ;;  %v3384_v58 = vpop.f32.mrb[68].mxu0  ;;  %v2443_v9 = vld [vmem:[#allocation14 + $0x200] sm:$0xff] }
 0x3e0   : > { %v3385_v48 = vpop.f32.mrb[69].mxu0 }
 0x3e1   : > { %v5675_v35 = vadd.f32 %v3385_v48, %v3384_v58  ;;  %v3387_v0 = vpop.f32.mrb[70].mxu0  ;;  %v4595_v48 = vld [vmem:[%s5221_s29 + $0x10] sm:$0xff] }
 0x3e2   : > { %2092 = vmatmul.mubr.f32.gmra.mrb[100].mxu1 %v5497_v28  ;;  %v3388_v1 = vpop.f32.mrb[71].mxu0 }
 0x3e3   : > { %2096 = vmatprep.mubr.f32.mxu1 %v5593_v21  ;;  %v5679_v16 = vadd.f32 %v3388_v1, %v3387_v0  ;;  %v3390_v22 = vpop.f32.mrb[72].mxu0  ;;  %v4596_v1 = vld [vmem:[%s5221_s29 + $0x18] sm:$0xff] }
 0x3e4   : > { %v3391_v26 = vpop.f32.mrb[73].mxu0 }
 0x3e5   : > { %v3393_v58 = vpop.f32.mrb[74].mxu0 }
 0x3e6   : > { %2097 = vmatmul.mubr.f32.gmra.mrb[102].mxu1 %v5500_v36 }
 0x3e7   : > { %2101 = vmatprep.mubr.f32.mxu1 %v5607_v62 }
 0x3ea   : > { %2102 = vmatmul.mubr.f32.gmra.mrb[104].mxu1 %v5503_v44 }
 0x3eb   : > { %2106 = vmatprep.mubr.f32.mxu1 %v5603_v59  ;;  %v4608_v59 = vld [vmem:[%s5221_s29 + $0x78] sm:$0xff] }
 0x3ee   : > { %2107 = vmatmul.mubr.f32.gmra.mrb[106].mxu1 %v5506_v50 }
 0x3ef   : > { %2111 = vmatprep.mubr.f32.mxu1 %v5617_v6 }
 0x3f2   : > { %2112 = vmatmul.mubr.f32.gmra.mrb[108].mxu1 %v5509_v5 }
 0x3f3   : > { %2116 = vmatprep.mubr.f32.mxu1 %v5613_v25  ;;  %v5683_v25 = vadd.f32 %v3391_v26, %v3390_v22  ;;  %v4597_v26 = vld [vmem:[%s5221_s29 + $0x20] sm:$0xff] }
 0x3f6   : > { %2117 = vmatmul.mubr.f32.gmra.mrb[110].mxu1 %v5512_v23 }
 0x3f7   : > { %2539 = vmatprep.mubr.f32.mxu1 %v5305_v20  ;;  %v3394_v20 = vpop.f32.mrb[75].mxu0 }
 0x3f8   : > { %v3396_v0 = vpop.f32.mrb[76].mxu0 }
 0x3fa   : > { %2540 = vmatmul.mubr.f32.vlgmr.msra.gmra.mrb[112].mxu1 %v4593_v37  ;;  %v5687_v37 = vadd.f32 %v3394_v20, %v3393_v58 }
 0x3fb   : > { %2544 = vmatprep.mubr.f32.mxu1 %v5303_v19  ;;  %v3397_v19 = vpop.f32.mrb[77].mxu0 }
 0x3fc   : > { %v5691_v23 = vadd.f32 %v3397_v19, %v3396_v0  ;;  %v3399_v22 = vpop.f32.mrb[78].mxu0  ;;  %v4599_v19 = vld [vmem:[%s5221_s29 + $0x30] sm:$0xff] }
 0x3fe   : > { %2545 = vmatmul.mubr.f32.gmra.mrb[114].mxu1 %v4594_v45 }
 0x3ff   : > { %2549 = vmatprep.mubr.f32.mxu1 %v5315_v31  ;;  %v3400_v31 = vpop.f32.mrb[79].mxu0 }
 0x400   : > { %v5695_v45 = vadd.f32 %v3400_v31, %v3399_v22  ;;  %v3514_v58 = vpop.f32.mrb[80].mxu0  ;;  %v4600_v31 = vld [vmem:[%s5221_s29 + $0x38] sm:$0xff] }
 0x401   : > { %v3515_v20 = vpop.f32.mrb[81].mxu0 }
 0x402   : > { %2550 = vmatmul.mubr.f32.gmra.mrb[116].mxu1 %v4595_v48  ;;  %v5700_v48 = vadd.f32 %v3515_v20, %v3514_v58  ;;  %v3517_v0 = vpop.f32.mrb[82].mxu0 }
 0x403   : > { %2554 = vmatprep.mubr.f32.mxu1 %v5313_v29  ;;  %v4598_v29 = vld [vmem:[%s5221_s29 + $0x28] sm:$0xff] }
 0x406   : > { %2555 = vmatmul.mubr.f32.gmra.mrb[118].mxu1 %v4596_v1 }
 0x407   : > { %2559 = vmatprep.mubr.f32.mxu1 %v5323_v42  ;;  %v3518_v42 = vpop.f32.mrb[83].mxu0 }
 0x408   : > { %v5703_v1 = vadd.f32 %v3518_v42, %v3517_v0  ;;  %v3520_v22 = vpop.f32.mrb[84].mxu0  ;;  %v4602_v42 = vld [vmem:[%s5221_s29 + $0x48] sm:$0xff] }
 0x40a   : > { %2560 = vmatmul.mubr.f32.gmra.mrb[120].mxu1 %v4597_v26 }
 0x40b   : > { %2564 = vmatprep.mubr.f32.mxu1 %v5321_v41  ;;  %v3521_v41 = vpop.f32.mrb[85].mxu0 }
 0x40c   : > { %v5707_v26 = vadd.f32 %v3521_v41, %v3520_v22  ;;  %v4603_v41 = vld [vmem:[%s5221_s29 + $0x50] sm:$0xff] }
 0x40e   : > { %2565 = vmatmul.mubr.f32.gmra.mrb[122].mxu1 %v4598_v29  ;;  %v4601_v29 = vld [vmem:[%s5221_s29 + $0x40] sm:$0xff] }
 0x40f   : > { %2569 = vmatprep.mubr.f32.mxu1 %v5331_v52  ;;  %v3523_v52 = vpop.f32.mrb[86].mxu0 }
 0x410   : > { %v3524_v58 = vpop.f32.mrb[87].mxu0 }
 0x411   : > { %v5711_v20 = vadd.f32 %v3524_v58, %v3523_v52  ;;  %v3526_v0 = vpop.f32.mrb[88].mxu0  ;;  %v4604_v58 = vld [vmem:[%s5221_s29 + $0x58] sm:$0xff] }
 0x412   : > { %2570 = vmatmul.mubr.f32.gmra.mrb[124].mxu1 %v4599_v19 }
 0x413   : > { %2574 = vmatprep.mubr.f32.mxu1 %v5329_v51  ;;  %v3527_v51 = vpop.f32.mrb[89].mxu0 }
 0x414   : > { %v5715_v19 = vadd.f32 %v3527_v51, %v3526_v0  ;;  %v3529_v22 = vpop.f32.mrb[90].mxu0  ;;  %v6231_v0 = vld [vmem:[#allocation22_spill] sm:$0xff] }
 0x416   : > { %2575 = vmatmul.mubr.f32.gmra.mrb[126].mxu1 %v4600_v31 }
 0x417   : > { %2579 = vmatprep.mubr.f32.mxu1 %v5339_v63  ;;  %v3530_v63 = vpop.f32.mrb[91].mxu0 }
 0x418   : > { %v5719_v31 = vadd.f32 %v3530_v63, %v3529_v22  ;;  %v3532_v52 = vpop.f32.mrb[92].mxu0  ;;  %v6233_v22 = vld [vmem:[#allocation21_spill] sm:$0xff] }
 0x41a   : > { %2580 = vmatmul.mubr.f32.gmra.mrb[128].mxu1 %v4601_v29 }
 0x41b   : > { %2584 = vmatprep.mubr.f32.mxu1 %v5337_v61  ;;  %v3533_v61 = vpop.f32.mrb[93].mxu0 }
 0x41c   : > { %v5723_v29 = vadd.f32 %v3533_v61, %v3532_v52  ;;  %v3535_v51 = vpop.f32.mrb[94].mxu0  ;;  %v6235_v52 = vld [vmem:[#allocation24_spill] sm:$0xff] }
 0x41e   : > { %2585 = vmatmul.mubr.f32.gmra.mrb[130].mxu1 %v4602_v42  ;;  %6230 = vst [vmem:[#allocation44_spill] sm:$0xff] %v5723_v29  ;;  %v4605_v42 = vld [vmem:[%s5221_s29 + $0x60] sm:$0xff] }
 0x41f   : > { %2589 = vmatprep.mubr.f32.mxu1 %v5347_v12  ;;  %v3536_v12 = vpop.f32.mrb[95].mxu0  ;;  %v2455_v29 = vld [vmem:[#allocation14 + $0x260] sm:$0xff] }
 0x420   : > { %v5727_v5 = vadd.f32 %v3536_v12, %v3535_v51  ;;  %v3538_v63 = vpop.f32.mrb[96].mxu0 }
 0x422   : > { %2590 = vmatmul.mubr.f32.gmra.mrb[132].mxu1 %v4603_v41  ;;  %6232 = vst [vmem:[#allocation22_spill] sm:$0xff] %v5727_v5  ;;  %v4606_v41 = vld [vmem:[%s5221_s29 + $0x68] sm:$0xff]  ;;  %v2449_v5 = vld [vmem:[#allocation14 + $0x230] sm:$0xff] }
 0x423   : > { %2594 = vmatprep.mubr.f32.mxu1 %v5345_v11  ;;  %v3539_v11 = vpop.f32.mrb[97].mxu0 }
 0x424   : > { %v5731_v6 = vadd.f32 %v3539_v11, %v3538_v63  ;;  %v3541_v61 = vpop.f32.mrb[98].mxu0 }
 0x426   : > { %2595 = vmatmul.mubr.f32.gmra.mrb[134].mxu1 %v4604_v58  ;;  %6234 = vst [vmem:[#allocation21_spill] sm:$0xff] %v5731_v6  ;;  %v3542_v58 = vpop.f32.mrb[99].mxu0  ;;  %v2447_v6 = vld [vmem:[#allocation14 + $0x220] sm:$0xff] }
 0x427   : > { %2599 = vmatprep.mubr.f32.mxu1 %v6231_v0  ;;  %v4607_v0 = vld [vmem:[%s5221_s29 + $0x70] sm:$0xff]  ;;  %v5735_v50 = vadd.f32 %v3542_v58, %v3541_v61  ;;  %v3544_v51 = vpop.f32.mrb[100].mxu0 }
 0x428   : > { %v3545_v12 = vpop.f32.mrb[101].mxu0 }
 0x429   : > { %6236 = vst [vmem:[#allocation24_spill] sm:$0xff] %v5735_v50  ;;  %v3547_v44 = vpop.f32.mrb[102].mxu0 }
 0x42a   : > { %2600 = vmatmul.mubr.f32.gmra.mrb[136].mxu1 %v4605_v42  ;;  %v6237_v42 = vld [vmem:[#allocation23_spill] sm:$0xff] }
 0x42b   : > { %2604 = vmatprep.mubr.f32.mxu1 %v6233_v22  ;;  %v5738_v22 = vadd.f32 %v3545_v12, %v3544_v51 }
 0x42d   : > { %6238 = vst [vmem:[#allocation23_spill] sm:$0xff] %v5738_v22 }
 0x42e   : > { %2605 = vmatmul.mubr.f32.gmra.mrb[138].mxu1 %v4606_v41  ;;  %v3548_v41 = vpop.f32.mrb[103].mxu0 }
 0x42f   : > { %2609 = vmatprep.mubr.f32.mxu1 %v6235_v52  ;;  %v5741_v63 = vadd.f32 %v3548_v41, %v3547_v44  ;;  %v3550_v11 = vpop.f32.mrb[104].mxu0  ;;  %v2459_v41 = vld [vmem:[#allocation14 + $0x280] sm:$0xff] }
 0x430   : > { %v3551_v52 = vpop.f32.mrb[105].mxu0 }
 0x431   : > { %6239 = vst [vmem:[#allocation45_spill] sm:$0xff] %v5741_v63  ;;  %v5743_v62 = vadd.f32 %v3551_v52, %v3550_v11  ;;  %v3553_v36 = vpop.f32.mrb[106].mxu0  ;;  %v2460_v63 = vld [vmem:[#allocation14 + $0x288] sm:$0xff] }
 0x432   : > { %2610 = vmatmul.mubr.f32.gmra.mrb[140].mxu1 %v4607_v0  ;;  %v3554_v0 = vpop.f32.mrb[107].mxu0  ;;  %v5751_v11 = vpack.c.bf16 %v2460_v63, %v2459_v41  ;;  %v2444_v52 = vld [vmem:[#allocation14 + $0x208] sm:$0xff]  ;;  %v2445_v63 = vld [vmem:[#allocation14 + $0x210] sm:$0xff] }
 0x433   : > { %2614 = vmatprep.mubr.f32.mxu1 %v6237_v42  ;;  %6240 = vst [vmem:[#allocation46_spill] sm:$0xff] %v5743_v62  ;;  %v5745_v61 = vadd.f32 %v3554_v0, %v3553_v36  ;;  %v3556_v58 = vpop.f32.mrb[108].mxu0  ;;  %v2461_v62 = vld [vmem:[#allocation14 + $0x290] sm:$0xff]  ;;  %v2462_v36 = vld [vmem:[#allocation14 + $0x298] sm:$0xff] }
 0x434   : > { %v3557_v42 = vpop.f32.mrb[109].mxu0  ;;  %4466 = vmatprep.subr.bf16.mxu1 %v5751_v11 }
 0x435   : > { %6241 = vst [vmem:[#allocation47_spill] sm:$0xff] %v5745_v61  ;;  %v5747_v21 = vadd.f32 %v3557_v42, %v3556_v58  ;;  %v3559_v51 = vpop.f32.mrb[110].mxu0  ;;  %v2411_v42 = vld [vmem:[#allocation14 + $0x100] sm:$0xff]  ;;  %v2429_v61 = vld [vmem:[#allocation14 + $0x190] sm:$0xff] }
 0x436   : > { %2615 = vmatmul.mubr.f32.gmra.mrb[142].mxu1 %v4608_v59  ;;  %v3560_v12 = vpop.f32.mrb[111].mxu0 }
 0x437   : > { %6242 = vst [vmem:[#allocation48_spill] sm:$0xff] %v5747_v21  ;;  %v5749_v28 = vadd.f32 %v3560_v12, %v3559_v51  ;;  %v2412_v21 = vld [vmem:[#allocation14 + $0x108] sm:$0xff]  ;;  %v5756_v51 = vpack.c.bf16 %v2444_v52, %v2443_v9 }
 0x438   : > { %v4404_v18 = vpack.c.bf16 %v2412_v21, %v2411_v42  ;;  %v2465_v21 = vld [vmem:[#allocation14 + $0x2b0] sm:$0xff] }
 0x439   : > { %6243 = vst [vmem:[#allocation49_spill] sm:$0xff] %v5749_v28  ;;  %v2430_v28 = vld [vmem:[#allocation14 + $0x198] sm:$0xff]  ;;  %4474 = vmatpush3.bf16.msra.mxu1 %v5756_v51 }
 0x43a   : > { %v4406_v50 = vpack.c.bf16 %v2430_v28, %v2429_v61 }
 0x44d   : > { %v3434_v59 = vpop.f32.mrb[48].mxu1 }
 0x44e   : > { %v3435_v22 = vpop.f32.mrb[49].mxu1 }
 0x44f   : > { %v3436_v44 = vadd.f32 %v3435_v22, %v3434_v59  ;;  %v5759_v22 = vpack.c.bf16 %v2462_v36, %v2461_v62  ;;  %v2446_v59 = vld [vmem:[#allocation14 + $0x218] sm:$0xff]  ;;  %v2431_v36 = vld [vmem:[#allocation14 + $0x1a0] sm:$0xff] }
 0x450   : > { %v2414_v62 = vld [vmem:[#allocation14 + $0x118] sm:$0xff]  ;;  %v5767_v15 = vpack.c.bf16 %v2446_v59, %v2445_v63  ;;  %v2415_v59 = vld [vmem:[#allocation14 + $0x120] sm:$0xff] }
 0x451   : > { %v5754_v0 = vadd.f32 %v3436_v44, %v5622_v14  ;;  %v3437_v58 = vpop.f32.mrb[50].mxu1  ;;  %v2463_v14 = vld [vmem:[#allocation14 + $0x2a0] sm:$0xff]  ;;  %v2464_v44 = vld [vmem:[#allocation14 + $0x2a8] sm:$0xff]  ;;  %4467 = vmatprep.subr.bf16.mxu1 %v5759_v22  ;;  %v4408_v28 = vpack.c.bf16 %v2414_v62, %v2413_v17 }
 0x452   : > { %v3438_v12 = vpop.f32.mrb[51].mxu1  ;;  %4475 = vmatpush3.bf16.msra.mxu1 %v5767_v15 }
 0x453   : > { %6244 = vst [vmem:[#allocation50_spill] sm:$0xff] %v5754_v0  ;;  %v3439_v41 = vadd.f32 %v3438_v12, %v3437_v58  ;;  %4058 = vmatprep.mubr.f32.mxu0 %v5754_v0  ;;  %v2432_v12 = vld [vmem:[#allocation14 + $0x1a8] sm:$0xff]  ;;  %v5769_v0 = vpack.c.bf16 %v2464_v44, %v2463_v14  ;;  %v2433_v14 = vld [vmem:[#allocation14 + $0x1b0] sm:$0xff]  ;;  %v5777_v44 = vpack.c.bf16 %v2448_v13, %v2447_v6 }
 0x454   : > { %v4410_v63 = vpack.c.bf16 %v2432_v12, %v2431_v36  ;;  %v2417_v36 = vld [vmem:[#allocation14 + $0x130] sm:$0xff]  ;;  %v2418_v12 = vld [vmem:[#allocation14 + $0x138] sm:$0xff] }
 0x455   : > { %v5765_v9 = vadd.f32 %v3439_v41, %v5639_v53  ;;  %v3440_v52 = vpop.f32.mrb[52].mxu1  ;;  %v2466_v53 = vld [vmem:[#allocation14 + $0x2b8] sm:$0xff]  ;;  %4468 = vmatprep.subr.bf16.mxu1 %v5769_v0  ;;  %v2416_v41 = vld [vmem:[#allocation14 + $0x128] sm:$0xff] }
 0x456   : > { %v3441_v58 = vpop.f32.mrb[53].mxu1  ;;  %4476 = vmatpush3.bf16.msra.mxu1 %v5777_v44 }
 0x457   : > { %6245 = vst [vmem:[#allocation51_spill] sm:$0xff] %v5765_v9  ;;  %v3442_v8 = vadd.f32 %v3441_v58, %v3440_v52  ;;  %4059 = vmatmul.mubr.f32.vlgmr.msra.gmra.mrb[112].mxu0 %v5765_v9  ;;  %v2434_v58 = vld [vmem:[#allocation14 + $0x1b8] sm:$0xff]  ;;  %v5779_v9 = vpack.c.bf16 %v2466_v53, %v2465_v21  ;;  %v2435_v21 = vld [vmem:[#allocation14 + $0x1c0] sm:$0xff] }
 0x458   : > { %4405 = vmatpush3.bf16.msra.mxu0 %v4404_v18  ;;  %v2450_v18 = vld [vmem:[#allocation14 + $0x238] sm:$0xff]  ;;  %v4414_v62 = vpack.c.bf16 %v2434_v58, %v2433_v14 }
 0x459   : > { %v5775_v61 = vadd.f32 %v3442_v8, %v5643_v4  ;;  %v3443_v42 = vpop.f32.mrb[54].mxu1  ;;  %4407 = vmatprep.subr.bf16.mxu0 %v4406_v50  ;;  %v2467_v8 = vld [vmem:[#allocation14 + $0x2c0] sm:$0xff]  ;;  %v2468_v4 = vld [vmem:[#allocation14 + $0x2c8] sm:$0xff]  ;;  %v4412_v50 = vpack.c.bf16 %v2416_v41, %v2415_v59  ;;  %4469 = vmatprep.subr.bf16.mxu1 %v5779_v9  ;;  %v5787_v53 = vpack.c.bf16 %v2450_v18, %v2449_v5  ;;  %v2470_v41 = vld [vmem:[#allocation14 + $0x2d8] sm:$0xff] }
 0x45a   : > { %v3444_v52 = vpop.f32.mrb[55].mxu1  ;;  %v2419_v18 = vld [vmem:[#allocation14 + $0x140] sm:$0xff] }
 0x45b   : > { %6246 = vst [vmem:[#allocation52_spill] sm:$0xff] %v5775_v61  ;;  %v3445_v17 = vadd.f32 %v3444_v52, %v3443_v42  ;;  %4061 = vmatprep.mubr.f32.mxu0 %v5775_v61  ;;  %v2436_v52 = vld [vmem:[#allocation14 + $0x1c8] sm:$0xff]  ;;  %v5789_v61 = vpack.c.bf16 %v2468_v4, %v2467_v8  ;;  %4477 = vmatpush3.bf16.msra.mxu1 %v5787_v53  ;;  %v2437_v8 = vld [vmem:[#allocation14 + $0x1d0] sm:$0xff] }
 0x45c   : > { %4409 = vmatpush3.bf16.msra.mxu0 %v4408_v28  ;;  %v2452_v28 = vld [vmem:[#allocation14 + $0x248] sm:$0xff]  ;;  %v4418_v58 = vpack.c.bf16 %v2436_v52, %v2435_v21 }
 0x45d   : > { %v5785_v13 = vadd.f32 %v3445_v17, %v5647_v39  ;;  %v3446_v6 = vpop.f32.mrb[56].mxu1  ;;  %4411 = vmatprep.subr.bf16.mxu0 %v4410_v63  ;;  %v2469_v39 = vld [vmem:[#allocation14 + $0x2d0] sm:$0xff]  ;;  %v4416_v63 = vpack.c.bf16 %v2418_v12, %v2417_v36  ;;  %4470 = vmatprep.subr.bf16.mxu1 %v5789_v61  ;;  %v2420_v17 = vld [vmem:[#allocation14 + $0x148] sm:$0xff]  ;;  %v5797_v4 = vpack.c.bf16 %v2452_v28, %v2451_v40 }
 0x45e   : > { %v3447_v42 = vpop.f32.mrb[57].mxu1  ;;  %v2472_v12 = vld [vmem:[#allocation14 + $0x2e8] sm:$0xff]  ;;  %v2421_v28 = vld [vmem:[#allocation14 + $0x150] sm:$0xff] }
 0x45f   : > { %6247 = vst [vmem:[#allocation53_spill] sm:$0xff] %v5785_v13  ;;  %v3448_v59 = vadd.f32 %v3447_v42, %v3446_v6  ;;  %4062 = vmatmul.mubr.f32.gmra.mrb[114].mxu0 %v5785_v13  ;;  %v2438_v42 = vld [vmem:[#allocation14 + $0x1d8] sm:$0xff]  ;;  %v5799_v13 = vpack.c.bf16 %v2470_v41, %v2469_v39  ;;  %4478 = vmatpush3.bf16.msra.mxu1 %v5797_v4  ;;  %v2439_v39 = vld [vmem:[#allocation14 + $0x1e0] sm:$0xff] }
 0x460   : > { %4413 = vmatpush3.bf16.msra.mxu0 %v4412_v50  ;;  %v2454_v50 = vld [vmem:[#allocation14 + $0x258] sm:$0xff]  ;;  %v4422_v52 = vpack.c.bf16 %v2438_v42, %v2437_v8  ;;  %v2423_v8 = vld [vmem:[#allocation14 + $0x160] sm:$0xff]  ;;  %v2424_v42 = vld [vmem:[#allocation14 + $0x168] sm:$0xff] }
 0x461   : > { %v5795_v5 = vadd.f32 %v3448_v59, %v5651_v33  ;;  %v3449_v14 = vpop.f32.mrb[58].mxu1  ;;  %4415 = vmatprep.subr.bf16.mxu0 %v4414_v62  ;;  %v2471_v33 = vld [vmem:[#allocation14 + $0x2e0] sm:$0xff]  ;;  %v4420_v62 = vpack.c.bf16 %v2420_v17, %v2419_v18  ;;  %4471 = vmatprep.subr.bf16.mxu1 %v5799_v13  ;;  %v2422_v59 = vld [vmem:[#allocation14 + $0x158] sm:$0xff]  ;;  %v5807_v41 = vpack.c.bf16 %v2454_v50, %v2453_v57 }
 0x462   : > { %v3450_v6 = vpop.f32.mrb[59].mxu1 }
 0x463   : > { %6248 = vst [vmem:[#allocation54_spill] sm:$0xff] %v5795_v5  ;;  %v3451_v36 = vadd.f32 %v3450_v6, %v3449_v14  ;;  %4064 = vmatprep.mubr.f32.mxu0 %v5795_v5  ;;  %v2440_v6 = vld [vmem:[#allocation14 + $0x1e8] sm:$0xff]  ;;  %v5809_v5 = vpack.c.bf16 %v2472_v12, %v2471_v33  ;;  %4479 = vmatpush3.bf16.msra.mxu1 %v5807_v41  ;;  %v2441_v33 = vld [vmem:[#allocation14 + $0x1f0] sm:$0xff]  ;;  %v2442_v12 = vld [vmem:[#allocation14 + $0x1f8] sm:$0xff] }
 0x464   : > { %4417 = vmatpush3.bf16.msra.mxu0 %v4416_v63  ;;  %v2456_v63 = vld [vmem:[#allocation14 + $0x268] sm:$0xff]  ;;  %v4426_v17 = vpack.c.bf16 %v2440_v6, %v2439_v39  ;;  %v2426_v39 = vld [vmem:[#allocation14 + $0x178] sm:$0xff] }
 0x465   : > { %v5805_v40 = vadd.f32 %v3451_v36, %v5655_v3  ;;  %v3452_v21 = vpop.f32.mrb[60].mxu1  ;;  %4419 = vmatprep.subr.bf16.mxu0 %v4418_v58  ;;  %v4424_v3 = vpack.c.bf16 %v2422_v59, %v2421_v28  ;;  %4472 = vmatprep.subr.bf16.mxu1 %v5809_v5  ;;  %v5817_v50 = vpack.c.bf16 %v2456_v63, %v2455_v29  ;;  %v2425_v59 = vld [vmem:[#allocation14 + $0x170] sm:$0xff] }
 0x466   : > { %v3453_v14 = vpop.f32.mrb[61].mxu1  ;;  %v4432_v6 = vpack.c.bf16 %v2426_v39, %v2425_v59 }
 0x467   : > { %v3454_v18 = vadd.f32 %v3453_v14, %v3452_v21  ;;  %4065 = vmatmul.mubr.f32.gmra.mrb[116].mxu0 %v5805_v40  ;;  %4480 = vmatpush3.bf16.msra.mxu1 %v5817_v50 }
 0x468   : > { %4421 = vmatpush3.bf16.msra.mxu0 %v4420_v62  ;;  %v4428_v62 = vpack.c.bf16 %v2424_v42, %v2423_v8 }
 0x469   : > { %v5815_v58 = vadd.f32 %v3454_v18, %v5659_v34  ;;  %v3455_v57 = vpop.f32.mrb[62].mxu1  ;;  %4423 = vmatprep.subr.bf16.mxu0 %v4422_v52  ;;  %v4430_v52 = vpack.c.bf16 %v2442_v12, %v2441_v33 }
 0x46a   : > { %v3456_v36 = vpop.f32.mrb[63].mxu1 }
 0x46b   : > { %v3457_v21 = vadd.f32 %v3456_v36, %v3455_v57  ;;  %4067 = vmatprep.mubr.f32.mxu0 %v5815_v58 }
 0x46c   : > { %4425 = vmatpush3.bf16.msra.mxu0 %v4424_v3 }
 0x46d   : > { %v5822_v34 = vadd.f32 %v3457_v21, %v5663_v49  ;;  %v3458_v28 = vpop.f32.mrb[64].mxu1  ;;  %4427 = vmatprep.subr.bf16.mxu0 %v4426_v17 }
 0x46e   : > { %v3459_v29 = vpop.f32.mrb[65].mxu1 }
 0x46f   : > { %v3460_v14 = vadd.f32 %v3459_v29, %v3458_v28  ;;  %4068 = vmatmul.mubr.f32.gmra.mrb[118].mxu0 %v5822_v34 }
 0x470   : > { %4429 = vmatpush3.bf16.msra.mxu0 %v4428_v62 }
 0x471   : > { %v5826_v63 = vadd.f32 %v3460_v14, %v5667_v43  ;;  %v3461_v18 = vpop.f32.mrb[66].mxu1  ;;  %4431 = vmatprep.subr.bf16.mxu0 %v4430_v52 }
 0x472   : > { %v3462_v3 = vpop.f32.mrb[67].mxu1 }
 0x473   : > { %v3463_v57 = vadd.f32 %v3462_v3, %v3461_v18  ;;  %4070 = vmatprep.mubr.f32.mxu0 %v5826_v63 }
 0x474   : > { %4433 = vmatpush3.bf16.msra.mxu0 %v4432_v6 }
 0x475   : > { %v5830_v49 = vadd.f32 %v3463_v57, %v5671_v24  ;;  %v3464_v17 = vpop.f32.mrb[68].mxu1  ;;  %4435 = vmatprep.subr.bf16.mxu0 %v5751_v11 }
 0x476   : > { %v3465_v8 = vpop.f32.mrb[69].mxu1 }
 0x477   : > { %v3466_v42 = vadd.f32 %v3465_v8, %v3464_v17  ;;  %4071 = vmatmul.mubr.f32.gmra.mrb[120].mxu0 %v5830_v49 }
 0x479   : > { %v5835_v43 = vadd.f32 %v3466_v42, %v5675_v35  ;;  %v3467_v36 = vpop.f32.mrb[70].mxu1 }
 0x47a   : > { %v3468_v33 = vpop.f32.mrb[71].mxu1 }
 0x47b   : > { %v3469_v12 = vadd.f32 %v3468_v33, %v3467_v36  ;;  %4073 = vmatprep.mubr.f32.mxu0 %v5835_v43 }
 0x47d   : > { %v5839_v21 = vadd.f32 %v3469_v12, %v5679_v16  ;;  %v3470_v24 = vpop.f32.mrb[72].mxu1 }
 0x47e   : > { %v3471_v62 = vpop.f32.mrb[73].mxu1 }
 0x47f   : > { %v3472_v28 = vadd.f32 %v3471_v62, %v3470_v24  ;;  %4074 = vmatmul.mubr.f32.gmra.mrb[122].mxu0 %v5839_v21  ;;  %v6250_v62 = vld [vmem:[#allocation25_spill] sm:$0xff] }
 0x481   : > { %v5843_v11 = vadd.f32 %v3472_v28, %v5683_v25  ;;  %v3473_v52 = vpop.f32.mrb[74].mxu1 }
 0x482   : > { %v3474_v59 = vpop.f32.mrb[75].mxu1 }
 0x483   : > { %v3475_v35 = vadd.f32 %v3474_v59, %v3473_v52  ;;  %4076 = vmatprep.mubr.f32.mxu0 %v5843_v11 }
 0x485   : > { %v5847_v39 = vadd.f32 %v3475_v35, %v5687_v37  ;;  %v3476_v29 = vpop.f32.mrb[76].mxu1  ;;  %v6253_v35 = vld [vmem:[#allocation26_spill] sm:$0xff] }
 0x486   : > { %v3477_v14 = vpop.f32.mrb[77].mxu1 }
 0x487   : > { %v3478_v16 = vadd.f32 %v3477_v14, %v3476_v29  ;;  %4077 = vmatmul.mubr.f32.gmra.mrb[124].mxu0 %v5847_v39  ;;  %v6254_v29 = vld [vmem:[#allocation37_spill] sm:$0xff] }
 0x489   : > { %v5851_v6 = vadd.f32 %v3478_v16, %v5691_v23  ;;  %v3479_v18 = vpop.f32.mrb[78].mxu1  ;;  %v6255_v16 = vld [vmem:[#allocation21_spill] sm:$0xff] }
 0x48a   : > { %v3480_v3 = vpop.f32.mrb[79].mxu1 }
 0x48b   : > { %v3481_v25 = vadd.f32 %v3480_v3, %v3479_v18  ;;  %4079 = vmatprep.mubr.f32.mxu0 %v5851_v6 }
 0x48d   : > { %v5855_v57 = vadd.f32 %v3481_v25, %v5695_v45  ;;  %v3594_v17 = vpop.f32.mrb[80].mxu1 }
 0x48e   : > { %v3595_v8 = vpop.f32.mrb[81].mxu1 }
 0x48f   : > { %v3596_v37 = vadd.f32 %v3595_v8, %v3594_v17  ;;  %4080 = vmatmul.mubr.f32.gmra.mrb[126].mxu0 %v5855_v57  ;;  %v6257_v17 = vld [vmem:[#allocation36_spill] sm:$0xff] }
 0x490   : > { %2684 = vmatprep.mubr.f32.mxu0 %v5547_v55 }
 0x491   : > { %v3597_v42 = vpop.f32.mrb[82].mxu1  ;;  %v5860_v36 = vadd.f32 %v3596_v37, %v5700_v48  ;;  %v6258_v37 = vld [vmem:[#allocation24_spill] sm:$0xff] }
 0x492   : > { %v3598_v23 = vpop.f32.mrb[83].mxu1 }
 0x493   : > { %v3599_v33 = vadd.f32 %v3598_v23, %v3597_v42  ;;  %2685 = vmatmul.mubr.f32.vlgmr.msra.gmra.mrb[128].mxu0 %v5463_v30 }
 0x494   : > { %2689 = vmatprep.mubr.f32.mxu0 %v5544_v56  ;;  %4437 = vmatpush3.bf16.msra.mxu0 %v5756_v51 }
 0x495   : > { %v3600_v45 = vpop.f32.mrb[84].mxu1  ;;  %4439 = vmatprep.subr.bf16.mxu0 %v5759_v22  ;;  %v5867_v12 = vadd.f32 %v3599_v33, %v5703_v1 }
 0x496   : > { %v3601_v24 = vpop.f32.mrb[85].mxu1 }
 0x497   : > { %v3602_v55 = vadd.f32 %v3601_v24, %v3600_v45  ;;  %2690 = vmatmul.mubr.f32.gmra.mrb[130].mxu0 %v5468_v2  ;;  %v6259_v45 = vld [vmem:[#allocation28_spill] sm:$0xff]  ;;  %v6260_v24 = vld [vmem:[#allocation39_spill] sm:$0xff] }
 0x498   : > { %2694 = vmatprep.mubr.f32.mxu0 %v5557_v54  ;;  %4441 = vmatpush3.bf16.msra.mxu0 %v5767_v15 }
 0x499   : > { %v3603_v48 = vpop.f32.mrb[86].mxu1  ;;  %4443 = vmatprep.subr.bf16.mxu0 %v5769_v0  ;;  %v5874_v30 = vadd.f32 %v3602_v55, %v5707_v26 }
 0x49a   : > { %v3604_v56 = vpop.f32.mrb[87].mxu1 }
 0x49b   : > { %v3605_v51 = vadd.f32 %v3604_v56, %v3603_v48  ;;  %2695 = vmatmul.mubr.f32.gmra.mrb[132].mxu0 %v5473_v10  ;;  %v6261_v48 = vld [vmem:[#allocation23_spill] sm:$0xff] }
 0x49c   : > { %2699 = vmatprep.mubr.f32.mxu0 %v5553_v38  ;;  %4445 = vmatpush3.bf16.msra.mxu0 %v5777_v44  ;;  %v2458_v44 = vld [vmem:[#allocation14 + $0x278] sm:$0xff] }
 0x49d   : > { %v3606_v1 = vpop.f32.mrb[88].mxu1  ;;  %4447 = vmatprep.subr.bf16.mxu0 %v5779_v9  ;;  %v5881_v2 = vadd.f32 %v3605_v51, %v5711_v20 }
 0x49e   : > { %v3607_v15 = vpop.f32.mrb[89].mxu1 }
 0x49f   : > { %v3608_v54 = vadd.f32 %v3607_v15, %v3606_v1  ;;  %2700 = vmatmul.mubr.f32.gmra.mrb[134].mxu0 %v5476_v27  ;;  %v6262_v15 = vld [vmem:[#allocation29_spill] sm:$0xff] }
 0x4a0   : > { %2704 = vmatprep.mubr.f32.mxu0 %v5567_v7  ;;  %4449 = vmatpush3.bf16.msra.mxu0 %v5787_v53 }
 0x4a1   : > { %v3609_v26 = vpop.f32.mrb[90].mxu1  ;;  %4451 = vmatprep.subr.bf16.mxu0 %v5789_v61  ;;  %v5888_v10 = vadd.f32 %v3608_v54, %v5715_v19  ;;  %v2473_v19 = vld [vmem:[#allocation14 + $0x2f0] sm:$0xff]  ;;  %v6263_v54 = vld [vmem:[#allocation38_spill] sm:$0xff] }
 0x4a2   : > { %v3610_v38 = vpop.f32.mrb[91].mxu1  ;;  %v2457_v61 = vld [vmem:[#allocation14 + $0x270] sm:$0xff] }
 0x4a3   : > { %v3611_v0 = vadd.f32 %v3610_v38, %v3609_v26  ;;  %2705 = vmatmul.mubr.f32.gmra.mrb[136].mxu0 %v5479_v47  ;;  %v2474_v47 = vld [vmem:[#allocation14 + $0x2f8] sm:$0xff]  ;;  %v6264_v38 = vld [vmem:[#allocation45_spill] sm:$0xff] }
 0x4a4   : > { %2709 = vmatprep.mubr.f32.mxu0 %v5563_v46  ;;  %4453 = vmatpush3.bf16.msra.mxu0 %v5797_v4  ;;  %v4462_v46 = vpack.c.bf16 %v2474_v47, %v2473_v19  ;;  %v6266_v19 = vld [vmem:[#allocation41_spill] sm:$0xff] }
 0x4a5   : > { %v3612_v20 = vpop.f32.mrb[92].mxu1  ;;  %4455 = vmatprep.subr.bf16.mxu0 %v5799_v13  ;;  %v5895_v27 = vadd.f32 %v3611_v0, %v5719_v31  ;;  %v6249_v13 = vld [vmem:[#allocation44_spill] sm:$0xff] }
 0x4a6   : > { %v3613_v7 = vpop.f32.mrb[93].mxu1  ;;  %4473 = vmatprep.subr.bf16.mxu1 %v4462_v46 }
 0x4a7   : > { %v3614_v22 = vadd.f32 %v3613_v7, %v3612_v20  ;;  %2710 = vmatmul.mubr.f32.gmra.mrb[138].mxu0 %v5482_v32  ;;  %v4464_v32 = vpack.c.bf16 %v2458_v44, %v2457_v61 }
 0x4a8   : > { %2714 = vmatprep.mubr.f32.mxu0 %v5577_v60  ;;  %4457 = vmatpush3.bf16.msra.mxu0 %v5807_v41  ;;  %v6251_v60 = vld [vmem:[#allocation35_spill] sm:$0xff] }
 0x4a9   : > { %v3615_v9 = vpop.f32.mrb[94].mxu1  ;;  %4459 = vmatprep.subr.bf16.mxu0 %v5809_v5  ;;  %v5902_v53 = vadd.f32 %v3614_v22, %v6249_v13  ;;  %4481 = vmatpush3.bf16.msra.mxu1 %v4464_v32  ;;  %v6252_v5 = vld [vmem:[#allocation22_spill] sm:$0xff]  ;;  %v6268_v13 = vld [vmem:[#allocation31_spill] sm:$0xff] }
 0x4aa   : > { %v3616_v31 = vpop.f32.mrb[95].mxu1  ;;  %v6265_v22 = vld [vmem:[#allocation30_spill] sm:$0xff] }
 0x4ab   : > { %v3617_v4 = vadd.f32 %v3616_v31, %v3615_v9  ;;  %2715 = vmatmul.mubr.f32.gmra.mrb[140].mxu0 %v6250_v62  ;;  %v6267_v9 = vld [vmem:[#allocation46_spill] sm:$0xff]  ;;  %v6269_v31 = vld [vmem:[#allocation40_spill] sm:$0xff]  ;;  %v6270_v62 = vld [vmem:[#allocation47_spill] sm:$0xff] }
 0x4ac   : > { %2719 = vmatprep.mubr.f32.mxu0 %v6251_v60  ;;  %4461 = vmatpush3.bf16.msra.mxu0 %v5817_v50  ;;  %v6256_v50 = vld [vmem:[#allocation27_spill] sm:$0xff] }
 0x4ad   : > { %v3618_v41 = vpop.f32.mrb[96].mxu1  ;;  %4463 = vmatprep.subr.bf16.mxu0 %v4462_v46  ;;  %v5908_v28 = vadd.f32 %v3617_v4, %v6252_v5  ;;  %v6271_v5 = vld [vmem:[#allocation32_spill] sm:$0xff] }
 0x4ae   : > { %v3619_v52 = vpop.f32.mrb[97].mxu1 }
 0x4af   : > { %v3620_v59 = vadd.f32 %v3619_v52, %v3618_v41  ;;  %2720 = vmatmul.mubr.f32.gmra.mrb[142].mxu0 %v6253_v35  ;;  %v6272_v52 = vld [vmem:[#allocation43_spill] sm:$0xff]  ;;  %v6273_v35 = vld [vmem:[#allocation48_spill] sm:$0xff] }
 0x4b0   : > { %2724 = vmatprep.mubr.f32.mxu0 %v6254_v29  ;;  %4465 = vmatpush3.bf16.msra.mxu0 %v4464_v32 }
 0x4b1   : > { %v3621_v14 = vpop.f32.mrb[98].mxu1  ;;  %v5913_v18 = vadd.f32 %v3620_v59, %v6255_v16 }
 0x4b2   : > { %v3622_v3 = vpop.f32.mrb[99].mxu1 }
 0x4b3   : > { %v3623_v25 = vadd.f32 %v3622_v3, %v3621_v14  ;;  %2725 = vmatmul.mubr.f32.gmra.mrb[144].mxu0 %v6256_v50  ;;  %v6274_v3 = vld [vmem:[#allocation33_spill] sm:$0xff] }
 0x4b4   : > { %2729 = vmatprep.mubr.f32.mxu0 %v6257_v17  ;;  %v6276_v50 = vld [vmem:[#allocation49_spill] sm:$0xff] }
 0x4b5   : > { %v3624_v8 = vpop.f32.mrb[100].mxu1  ;;  %v5918_v42 = vadd.f32 %v3623_v25, %v6258_v37  ;;  %v6275_v25 = vld [vmem:[#allocation42_spill] sm:$0xff] }
 0x4b6   : > { %v3625_v23 = vpop.f32.mrb[101].mxu1 }
 0x4b7   : > { %v3626_v33 = vadd.f32 %v3625_v23, %v3624_v8  ;;  %2730 = vmatmul.mubr.f32.gmra.mrb[146].mxu0 %v6259_v45  ;;  %v6277_v8 = vld [vmem:[#allocation34_spill] sm:$0xff] }
 0x4b8   : > { %2734 = vmatprep.mubr.f32.mxu0 %v6260_v24 }
 0x4b9   : > { %v3627_v55 = vpop.f32.mrb[102].mxu1  ;;  %v5923_v56 = vadd.f32 %v3626_v33, %v6261_v48 }
 0x4ba   : > { %v3628_v51 = vpop.f32.mrb[103].mxu1 }
 0x4bb   : > { %v3629_v1 = vadd.f32 %v3628_v51, %v3627_v55  ;;  %2735 = vmatmul.mubr.f32.gmra.mrb[148].mxu0 %v6262_v15 }
 0x4bc   : > { %2739 = vmatprep.mubr.f32.mxu0 %v6263_v54 }
 0x4bd   : > { %v3630_v26 = vpop.f32.mrb[104].mxu1  ;;  %v5928_v0 = vadd.f32 %v3629_v1, %v6264_v38 }
 0x4be   : > { %v3631_v20 = vpop.f32.mrb[105].mxu1 }
 0x4bf   : > { %v3632_v7 = vadd.f32 %v3631_v20, %v3630_v26  ;;  %2740 = vmatmul.mubr.f32.gmra.mrb[150].mxu0 %v6265_v22 }
 0x4c0   : > { %2744 = vmatprep.mubr.f32.mxu0 %v6266_v19 }
 0x4c1   : > { %v3633_v47 = vpop.f32.mrb[106].mxu1  ;;  %v5933_v46 = vadd.f32 %v3632_v7, %v6267_v9 }
 0x4c2   : > { %v3634_v61 = vpop.f32.mrb[107].mxu1 }
 0x4c3   : > { %v3635_v44 = vadd.f32 %v3634_v61, %v3633_v47  ;;  %2745 = vmatmul.mubr.f32.gmra.mrb[152].mxu0 %v6268_v13 }
 0x4c4   : > { %2749 = vmatprep.mubr.f32.mxu0 %v6269_v31 }
 0x4c5   : > { %v3636_v4 = vpop.f32.mrb[108].mxu1  ;;  %v5938_v32 = vadd.f32 %v3635_v44, %v6270_v62 }
 0x4c6   : > { %v3637_v60 = vpop.f32.mrb[109].mxu1 }
 0x4c7   : > { %v3638_v41 = vadd.f32 %v3637_v60, %v3636_v4  ;;  %2750 = vmatmul.mubr.f32.gmra.mrb[154].mxu0 %v6271_v5 }
 0x4c8   : > { %2754 = vmatprep.mubr.f32.mxu0 %v6272_v52 }
 0x4c9   : > { %v3639_v59 = vpop.f32.mrb[110].mxu1  ;;  %v5943_v29 = vadd.f32 %v3638_v41, %v6273_v35 }
 0x4ca   : > { %v3640_v14 = vpop.f32.mrb[111].mxu1 }
 0x4cb   : > { %v3641_v16 = vadd.f32 %v3640_v14, %v3639_v59  ;;  %2755 = vmatmul.mubr.f32.gmra.mrb[156].mxu0 %v6274_v3 }
 0x4cc   : > { %2759 = vmatprep.mubr.f32.mxu0 %v6275_v25 }
 0x4cd   : > { %v5948_v17 = vadd.f32 %v3641_v16, %v6276_v50  ;;  %v3706_v37 = vpop.f32.mrb[112].mxu1 }
 0x4ce   : > { %v3707_v23 = vpop.f32.mrb[113].mxu1 }
 0x4cf   : > { %2760 = vmatmul.mubr.f32.gmra.mrb[158].mxu0 %v6277_v8  ;;  %v5951_v33 = vadd.f32 %v3707_v23, %v3706_v37 }
 0x4d1   : > { %v3709_v45 = vpop.f32.mrb[114].mxu1 }
 0x4d2   : > { %v3710_v24 = vpop.f32.mrb[115].mxu1 }
 0x4d3   : > { %v5953_v55 = vadd.f32 %v3710_v24, %v3709_v45 }
 0x4d5   : > { %v3712_v48 = vpop.f32.mrb[116].mxu1 }
 0x4d6   : > { %v3713_v51 = vpop.f32.mrb[117].mxu1 }
 0x4d7   : > { %v5955_v1 = vadd.f32 %v3713_v51, %v3712_v48 }
 0x4d9   : > { %v3715_v15 = vpop.f32.mrb[118].mxu1 }
 0x4da   : > { %v3716_v54 = vpop.f32.mrb[119].mxu1 }
 0x4db   : > { %v5957_v26 = vadd.f32 %v3716_v54, %v3715_v15 }
 0x4dd   : > { %v3718_v38 = vpop.f32.mrb[120].mxu1 }
 0x4de   : > { %v3719_v20 = vpop.f32.mrb[121].mxu1 }
 0x4df   : > { %v5959_v7 = vadd.f32 %v3719_v20, %v3718_v38 }
 0x4e1   : > { %v3721_v22 = vpop.f32.mrb[122].mxu1 }
 0x4e2   : > { %v3722_v19 = vpop.f32.mrb[123].mxu1 }
 0x4e3   : > { %v5961_v47 = vadd.f32 %v3722_v19, %v3721_v22 }
 0x4e5   : > { %v3724_v9 = vpop.f32.mrb[124].mxu1 }
 0x4e6   : > { %v3725_v61 = vpop.f32.mrb[125].mxu1 }
 0x4e7   : > { %v5963_v44 = vadd.f32 %v3725_v61, %v3724_v9 }
 0x4e9   : > { %v3727_v13 = vpop.f32.mrb[126].mxu1 }
 0x4ea   : > { %v3728_v31 = vpop.f32.mrb[127].mxu1 }
 0x4eb   : > { %v5965_v4 = vadd.f32 %v3728_v31, %v3727_v13  ;;  %v6278_v31 = vld [vmem:[#allocation50_spill] sm:$0xff] }
 0x4ed   : > { %v3730_v62 = vpop.f32.mrb[128].mxu1 }
 0x4ee   : > { %v3731_v60 = vpop.f32.mrb[129].mxu1 }
 0x4ef   : > { %v5967_v41 = vadd.f32 %v3731_v60, %v3730_v62 }
 0x4f1   : > { %v3733_v5 = vpop.f32.mrb[130].mxu1 }
 0x4f2   : > { %v3734_v52 = vpop.f32.mrb[131].mxu1 }
 0x4f3   : > { %v5969_v59 = vadd.f32 %v3734_v52, %v3733_v5  ;;  %v6279_v52 = vld [vmem:[#allocation51_spill] sm:$0xff] }
 0x4f5   : > { %v3736_v35 = vpop.f32.mrb[132].mxu1 }
 0x4f6   : > { %v3737_v14 = vpop.f32.mrb[133].mxu1 }
 0x4f7   : > { %v5971_v16 = vadd.f32 %v3737_v14, %v3736_v35  ;;  %v6280_v14 = vld [vmem:[#allocation52_spill] sm:$0xff] }
 0x4f9   : > { %v3739_v3 = vpop.f32.mrb[134].mxu1 }
 0x4fa   : > { %v3740_v25 = vpop.f32.mrb[135].mxu1 }
 0x4fb   : > { %v5973_v50 = vadd.f32 %v3740_v25, %v3739_v3  ;;  %v6281_v25 = vld [vmem:[#allocation53_spill] sm:$0xff] }
 0x4fd   : > { %v3742_v8 = vpop.f32.mrb[136].mxu1 }
 0x4fe   : > { %v3743_v37 = vpop.f32.mrb[137].mxu1 }
 0x4ff   : > { %v5975_v23 = vadd.f32 %v3743_v37, %v3742_v8  ;;  %v6282_v37 = vld [vmem:[#allocation54_spill] sm:$0xff] }
 0x501   : > { %v3745_v45 = vpop.f32.mrb[138].mxu1 }
 0x502   : > { %v3746_v24 = vpop.f32.mrb[139].mxu1 }
 0x503   : > { %v5977_v48 = vadd.f32 %v3746_v24, %v3745_v45 }
 0x505   : > { %v3748_v51 = vpop.f32.mrb[140].mxu1 }
 0x506   : > { %v3749_v15 = vpop.f32.mrb[141].mxu1 }
 0x507   : > { %v5979_v54 = vadd.f32 %v3749_v15, %v3748_v51 }
 0x509   : > { %v3751_v38 = vpop.f32.mrb[142].mxu1 }
 0x50a   : > { %v3752_v20 = vpop.f32.mrb[143].mxu1 }
 0x50b   : > { %v5981_v22 = vadd.f32 %v3752_v20, %v3751_v38 }
 0x52a   : > { %v4060_v19 = vpop.f32.mrb[112].mxu0 }
 0x52b   : > { %v2194_v9 = vadd.f32 %v4060_v19, %v5867_v12  ;;  %v2188_v61 = vpop.f32.mrb[113].mxu0 }
 0x52c   : > { %v2189_v13 = vadd.f32 %v2188_v61, %v5860_v36 }
 0x52e   : > { %2829 = vmatprep.mubr.f32.mxu0 %v2189_v13 }
 0x52f   : > { %2830 = vmatmul.mubr.f32.vlgmr.msra.gmra.mrb[160].mxu0 %v6278_v31 }
 0x530   : > { %2834 = vmatprep.mubr.f32.mxu0 %v2194_v9 }
 0x532   : > { %v4063_v62 = vpop.f32.mrb[114].mxu0 }
 0x533   : > { %v2204_v60 = vadd.f32 %v4063_v62, %v5881_v2  ;;  %v2198_v5 = vpop.f32.mrb[115].mxu0  ;;  %2835 = vmatmul.mubr.f32.gmra.mrb[162].mxu0 %v6279_v52 }
 0x534   : > { %v2199_v35 = vadd.f32 %v2198_v5, %v5874_v30 }
 0x536   : > { %2839 = vmatprep.mubr.f32.mxu0 %v2199_v35 }
 0x537   : > { %2840 = vmatmul.mubr.f32.gmra.mrb[164].mxu0 %v6280_v14 }
 0x538   : > { %2844 = vmatprep.mubr.f32.mxu0 %v2204_v60 }
 0x53a   : > { %v4066_v12 = vpop.f32.mrb[116].mxu0 }
 0x53b   : > { %v2214_v3 = vadd.f32 %v4066_v12, %v5895_v27  ;;  %v2208_v36 = vpop.f32.mrb[117].mxu0  ;;  %2845 = vmatmul.mubr.f32.gmra.mrb[166].mxu0 %v6281_v25 }
 0x53c   : > { %v2209_v8 = vadd.f32 %v2208_v36, %v5888_v10 }
 0x53e   : > { %2849 = vmatprep.mubr.f32.mxu1 %v2209_v8 }
 0x53f   : > { %2850 = vmatmul.mubr.f32.vlgmr.msra.gmra.mrb[144].mxu1 %v6282_v37 }
 0x540   : > { %2854 = vmatprep.mubr.f32.mxu1 %v2214_v3 }
 0x542   : > { %v4069_v2 = vpop.f32.mrb[118].mxu0 }
 0x543   : > { %v2224_v45 = vadd.f32 %v4069_v2, %v5908_v28  ;;  %v2218_v30 = vpop.f32.mrb[119].mxu0  ;;  %2855 = vmatmul.mubr.f32.gmra.mrb[146].mxu1 %v5805_v40 }
 0x544   : > { %v2219_v24 = vadd.f32 %v2218_v30, %v5902_v53 }
 0x546   : > { %2859 = vmatprep.mubr.f32.mxu1 %v2219_v24 }
 0x547   : > { %2860 = vmatmul.mubr.f32.gmra.mrb[148].mxu1 %v5815_v58 }
 0x548   : > { %2864 = vmatprep.mubr.f32.mxu1 %v2224_v45 }
 0x54a   : > { %v4072_v27 = vpop.f32.mrb[120].mxu0 }
 0x54b   : > { %v2234_v51 = vadd.f32 %v4072_v27, %v5918_v42  ;;  %v2228_v10 = vpop.f32.mrb[121].mxu0  ;;  %2865 = vmatmul.mubr.f32.gmra.mrb[150].mxu1 %v5822_v34 }
 0x54c   : > { %v2229_v15 = vadd.f32 %v2228_v10, %v5913_v18 }
 0x54e   : > { %2869 = vmatprep.mubr.f32.mxu1 %v2229_v15 }
 0x54f   : > { %2870 = vmatmul.mubr.f32.gmra.mrb[152].mxu1 %v5826_v63 }
 0x550   : > { %2874 = vmatprep.mubr.f32.mxu1 %v2234_v51 }
 0x552   : > { %v4075_v28 = vpop.f32.mrb[122].mxu0 }
 0x553   : > { %v2244_v40 = vadd.f32 %v4075_v28, %v5928_v0  ;;  %v2238_v53 = vpop.f32.mrb[123].mxu0  ;;  %2875 = vmatmul.mubr.f32.gmra.mrb[154].mxu1 %v5830_v49 }
 0x554   : > { %v2239_v58 = vadd.f32 %v2238_v53, %v5923_v56 }
 0x556   : > { %2879 = vmatprep.mubr.f32.mxu1 %v2239_v58 }
 0x557   : > { %2880 = vmatmul.mubr.f32.gmra.mrb[156].mxu1 %v5835_v43 }
 0x558   : > { %2884 = vmatprep.mubr.f32.mxu1 %v2244_v40 }
 0x55a   : > { %v4078_v42 = vpop.f32.mrb[124].mxu0 }
 0x55b   : > { %v2254_v34 = vadd.f32 %v4078_v42, %v5938_v32  ;;  %v2248_v18 = vpop.f32.mrb[125].mxu0  ;;  %2885 = vmatmul.mubr.f32.gmra.mrb[158].mxu1 %v5839_v21 }
 0x55c   : > { %v2249_v63 = vadd.f32 %v2248_v18, %v5933_v46 }
 0x55e   : > { %2889 = vmatprep.mubr.f32.mxu1 %v2249_v63 }
 0x55f   : > { %2890 = vmatmul.mubr.f32.gmra.mrb[160].mxu1 %v5843_v11 }
 0x560   : > { %2894 = vmatprep.mubr.f32.mxu1 %v2254_v34 }
 0x562   : > { %v4081_v0 = vpop.f32.mrb[126].mxu0 }
 0x563   : > { %v2264_v49 = vadd.f32 %v4081_v0, %v5948_v17  ;;  %v2258_v56 = vpop.f32.mrb[127].mxu0  ;;  %2895 = vmatmul.mubr.f32.gmra.mrb[162].mxu1 %v5847_v39 }
 0x564   : > { %v2259_v43 = vadd.f32 %v2258_v56, %v5943_v29 }
 0x566   : > { %v3786_v38 = vpop.f32.mrb[128].mxu0  ;;  %2899 = vmatprep.mubr.f32.mxu1 %v2259_v43 }
 0x567   : > { %v3787_v32 = vpop.f32.mrb[129].mxu0  ;;  %2900 = vmatmul.mubr.f32.gmra.mrb[164].mxu1 %v5851_v6 }
 0x568   : > { %v3788_v21 = vadd.f32 %v3787_v32, %v3786_v38  ;;  %2904 = vmatprep.mubr.f32.mxu1 %v2264_v49 }
 0x56a   : > { %v6015_v46 = vadd.f32 %v3788_v21, %v5951_v33  ;;  %v3789_v11 = vpop.f32.mrb[130].mxu0 }
 0x56b   : > { %v3790_v20 = vpop.f32.mrb[131].mxu0  ;;  %2905 = vmatmul.mubr.f32.gmra.mrb[166].mxu1 %v5855_v57 }
 0x56c   : > { %v3791_v17 = vadd.f32 %v3790_v20, %v3789_v11 }
 0x56e   : > { %v6019_v19 = vadd.f32 %v3791_v17, %v5953_v55  ;;  %v3792_v39 = vpop.f32.mrb[132].mxu0 }
 0x56f   : > { %v3793_v29 = vpop.f32.mrb[133].mxu0 }
 0x570   : > { %v3794_v9 = vadd.f32 %v3793_v29, %v3792_v39 }
 0x572   : > { %v6022_v61 = vadd.f32 %v3794_v9, %v5955_v1  ;;  %v3795_v6 = vpop.f32.mrb[134].mxu0 }
 0x573   : > { %v3796_v13 = vpop.f32.mrb[135].mxu0 }
 0x574   : > { %v3797_v31 = vadd.f32 %v3796_v13, %v3795_v6 }
 0x576   : > { %v6025_v33 = vadd.f32 %v3797_v31, %v5957_v26  ;;  %v3798_v62 = vpop.f32.mrb[136].mxu0 }
 0x577   : > { %v3799_v60 = vpop.f32.mrb[137].mxu0 }
 0x578   : > { %v3800_v5 = vadd.f32 %v3799_v60, %v3798_v62 }
 0x57a   : > { %v6028_v57 = vadd.f32 %v3800_v5, %v5959_v7  ;;  %v3801_v55 = vpop.f32.mrb[138].mxu0 }
 0x57b   : > { %v3802_v52 = vpop.f32.mrb[139].mxu0 }
 0x57c   : > { %v3803_v35 = vadd.f32 %v3802_v52, %v3801_v55 }
 0x57e   : > { %v6031_v14 = vadd.f32 %v3803_v35, %v5961_v47  ;;  %v3804_v1 = vpop.f32.mrb[140].mxu0 }
 0x57f   : > { %v3805_v12 = vpop.f32.mrb[141].mxu0 }
 0x580   : > { %v3806_v3 = vadd.f32 %v3805_v12, %v3804_v1 }
 0x582   : > { %v6034_v36 = vadd.f32 %v3806_v3, %v5963_v44  ;;  %v3807_v26 = vpop.f32.mrb[142].mxu0 }
 0x583   : > { %v3808_v25 = vpop.f32.mrb[143].mxu0 }
 0x584   : > { %v3809_v8 = vadd.f32 %v3808_v25, %v3807_v26 }
 0x586   : > { %v6037_v37 = vadd.f32 %v3809_v8, %v5965_v4  ;;  %v3810_v7 = vpop.f32.mrb[144].mxu0 }
 0x587   : > { %v3811_v2 = vpop.f32.mrb[145].mxu0 }
 0x588   : > { %v3812_v45 = vadd.f32 %v3811_v2, %v3810_v7 }
 0x58a   : > { %v6040_v30 = vadd.f32 %v3812_v45, %v5967_v41  ;;  %v3813_v47 = vpop.f32.mrb[146].mxu0 }
 0x58b   : > { %v3814_v24 = vpop.f32.mrb[147].mxu0 }
 0x58c   : > { %v3815_v27 = vadd.f32 %v3814_v24, %v3813_v47 }
 0x58e   : > { %v6043_v51 = vadd.f32 %v3815_v27, %v5969_v59  ;;  %v3816_v44 = vpop.f32.mrb[148].mxu0 }
 0x58f   : > { %v3817_v10 = vpop.f32.mrb[149].mxu0 }
 0x590   : > { %v3818_v15 = vadd.f32 %v3817_v10, %v3816_v44 }
 0x592   : > { %v6046_v28 = vadd.f32 %v3818_v15, %v5971_v16  ;;  %v3819_v4 = vpop.f32.mrb[150].mxu0 }
 0x593   : > { %v3820_v40 = vpop.f32.mrb[151].mxu0 }
 0x594   : > { %v3821_v53 = vadd.f32 %v3820_v40, %v3819_v4 }
 0x596   : > { %v6049_v58 = vadd.f32 %v3821_v53, %v5973_v50  ;;  %v3822_v41 = vpop.f32.mrb[152].mxu0 }
 0x597   : > { %v3823_v42 = vpop.f32.mrb[153].mxu0 }
 0x598   : > { %v3824_v34 = vadd.f32 %v3823_v42, %v3822_v41 }
 0x59a   : > { %v6052_v18 = vadd.f32 %v3824_v34, %v5975_v23  ;;  %v3825_v59 = vpop.f32.mrb[154].mxu0 }
 0x59b   : > { %v3826_v63 = vpop.f32.mrb[155].mxu0 }
 0x59c   : > { %v3827_v0 = vadd.f32 %v3826_v63, %v3825_v59 }
 0x59e   : > { %v6055_v49 = vadd.f32 %v3827_v0, %v5977_v48  ;;  %v3828_v16 = vpop.f32.mrb[156].mxu0 }
 0x59f   : > { %v3829_v56 = vpop.f32.mrb[157].mxu0 }
 0x5a0   : > { %v3830_v43 = vadd.f32 %v3829_v56, %v3828_v16 }
 0x5a2   : > { %v6058_v38 = vadd.f32 %v3830_v43, %v5979_v54  ;;  %v3831_v50 = vpop.f32.mrb[158].mxu0 }
 0x5a3   : > { %v3832_v32 = vpop.f32.mrb[159].mxu0 }
 0x5a4   : > { %v3833_v21 = vadd.f32 %v3832_v32, %v3831_v50 }
 0x5a6   : > { %v6061_v11 = vadd.f32 %v3833_v21, %v5981_v22 }
 0x602   : > { %v3866_v23 = vpop.f32.mrb[160].mxu0 }
 0x603   : > { %v3867_v20 = vpop.f32.mrb[161].mxu0 }
 0x604   : > { %v3868_v17 = vadd.f32 %v3867_v20, %v3866_v23 }
 0x606   : > { %v2832_v39 = vadd.f32 %v3868_v17, %v6015_v46  ;;  %v3869_v29 = vpop.f32.mrb[162].mxu0 }
 0x607   : > { %v3870_v48 = vpop.f32.mrb[163].mxu0 }
 0x608   : > { %2910 = vst [vmem:[%s6066_s8] sm:$0xff] %v2832_v39  ;;  %v3871_v54 = vadd.f32 %v3870_v48, %v3869_v29 }
 0x60a   : > { %v2837_v9 = vadd.f32 %v3871_v54, %v6019_v19  ;;  %v3872_v22 = vpop.f32.mrb[164].mxu0 }
 0x60b   : > { %v3873_v6 = vpop.f32.mrb[165].mxu0 }
 0x60c   : > { %2911 = vst [vmem:[%s6066_s8 + $0x8] sm:$0xff] %v2837_v9  ;;  %v3874_v13 = vadd.f32 %v3873_v6, %v3872_v22 }
 0x60e   : > { %v2842_v46 = vadd.f32 %v3874_v13, %v6022_v61  ;;  %v3875_v31 = vpop.f32.mrb[166].mxu0 }
 0x60f   : > { %v3876_v62 = vpop.f32.mrb[167].mxu0 }
 0x610   : > { %2912 = vst [vmem:[%s6066_s8 + $0x10] sm:$0xff] %v2842_v46  ;;  %v3877_v60 = vadd.f32 %v3876_v62, %v3875_v31 }
 0x612   : > { %v2847_v5 = vadd.f32 %v3877_v60, %v6025_v33  ;;  %v3878_v55 = vpop.f32.mrb[144].mxu1 }
 0x613   : > { %v3879_v52 = vpop.f32.mrb[145].mxu1 }
 0x614   : > { %2913 = vst [vmem:[%s6066_s8 + $0x18] sm:$0xff] %v2847_v5  ;;  %v3880_v35 = vadd.f32 %v3879_v52, %v3878_v55 }
 0x616   : > { %v2852_v19 = vadd.f32 %v3880_v35, %v6028_v57  ;;  %v3881_v1 = vpop.f32.mrb[146].mxu1 }
 0x617   : > { %v3882_v12 = vpop.f32.mrb[147].mxu1 }
 0x618   : > { %2914 = vst [vmem:[%s6066_s8 + $0x20] sm:$0xff] %v2852_v19  ;;  %v3883_v3 = vadd.f32 %v3882_v12, %v3881_v1 }
 0x61a   : > { %v2857_v61 = vadd.f32 %v3883_v3, %v6031_v14  ;;  %v3884_v26 = vpop.f32.mrb[148].mxu1 }
 0x61b   : > { %v3885_v25 = vpop.f32.mrb[149].mxu1 }
 0x61c   : > { %2915 = vst [vmem:[%s6066_s8 + $0x28] sm:$0xff] %v2857_v61  ;;  %v3886_v8 = vadd.f32 %v3885_v25, %v3884_v26 }
 0x61e   : > { %v2862_v33 = vadd.f32 %v3886_v8, %v6034_v36  ;;  %v3887_v7 = vpop.f32.mrb[150].mxu1 }
 0x61f   : > { %v3888_v2 = vpop.f32.mrb[151].mxu1 }
 0x620   : > { %2916 = vst [vmem:[%s6066_s8 + $0x30] sm:$0xff] %v2862_v33  ;;  %v3889_v45 = vadd.f32 %v3888_v2, %v3887_v7 }
 0x622   : > { %v2867_v57 = vadd.f32 %v3889_v45, %v6037_v37  ;;  %v3890_v47 = vpop.f32.mrb[152].mxu1 }
 0x623   : > { %v3891_v24 = vpop.f32.mrb[153].mxu1 }
 0x624   : > { %2917 = vst [vmem:[%s6066_s8 + $0x38] sm:$0xff] %v2867_v57  ;;  %v3892_v27 = vadd.f32 %v3891_v24, %v3890_v47 }
 0x626   : > { %v2872_v14 = vadd.f32 %v3892_v27, %v6040_v30  ;;  %v3893_v44 = vpop.f32.mrb[154].mxu1 }
 0x627   : > { %v3894_v10 = vpop.f32.mrb[155].mxu1 }
 0x628   : > { %2918 = vst [vmem:[%s6066_s8 + $0x40] sm:$0xff] %v2872_v14  ;;  %v3895_v15 = vadd.f32 %v3894_v10, %v3893_v44 }
 0x62a   : > { %v2877_v36 = vadd.f32 %v3895_v15, %v6043_v51  ;;  %v3896_v4 = vpop.f32.mrb[156].mxu1 }
 0x62b   : > { %v3897_v40 = vpop.f32.mrb[157].mxu1 }
 0x62c   : > { %2919 = vst [vmem:[%s6066_s8 + $0x48] sm:$0xff] %v2877_v36  ;;  %v3898_v53 = vadd.f32 %v3897_v40, %v3896_v4 }
 0x62e   : > { %v2882_v37 = vadd.f32 %v3898_v53, %v6046_v28  ;;  %v3899_v41 = vpop.f32.mrb[158].mxu1 }
 0x62f   : > { %v3900_v42 = vpop.f32.mrb[159].mxu1 }
 0x630   : > { %2920 = vst [vmem:[%s6066_s8 + $0x50] sm:$0xff] %v2882_v37  ;;  %v3901_v34 = vadd.f32 %v3900_v42, %v3899_v41 }
 0x632   : > { %v2887_v30 = vadd.f32 %v3901_v34, %v6049_v58  ;;  %v3902_v59 = vpop.f32.mrb[160].mxu1 }
 0x633   : > { %v3903_v63 = vpop.f32.mrb[161].mxu1 }
 0x634   : > { %2921 = vst [vmem:[%s6066_s8 + $0x58] sm:$0xff] %v2887_v30  ;;  %v3904_v51 = vadd.f32 %v3903_v63, %v3902_v59 }
 0x636   : > { %v2892_v0 = vadd.f32 %v3904_v51, %v6052_v18  ;;  %v3905_v16 = vpop.f32.mrb[162].mxu1 }
 0x637   : > { %v3906_v56 = vpop.f32.mrb[163].mxu1 }
 0x638   : > { %2922 = vst [vmem:[%s6066_s8 + $0x60] sm:$0xff] %v2892_v0  ;;  %v3907_v28 = vadd.f32 %v3906_v56, %v3905_v16 }
 0x63a   : > { %v2897_v43 = vadd.f32 %v3907_v28, %v6055_v49  ;;  %v3908_v50 = vpop.f32.mrb[164].mxu1 }
 0x63b   : > { %v3909_v32 = vpop.f32.mrb[165].mxu1 }
 0x63c   : > { %2923 = vst [vmem:[%s6066_s8 + $0x68] sm:$0xff] %v2897_v43  ;;  %v3910_v58 = vadd.f32 %v3909_v32, %v3908_v50 }
 0x63e   : > { %v2902_v21 = vadd.f32 %v3910_v58, %v6058_v38  ;;  %v3911_v23 = vpop.f32.mrb[166].mxu1 }
 0x63f   : > { %v3912_v20 = vpop.f32.mrb[167].mxu1 }
 0x640   : > { %2924 = vst [vmem:[%s6066_s8 + $0x70] sm:$0xff] %v2902_v21  ;;  %v3913_v18 = vadd.f32 %v3912_v20, %v3911_v23 }
 0x642   : > { %v2907_v49 = vadd.f32 %v3913_v18, %v6061_v11 }
 0x644   : > { %2925 = vst [vmem:[%s6066_s8 + $0x78] sm:$0xff] %v2907_v49 }
 0x645   : > { %4820 = shalt.err (!%p4817_p8)
}
 0x646   : > { %s4821_s11 = scalar_lea.hbm %s6102_s13, 2048  ;;  %s4825_s8 = scalar_lea.hbm %s6157_s7, 4096 }
 0x647   : > { %p4822_p4 = scmp.ne.s32.totalorder %s6102_s13, %s4821_s11  ;;  %p4826_p3 = scmp.lt.u32.totalorder %s6102_s13, %s6157_s7 }
 0x648   : > { %p4827_p5 = scmp.lt.u32.totalorder %s4825_s8, %s4821_s11  ;;  %p4829_p6 = scmp.lt.u32.totalorder %s4821_s11, %s6102_s13 }
 0x649   : > { %p4823_p10 = pnand %p4822_p4, %p6283_p9 }
 0x64a   : > { %p4828_p7 = por %p4827_p5, %p4826_p3 }
 0x64b   : > { %p4824_p11 = pneg %p4823_p10 }
 0x64c   : > { %p4830_p12 = por %p4829_p6, %p4828_p7 }
 0x64e   : > { %p4831_p1 = pnand %p4830_p12, %p4824_p11 }
 0x650   : > { %4834 = shalt.err (!%p4831_p1)
}
 0x651   : > { %s4897_s9 = smov 128   ;;  %s4898_s10 = smov 8  }
 0x652   : > { %4508 = dma.vmem_to_hbm [thread:$0]  (%p6283_p9), %s6104_s28, 2048, %s6102_s13, %s2927_s20, %s4897_s9, %s4897_s9, %s4898_s10  }
 0x653 PF: > { %s2955_s30 = sand.u32 1, %s4873_s24   ;;  %p6284_p13 = scmp.ne.s32.totalorder %s6197_s18, 0 }
 0x654   : > { %p6285_p0 = scmp.ge.s32.totalorder %s4885_s27, 2  ;;  %s2956_s21 = scalar_lea.sflag [#allocation5], %s2955_s30 }
 0x656   : > { %p4534_p2 = pnand %p6285_p0, %p6284_p13 }
 0x658   : > { %4868 = dma.done.wait (!%p4534_p2), %s2956_s21, 2048  }
 0x659   : > { %4870 = vsyncadd (!%p4534_p2), %s2956_s21, 4294965248  ;;  %p23_p8 = scmp.ge.s32.totalorder %s5133_s19, 4   ;;  %s6286_s24 = smov %s4877_s25 }
 0x65a   : > { %s6287_s25 = smov %s4881_s26  ;;  %s6288_s26 = smov %s5144_s12 }
 0x65b   : > { %s6289_s27 = smov %s5133_s19  ;;  %25 = sbr.rel (!%p23_p8) target bundleno = 8 (0x8), region = 117 }
 0x662   :  { %2961 = vsyncpa [#allocation4], 1 }
 0x663   :  { %2963 = vsyncpa [#allocation4 + $0x1], 1 }
 0x664   :  { %2964 = vsyncpa [#allocation7], 1 }
 0x665   :  { %2965 = vsyncpa [#allocation10], 1 }
 0x666   :  { %2966 = vsyncpa [#allocation13], 1 }
 0x667   :  { %2967 = vsyncpa [#allocation5], 1 }
 0x668   :  { %2969 = vsyncpa [#allocation5 + $0x1], 1 }

</bundles_post_ra>
